<compile_context>
chip_gen: v6e
topology: v6e:2x2x1
jax: 0.10.0
libtpu: 0.0.40
codegen_flags: <defaults>
</compile_context>

<pallas_src>
import jax
import jax.numpy as jnp
from jax.experimental import pallas as pl
from jax.experimental.pallas import tpu as pltpu


# Packed-small-param row layout (width = A*H, H-sized rows left-padded with zeros):
#   0: conv bias bc        (A*H)
#   1: mlp bias b1         (A*H)
#   2: mlp bias b2         (H)
#   3: norms[l] gamma      (H)
#   4: norms[l] beta       (H)
#   5: normsbis[l] gamma   (H)
#   6: normsbis[l] beta    (H)
#   7: norm1 gamma         (H)   (only consumed before layer 0)
#   8: norm1 beta          (H)   (only consumed before layer 0)
#   9..15: padding to a full (16, 128) tile
PV_ROWS = 16


def _layernorm(x, gamma, beta, eps=1e-5):
    mu = jnp.mean(x, axis=-1, keepdims=True)
    var = jnp.mean((x - mu) ** 2, axis=-1, keepdims=True)
    return (x - mu) * jax.lax.rsqrt(var + eps) * gamma + beta


# -----------------------------------------------------------------------------
# Fused Pallas kernel: whole forward (norm1 + all layers) in one invocation.
# All refs are whole arrays resident in VMEM; layers unrolled statically.
# -----------------------------------------------------------------------------
def gnn_flat_kernel(adj_ref, x_ref, wc_ref, w1_ref, w2_ref, pv_ref, out_ref):
    H = out_ref.shape[1]
    L = wc_ref.shape[0]

    adj = adj_ref[...]                      # (N, N) bf16, resident for all layers

    # features = norm1(features)
    pv0 = pv_ref[0]                         # (PV_ROWS, A*H) f32
    feat = _layernorm(x_ref[...], pv0[7, :H], pv0[8, :H])   # (N, H) f32

    for l in range(L):                      # static unroll; L is small
        pv = pv_ref[l]

        # GraphConv, reassociated: adj @ (x @ Wc) == (adj @ x) @ Wc.
        # The N^2 aggregation contracts over H instead of A*H.  Bias bc can
        # stay after aggregation because adj is row-normalized.
        agg = jnp.dot(adj, feat.astype(jnp.bfloat16),
                      preferred_element_type=jnp.float32)               # (N, H)
        y = jnp.dot(agg.astype(jnp.bfloat16), wc_ref[l],
                    preferred_element_type=jnp.float32) + pv[0, :]      # (N, A*H)

        # MLP: (A*H -> A*H) relu, (A*H -> H)
        h = jnp.dot(y.astype(jnp.bfloat16), w1_ref[l],
                    preferred_element_type=jnp.float32) + pv[1, :]
        h = jnp.maximum(h, 0.0)
        f = jnp.dot(h.astype(jnp.bfloat16), w2_ref[l],
                    preferred_element_type=jnp.float32) + pv[2, :H]     # (N, H)

        f = _layernorm(f, pv[3, :H], pv[4, :H])   # norms[layer]
        f = f + feat                              # residual (prev[:, :H] == prev)
        f = _layernorm(f, pv[5, :H], pv[6, :H])   # normsbis[layer]
        feat = f

    out_ref[...] = feat


# -----------------------------------------------------------------------------
# Wrapper
# -----------------------------------------------------------------------------
def gnn_flat_forward(adj, features, params):
    """GnnFlat.forward with layer_pooling='last', normalize=True, residual=True, rwpe_k=0."""
    N, H = features.shape
    L, _, AH = params["wc"].shape

    # Advisory cost estimate for XLA scheduling around the fused call.
    flops = L * (2 * N * N * H + 2 * N * H * AH + 2 * N * AH * AH + 2 * N * AH * H)
    transcendentals = (2 * L + 1) * N          # one rsqrt per node per LayerNorm
    bytes_accessed = (adj.size * adj.dtype.itemsize
                      + features.size * 4
                      + params["wc"].size * 2 + params["w1"].size * 2
                      + params["w2"].size * 2 + params["pv"].size * 4
                      + N * H * 4)

    fused = pl.pallas_call(
        gnn_flat_kernel,
        out_shape=jax.ShapeDtypeStruct((N, H), jnp.float32),
        cost_estimate=pl.CostEstimate(flops=flops,
                                      transcendentals=transcendentals,
                                      bytes_accessed=bytes_accessed),
        compiler_params=pltpu.CompilerParams(vmem_limit_bytes=32 * 1024 * 1024),
    )
    return fused(adj, features, params["wc"], params["w1"], params["w2"],
                 params["pv"])


# -----------------------------------------------------------------------------
# Deterministic parameter / input construction
# -----------------------------------------------------------------------------
def make_params(key, hidden_dim, n_heads, n_layers):
    H, AH = hidden_dim, hidden_dim * n_heads
    keys = jax.random.split(key, 3 * n_layers)
    wc, w1, w2, pv = [], [], [], []
    for l in range(n_layers):
        k0, k1, k2 = keys[3 * l], keys[3 * l + 1], keys[3 * l + 2]
        wc.append(jax.random.normal(k0, (H, AH), jnp.float32) / jnp.sqrt(H))
        w1.append(jax.random.normal(k1, (AH, AH), jnp.float32) / jnp.sqrt(AH))
        w2.append(jax.random.normal(k2, (AH, H), jnp.float32) / jnp.sqrt(AH))
        rows = jnp.zeros((PV_ROWS, AH), jnp.float32)
        rows = rows.at[3, :H].set(1.0)   # norms[l] gamma
        rows = rows.at[5, :H].set(1.0)   # normsbis[l] gamma
        rows = rows.at[7, :H].set(1.0)   # norm1 gamma (only read before layer 0)
        # biases / betas stay zero
        pv.append(rows)
    return {
        "wc": jnp.stack(wc).astype(jnp.bfloat16),
        "w1": jnp.stack(w1).astype(jnp.bfloat16),
        "w2": jnp.stack(w2).astype(jnp.bfloat16),
        "pv": jnp.stack(pv),  # f32
    }


def make_ring_adjacency(n_nodes):
    # deterministic ring graph + self loops, row-normalized (row-stochastic)
    adj = jnp.eye(n_nodes, dtype=jnp.float32)
    idx = jnp.arange(n_nodes)
    adj = adj.at[idx, (idx + 1) % n_nodes].set(1.0)
    adj = adj.at[idx, (idx - 1) % n_nodes].set(1.0)
    adj = adj / jnp.sum(adj, axis=-1, keepdims=True)
    return adj


# -----------------------------------------------------------------------------
if __name__ == "__main__":
    N_NODES = 256              # full 256-row node tile for the v6e/v7x 256^2 MXU
    HIDDEN_DIM = 32            # hidden_dim_features_extractor
    N_HEADS = 4                # n_attention_heads  -> A*H = 128
    N_LAYERS = 3               # n_layers_features_extractor

    key = jax.random.PRNGKey(0)
    k_feat, k_par = jax.random.split(key)

    features = jax.random.normal(k_feat, (N_NODES, HIDDEN_DIM), jnp.float32)
    adj = make_ring_adjacency(N_NODES).astype(jnp.bfloat16)
    params = make_params(k_par, HIDDEN_DIM, N_HEADS, N_LAYERS)

    out = gnn_flat_forward(adj, features, params)
    out = jax.block_until_ready(out)

    assert out.shape == (N_NODES, HIDDEN_DIM)
    assert bool(jnp.all(jnp.isfinite(out)))
    print("KERNEL_OK")
</pallas_src>

<mosaic_0001>
module attributes {stable_mosaic.version = 11 : i64} {
  func.func @gnn_flat_kernel(%arg0: memref<256x256xbf16, #tpu.memory_space<vmem>>, %arg1: memref<256x32xf32, #tpu.memory_space<vmem>>, %arg2: memref<3x32x128xbf16, #tpu.memory_space<vmem>>, %arg3: memref<3x128x128xbf16, #tpu.memory_space<vmem>>, %arg4: memref<3x128x32xbf16, #tpu.memory_space<vmem>>, %arg5: memref<3x16x128xf32, #tpu.memory_space<vmem>>, %arg6: memref<256x32xf32, #tpu.memory_space<vmem>>) attributes {dimension_semantics = [], scalar_prefetch = 0 : i64, scratch_operands = 0 : i64, tpu.core_type = #tpu.core_type<tc>} {
    %c0 = arith.constant 0 : index
    %c0_0 = arith.constant 0 : index
    %0 = vector.load %arg0[%c0, %c0_0] : memref<256x256xbf16, #tpu.memory_space<vmem>>, vector<256x256xbf16>
    %c0_1 = arith.constant 0 : index
    %c0_2 = arith.constant 0 : index
    %c0_3 = arith.constant 0 : index
    %1 = vector.load %arg5[%c0_1, %c0_2, %c0_3] : memref<3x16x128xf32, #tpu.memory_space<vmem>>, vector<1x16x128xf32>
    %2 = vector.shape_cast %1 : vector<1x16x128xf32> to vector<16x128xf32>
    %c0_4 = arith.constant 0 : index
    %c0_5 = arith.constant 0 : index
    %3 = vector.load %arg1[%c0_4, %c0_5] : memref<256x32xf32, #tpu.memory_space<vmem>>, vector<256x32xf32>
    %4 = vector.extract_strided_slice %2 {offsets = [7, 0], sizes = [1, 32], strides = [1, 1]} : vector<16x128xf32> to vector<1x32xf32>
    %5 = vector.shape_cast %4 : vector<1x32xf32> to vector<32xf32>
    %6 = vector.extract_strided_slice %2 {offsets = [8, 0], sizes = [1, 32], strides = [1, 1]} : vector<16x128xf32> to vector<1x32xf32>
    %7 = vector.shape_cast %6 : vector<1x32xf32> to vector<32xf32>
    %cst = arith.constant dense<0.000000e+00> : vector<256xf32>
    %8 = vector.multi_reduction <add>, %3, %cst [1] : vector<256x32xf32> to vector<256xf32>
    %9 = vector.shape_cast %8 : vector<256xf32> to vector<256x1xf32>
    %cst_6 = arith.constant 3.200000e+01 : f32
    %10 = vector.broadcast %cst_6 : f32 to vector<256x1xf32>
    %11 = arith.divf %9, %10 : vector<256x1xf32>
    %12 = vector.broadcast %11 : vector<256x1xf32> to vector<256x32xf32>
    %13 = arith.subf %3, %12 : vector<256x32xf32>
    %14 = arith.mulf %13, %13 : vector<256x32xf32>
    %cst_7 = arith.constant dense<0.000000e+00> : vector<256xf32>
    %15 = vector.multi_reduction <add>, %14, %cst_7 [1] : vector<256x32xf32> to vector<256xf32>
    %16 = vector.shape_cast %15 : vector<256xf32> to vector<256x1xf32>
    %cst_8 = arith.constant 3.200000e+01 : f32
    %17 = vector.broadcast %cst_8 : f32 to vector<256x1xf32>
    %18 = arith.divf %16, %17 : vector<256x1xf32>
    %19 = vector.broadcast %11 : vector<256x1xf32> to vector<256x32xf32>
    %20 = arith.subf %3, %19 : vector<256x32xf32>
    %cst_9 = arith.constant 9.99999974E-6 : f32
    %21 = vector.broadcast %cst_9 : f32 to vector<256x1xf32>
    %22 = arith.addf %18, %21 : vector<256x1xf32>
    %23 = math.rsqrt %22 : vector<256x1xf32>
    %24 = vector.broadcast %23 : vector<256x1xf32> to vector<256x32xf32>
    %25 = arith.mulf %20, %24 : vector<256x32xf32>
    %26 = vector.shape_cast %5 : vector<32xf32> to vector<1x32xf32>
    %27 = vector.broadcast %26 : vector<1x32xf32> to vector<256x32xf32>
    %28 = arith.mulf %25, %27 : vector<256x32xf32>
    %29 = vector.shape_cast %7 : vector<32xf32> to vector<1x32xf32>
    %30 = vector.broadcast %29 : vector<1x32xf32> to vector<256x32xf32>
    %31 = arith.addf %28, %30 : vector<256x32xf32>
    %c0_10 = arith.constant 0 : index
    %c0_11 = arith.constant 0 : index
    %c0_12 = arith.constant 0 : index
    %32 = vector.load %arg5[%c0_10, %c0_11, %c0_12] : memref<3x16x128xf32, #tpu.memory_space<vmem>>, vector<1x16x128xf32>
    %33 = vector.shape_cast %32 : vector<1x16x128xf32> to vector<16x128xf32>
    %34 = arith.truncf %31 : vector<256x32xf32> to vector<256x32xbf16>
    %cst_13 = arith.constant dense<0.000000e+00> : vector<256x32xf32>
    %35 = tpu.matmul %0, %34, %cst_13 {dimension_numbers = #tpu.dot_dimension_numbers<[1], [0], [0], [1], [0, 0, 1, 1], [], []>} : vector<256x256xbf16>, vector<256x32xbf16>, vector<256x32xf32> -> vector<256x32xf32>
    %36 = arith.truncf %35 : vector<256x32xf32> to vector<256x32xbf16>
    %c0_14 = arith.constant 0 : index
    %c0_15 = arith.constant 0 : index
    %c0_16 = arith.constant 0 : index
    %37 = vector.load %arg2[%c0_14, %c0_15, %c0_16] : memref<3x32x128xbf16, #tpu.memory_space<vmem>>, vector<1x32x128xbf16>
    %38 = vector.shape_cast %37 : vector<1x32x128xbf16> to vector<32x128xbf16>
    %cst_17 = arith.constant dense<0.000000e+00> : vector<256x128xf32>
    %39 = tpu.matmul %36, %38, %cst_17 {dimension_numbers = #tpu.dot_dimension_numbers<[1], [0], [0], [1], [0, 0, 1, 1], [], []>} : vector<256x32xbf16>, vector<32x128xbf16>, vector<256x128xf32> -> vector<256x128xf32>
    %40 = vector.extract_strided_slice %33 {offsets = [0, 0], sizes = [1, 128], strides = [1, 1]} : vector<16x128xf32> to vector<1x128xf32>
    %41 = vector.shape_cast %40 : vector<1x128xf32> to vector<128xf32>
    %42 = vector.shape_cast %41 : vector<128xf32> to vector<1x128xf32>
    %43 = vector.broadcast %42 : vector<1x128xf32> to vector<256x128xf32>
    %44 = arith.addf %39, %43 : vector<256x128xf32>
    %45 = arith.truncf %44 : vector<256x128xf32> to vector<256x128xbf16>
    %c0_18 = arith.constant 0 : index
    %c0_19 = arith.constant 0 : index
    %c0_20 = arith.constant 0 : index
    %46 = vector.load %arg3[%c0_18, %c0_19, %c0_20] : memref<3x128x128xbf16, #tpu.memory_space<vmem>>, vector<1x128x128xbf16>
    %47 = vector.shape_cast %46 : vector<1x128x128xbf16> to vector<128x128xbf16>
    %cst_21 = arith.constant dense<0.000000e+00> : vector<256x128xf32>
    %48 = tpu.matmul %45, %47, %cst_21 {dimension_numbers = #tpu.dot_dimension_numbers<[1], [0], [0], [1], [0, 0, 1, 1], [], []>} : vector<256x128xbf16>, vector<128x128xbf16>, vector<256x128xf32> -> vector<256x128xf32>
    %49 = vector.extract_strided_slice %33 {offsets = [1, 0], sizes = [1, 128], strides = [1, 1]} : vector<16x128xf32> to vector<1x128xf32>
    %50 = vector.shape_cast %49 : vector<1x128xf32> to vector<128xf32>
    %51 = vector.shape_cast %50 : vector<128xf32> to vector<1x128xf32>
    %52 = vector.broadcast %51 : vector<1x128xf32> to vector<256x128xf32>
    %53 = arith.addf %48, %52 : vector<256x128xf32>
    %cst_22 = arith.constant 0.000000e+00 : f32
    %54 = vector.broadcast %cst_22 : f32 to vector<256x128xf32>
    %55 = arith.maximumf %53, %54 : vector<256x128xf32>
    %56 = arith.truncf %55 : vector<256x128xf32> to vector<256x128xbf16>
    %c0_23 = arith.constant 0 : index
    %c0_24 = arith.constant 0 : index
    %c0_25 = arith.constant 0 : index
    %57 = vector.load %arg4[%c0_23, %c0_24, %c0_25] : memref<3x128x32xbf16, #tpu.memory_space<vmem>>, vector<1x128x32xbf16>
    %58 = vector.shape_cast %57 : vector<1x128x32xbf16> to vector<128x32xbf16>
    %cst_26 = arith.constant dense<0.000000e+00> : vector<256x32xf32>
    %59 = tpu.matmul %56, %58, %cst_26 {dimension_numbers = #tpu.dot_dimension_numbers<[1], [0], [0], [1], [0, 0, 1, 1], [], []>} : vector<256x128xbf16>, vector<128x32xbf16>, vector<256x32xf32> -> vector<256x32xf32>
    %60 = vector.extract_strided_slice %33 {offsets = [2, 0], sizes = [1, 32], strides = [1, 1]} : vector<16x128xf32> to vector<1x32xf32>
    %61 = vector.shape_cast %60 : vector<1x32xf32> to vector<32xf32>
    %62 = vector.shape_cast %61 : vector<32xf32> to vector<1x32xf32>
    %63 = vector.broadcast %62 : vector<1x32xf32> to vector<256x32xf32>
    %64 = arith.addf %59, %63 : vector<256x32xf32>
    %65 = vector.extract_strided_slice %33 {offsets = [3, 0], sizes = [1, 32], strides = [1, 1]} : vector<16x128xf32> to vector<1x32xf32>
    %66 = vector.shape_cast %65 : vector<1x32xf32> to vector<32xf32>
    %67 = vector.extract_strided_slice %33 {offsets = [4, 0], sizes = [1, 32], strides = [1, 1]} : vector<16x128xf32> to vector<1x32xf32>
    %68 = vector.shape_cast %67 : vector<1x32xf32> to vector<32xf32>
    %cst_27 = arith.constant dense<0.000000e+00> : vector<256xf32>
    %69 = vector.multi_reduction <add>, %64, %cst_27 [1] : vector<256x32xf32> to vector<256xf32>
    %70 = vector.shape_cast %69 : vector<256xf32> to vector<256x1xf32>
    %cst_28 = arith.constant 3.200000e+01 : f32
    %71 = vector.broadcast %cst_28 : f32 to vector<256x1xf32>
    %72 = arith.divf %70, %71 : vector<256x1xf32>
    %73 = vector.broadcast %72 : vector<256x1xf32> to vector<256x32xf32>
    %74 = arith.subf %64, %73 : vector<256x32xf32>
    %75 = arith.mulf %74, %74 : vector<256x32xf32>
    %cst_29 = arith.constant dense<0.000000e+00> : vector<256xf32>
    %76 = vector.multi_reduction <add>, %75, %cst_29 [1] : vector<256x32xf32> to vector<256xf32>
    %77 = vector.shape_cast %76 : vector<256xf32> to vector<256x1xf32>
    %cst_30 = arith.constant 3.200000e+01 : f32
    %78 = vector.broadcast %cst_30 : f32 to vector<256x1xf32>
    %79 = arith.divf %77, %78 : vector<256x1xf32>
    %80 = vector.broadcast %72 : vector<256x1xf32> to vector<256x32xf32>
    %81 = arith.subf %64, %80 : vector<256x32xf32>
    %cst_31 = arith.constant 9.99999974E-6 : f32
    %82 = vector.broadcast %cst_31 : f32 to vector<256x1xf32>
    %83 = arith.addf %79, %82 : vector<256x1xf32>
    %84 = math.rsqrt %83 : vector<256x1xf32>
    %85 = vector.broadcast %84 : vector<256x1xf32> to vector<256x32xf32>
    %86 = arith.mulf %81, %85 : vector<256x32xf32>
    %87 = vector.shape_cast %66 : vector<32xf32> to vector<1x32xf32>
    %88 = vector.broadcast %87 : vector<1x32xf32> to vector<256x32xf32>
    %89 = arith.mulf %86, %88 : vector<256x32xf32>
    %90 = vector.shape_cast %68 : vector<32xf32> to vector<1x32xf32>
    %91 = vector.broadcast %90 : vector<1x32xf32> to vector<256x32xf32>
    %92 = arith.addf %89, %91 : vector<256x32xf32>
    %93 = arith.addf %92, %31 : vector<256x32xf32>
    %94 = vector.extract_strided_slice %33 {offsets = [5, 0], sizes = [1, 32], strides = [1, 1]} : vector<16x128xf32> to vector<1x32xf32>
    %95 = vector.shape_cast %94 : vector<1x32xf32> to vector<32xf32>
    %96 = vector.extract_strided_slice %33 {offsets = [6, 0], sizes = [1, 32], strides = [1, 1]} : vector<16x128xf32> to vector<1x32xf32>
    %97 = vector.shape_cast %96 : vector<1x32xf32> to vector<32xf32>
    %cst_32 = arith.constant dense<0.000000e+00> : vector<256xf32>
    %98 = vector.multi_reduction <add>, %93, %cst_32 [1] : vector<256x32xf32> to vector<256xf32>
    %99 = vector.shape_cast %98 : vector<256xf32> to vector<256x1xf32>
    %cst_33 = arith.constant 3.200000e+01 : f32
    %100 = vector.broadcast %cst_33 : f32 to vector<256x1xf32>
    %101 = arith.divf %99, %100 : vector<256x1xf32>
    %102 = vector.broadcast %101 : vector<256x1xf32> to vector<256x32xf32>
    %103 = arith.subf %93, %102 : vector<256x32xf32>
    %104 = arith.mulf %103, %103 : vector<256x32xf32>
    %cst_34 = arith.constant dense<0.000000e+00> : vector<256xf32>
    %105 = vector.multi_reduction <add>, %104, %cst_34 [1] : vector<256x32xf32> to vector<256xf32>
    %106 = vector.shape_cast %105 : vector<256xf32> to vector<256x1xf32>
    %cst_35 = arith.constant 3.200000e+01 : f32
    %107 = vector.broadcast %cst_35 : f32 to vector<256x1xf32>
    %108 = arith.divf %106, %107 : vector<256x1xf32>
    %109 = vector.broadcast %101 : vector<256x1xf32> to vector<256x32xf32>
    %110 = arith.subf %93, %109 : vector<256x32xf32>
    %cst_36 = arith.constant 9.99999974E-6 : f32
    %111 = vector.broadcast %cst_36 : f32 to vector<256x1xf32>
    %112 = arith.addf %108, %111 : vector<256x1xf32>
    %113 = math.rsqrt %112 : vector<256x1xf32>
    %114 = vector.broadcast %113 : vector<256x1xf32> to vector<256x32xf32>
    %115 = arith.mulf %110, %114 : vector<256x32xf32>
    %116 = vector.shape_cast %95 : vector<32xf32> to vector<1x32xf32>
    %117 = vector.broadcast %116 : vector<1x32xf32> to vector<256x32xf32>
    %118 = arith.mulf %115, %117 : vector<256x32xf32>
    %119 = vector.shape_cast %97 : vector<32xf32> to vector<1x32xf32>
    %120 = vector.broadcast %119 : vector<1x32xf32> to vector<256x32xf32>
    %121 = arith.addf %118, %120 : vector<256x32xf32>
    %c1 = arith.constant 1 : index
    %c0_37 = arith.constant 0 : index
    %c0_38 = arith.constant 0 : index
    %122 = vector.load %arg5[%c1, %c0_37, %c0_38] : memref<3x16x128xf32, #tpu.memory_space<vmem>>, vector<1x16x128xf32>
    %123 = vector.shape_cast %122 : vector<1x16x128xf32> to vector<16x128xf32>
    %124 = arith.truncf %121 : vector<256x32xf32> to vector<256x32xbf16>
    %cst_39 = arith.constant dense<0.000000e+00> : vector<256x32xf32>
    %125 = tpu.matmul %0, %124, %cst_39 {dimension_numbers = #tpu.dot_dimension_numbers<[1], [0], [0], [1], [0, 0, 1, 1], [], []>} : vector<256x256xbf16>, vector<256x32xbf16>, vector<256x32xf32> -> vector<256x32xf32>
    %126 = arith.truncf %125 : vector<256x32xf32> to vector<256x32xbf16>
    %c1_40 = arith.constant 1 : index
    %c0_41 = arith.constant 0 : index
    %c0_42 = arith.constant 0 : index
    %127 = vector.load %arg2[%c1_40, %c0_41, %c0_42] : memref<3x32x128xbf16, #tpu.memory_space<vmem>>, vector<1x32x128xbf16>
    %128 = vector.shape_cast %127 : vector<1x32x128xbf16> to vector<32x128xbf16>
    %cst_43 = arith.constant dense<0.000000e+00> : vector<256x128xf32>
    %129 = tpu.matmul %126, %128, %cst_43 {dimension_numbers = #tpu.dot_dimension_numbers<[1], [0], [0], [1], [0, 0, 1, 1], [], []>} : vector<256x32xbf16>, vector<32x128xbf16>, vector<256x128xf32> -> vector<256x128xf32>
    %130 = vector.extract_strided_slice %123 {offsets = [0, 0], sizes = [1, 128], strides = [1, 1]} : vector<16x128xf32> to vector<1x128xf32>
    %131 = vector.shape_cast %130 : vector<1x128xf32> to vector<128xf32>
    %132 = vector.shape_cast %131 : vector<128xf32> to vector<1x128xf32>
    %133 = vector.broadcast %132 : vector<1x128xf32> to vector<256x128xf32>
    %134 = arith.addf %129, %133 : vector<256x128xf32>
    %135 = arith.truncf %134 : vector<256x128xf32> to vector<256x128xbf16>
    %c1_44 = arith.constant 1 : index
    %c0_45 = arith.constant 0 : index
    %c0_46 = arith.constant 0 : index
    %136 = vector.load %arg3[%c1_44, %c0_45, %c0_46] : memref<3x128x128xbf16, #tpu.memory_space<vmem>>, vector<1x128x128xbf16>
    %137 = vector.shape_cast %136 : vector<1x128x128xbf16> to vector<128x128xbf16>
    %cst_47 = arith.constant dense<0.000000e+00> : vector<256x128xf32>
    %138 = tpu.matmul %135, %137, %cst_47 {dimension_numbers = #tpu.dot_dimension_numbers<[1], [0], [0], [1], [0, 0, 1, 1], [], []>} : vector<256x128xbf16>, vector<128x128xbf16>, vector<256x128xf32> -> vector<256x128xf32>
    %139 = vector.extract_strided_slice %123 {offsets = [1, 0], sizes = [1, 128], strides = [1, 1]} : vector<16x128xf32> to vector<1x128xf32>
    %140 = vector.shape_cast %139 : vector<1x128xf32> to vector<128xf32>
    %141 = vector.shape_cast %140 : vector<128xf32> to vector<1x128xf32>
    %142 = vector.broadcast %141 : vector<1x128xf32> to vector<256x128xf32>
    %143 = arith.addf %138, %142 : vector<256x128xf32>
    %cst_48 = arith.constant 0.000000e+00 : f32
    %144 = vector.broadcast %cst_48 : f32 to vector<256x128xf32>
    %145 = arith.maximumf %143, %144 : vector<256x128xf32>
    %146 = arith.truncf %145 : vector<256x128xf32> to vector<256x128xbf16>
    %c1_49 = arith.constant 1 : index
    %c0_50 = arith.constant 0 : index
    %c0_51 = arith.constant 0 : index
    %147 = vector.load %arg4[%c1_49, %c0_50, %c0_51] : memref<3x128x32xbf16, #tpu.memory_space<vmem>>, vector<1x128x32xbf16>
    %148 = vector.shape_cast %147 : vector<1x128x32xbf16> to vector<128x32xbf16>
    %cst_52 = arith.constant dense<0.000000e+00> : vector<256x32xf32>
    %149 = tpu.matmul %146, %148, %cst_52 {dimension_numbers = #tpu.dot_dimension_numbers<[1], [0], [0], [1], [0, 0, 1, 1], [], []>} : vector<256x128xbf16>, vector<128x32xbf16>, vector<256x32xf32> -> vector<256x32xf32>
    %150 = vector.extract_strided_slice %123 {offsets = [2, 0], sizes = [1, 32], strides = [1, 1]} : vector<16x128xf32> to vector<1x32xf32>
    %151 = vector.shape_cast %150 : vector<1x32xf32> to vector<32xf32>
    %152 = vector.shape_cast %151 : vector<32xf32> to vector<1x32xf32>
    %153 = vector.broadcast %152 : vector<1x32xf32> to vector<256x32xf32>
    %154 = arith.addf %149, %153 : vector<256x32xf32>
    %155 = vector.extract_strided_slice %123 {offsets = [3, 0], sizes = [1, 32], strides = [1, 1]} : vector<16x128xf32> to vector<1x32xf32>
    %156 = vector.shape_cast %155 : vector<1x32xf32> to vector<32xf32>
    %157 = vector.extract_strided_slice %123 {offsets = [4, 0], sizes = [1, 32], strides = [1, 1]} : vector<16x128xf32> to vector<1x32xf32>
    %158 = vector.shape_cast %157 : vector<1x32xf32> to vector<32xf32>
    %cst_53 = arith.constant dense<0.000000e+00> : vector<256xf32>
    %159 = vector.multi_reduction <add>, %154, %cst_53 [1] : vector<256x32xf32> to vector<256xf32>
    %160 = vector.shape_cast %159 : vector<256xf32> to vector<256x1xf32>
    %cst_54 = arith.constant 3.200000e+01 : f32
    %161 = vector.broadcast %cst_54 : f32 to vector<256x1xf32>
    %162 = arith.divf %160, %161 : vector<256x1xf32>
    %163 = vector.broadcast %162 : vector<256x1xf32> to vector<256x32xf32>
    %164 = arith.subf %154, %163 : vector<256x32xf32>
    %165 = arith.mulf %164, %164 : vector<256x32xf32>
    %cst_55 = arith.constant dense<0.000000e+00> : vector<256xf32>
    %166 = vector.multi_reduction <add>, %165, %cst_55 [1] : vector<256x32xf32> to vector<256xf32>
    %167 = vector.shape_cast %166 : vector<256xf32> to vector<256x1xf32>
    %cst_56 = arith.constant 3.200000e+01 : f32
    %168 = vector.broadcast %cst_56 : f32 to vector<256x1xf32>
    %169 = arith.divf %167, %168 : vector<256x1xf32>
    %170 = vector.broadcast %162 : vector<256x1xf32> to vector<256x32xf32>
    %171 = arith.subf %154, %170 : vector<256x32xf32>
    %cst_57 = arith.constant 9.99999974E-6 : f32
    %172 = vector.broadcast %cst_57 : f32 to vector<256x1xf32>
    %173 = arith.addf %169, %172 : vector<256x1xf32>
    %174 = math.rsqrt %173 : vector<256x1xf32>
    %175 = vector.broadcast %174 : vector<256x1xf32> to vector<256x32xf32>
    %176 = arith.mulf %171, %175 : vector<256x32xf32>
    %177 = vector.shape_cast %156 : vector<32xf32> to vector<1x32xf32>
    %178 = vector.broadcast %177 : vector<1x32xf32> to vector<256x32xf32>
    %179 = arith.mulf %176, %178 : vector<256x32xf32>
    %180 = vector.shape_cast %158 : vector<32xf32> to vector<1x32xf32>
    %181 = vector.broadcast %180 : vector<1x32xf32> to vector<256x32xf32>
    %182 = arith.addf %179, %181 : vector<256x32xf32>
    %183 = arith.addf %182, %121 : vector<256x32xf32>
    %184 = vector.extract_strided_slice %123 {offsets = [5, 0], sizes = [1, 32], strides = [1, 1]} : vector<16x128xf32> to vector<1x32xf32>
    %185 = vector.shape_cast %184 : vector<1x32xf32> to vector<32xf32>
    %186 = vector.extract_strided_slice %123 {offsets = [6, 0], sizes = [1, 32], strides = [1, 1]} : vector<16x128xf32> to vector<1x32xf32>
    %187 = vector.shape_cast %186 : vector<1x32xf32> to vector<32xf32>
    %cst_58 = arith.constant dense<0.000000e+00> : vector<256xf32>
    %188 = vector.multi_reduction <add>, %183, %cst_58 [1] : vector<256x32xf32> to vector<256xf32>
    %189 = vector.shape_cast %188 : vector<256xf32> to vector<256x1xf32>
    %cst_59 = arith.constant 3.200000e+01 : f32
    %190 = vector.broadcast %cst_59 : f32 to vector<256x1xf32>
    %191 = arith.divf %189, %190 : vector<256x1xf32>
    %192 = vector.broadcast %191 : vector<256x1xf32> to vector<256x32xf32>
    %193 = arith.subf %183, %192 : vector<256x32xf32>
    %194 = arith.mulf %193, %193 : vector<256x32xf32>
    %cst_60 = arith.constant dense<0.000000e+00> : vector<256xf32>
    %195 = vector.multi_reduction <add>, %194, %cst_60 [1] : vector<256x32xf32> to vector<256xf32>
    %196 = vector.shape_cast %195 : vector<256xf32> to vector<256x1xf32>
    %cst_61 = arith.constant 3.200000e+01 : f32
    %197 = vector.broadcast %cst_61 : f32 to vector<256x1xf32>
    %198 = arith.divf %196, %197 : vector<256x1xf32>
    %199 = vector.broadcast %191 : vector<256x1xf32> to vector<256x32xf32>
    %200 = arith.subf %183, %199 : vector<256x32xf32>
    %cst_62 = arith.constant 9.99999974E-6 : f32
    %201 = vector.broadcast %cst_62 : f32 to vector<256x1xf32>
    %202 = arith.addf %198, %201 : vector<256x1xf32>
    %203 = math.rsqrt %202 : vector<256x1xf32>
    %204 = vector.broadcast %203 : vector<256x1xf32> to vector<256x32xf32>
    %205 = arith.mulf %200, %204 : vector<256x32xf32>
    %206 = vector.shape_cast %185 : vector<32xf32> to vector<1x32xf32>
    %207 = vector.broadcast %206 : vector<1x32xf32> to vector<256x32xf32>
    %208 = arith.mulf %205, %207 : vector<256x32xf32>
    %209 = vector.shape_cast %187 : vector<32xf32> to vector<1x32xf32>
    %210 = vector.broadcast %209 : vector<1x32xf32> to vector<256x32xf32>
    %211 = arith.addf %208, %210 : vector<256x32xf32>
    %c2 = arith.constant 2 : index
    %c0_63 = arith.constant 0 : index
    %c0_64 = arith.constant 0 : index
    %212 = vector.load %arg5[%c2, %c0_63, %c0_64] : memref<3x16x128xf32, #tpu.memory_space<vmem>>, vector<1x16x128xf32>
    %213 = vector.shape_cast %212 : vector<1x16x128xf32> to vector<16x128xf32>
    %214 = arith.truncf %211 : vector<256x32xf32> to vector<256x32xbf16>
    %cst_65 = arith.constant dense<0.000000e+00> : vector<256x32xf32>
    %215 = tpu.matmul %0, %214, %cst_65 {dimension_numbers = #tpu.dot_dimension_numbers<[1], [0], [0], [1], [0, 0, 1, 1], [], []>} : vector<256x256xbf16>, vector<256x32xbf16>, vector<256x32xf32> -> vector<256x32xf32>
    %216 = arith.truncf %215 : vector<256x32xf32> to vector<256x32xbf16>
    %c2_66 = arith.constant 2 : index
    %c0_67 = arith.constant 0 : index
    %c0_68 = arith.constant 0 : index
    %217 = vector.load %arg2[%c2_66, %c0_67, %c0_68] : memref<3x32x128xbf16, #tpu.memory_space<vmem>>, vector<1x32x128xbf16>
    %218 = vector.shape_cast %217 : vector<1x32x128xbf16> to vector<32x128xbf16>
    %cst_69 = arith.constant dense<0.000000e+00> : vector<256x128xf32>
    %219 = tpu.matmul %216, %218, %cst_69 {dimension_numbers = #tpu.dot_dimension_numbers<[1], [0], [0], [1], [0, 0, 1, 1], [], []>} : vector<256x32xbf16>, vector<32x128xbf16>, vector<256x128xf32> -> vector<256x128xf32>
    %220 = vector.extract_strided_slice %213 {offsets = [0, 0], sizes = [1, 128], strides = [1, 1]} : vector<16x128xf32> to vector<1x128xf32>
    %221 = vector.shape_cast %220 : vector<1x128xf32> to vector<128xf32>
    %222 = vector.shape_cast %221 : vector<128xf32> to vector<1x128xf32>
    %223 = vector.broadcast %222 : vector<1x128xf32> to vector<256x128xf32>
    %224 = arith.addf %219, %223 : vector<256x128xf32>
    %225 = arith.truncf %224 : vector<256x128xf32> to vector<256x128xbf16>
    %c2_70 = arith.constant 2 : index
    %c0_71 = arith.constant 0 : index
    %c0_72 = arith.constant 0 : index
    %226 = vector.load %arg3[%c2_70, %c0_71, %c0_72] : memref<3x128x128xbf16, #tpu.memory_space<vmem>>, vector<1x128x128xbf16>
    %227 = vector.shape_cast %226 : vector<1x128x128xbf16> to vector<128x128xbf16>
    %cst_73 = arith.constant dense<0.000000e+00> : vector<256x128xf32>
    %228 = tpu.matmul %225, %227, %cst_73 {dimension_numbers = #tpu.dot_dimension_numbers<[1], [0], [0], [1], [0, 0, 1, 1], [], []>} : vector<256x128xbf16>, vector<128x128xbf16>, vector<256x128xf32> -> vector<256x128xf32>
    %229 = vector.extract_strided_slice %213 {offsets = [1, 0], sizes = [1, 128], strides = [1, 1]} : vector<16x128xf32> to vector<1x128xf32>
    %230 = vector.shape_cast %229 : vector<1x128xf32> to vector<128xf32>
    %231 = vector.shape_cast %230 : vector<128xf32> to vector<1x128xf32>
    %232 = vector.broadcast %231 : vector<1x128xf32> to vector<256x128xf32>
    %233 = arith.addf %228, %232 : vector<256x128xf32>
    %cst_74 = arith.constant 0.000000e+00 : f32
    %234 = vector.broadcast %cst_74 : f32 to vector<256x128xf32>
    %235 = arith.maximumf %233, %234 : vector<256x128xf32>
    %236 = arith.truncf %235 : vector<256x128xf32> to vector<256x128xbf16>
    %c2_75 = arith.constant 2 : index
    %c0_76 = arith.constant 0 : index
    %c0_77 = arith.constant 0 : index
    %237 = vector.load %arg4[%c2_75, %c0_76, %c0_77] : memref<3x128x32xbf16, #tpu.memory_space<vmem>>, vector<1x128x32xbf16>
    %238 = vector.shape_cast %237 : vector<1x128x32xbf16> to vector<128x32xbf16>
    %cst_78 = arith.constant dense<0.000000e+00> : vector<256x32xf32>
    %239 = tpu.matmul %236, %238, %cst_78 {dimension_numbers = #tpu.dot_dimension_numbers<[1], [0], [0], [1], [0, 0, 1, 1], [], []>} : vector<256x128xbf16>, vector<128x32xbf16>, vector<256x32xf32> -> vector<256x32xf32>
    %240 = vector.extract_strided_slice %213 {offsets = [2, 0], sizes = [1, 32], strides = [1, 1]} : vector<16x128xf32> to vector<1x32xf32>
    %241 = vector.shape_cast %240 : vector<1x32xf32> to vector<32xf32>
    %242 = vector.shape_cast %241 : vector<32xf32> to vector<1x32xf32>
    %243 = vector.broadcast %242 : vector<1x32xf32> to vector<256x32xf32>
    %244 = arith.addf %239, %243 : vector<256x32xf32>
    %245 = vector.extract_strided_slice %213 {offsets = [3, 0], sizes = [1, 32], strides = [1, 1]} : vector<16x128xf32> to vector<1x32xf32>
    %246 = vector.shape_cast %245 : vector<1x32xf32> to vector<32xf32>
    %247 = vector.extract_strided_slice %213 {offsets = [4, 0], sizes = [1, 32], strides = [1, 1]} : vector<16x128xf32> to vector<1x32xf32>
    %248 = vector.shape_cast %247 : vector<1x32xf32> to vector<32xf32>
    %cst_79 = arith.constant dense<0.000000e+00> : vector<256xf32>
    %249 = vector.multi_reduction <add>, %244, %cst_79 [1] : vector<256x32xf32> to vector<256xf32>
    %250 = vector.shape_cast %249 : vector<256xf32> to vector<256x1xf32>
    %cst_80 = arith.constant 3.200000e+01 : f32
    %251 = vector.broadcast %cst_80 : f32 to vector<256x1xf32>
    %252 = arith.divf %250, %251 : vector<256x1xf32>
    %253 = vector.broadcast %252 : vector<256x1xf32> to vector<256x32xf32>
    %254 = arith.subf %244, %253 : vector<256x32xf32>
    %255 = arith.mulf %254, %254 : vector<256x32xf32>
    %cst_81 = arith.constant dense<0.000000e+00> : vector<256xf32>
    %256 = vector.multi_reduction <add>, %255, %cst_81 [1] : vector<256x32xf32> to vector<256xf32>
    %257 = vector.shape_cast %256 : vector<256xf32> to vector<256x1xf32>
    %cst_82 = arith.constant 3.200000e+01 : f32
    %258 = vector.broadcast %cst_82 : f32 to vector<256x1xf32>
    %259 = arith.divf %257, %258 : vector<256x1xf32>
    %260 = vector.broadcast %252 : vector<256x1xf32> to vector<256x32xf32>
    %261 = arith.subf %244, %260 : vector<256x32xf32>
    %cst_83 = arith.constant 9.99999974E-6 : f32
    %262 = vector.broadcast %cst_83 : f32 to vector<256x1xf32>
    %263 = arith.addf %259, %262 : vector<256x1xf32>
    %264 = math.rsqrt %263 : vector<256x1xf32>
    %265 = vector.broadcast %264 : vector<256x1xf32> to vector<256x32xf32>
    %266 = arith.mulf %261, %265 : vector<256x32xf32>
    %267 = vector.shape_cast %246 : vector<32xf32> to vector<1x32xf32>
    %268 = vector.broadcast %267 : vector<1x32xf32> to vector<256x32xf32>
    %269 = arith.mulf %266, %268 : vector<256x32xf32>
    %270 = vector.shape_cast %248 : vector<32xf32> to vector<1x32xf32>
    %271 = vector.broadcast %270 : vector<1x32xf32> to vector<256x32xf32>
    %272 = arith.addf %269, %271 : vector<256x32xf32>
    %273 = arith.addf %272, %211 : vector<256x32xf32>
    %274 = vector.extract_strided_slice %213 {offsets = [5, 0], sizes = [1, 32], strides = [1, 1]} : vector<16x128xf32> to vector<1x32xf32>
    %275 = vector.shape_cast %274 : vector<1x32xf32> to vector<32xf32>
    %276 = vector.extract_strided_slice %213 {offsets = [6, 0], sizes = [1, 32], strides = [1, 1]} : vector<16x128xf32> to vector<1x32xf32>
    %277 = vector.shape_cast %276 : vector<1x32xf32> to vector<32xf32>
    %cst_84 = arith.constant dense<0.000000e+00> : vector<256xf32>
    %278 = vector.multi_reduction <add>, %273, %cst_84 [1] : vector<256x32xf32> to vector<256xf32>
    %279 = vector.shape_cast %278 : vector<256xf32> to vector<256x1xf32>
    %cst_85 = arith.constant 3.200000e+01 : f32
    %280 = vector.broadcast %cst_85 : f32 to vector<256x1xf32>
    %281 = arith.divf %279, %280 : vector<256x1xf32>
    %282 = vector.broadcast %281 : vector<256x1xf32> to vector<256x32xf32>
    %283 = arith.subf %273, %282 : vector<256x32xf32>
    %284 = arith.mulf %283, %283 : vector<256x32xf32>
    %cst_86 = arith.constant dense<0.000000e+00> : vector<256xf32>
    %285 = vector.multi_reduction <add>, %284, %cst_86 [1] : vector<256x32xf32> to vector<256xf32>
    %286 = vector.shape_cast %285 : vector<256xf32> to vector<256x1xf32>
    %cst_87 = arith.constant 3.200000e+01 : f32
    %287 = vector.broadcast %cst_87 : f32 to vector<256x1xf32>
    %288 = arith.divf %286, %287 : vector<256x1xf32>
    %289 = vector.broadcast %281 : vector<256x1xf32> to vector<256x32xf32>
    %290 = arith.subf %273, %289 : vector<256x32xf32>
    %cst_88 = arith.constant 9.99999974E-6 : f32
    %291 = vector.broadcast %cst_88 : f32 to vector<256x1xf32>
    %292 = arith.addf %288, %291 : vector<256x1xf32>
    %293 = math.rsqrt %292 : vector<256x1xf32>
    %294 = vector.broadcast %293 : vector<256x1xf32> to vector<256x32xf32>
    %295 = arith.mulf %290, %294 : vector<256x32xf32>
    %296 = vector.shape_cast %275 : vector<32xf32> to vector<1x32xf32>
    %297 = vector.broadcast %296 : vector<1x32xf32> to vector<256x32xf32>
    %298 = arith.mulf %295, %297 : vector<256x32xf32>
    %299 = vector.shape_cast %277 : vector<32xf32> to vector<1x32xf32>
    %300 = vector.broadcast %299 : vector<1x32xf32> to vector<256x32xf32>
    %301 = arith.addf %298, %300 : vector<256x32xf32>
    %c0_89 = arith.constant 0 : index
    %c0_90 = arith.constant 0 : index
    %302 = vector.load %arg6[%c0_89, %c0_90] : memref<256x32xf32, #tpu.memory_space<vmem>>, vector<256x32xf32>
    tpu.vector_store %arg6[%c0_89, %c0_90], %301 {strides = array<i32>} : memref<256x32xf32, #tpu.memory_space<vmem>>, vector<256x32xf32>,
    return
  }
}

</mosaic_0001>

<bundles_post_ra>
// kernel: tpu_custom_call.1
= control target key start
LH: loop header
LB: loop body
LE: loop exit
PB: predicated region body
PF: predicated region fallthrough
CT: control target
= control target key end

     0   :  { %vm90_vm0 = vcmask 261120   ;;  %s12970_s1 = inlined_call_operand.vmem [shape: f32[256,32], index: 1, kind: input, shape index: {}]   ;;  %s12971_s0 = inlined_call_operand.vmem [shape: bf16[256,256], index: 0, kind: input, shape index: {}]   ;;  %s12972_s5 = inlined_call_operand.vmem [shape: f32[3,16,128], index: 5, kind: input, shape index: {}]   ;;  %s12973_s2 = inlined_call_operand.vmem [shape: bf16[3,32,128], index: 2, kind: input, shape index: {}]   ;;  %s12974_s3 = inlined_call_operand.vmem [shape: bf16[3,128,128], index: 3, kind: input, shape index: {}]   ;;  %s12975_s4 = inlined_call_operand.vmem [shape: bf16[3,128,32], index: 4, kind: input, shape index: {}]   ;;  %s12976_s6 = inlined_call_operand.vmem [shape: f32[256,32], index: 6, kind: output, shape index: {}]  }
   0x1   :  { %v8453_v0 = vld [vmem:[%s12970_s1 + $0xf0] sm:$0xff]  ;;  %v8458_v1 = vld [vmem:[%s12970_s1 + $0xf8] sm:$0xff]  ;;  %v8481_v8 = vld [vmem:[%s12970_s1 + $0xe0] sm:$0xff] }
   0x2   :  { %v8463_v2 = vld [vmem:[%s12970_s1 + $0x70] sm:$0xff]  ;;  %v181_v3 = vsel %vm90_vm0, %v8453_v0, 0.0  ;;  %v8472_v5 = vld [vmem:[%s12970_s1 + $0x78] sm:$0xff]  ;;  %v184_v6 = vsel %vm90_vm0, %v8458_v1, 0.0  ;;  %v8486_v9 = vld [vmem:[%s12970_s1 + $0xe8] sm:$0xff]  ;;  %v175_v10 = vsel %vm90_vm0, %v8481_v8, 0.0 }
   0x3   :  { %v133_v4 = vsel %vm90_vm0, %v8463_v2, 0.0  ;;  %182 = vadd.xlane.f32.xlu0 %v181_v3  ;;  %v136_v7 = vsel %vm90_vm0, %v8472_v5, 0.0  ;;  %v178_v11 = vsel %vm90_vm0, %v8486_v9, 0.0  ;;  %v8495_v12 = vld [vmem:[%s12970_s1 + $0x60] sm:$0xff]  ;;  %v8500_v13 = vld [vmem:[%s12970_s1 + $0x68] sm:$0xff]  ;;  %v8509_v16 = vld [vmem:[%s12970_s1 + $0xd0] sm:$0xff] }
   0x4   :  { %134 = vadd.xlane.f32.xlu1 %v133_v4  ;;  %v127_v14 = vsel %vm90_vm0, %v8495_v12, 0.0  ;;  %v130_v15 = vsel %vm90_vm0, %v8500_v13, 0.0  ;;  %v8514_v17 = vld [vmem:[%s12970_s1 + $0xd8] sm:$0xff]  ;;  %v169_v18 = vsel %vm90_vm0, %v8509_v16, 0.0  ;;  %v8523_v20 = vld [vmem:[%s12970_s1 + $0x50] sm:$0xff]  ;;  %v8537_v24 = vld [vmem:[%s12970_s1 + $0xc0] sm:$0xff] }
   0x5   :  { %v172_v19 = vsel %vm90_vm0, %v8514_v17, 0.0  ;;  %v8528_v21 = vld [vmem:[%s12970_s1 + $0x58] sm:$0xff]  ;;  %v121_v22 = vsel %vm90_vm0, %v8523_v20, 0.0  ;;  %v8542_v25 = vld [vmem:[%s12970_s1 + $0xc8] sm:$0xff]  ;;  %v163_v26 = vsel %vm90_vm0, %v8537_v24, 0.0  ;;  %v8551_v28 = vld [vmem:[%s12970_s1 + $0x40] sm:$0xff] }
   0x6   :  { %v124_v23 = vsel %vm90_vm0, %v8528_v21, 0.0  ;;  %v166_v27 = vsel %vm90_vm0, %v8542_v25, 0.0  ;;  %v8556_v29 = vld [vmem:[%s12970_s1 + $0x48] sm:$0xff]  ;;  %v115_v30 = vsel %vm90_vm0, %v8551_v28, 0.0  ;;  %v8565_v32 = vld [vmem:[%s12970_s1 + $0xb0] sm:$0xff]  ;;  %v8570_v33 = vld [vmem:[%s12970_s1 + $0xb8] sm:$0xff] }
   0x7   :  { %185 = vadd.xlane.f32.xlu0 %v184_v6  ;;  %v118_v31 = vsel %vm90_vm0, %v8556_v29, 0.0  ;;  %v157_v34 = vsel %vm90_vm0, %v8565_v32, 0.0  ;;  %v160_v35 = vsel %vm90_vm0, %v8570_v33, 0.0  ;;  %v8579_v36 = vld [vmem:[%s12970_s1 + $0x30] sm:$0xff]  ;;  %v8584_v37 = vld [vmem:[%s12970_s1 + $0x38] sm:$0xff]  ;;  %v8593_v40 = vld [vmem:[%s12970_s1 + $0xa0] sm:$0xff] }
   0x8   :  { %137 = vadd.xlane.f32.xlu1 %v136_v7  ;;  %v109_v38 = vsel %vm90_vm0, %v8579_v36, 0.0  ;;  %v112_v39 = vsel %vm90_vm0, %v8584_v37, 0.0  ;;  %v8598_v41 = vld [vmem:[%s12970_s1 + $0xa8] sm:$0xff]  ;;  %v151_v42 = vsel %vm90_vm0, %v8593_v40, 0.0  ;;  %v8607_v44 = vld [vmem:[%s12970_s1 + $0x20] sm:$0xff]  ;;  %v8621_v48 = vld [vmem:[%s12970_s1 + $0x90] sm:$0xff] }
   0x9   :  { %v154_v43 = vsel %vm90_vm0, %v8598_v41, 0.0  ;;  %v8612_v45 = vld [vmem:[%s12970_s1 + $0x28] sm:$0xff]  ;;  %v103_v46 = vsel %vm90_vm0, %v8607_v44, 0.0  ;;  %v8626_v49 = vld [vmem:[%s12970_s1 + $0x98] sm:$0xff]  ;;  %v145_v50 = vsel %vm90_vm0, %v8621_v48, 0.0  ;;  %v8635_v52 = vld [vmem:[%s12970_s1 + $0x10] sm:$0xff] }
   0xa   :  { %v106_v47 = vsel %vm90_vm0, %v8612_v45, 0.0  ;;  %v148_v51 = vsel %vm90_vm0, %v8626_v49, 0.0  ;;  %v8640_v53 = vld [vmem:[%s12970_s1 + $0x18] sm:$0xff]  ;;  %v97_v54 = vsel %vm90_vm0, %v8635_v52, 0.0  ;;  %v8649_v56 = vld [vmem:[%s12970_s1 + $0x80] sm:$0xff]  ;;  %v8654_v57 = vld [vmem:[%s12970_s1 + $0x88] sm:$0xff] }
   0xb   :  { %176 = vadd.xlane.f32.xlu0 %v175_v10  ;;  %v100_v55 = vsel %vm90_vm0, %v8640_v53, 0.0  ;;  %v139_v58 = vsel %vm90_vm0, %v8649_v56, 0.0  ;;  %v142_v59 = vsel %vm90_vm0, %v8654_v57, 0.0  ;;  %v8663_v60 = vld [vmem:[%s12970_s1] sm:$0xff]  ;;  %v8668_v61 = vld [vmem:[%s12970_s1 + $0x8] sm:$0xff] }
   0xc   :  { %179 = vadd.xlane.f32.xlu1 %v178_v11  ;;  %v91_v62 = vsel %vm90_vm0, %v8663_v60, 0.0  ;;  %v94_v63 = vsel %vm90_vm0, %v8668_v61, 0.0 }
   0xf   :  { %128 = vadd.xlane.f32.xlu0 %v127_v14 }
  0x10   :  { %131 = vadd.xlane.f32.xlu1 %v130_v15 }
  0x13   :  { %170 = vadd.xlane.f32.xlu0 %v169_v18 }
  0x14   :  { %173 = vadd.xlane.f32.xlu1 %v172_v19 }
  0x17   :  { %122 = vadd.xlane.f32.xlu0 %v121_v22 }
  0x18   :  { %125 = vadd.xlane.f32.xlu1 %v124_v23 }
  0x1b   :  { %164 = vadd.xlane.f32.xlu0 %v163_v26 }
  0x1c   :  { %167 = vadd.xlane.f32.xlu1 %v166_v27 }
  0x1f   :  { %116 = vadd.xlane.f32.xlu0 %v115_v30 }
  0x20   :  { %119 = vadd.xlane.f32.xlu1 %v118_v31 }
  0x23   :  { %158 = vadd.xlane.f32.xlu0 %v157_v34 }
  0x24   :  { %161 = vadd.xlane.f32.xlu1 %v160_v35 }
  0x27   :  { %110 = vadd.xlane.f32.xlu0 %v109_v38 }
  0x28   :  { %113 = vadd.xlane.f32.xlu1 %v112_v39 }
  0x2b   :  { %152 = vadd.xlane.f32.xlu0 %v151_v42 }
  0x2c   :  { %155 = vadd.xlane.f32.xlu1 %v154_v43 }
  0x2f   :  { %104 = vadd.xlane.f32.xlu0 %v103_v46 }
  0x30   :  { %107 = vadd.xlane.f32.xlu1 %v106_v47 }
  0x33   :  { %146 = vadd.xlane.f32.xlu0 %v145_v50 }
  0x34   :  { %149 = vadd.xlane.f32.xlu1 %v148_v51 }
  0x37   :  { %98 = vadd.xlane.f32.xlu0 %v97_v54 }
  0x38   :  { %101 = vadd.xlane.f32.xlu1 %v100_v55 }
  0x3b   :  { %140 = vadd.xlane.f32.xlu0 %v139_v58 }
  0x3c   :  { %143 = vadd.xlane.f32.xlu1 %v142_v59 }
  0x3f   :  { %92 = vadd.xlane.f32.xlu0 %v91_v62 }
  0x40   :  { %95 = vadd.xlane.f32.xlu1 %v94_v63 }
  0x8c   :  { %v183_v3 = vpop.xlane.xlu0 %182 }
  0x8d   :  { %v135_v4 = vpop.xlane.xlu1 %134  ;;  %v218_v6 = vmul.f32 0.03125, %v183_v3 }
  0x8e   :  { %v202_v7 = vmul.f32 0.03125, %v135_v4 }
  0x8f   :  { %v8675_v10 = vsub.f32 %v8453_v0, %v218_v6 }
  0x90   :  { %v8678_v11 = vsub.f32 %v8463_v2, %v202_v7  ;;  %v186_v14 = vpop.xlane.xlu0 %185 }
  0x91   :  { %v138_v15 = vpop.xlane.xlu1 %137  ;;  %v219_v18 = vmul.f32 0.03125, %v186_v14  ;;  %v282_v22 = vmul.f32 %v8675_v10, %v8675_v10 }
  0x92   :  { %v203_v19 = vmul.f32 0.03125, %v138_v15  ;;  %v266_v23 = vmul.f32 %v8678_v11, %v8678_v11 }
  0x93   :  { %v8685_v26 = vsub.f32 %v8458_v1, %v219_v18  ;;  %v374_v0 = vsel %vm90_vm0, %v282_v22, 0.0 }
  0x94   :  { %v8688_v27 = vsub.f32 %v8472_v5, %v203_v19  ;;  %v177_v2 = vpop.xlane.xlu0 %176  ;;  %375 = vadd.xlane.f32.xlu0 %v374_v0  ;;  %v326_v31 = vsel %vm90_vm0, %v266_v23, 0.0 }
  0x95   :  { %v180_v30 = vpop.xlane.xlu1 %179  ;;  %v216_v34 = vmul.f32 0.03125, %v177_v2  ;;  %v283_v38 = vmul.f32 %v8685_v26, %v8685_v26 }
  0x96   :  { %v217_v35 = vmul.f32 0.03125, %v180_v30  ;;  %v267_v39 = vmul.f32 %v8688_v27, %v8688_v27 }
  0x97   :  { %v8697_v1 = vsub.f32 %v8481_v8, %v216_v34  ;;  %v377_v42 = vsel %vm90_vm0, %v283_v38, 0.0 }
  0x98   :  { %v8700_v5 = vsub.f32 %v8486_v9, %v217_v35  ;;  %v129_v43 = vpop.xlane.xlu0 %128  ;;  %378 = vadd.xlane.f32.xlu1 %v377_v42  ;;  %327 = vadd.xlane.f32.xlu0 %v326_v31  ;;  %v329_v47 = vsel %vm90_vm0, %v267_v39, 0.0 }
  0x99   :  { %v132_v46 = vpop.xlane.xlu1 %131  ;;  %v200_v50 = vmul.f32 0.03125, %v129_v43  ;;  %v280_v54 = vmul.f32 %v8697_v1, %v8697_v1 }
  0x9a   :  { %v201_v51 = vmul.f32 0.03125, %v132_v46  ;;  %v281_v8 = vmul.f32 %v8700_v5, %v8700_v5 }
  0x9b   :  { %v8709_v55 = vsub.f32 %v8495_v12, %v200_v50  ;;  %v368_v58 = vsel %vm90_vm0, %v280_v54, 0.0 }
  0x9c   :  { %v8712_v9 = vsub.f32 %v8500_v13, %v201_v51  ;;  %v171_v59 = vpop.xlane.xlu0 %170  ;;  %330 = vadd.xlane.f32.xlu1 %v329_v47  ;;  %369 = vadd.xlane.f32.xlu0 %v368_v58  ;;  %v371_v63 = vsel %vm90_vm0, %v281_v8, 0.0 }
  0x9d   :  { %v174_v62 = vpop.xlane.xlu1 %173  ;;  %v214_v3 = vmul.f32 0.03125, %v171_v59  ;;  %v264_v6 = vmul.f32 %v8709_v55, %v8709_v55 }
  0x9e   :  { %v215_v4 = vmul.f32 0.03125, %v174_v62  ;;  %v265_v12 = vmul.f32 %v8712_v9, %v8712_v9 }
  0x9f   :  { %v8721_v7 = vsub.f32 %v8509_v16, %v214_v3  ;;  %v320_v14 = vsel %vm90_vm0, %v264_v6, 0.0 }
  0xa0   :  { %v8724_v13 = vsub.f32 %v8514_v17, %v215_v4  ;;  %v123_v15 = vpop.xlane.xlu0 %122  ;;  %372 = vadd.xlane.f32.xlu1 %v371_v63  ;;  %321 = vadd.xlane.f32.xlu0 %v320_v14  ;;  %v323_v19 = vsel %vm90_vm0, %v265_v12, 0.0 }
  0xa1   :  { %v126_v18 = vpop.xlane.xlu1 %125  ;;  %v198_v22 = vmul.f32 0.03125, %v123_v15  ;;  %v278_v0 = vmul.f32 %v8721_v7, %v8721_v7 }
  0xa2   :  { %v199_v23 = vmul.f32 0.03125, %v126_v18  ;;  %v279_v16 = vmul.f32 %v8724_v13, %v8724_v13 }
  0xa3   :  { %v8733_v2 = vsub.f32 %v8523_v20, %v198_v22  ;;  %v362_v30 = vsel %vm90_vm0, %v278_v0, 0.0 }
  0xa4   :  { %v8736_v17 = vsub.f32 %v8528_v21, %v199_v23  ;;  %v165_v31 = vpop.xlane.xlu0 %164  ;;  %324 = vadd.xlane.f32.xlu1 %v323_v19  ;;  %363 = vadd.xlane.f32.xlu0 %v362_v30  ;;  %v365_v35 = vsel %vm90_vm0, %v279_v16, 0.0 }
  0xa5   :  { %v168_v34 = vpop.xlane.xlu1 %167  ;;  %v212_v38 = vmul.f32 0.03125, %v165_v31  ;;  %v262_v42 = vmul.f32 %v8733_v2, %v8733_v2 }
  0xa6   :  { %v213_v39 = vmul.f32 0.03125, %v168_v34  ;;  %v263_v20 = vmul.f32 %v8736_v17, %v8736_v17 }
  0xa7   :  { %v8745_v43 = vsub.f32 %v8537_v24, %v212_v38  ;;  %v314_v46 = vsel %vm90_vm0, %v262_v42, 0.0 }
  0xa8   :  { %v8748_v21 = vsub.f32 %v8542_v25, %v213_v39  ;;  %v117_v47 = vpop.xlane.xlu0 %116  ;;  %366 = vadd.xlane.f32.xlu1 %v365_v35  ;;  %315 = vadd.xlane.f32.xlu0 %v314_v46  ;;  %v317_v51 = vsel %vm90_vm0, %v263_v20, 0.0 }
  0xa9   :  { %v120_v50 = vpop.xlane.xlu1 %119  ;;  %v196_v54 = vmul.f32 0.03125, %v117_v47  ;;  %v276_v58 = vmul.f32 %v8745_v43, %v8745_v43 }
  0xaa   :  { %v197_v8 = vmul.f32 0.03125, %v120_v50  ;;  %v277_v24 = vmul.f32 %v8748_v21, %v8748_v21 }
  0xab   :  { %v8757_v59 = vsub.f32 %v8551_v28, %v196_v54  ;;  %v356_v62 = vsel %vm90_vm0, %v276_v58, 0.0 }
  0xac   :  { %v8760_v25 = vsub.f32 %v8556_v29, %v197_v8  ;;  %v159_v63 = vpop.xlane.xlu0 %158  ;;  %318 = vadd.xlane.f32.xlu1 %v317_v51  ;;  %357 = vadd.xlane.f32.xlu0 %v356_v62  ;;  %v359_v4 = vsel %vm90_vm0, %v277_v24, 0.0 }
  0xad   :  { %v162_v3 = vpop.xlane.xlu1 %161  ;;  %v210_v6 = vmul.f32 0.03125, %v159_v63  ;;  %v260_v14 = vmul.f32 %v8757_v59, %v8757_v59 }
  0xae   :  { %v211_v12 = vmul.f32 0.03125, %v162_v3  ;;  %v261_v28 = vmul.f32 %v8760_v25, %v8760_v25 }
  0xaf   :  { %v8769_v15 = vsub.f32 %v8565_v32, %v210_v6  ;;  %v308_v18 = vsel %vm90_vm0, %v260_v14, 0.0 }
  0xb0   :  { %v8772_v29 = vsub.f32 %v8570_v33, %v211_v12  ;;  %v111_v19 = vpop.xlane.xlu0 %110  ;;  %360 = vadd.xlane.f32.xlu1 %v359_v4  ;;  %309 = vadd.xlane.f32.xlu0 %v308_v18  ;;  %v311_v23 = vsel %vm90_vm0, %v261_v28, 0.0 }
  0xb1   :  { %v114_v22 = vpop.xlane.xlu1 %113  ;;  %v194_v0 = vmul.f32 0.03125, %v111_v19  ;;  %v274_v30 = vmul.f32 %v8769_v15, %v8769_v15 }
  0xb2   :  { %v195_v16 = vmul.f32 0.03125, %v114_v22  ;;  %v275_v32 = vmul.f32 %v8772_v29, %v8772_v29 }
  0xb3   :  { %v8781_v31 = vsub.f32 %v8579_v36, %v194_v0  ;;  %v350_v34 = vsel %vm90_vm0, %v274_v30, 0.0 }
  0xb4   :  { %v8784_v33 = vsub.f32 %v8584_v37, %v195_v16  ;;  %v153_v35 = vpop.xlane.xlu0 %152  ;;  %312 = vadd.xlane.f32.xlu1 %v311_v23  ;;  %351 = vadd.xlane.f32.xlu0 %v350_v34  ;;  %v353_v39 = vsel %vm90_vm0, %v275_v32, 0.0 }
  0xb5   :  { %v156_v38 = vpop.xlane.xlu1 %155  ;;  %v208_v42 = vmul.f32 0.03125, %v153_v35  ;;  %v258_v46 = vmul.f32 %v8781_v31, %v8781_v31 }
  0xb6   :  { %v209_v20 = vmul.f32 0.03125, %v156_v38  ;;  %v259_v36 = vmul.f32 %v8784_v33, %v8784_v33 }
  0xb7   :  { %v8793_v47 = vsub.f32 %v8593_v40, %v208_v42  ;;  %v302_v50 = vsel %vm90_vm0, %v258_v46, 0.0 }
  0xb8   :  { %v8796_v37 = vsub.f32 %v8598_v41, %v209_v20  ;;  %v105_v51 = vpop.xlane.xlu0 %104  ;;  %354 = vadd.xlane.f32.xlu1 %v353_v39  ;;  %303 = vadd.xlane.f32.xlu0 %v302_v50  ;;  %v305_v8 = vsel %vm90_vm0, %v259_v36, 0.0 }
  0xb9   :  { %v108_v54 = vpop.xlane.xlu1 %107  ;;  %v192_v58 = vmul.f32 0.03125, %v105_v51  ;;  %v272_v62 = vmul.f32 %v8793_v47, %v8793_v47 }
  0xba   :  { %v193_v24 = vmul.f32 0.03125, %v108_v54  ;;  %v273_v40 = vmul.f32 %v8796_v37, %v8796_v37 }
  0xbb   :  { %v8805_v63 = vsub.f32 %v8607_v44, %v192_v58  ;;  %v344_v3 = vsel %vm90_vm0, %v272_v62, 0.0 }
  0xbc   :  { %v8808_v41 = vsub.f32 %v8612_v45, %v193_v24  ;;  %v147_v4 = vpop.xlane.xlu0 %146  ;;  %306 = vadd.xlane.f32.xlu1 %v305_v8  ;;  %345 = vadd.xlane.f32.xlu0 %v344_v3  ;;  %v347_v12 = vsel %vm90_vm0, %v273_v40, 0.0 }
  0xbd   :  { %v150_v6 = vpop.xlane.xlu1 %149  ;;  %v206_v14 = vmul.f32 0.03125, %v147_v4  ;;  %v256_v18 = vmul.f32 %v8805_v63, %v8805_v63 }
  0xbe   :  { %v207_v28 = vmul.f32 0.03125, %v150_v6  ;;  %v257_v44 = vmul.f32 %v8808_v41, %v8808_v41 }
  0xbf   :  { %v8817_v19 = vsub.f32 %v8621_v48, %v206_v14  ;;  %v296_v22 = vsel %vm90_vm0, %v256_v18, 0.0 }
  0xc0   :  { %v8820_v45 = vsub.f32 %v8626_v49, %v207_v28  ;;  %v99_v23 = vpop.xlane.xlu0 %98  ;;  %348 = vadd.xlane.f32.xlu1 %v347_v12  ;;  %297 = vadd.xlane.f32.xlu0 %v296_v22  ;;  %v299_v16 = vsel %vm90_vm0, %v257_v44, 0.0 }
  0xc1   :  { %v102_v0 = vpop.xlane.xlu1 %101  ;;  %v190_v30 = vmul.f32 0.03125, %v99_v23  ;;  %v270_v34 = vmul.f32 %v8817_v19, %v8817_v19 }
  0xc2   :  { %v191_v32 = vmul.f32 0.03125, %v102_v0  ;;  %v271_v48 = vmul.f32 %v8820_v45, %v8820_v45 }
  0xc3   :  { %v8829_v35 = vsub.f32 %v8635_v52, %v190_v30  ;;  %v338_v38 = vsel %vm90_vm0, %v270_v34, 0.0  ;;  %v508_v34 = vlaneseq }
  0xc4   :  { %v8832_v49 = vsub.f32 %v8640_v53, %v191_v32  ;;  %v141_v39 = vpop.xlane.xlu0 %140  ;;  %300 = vadd.xlane.f32.xlu1 %v299_v16  ;;  %339 = vadd.xlane.f32.xlu0 %v338_v38  ;;  %v341_v20 = vsel %vm90_vm0, %v271_v48, 0.0 }
  0xc5   :  { %v144_v42 = vpop.xlane.xlu1 %143  ;;  %v204_v46 = vmul.f32 0.03125, %v141_v39  ;;  %v254_v50 = vmul.f32 %v8829_v35, %v8829_v35 }
  0xc6   :  { %v205_v36 = vmul.f32 0.03125, %v144_v42  ;;  %v255_v52 = vmul.f32 %v8832_v49, %v8832_v49 }
  0xc7   :  { %v8841_v51 = vsub.f32 %v8649_v56, %v204_v46  ;;  %v290_v54 = vsel %vm90_vm0, %v254_v50, 0.0 }
  0xc8   :  { %v8844_v53 = vsub.f32 %v8654_v57, %v205_v36  ;;  %342 = vadd.xlane.f32.xlu1 %v341_v20  ;;  %291 = vadd.xlane.f32.xlu0 %v290_v54  ;;  %v93_v8 = vpop.xlane.xlu0 %92  ;;  %v293_v58 = vsel %vm90_vm0, %v255_v52, 0.0  ;;  %v8872_v36 = vshrl.u32 %v508_v34, 7 }
  0xc9   :  { %v96_v24 = vpop.xlane.xlu1 %95  ;;  %v188_v62 = vmul.f32 0.03125, %v93_v8  ;;  %v268_v3 = vmul.f32 %v8841_v51, %v8841_v51 }
  0xca   :  { %v189_v40 = vmul.f32 0.03125, %v96_v24  ;;  %v269_v56 = vmul.f32 %v8844_v53, %v8844_v53  ;;  %13049 = vst [vmem:[#allocation2_spill] sm:$0xff] %v8872_v36 }
  0xcb   :  { %v8853_v4 = vsub.f32 %v8663_v60, %v188_v62  ;;  %v332_v6 = vsel %vm90_vm0, %v268_v3, 0.0  ;;  %v510_v62 = vsub.s32 7, %v8872_v36 }
  0xcc   :  { %v8856_v57 = vsub.f32 %v8668_v61, %v189_v40  ;;  %294 = vadd.xlane.f32.xlu1 %v293_v58  ;;  %333 = vadd.xlane.f32.xlu0 %v332_v6  ;;  %v335_v12 = vsel %vm90_vm0, %v269_v56, 0.0  ;;  %v8869_v61 = vld [vmem:[%s12971_s0 + $0x4] ss:$8 sps:$4 sm:$0xff]  }
  0xcd   :  { %v252_v14 = vmul.f32 %v8853_v4, %v8853_v4  ;;  %788 = vmatprep.mubr.bf16.mxu0 %v8869_v61  ;;  %v56_v56 = vld [vmem:[%s12972_s5] sm:$0xff] }
  0xce   :  { %v253_v28 = vmul.f32 %v8856_v57, %v8856_v57 }
  0xcf   :  { %v284_v18 = vsel %vm90_vm0, %v252_v14, 0.0 }
  0xd0   :  { %336 = vadd.xlane.f32.xlu1 %v335_v12  ;;  %285 = vadd.xlane.f32.xlu0 %v284_v18  ;;  %v287_v60 = vsel %vm90_vm0, %v253_v28, 0.0 }
  0xd4   :  { %288 = vadd.xlane.f32.xlu1 %v287_v60  ;;  %v8878_v60 = vrot.slane %v56_v56, %v510_v62 }
 0x11d   :  { %v376_v44 = vpop.xlane.xlu0 %375 }
 0x11e   :  { %v410_v22 = vmul.f32 0.03125, %v376_v44  ;;  %v8881_v44 = vsub.s32 0, %v8872_v36 }
 0x120   :  { %v442_v23 = vadd.f32 1e-05, %v410_v22  ;;  %13050 = vst [vmem:[#allocation3_spill] sm:$0xff] %v8881_v44 }
 0x121   :  { %v379_v0 = vpop.xlane.xlu1 %378  ;;  %v328_v16 = vpop.xlane.xlu0 %327 }
 0x122   :  { %7898 = vrsqrt.f32 %v442_v23  ;;  %v411_v30 = vmul.f32 0.03125, %v379_v0  ;;  %v394_v32 = vmul.f32 0.03125, %v328_v16  ;;  %v57_v0 = vld [vmem:[%s12972_s5 + $0x8] sm:$0xff] }
 0x124   :  { %v443_v48 = vadd.f32 1e-05, %v411_v30  ;;  %v426_v38 = vadd.f32 1e-05, %v394_v32 }
 0x125   :  { %v331_v39 = vpop.xlane.xlu1 %330  ;;  %v370_v42 = vpop.xlane.xlu0 %369 }
 0x126   :  { %7900 = vrsqrt.f32 %v443_v48  ;;  %v395_v20 = vmul.f32 0.03125, %v331_v39  ;;  %v408_v46 = vmul.f32 0.03125, %v370_v42  ;;  %v8889_v42 = vrot.slane %v57_v0, %v8881_v44 }
 0x127   :  { %7902 = vrsqrt.f32 %v426_v38 }
 0x128   :  { %v427_v50 = vadd.f32 1e-05, %v395_v20  ;;  %v440_v52 = vadd.f32 1e-05, %v408_v46 }
 0x129   :  { %v373_v54 = vpop.xlane.xlu1 %372  ;;  %v322_v8 = vpop.xlane.xlu0 %321 }
 0x12a   :  { %7904 = vrsqrt.f32 %v427_v50  ;;  %v409_v58 = vmul.f32 0.03125, %v373_v54  ;;  %v392_v24 = vmul.f32 0.03125, %v322_v8 }
 0x12b   :  { %7906 = vrsqrt.f32 %v440_v52 }
 0x12c   :  { %v441_v40 = vadd.f32 1e-05, %v409_v58  ;;  %v424_v3 = vadd.f32 1e-05, %v392_v24 }
 0x12d   :  { %v325_v6 = vpop.xlane.xlu1 %324  ;;  %v364_v12 = vpop.xlane.xlu0 %363 }
 0x12e   :  { %7908 = vrsqrt.f32 %v441_v40  ;;  %v393_v14 = vmul.f32 0.03125, %v325_v6  ;;  %v406_v28 = vmul.f32 0.03125, %v364_v12 }
 0x12f   :  { %v7899_v18 = vpop.eup %7898  ;;  %7910 = vrsqrt.f32 %v424_v3 }
 0x130   :  { %v425_v22 = vadd.f32 1e-05, %v393_v14  ;;  %v438_v23 = vadd.f32 1e-05, %v406_v28  ;;  %v506_v16 = vmul.f32 %v7899_v18, %v8675_v10 }
 0x131   :  { %v367_v30 = vpop.xlane.xlu1 %366  ;;  %v316_v32 = vpop.xlane.xlu0 %315 }
 0x132   :  { %7912 = vrsqrt.f32 %v425_v22  ;;  %v407_v34 = vmul.f32 0.03125, %v367_v30  ;;  %v390_v48 = vmul.f32 0.03125, %v316_v32  ;;  %v542_v39 = vmul.f32 %v8878_v60, %v506_v16 }
 0x133   :  { %v7901_v38 = vpop.eup %7900  ;;  %7914 = vrsqrt.f32 %v438_v23 }
 0x134   :  { %v7903_v20 = vpop.eup %7902  ;;  %v439_v46 = vadd.f32 1e-05, %v407_v34  ;;  %v422_v50 = vadd.f32 1e-05, %v390_v48  ;;  %v507_v52 = vmul.f32 %v7901_v38, %v8685_v26  ;;  %v8895_v3 = vadd.f32 %v8889_v42, %v542_v39 }
 0x135   :  { %v319_v54 = vpop.xlane.xlu1 %318  ;;  %v358_v8 = vpop.xlane.xlu0 %357  ;;  %v490_v10 = vmul.f32 %v7903_v20, %v8678_v11 }
 0x136   :  { %7916 = vrsqrt.f32 %v439_v46  ;;  %v391_v58 = vmul.f32 0.03125, %v319_v54  ;;  %v404_v24 = vmul.f32 0.03125, %v358_v8  ;;  %v543_v62 = vmul.f32 %v8878_v60, %v507_v52 }
 0x137   :  { %v7905_v40 = vpop.eup %7904  ;;  %7918 = vrsqrt.f32 %v422_v50  ;;  %v526_v18 = vmul.f32 %v8878_v60, %v490_v10 }
 0x138   :  { %v7907_v56 = vpop.eup %7906  ;;  %v423_v6 = vadd.f32 1e-05, %v391_v58  ;;  %v436_v12 = vadd.f32 1e-05, %v404_v24  ;;  %v8898_v14 = vadd.f32 %v8889_v42, %v543_v62  ;;  %v491_v26 = vmul.f32 %v7905_v40, %v8688_v27 }
 0x139   :  { %v361_v28 = vpop.xlane.xlu1 %360  ;;  %v310_v11 = vpop.xlane.xlu0 %309  ;;  %v504_v22 = vmul.f32 %v7907_v56, %v8697_v1  ;;  %v8909_v46 = vadd.f32 %v8889_v42, %v526_v18 }
 0x13a   :  { %7920 = vrsqrt.f32 %v423_v6  ;;  %v405_v23 = vmul.f32 0.03125, %v361_v28  ;;  %v388_v0 = vmul.f32 0.03125, %v310_v11  ;;  %v595_v16 = vpack.c.bf16 %v8898_v14, %v8895_v3 }
 0x13b   :  { %v7909_v30 = vpop.eup %7908  ;;  %7922 = vrsqrt.f32 %v436_v12  ;;  %v527_v32 = vmul.f32 %v8878_v60, %v491_v26  ;;  %v540_v34 = vmul.f32 %v8878_v60, %v504_v22 }
 0x13c   :  { %v7911_v48 = vpop.eup %7910  ;;  %v437_v27 = vadd.f32 1e-05, %v405_v23  ;;  %v420_v38 = vadd.f32 1e-05, %v388_v0  ;;  %6850 = vmatprep.subr.bf16.mxu0 %v595_v16  ;;  %v505_v39 = vmul.f32 %v7909_v30, %v8700_v5 }
 0x13d   :  { %v313_v20 = vpop.xlane.xlu1 %312  ;;  %v352_v1 = vpop.xlane.xlu0 %351  ;;  %v8912_v50 = vadd.f32 %v8889_v42, %v527_v32  ;;  %v488_v52 = vmul.f32 %v7911_v48, %v8709_v55  ;;  %v8919_v24 = vadd.f32 %v8889_v42, %v540_v34 }
 0x13e   :  { %7924 = vrsqrt.f32 %v437_v27  ;;  %v389_v54 = vmul.f32 0.03125, %v313_v20  ;;  %v402_v8 = vmul.f32 0.03125, %v352_v1  ;;  %v541_v10 = vmul.f32 %v8878_v60, %v505_v39 }
 0x13f   :  { %v7913_v58 = vpop.eup %7912  ;;  %7926 = vrsqrt.f32 %v420_v38  ;;  %v587_v5 = vpack.c.bf16 %v8912_v50, %v8909_v46  ;;  %v524_v28 = vmul.f32 %v8878_v60, %v488_v52 }
 0x140   :  { %v7915_v62 = vpop.eup %7914  ;;  %v421_v40 = vadd.f32 1e-05, %v389_v54  ;;  %v434_v56 = vadd.f32 1e-05, %v402_v8  ;;  %v8922_v6 = vadd.f32 %v8889_v42, %v541_v10  ;;  %v489_v55 = vmul.f32 %v7913_v58, %v8712_v9 }
 0x141   :  { %6851 = vmatpush3.bf16.msra.mxu0 %v587_v5  ;;  %v355_v12 = vpop.xlane.xlu1 %354  ;;  %v304_v26 = vpop.xlane.xlu0 %303  ;;  %v502_v11 = vmul.f32 %v7915_v62, %v8721_v7  ;;  %v8933_v38 = vadd.f32 %v8889_v42, %v524_v28 }
 0x142   :  { %7928 = vrsqrt.f32 %v421_v40  ;;  %v403_v18 = vmul.f32 0.03125, %v355_v12  ;;  %v386_v22 = vmul.f32 0.03125, %v304_v26  ;;  %v594_v23 = vpack.c.bf16 %v8922_v6, %v8919_v24 }
 0x143   :  { %v7917_v0 = vpop.eup %7916  ;;  %7930 = vrsqrt.f32 %v434_v56  ;;  %v525_v16 = vmul.f32 %v8878_v60, %v489_v55  ;;  %v538_v30 = vmul.f32 %v8878_v60, %v502_v11 }
 0x144   :  { %v7919_v9 = vpop.eup %7918  ;;  %v435_v32 = vadd.f32 1e-05, %v403_v18  ;;  %v418_v34 = vadd.f32 1e-05, %v386_v22  ;;  %6852 = vmatprep.subr.bf16.mxu0 %v594_v23  ;;  %v503_v48 = vmul.f32 %v7917_v0, %v8724_v13 }
 0x145   :  { %v307_v27 = vpop.xlane.xlu1 %306  ;;  %v346_v7 = vpop.xlane.xlu0 %345  ;;  %v8936_v39 = vadd.f32 %v8889_v42, %v525_v16  ;;  %v486_v20 = vmul.f32 %v7919_v9, %v8733_v2  ;;  %v8943_v10 = vadd.f32 %v8889_v42, %v538_v30 }
 0x146   :  { %7932 = vrsqrt.f32 %v435_v32  ;;  %v387_v1 = vmul.f32 0.03125, %v307_v27  ;;  %v400_v52 = vmul.f32 0.03125, %v346_v7  ;;  %v539_v54 = vmul.f32 %v8878_v60, %v503_v48 }
 0x147   :  { %v7921_v8 = vpop.eup %7920  ;;  %7934 = vrsqrt.f32 %v418_v34  ;;  %v586_v13 = vpack.c.bf16 %v8936_v39, %v8933_v38  ;;  %v522_v12 = vmul.f32 %v8878_v60, %v486_v20 }
 0x148   :  { %v7923_v58 = vpop.eup %7922  ;;  %v419_v5 = vadd.f32 1e-05, %v387_v1  ;;  %v432_v62 = vadd.f32 1e-05, %v400_v52  ;;  %v8946_v40 = vadd.f32 %v8889_v42, %v539_v54  ;;  %v487_v2 = vmul.f32 %v7921_v8, %v8736_v17 }
 0x149   :  { %6853 = vmatpush3.bf16.msra.mxu0 %v586_v13  ;;  %v349_v56 = vpop.xlane.xlu1 %348  ;;  %v298_v55 = vpop.xlane.xlu0 %297  ;;  %v500_v26 = vmul.f32 %v7923_v58, %v8745_v43  ;;  %v8957_v34 = vadd.f32 %v8889_v42, %v522_v12 }
 0x14a   :  { %7936 = vrsqrt.f32 %v419_v5  ;;  %v401_v28 = vmul.f32 0.03125, %v349_v56  ;;  %v384_v11 = vmul.f32 0.03125, %v298_v55  ;;  %v593_v18 = vpack.c.bf16 %v8946_v40, %v8943_v10 }
 0x14b   :  { %v7925_v22 = vpop.eup %7924  ;;  %7938 = vrsqrt.f32 %v432_v62  ;;  %v523_v23 = vmul.f32 %v8878_v60, %v487_v2  ;;  %v536_v0 = vmul.f32 %v8878_v60, %v500_v26 }
 0x14c   :  { %v7927_v17 = vpop.eup %7926  ;;  %v433_v16 = vadd.f32 1e-05, %v401_v28  ;;  %v416_v30 = vadd.f32 1e-05, %v384_v11  ;;  %6854 = vmatprep.subr.bf16.mxu0 %v593_v18  ;;  %v501_v9 = vmul.f32 %v7925_v22, %v8748_v21 }
 0x14d   :  { %v301_v32 = vpop.xlane.xlu1 %300  ;;  %v340_v43 = vpop.xlane.xlu0 %339  ;;  %v8960_v48 = vadd.f32 %v8889_v42, %v523_v23  ;;  %v484_v27 = vmul.f32 %v7927_v17, %v8757_v59  ;;  %v8967_v54 = vadd.f32 %v8889_v42, %v536_v0 }
 0x14e   :  { %7940 = vrsqrt.f32 %v433_v16  ;;  %v385_v7 = vmul.f32 0.03125, %v301_v32  ;;  %v398_v20 = vmul.f32 0.03125, %v340_v43  ;;  %v537_v1 = vmul.f32 %v8878_v60, %v501_v9 }
 0x14f   :  { %v7929_v52 = vpop.eup %7928  ;;  %7942 = vrsqrt.f32 %v416_v30  ;;  %v585_v21 = vpack.c.bf16 %v8960_v48, %v8957_v34  ;;  %v520_v56 = vmul.f32 %v8878_v60, %v484_v27 }
 0x150   :  { %v7931_v8 = vpop.eup %7930  ;;  %v417_v13 = vadd.f32 1e-05, %v385_v7  ;;  %v430_v58 = vadd.f32 1e-05, %v398_v20  ;;  %v8970_v5 = vadd.f32 %v8889_v42, %v537_v1  ;;  %v485_v59 = vmul.f32 %v7929_v52, %v8760_v25 }
 0x151   :  { %6855 = vmatpush3.bf16.msra.mxu0 %v585_v21  ;;  %v343_v62 = vpop.xlane.xlu1 %342  ;;  %v292_v2 = vpop.xlane.xlu0 %291  ;;  %v498_v55 = vmul.f32 %v7931_v8, %v8769_v15  ;;  %v8981_v30 = vadd.f32 %v8889_v42, %v520_v56 }
 0x152   :  { %7944 = vrsqrt.f32 %v417_v13  ;;  %v399_v12 = vmul.f32 0.03125, %v343_v62  ;;  %v382_v26 = vmul.f32 0.03125, %v292_v2  ;;  %v592_v28 = vpack.c.bf16 %v8970_v5, %v8967_v54 }
 0x153   :  { %v7933_v11 = vpop.eup %7932  ;;  %7946 = vrsqrt.f32 %v430_v58  ;;  %v521_v18 = vmul.f32 %v8878_v60, %v485_v59  ;;  %v534_v22 = vmul.f32 %v8878_v60, %v498_v55 }
 0x154   :  { %v7935_v25 = vpop.eup %7934  ;;  %v431_v23 = vadd.f32 1e-05, %v399_v12  ;;  %v414_v0 = vadd.f32 1e-05, %v382_v26  ;;  %6856 = vmatprep.subr.bf16.mxu0 %v592_v28  ;;  %v499_v17 = vmul.f32 %v7933_v11, %v8772_v29 }
 0x155   :  { %v295_v16 = vpop.xlane.xlu1 %294  ;;  %v334_v15 = vpop.xlane.xlu0 %333  ;;  %v8984_v9 = vadd.f32 %v8889_v42, %v521_v18  ;;  %v482_v32 = vmul.f32 %v7935_v25, %v8781_v31  ;;  %v8991_v1 = vadd.f32 %v8889_v42, %v534_v22 }
 0x156   :  { %7948 = vrsqrt.f32 %v431_v23  ;;  %v383_v43 = vmul.f32 0.03125, %v295_v16  ;;  %v396_v27 = vmul.f32 0.03125, %v334_v15  ;;  %v535_v7 = vmul.f32 %v8878_v60, %v499_v17 }
 0x157   :  { %v7937_v20 = vpop.eup %7936  ;;  %7950 = vrsqrt.f32 %v414_v0  ;;  %v584_v29 = vpack.c.bf16 %v8984_v9, %v8981_v30  ;;  %v518_v62 = vmul.f32 %v8878_v60, %v482_v32 }
 0x158   :  { %v7939_v52 = vpop.eup %7938  ;;  %v415_v21 = vadd.f32 1e-05, %v383_v43  ;;  %v428_v8 = vadd.f32 1e-05, %v396_v27  ;;  %v8994_v13 = vadd.f32 %v8889_v42, %v535_v7  ;;  %v483_v31 = vmul.f32 %v7937_v20, %v8784_v33 }
 0x159   :  { %6857 = vmatpush3.bf16.msra.mxu0 %v584_v29  ;;  %v337_v58 = vpop.xlane.xlu1 %336  ;;  %v286_v59 = vpop.xlane.xlu0 %285  ;;  %v496_v2 = vmul.f32 %v7939_v52, %v8793_v47  ;;  %v9005_v47 = vadd.f32 %v8889_v42, %v518_v62 }
 0x15a   :  { %7952 = vrsqrt.f32 %v415_v21  ;;  %v397_v56 = vmul.f32 0.03125, %v337_v58  ;;  %v380_v55 = vmul.f32 0.03125, %v286_v59  ;;  %v591_v12 = vpack.c.bf16 %v8994_v13, %v8991_v1 }
 0x15b   :  { %v7941_v26 = vpop.eup %7940  ;;  %7954 = vrsqrt.f32 %v428_v8  ;;  %v519_v28 = vmul.f32 %v8878_v60, %v483_v31  ;;  %v532_v11 = vmul.f32 %v8878_v60, %v496_v2  ;;  %13051 = vst [vmem:[#allocation4_spill] sm:$0xff] %v9005_v47 }
 0x15c   :  { %v7943_v33 = vpop.eup %7942  ;;  %v429_v18 = vadd.f32 1e-05, %v397_v56  ;;  %v412_v22 = vadd.f32 1e-05, %v380_v55  ;;  %6858 = vmatprep.subr.bf16.mxu0 %v591_v12  ;;  %v497_v25 = vmul.f32 %v7941_v26, %v8796_v37 }
 0x15d   :  { %v289_v23 = vpop.xlane.xlu1 %288  ;;  %v9008_v0 = vadd.f32 %v8889_v42, %v519_v28  ;;  %v480_v17 = vmul.f32 %v7943_v33, %v8805_v63  ;;  %v9015_v37 = vadd.f32 %v8889_v42, %v532_v11 }
 0x15e   :  { %7956 = vrsqrt.f32 %v429_v18  ;;  %v381_v16 = vmul.f32 0.03125, %v289_v23  ;;  %v533_v15 = vmul.f32 %v8878_v60, %v497_v25 }
 0x15f   :  { %13052 = vst [vmem:[#allocation5_spill] sm:$0xff] %v9008_v0  ;;  %v7945_v32 = vpop.eup %7944  ;;  %7958 = vrsqrt.f32 %v412_v22  ;;  %v583_v43 = vpack.c.bf16 %v9008_v0, %v9005_v47  ;;  %13053 = vst [vmem:[#allocation6_spill] sm:$0xff] %v9015_v37  ;;  %v516_v63 = vmul.f32 %v8878_v60, %v480_v17 }
 0x160   :  { %v7947_v27 = vpop.eup %7946  ;;  %v413_v7 = vadd.f32 1e-05, %v381_v16  ;;  %v9018_v20 = vadd.f32 %v8889_v42, %v533_v15  ;;  %v481_v29 = vmul.f32 %v7945_v32, %v8808_v41 }
 0x161   :  { %6859 = vmatpush3.bf16.msra.mxu0 %v583_v43  ;;  %v494_v52 = vmul.f32 %v7947_v27, %v8817_v19  ;;  %v9027_v59 = vadd.f32 %v8889_v42, %v516_v63 }
 0x162   :  { %13054 = vst [vmem:[#allocation7_spill] sm:$0xff] %v9018_v20  ;;  %7960 = vrsqrt.f32 %v413_v7  ;;  %v590_v21 = vpack.c.bf16 %v9018_v20, %v9015_v37  ;;  %v517_v8 = vmul.f32 %v8878_v60, %v481_v29 }
 0x163   :  { %v7949_v31 = vpop.eup %7948  ;;  %13055 = vst [vmem:[#allocation8_spill] sm:$0xff] %v9027_v59  ;;  %v530_v2 = vmul.f32 %v8878_v60, %v494_v52 }
 0x164   :  { %v7951_v58 = vpop.eup %7950  ;;  %6860 = vmatprep.subr.bf16.mxu0 %v590_v21  ;;  %v9030_v62 = vadd.f32 %v8889_v42, %v517_v8  ;;  %v495_v41 = vmul.f32 %v7949_v31, %v8820_v45 }
 0x165   :  { %v478_v19 = vmul.f32 %v7951_v58, %v8829_v35  ;;  %v9039_v28 = vadd.f32 %v8889_v42, %v530_v2  ;;  %v7799_v58 = vld [vmem:[%s12971_s0 + $0x14] ss:$8 sps:$4 sm:$0xff]  }
 0x166   :  { %13056 = vst [vmem:[#allocation9_spill] sm:$0xff] %v9030_v62  ;;  %v582_v56 = vpack.c.bf16 %v9030_v62, %v9027_v59  ;;  %v531_v55 = vmul.f32 %v8878_v60, %v495_v41  ;;  %v7804_v41 = vld [vmem:[%s12971_s0 + $0x20] ss:$8 sps:$4 sm:$0xff]   ;;  %v7805_v2 = vld [vmem:[%s12971_s0 + $0x34] ss:$8 sps:$4 sm:$0xff]  }
 0x167   :  { %v7953_v12 = vpop.eup %7952  ;;  %13057 = vst [vmem:[#allocation10_spill] sm:$0xff] %v9039_v28  ;;  %v514_v33 = vmul.f32 %v8878_v60, %v478_v19  ;;  %v7807_v19 = vld [vmem:[%s12971_s0 + $0x30] ss:$8 sps:$4 sm:$0xff]  }
 0x168   :  { %v7955_v26 = vpop.eup %7954  ;;  %6861 = vmatpush3.bf16.msra.mxu0 %v582_v56  ;;  %v9042_v11 = vadd.f32 %v8889_v42, %v531_v55  ;;  %v479_v45 = vmul.f32 %v7953_v12, %v8832_v49  ;;  %v7808_v56 = vld [vmem:[%s12971_s0 + $0x44] ss:$8 sps:$4 sm:$0xff]   ;;  %v7810_v55 = vld [vmem:[%s12971_s0 + $0x40] ss:$8 sps:$4 sm:$0xff]   ;;  %v7811_v12 = vld [vmem:[%s12971_s0 + $0x54] ss:$8 sps:$4 sm:$0xff]  }
 0x169   :  { %v492_v35 = vmul.f32 %v7955_v26, %v8841_v51  ;;  %v9051_v17 = vadd.f32 %v8889_v42, %v514_v33  ;;  %v7813_v26 = vld [vmem:[%s12971_s0 + $0x50] ss:$8 sps:$4 sm:$0xff]   ;;  %v7816_v33 = vld [vmem:[%s12971_s0 + $0x60] ss:$8 sps:$4 sm:$0xff]  }
 0x16a   :  { %13058 = vst [vmem:[#allocation11_spill] sm:$0xff] %v9042_v11  ;;  %v589_v18 = vpack.c.bf16 %v9042_v11, %v9039_v28  ;;  %v515_v22 = vmul.f32 %v8878_v60, %v479_v45  ;;  %v7814_v45 = vld [vmem:[%s12971_s0 + $0x64] ss:$8 sps:$4 sm:$0xff]  }
 0x16b   :  { %v7957_v25 = vpop.eup %7956  ;;  %13059 = vst [vmem:[#allocation12_spill] sm:$0xff] %v9051_v17  ;;  %v528_v15 = vmul.f32 %v8878_v60, %v492_v35  ;;  %v7817_v35 = vld [vmem:[%s12971_s0 + $0x74] ss:$8 sps:$4 sm:$0xff]  }
 0x16c   :  { %v7959_v23 = vpop.eup %7958  ;;  %6862 = vmatprep.subr.bf16.mxu0 %v589_v18  ;;  %v9054_v16 = vadd.f32 %v8889_v42, %v515_v22  ;;  %v493_v49 = vmul.f32 %v7957_v25, %v8844_v53  ;;  %v7819_v18 = vld [vmem:[%s12971_s0 + $0x70] ss:$8 sps:$4 sm:$0xff]   ;;  %v7820_v22 = vld [vmem:[%s12971_s0 + $0x84] ss:$8 sps:$4 sm:$0xff]   ;;  %v7822_v25 = vld [vmem:[%s12971_s0 + $0x80] ss:$8 sps:$4 sm:$0xff]  }
 0x16d   :  { %v476_v51 = vmul.f32 %v7959_v23, %v8853_v4  ;;  %v9063_v7 = vadd.f32 %v8889_v42, %v528_v15  ;;  %v7823_v23 = vld [vmem:[%s12971_s0 + $0x94] ss:$8 sps:$4 sm:$0xff]   ;;  %v7826_v15 = vld [vmem:[%s12971_s0 + $0xa4] ss:$8 sps:$4 sm:$0xff]  }
 0x16e   :  { %13060 = vst [vmem:[#allocation13_spill] sm:$0xff] %v9054_v16  ;;  %v581_v32 = vpack.c.bf16 %v9054_v16, %v9051_v17  ;;  %v529_v43 = vmul.f32 %v8878_v60, %v493_v49  ;;  %v7825_v49 = vld [vmem:[%s12971_s0 + $0x90] ss:$8 sps:$4 sm:$0xff]  }
 0x16f   :  { %v7961_v27 = vpop.eup %7960  ;;  %13061 = vst [vmem:[#allocation14_spill] sm:$0xff] %v9063_v7  ;;  %v512_v53 = vmul.f32 %v8878_v60, %v476_v51  ;;  %v7828_v51 = vld [vmem:[%s12971_s0 + $0xa0] ss:$8 sps:$4 sm:$0xff]  }
 0x170   :  { %6863 = vmatpush3.bf16.msra.mxu0 %v581_v32  ;;  %v9066_v29 = vadd.f32 %v8889_v42, %v529_v43  ;;  %v477_v63 = vmul.f32 %v7961_v27, %v8856_v57  ;;  %v7798_v57 = vld [vmem:[%s12971_s0] ss:$8 sps:$4 sm:$0xff]   ;;  %v7829_v43 = vld [vmem:[%s12971_s0 + $0xb4] ss:$8 sps:$4 sm:$0xff]  }
 0x171   :  { %v9074_v21 = vadd.f32 %v8889_v42, %v512_v53  ;;  %v7844_v32 = vld [vmem:[%s12973_s2 + $0x8] sm:$0xff]   ;;  %v7845_v27 = vld [vmem:[%s12973_s2] sm:$0xff]  }
 0x172   :  { %13062 = vst [vmem:[#allocation15_spill] sm:$0xff] %v9066_v29  ;;  %v588_v4 = vpack.c.bf16 %v9066_v29, %v9063_v7  ;;  %v513_v52 = vmul.f32 %v8878_v60, %v477_v63  ;;  %v7801_v60 = vld [vmem:[%s12971_s0 + $0x10] ss:$8 sps:$4 sm:$0xff]   ;;  %7384 = vmatprep.subr.bf16.mxu1 %v7844_v32  ;;  %v7832_v53 = vld [vmem:[%s12971_s0 + $0xc4] ss:$8 sps:$4 sm:$0xff]  }
 0x173   :  { %13063 = vst [vmem:[#allocation16_spill] sm:$0xff] %v9074_v21  ;;  %7385 = vmatpush3.bf16.msra.mxu1 %v7844_v32  ;;  %v7831_v63 = vld [vmem:[%s12971_s0 + $0xb0] ss:$8 sps:$4 sm:$0xff]  }
 0x174   :  { %6864 = vmatprep.subr.bf16.mxu0 %v588_v4  ;;  %v9077_v8 = vadd.f32 %v8889_v42, %v513_v52  ;;  %v7802_v42 = vld [vmem:[%s12971_s0 + $0x24] ss:$8 sps:$4 sm:$0xff]   ;;  %7386 = vmatprep.subr.bf16.mxu1 %v7845_v27  ;;  %v7834_v4 = vld [vmem:[%s12971_s0 + $0xc0] ss:$8 sps:$4 sm:$0xff]   ;;  %v7835_v52 = vld [vmem:[%s12971_s0 + $0xd4] ss:$8 sps:$4 sm:$0xff]  }
 0x176   :  { %13064 = vst [vmem:[#allocation17_spill] sm:$0xff] %v9077_v8  ;;  %v580_v31 = vpack.c.bf16 %v9077_v8, %v9074_v21 }
 0x177   :  { %7387 = vmatpush3.bf16.msra.mxu1 %v7845_v27 }
 0x178   :  { %6865 = vmatpush3.bf16.msra.mxu0 %v580_v31  ;;  %v7837_v31 = vld [vmem:[%s12971_s0 + $0xd0] ss:$8 sps:$4 sm:$0xff]  }
 0x17b   :  { %789 = vmatmul.mubr.bf16.vlgmr.msra.gmra.mxu0 %v7798_v57  ;;  %v7838_v57 = vld [vmem:[%s12971_s0 + $0xe4] ss:$8 sps:$4 sm:$0xff]  }
 0x17c   :  { %796 = vmatprep.mubr.bf16.mxu0 %v7799_v58  ;;  %v7840_v58 = vld [vmem:[%s12971_s0 + $0xe0] ss:$8 sps:$4 sm:$0xff]  }
 0x183   :  { %797 = vmatmul.mubr.bf16.gmra.mxu0 %v7801_v60  ;;  %v7841_v60 = vld [vmem:[%s12971_s0 + $0xf4] ss:$8 sps:$4 sm:$0xff]  }
 0x184   :  { %804 = vmatprep.mubr.bf16.mxu0 %v7802_v42  ;;  %v7843_v42 = vld [vmem:[%s12971_s0 + $0xf0] ss:$8 sps:$4 sm:$0xff]  }
 0x18b   :  { %805 = vmatmul.mubr.bf16.gmra.mxu0 %v7804_v41 }
 0x18c   :  { %812 = vmatprep.mubr.bf16.mxu0 %v7805_v2 }
 0x193   :  { %813 = vmatmul.mubr.bf16.gmra.mxu0 %v7807_v19 }
 0x194   :  { %820 = vmatprep.mubr.bf16.mxu0 %v7808_v56  ;;  %v7846_v56 = vld [vmem:[%s12974_s3 + $0x38] sm:$0xff]  }
 0x195   :  { %7420 = vmatprep.subr.bf16.mxu1 %v7846_v56 }
 0x19b   :  { %821 = vmatmul.mubr.bf16.gmra.mxu0 %v7810_v55 }
 0x19c   :  { %828 = vmatprep.mubr.bf16.mxu0 %v7811_v12 }
 0x1a3   :  { %829 = vmatmul.mubr.bf16.gmra.mxu0 %v7813_v26 }
 0x1a4   :  { %836 = vmatprep.mubr.bf16.mxu0 %v7814_v45 }
 0x1ab   :  { %837 = vmatmul.mubr.bf16.gmra.mxu0 %v7816_v33 }
 0x1ac   :  { %844 = vmatprep.mubr.bf16.mxu0 %v7817_v35 }
 0x1b3   :  { %845 = vmatmul.mubr.bf16.gmra.mxu0 %v7819_v18 }
 0x1b4   :  { %852 = vmatprep.mubr.bf16.mxu0 %v7820_v22 }
 0x1bb   :  { %853 = vmatmul.mubr.bf16.gmra.mxu0 %v7822_v25 }
 0x1bc   :  { %860 = vmatprep.mubr.bf16.mxu0 %v7823_v23  ;;  %v7847_v23 = vld [vmem:[%s12974_s3 + $0x30] sm:$0xff]  }
 0x1c3   :  { %861 = vmatmul.mubr.bf16.gmra.mxu0 %v7825_v49 }
 0x1c4   :  { %868 = vmatprep.mubr.bf16.mxu0 %v7826_v15 }
 0x1cb   :  { %869 = vmatmul.mubr.bf16.gmra.mxu0 %v7828_v51 }
 0x1cc   :  { %876 = vmatprep.mubr.bf16.mxu0 %v7829_v43  ;;  %v7848_v43 = vld [vmem:[%s12974_s3 + $0x28] sm:$0xff]  }
 0x1d3   :  { %877 = vmatmul.mubr.bf16.gmra.mxu0 %v7831_v63 }
 0x1d4   :  { %884 = vmatprep.mubr.bf16.mxu0 %v7832_v53 }
 0x1db   :  { %885 = vmatmul.mubr.bf16.gmra.mxu0 %v7834_v4 }
 0x1dc   :  { %892 = vmatprep.mubr.bf16.mxu0 %v7835_v52 }
 0x1e3   :  { %893 = vmatmul.mubr.bf16.gmra.mxu0 %v7837_v31  ;;  %v7849_v31 = vld [vmem:[%s12974_s3 + $0x20] sm:$0xff]  }
 0x1e4   :  { %900 = vmatprep.mubr.bf16.mxu0 %v7838_v57 }
 0x1eb   :  { %901 = vmatmul.mubr.bf16.gmra.mxu0 %v7840_v58 }
 0x1ec   :  { %908 = vmatprep.mubr.bf16.mxu0 %v7841_v60  ;;  %v7850_v60 = vld [vmem:[%s12974_s3 + $0x18] sm:$0xff]  }
 0x1f3   :  { %909 = vmatmul.mubr.bf16.gmra.mxu0 %v7843_v42 }
 0x1f4   :  { %2742 = vmatprep.mubr.bf16.mxu0 %v8869_v61 }
 0x23b   :  { %v6866_v41 = vpop.f32.mrf.mxu0 }
 0x23d   :  { %v6867_v2 = vpop.f32.mrf.mxu0 }
 0x23e   :  { %v6868_v12 = vadd.f32 %v6867_v2, %v6866_v41 }
 0x23f   :  { %v6869_v19 = vpop.f32.mrf.mxu0 }
 0x241   :  { %v6870_v55 = vpop.f32.mrf.mxu0 }
 0x242   :  { %v6871_v26 = vadd.f32 %v6870_v55, %v6869_v19 }
 0x243   :  { %v6872_v45 = vpop.f32.mrf.mxu0 }
 0x244   :  { %v917_v33 = vpack.c.bf16 %v6871_v26, %v6868_v12 }
 0x245   :  { %v6873_v35 = vpop.f32.mrf.mxu0 }
 0x246   :  { %7388 = vmatprep.mubr.msk.bf16.mxu1 %vm90_vm0, %v917_v33  ;;  %v6874_v25 = vadd.f32 %v6873_v35, %v6872_v45 }
 0x247   :  { %v6875_v18 = vpop.f32.mrf.mxu0 }
 0x249   :  { %v6876_v22 = vpop.f32.mrf.mxu0 }
 0x24a   :  { %v6877_v61 = vadd.f32 %v6876_v22, %v6875_v18 }
 0x24b   :  { %v6878_v49 = vpop.f32.mrf.mxu0 }
 0x24c   :  { %v918_v15 = vpack.c.bf16 %v6877_v61, %v6874_v25 }
 0x24d   :  { %v6879_v51 = vpop.f32.mrf.mxu0 }
 0x24e   :  { %7389 = vmatmul.mubr.msk.bf16.vlgmr.msra.gmra.mxu1 %vm90_vm0, %v918_v15  ;;  %v6880_v63 = vadd.f32 %v6879_v51, %v6878_v49 }
 0x24f   :  { %v6881_v32 = vpop.f32.mrf.mxu0  ;;  %7421 = vmatpush3.bf16.msra.mxu1 %v7846_v56 }
 0x250   :  { %7422 = vmatprep.subr.bf16.mxu1 %v7847_v23 }
 0x251   :  { %v6882_v27 = vpop.f32.mrf.mxu0 }
 0x252   :  { %v6883_v53 = vadd.f32 %v6882_v27, %v6881_v32 }
 0x253   :  { %v6884_v4 = vpop.f32.mrf.mxu0  ;;  %7423 = vmatpush3.bf16.msra.mxu1 %v7847_v23 }
 0x254   :  { %v919_v52 = vpack.c.bf16 %v6883_v53, %v6880_v63  ;;  %7424 = vmatprep.subr.bf16.mxu1 %v7848_v43 }
 0x255   :  { %v6885_v57 = vpop.f32.mrf.mxu0 }
 0x256   :  { %7392 = vmatprep.mubr.msk.bf16.mxu1 %vm90_vm0, %v919_v52  ;;  %v6886_v41 = vadd.f32 %v6885_v57, %v6884_v4 }
 0x257   :  { %v6887_v58 = vpop.f32.mrf.mxu0  ;;  %7425 = vmatpush3.bf16.msra.mxu1 %v7848_v43 }
 0x258   :  { %7426 = vmatprep.subr.bf16.mxu1 %v7849_v31 }
 0x259   :  { %v6888_v42 = vpop.f32.mrf.mxu0 }
 0x25a   :  { %v6889_v2 = vadd.f32 %v6888_v42, %v6887_v58 }
 0x25b   :  { %v6890_v19 = vpop.f32.mrf.mxu0  ;;  %7427 = vmatpush3.bf16.msra.mxu1 %v7849_v31 }
 0x25c   :  { %v920_v56 = vpack.c.bf16 %v6889_v2, %v6886_v41  ;;  %7428 = vmatprep.subr.bf16.mxu1 %v7850_v60 }
 0x25d   :  { %v6891_v55 = vpop.f32.mrf.mxu0 }
 0x25e   :  { %7393 = vmatmul.mubr.msk.bf16.gmra.mxu1 %vm90_vm0, %v920_v56  ;;  %v6892_v45 = vadd.f32 %v6891_v55, %v6890_v19 }
 0x25f   :  { %v6893_v12 = vpop.f32.mrf.mxu0  ;;  %7429 = vmatpush3.bf16.msra.mxu1 %v7850_v60 }
 0x261   :  { %v6894_v26 = vpop.f32.mrf.mxu0 }
 0x262   :  { %v6895_v33 = vadd.f32 %v6894_v26, %v6893_v12 }
 0x263   :  { %v6896_v35 = vpop.f32.mrf.mxu0 }
 0x264   :  { %v921_v18 = vpack.c.bf16 %v6895_v33, %v6892_v45 }
 0x265   :  { %v6897_v22 = vpop.f32.mrf.mxu0 }
 0x266   :  { %7396 = vmatprep.mubr.msk.bf16.mxu1 %vm90_vm0, %v921_v18  ;;  %v6898_v23 = vadd.f32 %v6897_v22, %v6896_v35 }
 0x267   :  { %v6899_v25 = vpop.f32.mrf.mxu0 }
 0x269   :  { %v6900_v61 = vpop.f32.mrf.mxu0 }
 0x26a   :  { %v6901_v49 = vadd.f32 %v6900_v61, %v6899_v25 }
 0x26b   :  { %v6902_v15 = vpop.f32.mrf.mxu0 }
 0x26c   :  { %v922_v51 = vpack.c.bf16 %v6901_v49, %v6898_v23 }
 0x26d   :  { %v6903_v32 = vpop.f32.mrf.mxu0 }
 0x26e   :  { %7397 = vmatmul.mubr.msk.bf16.gmra.mxu1 %vm90_vm0, %v922_v51  ;;  %v6904_v63 = vadd.f32 %v6903_v32, %v6902_v15  ;;  %v7851_v51 = vld [vmem:[%s12974_s3 + $0x10] sm:$0xff]  }
 0x26f   :  { %v6905_v43 = vpop.f32.mrf.mxu0  ;;  %7430 = vmatprep.subr.bf16.mxu1 %v7851_v51 }
 0x270   :  { %7431 = vmatpush3.bf16.msra.mxu1 %v7851_v51 }
 0x271   :  { %v6906_v27 = vpop.f32.mrf.mxu0 }
 0x272   :  { %v6907_v53 = vadd.f32 %v6906_v27, %v6905_v43  ;;  %v7852_v27 = vld [vmem:[%s12974_s3 + $0x8] sm:$0xff]  }
 0x273   :  { %v6908_v4 = vpop.f32.mrf.mxu0  ;;  %7432 = vmatprep.subr.bf16.mxu1 %v7852_v27 }
 0x274   :  { %v923_v52 = vpack.c.bf16 %v6907_v53, %v6904_v63  ;;  %7433 = vmatpush3.bf16.msra.mxu1 %v7852_v27 }
 0x275   :  { %v6909_v31 = vpop.f32.mrf.mxu0 }
 0x276   :  { %7400 = vmatprep.mubr.msk.bf16.mxu1 %vm90_vm0, %v923_v52  ;;  %v6910_v60 = vadd.f32 %v6909_v31, %v6908_v4 }
 0x277   :  { %v6911_v57 = vpop.f32.mrf.mxu0 }
 0x279   :  { %v6912_v58 = vpop.f32.mrf.mxu0 }
 0x27a   :  { %v6913_v42 = vadd.f32 %v6912_v58, %v6911_v57  ;;  %v7853_v57 = vld [vmem:[%s12974_s3] sm:$0xff]  }
 0x27b   :  { %v6914_v41 = vpop.f32.mrf.mxu0  ;;  %7434 = vmatprep.subr.bf16.mxu1 %v7853_v57 }
 0x27c   :  { %v924_v2 = vpack.c.bf16 %v6913_v42, %v6910_v60  ;;  %7435 = vmatpush3.bf16.msra.mxu1 %v7853_v57 }
 0x27d   :  { %v6915_v19 = vpop.f32.mrf.mxu0 }
 0x27e   :  { %7401 = vmatmul.mubr.msk.bf16.gmra.mxu1 %vm90_vm0, %v924_v2  ;;  %v6916_v12 = vadd.f32 %v6915_v19, %v6914_v41 }
 0x27f   :  { %v6917_v56 = vpop.f32.mrf.mxu0 }
 0x281   :  { %v6918_v55 = vpop.f32.mrf.mxu0 }
 0x282   :  { %v6919_v26 = vadd.f32 %v6918_v55, %v6917_v56 }
 0x283   :  { %v6920_v45 = vpop.f32.mrf.mxu0 }
 0x284   :  { %v925_v33 = vpack.c.bf16 %v6919_v26, %v6916_v12 }
 0x285   :  { %v6921_v35 = vpop.f32.mrf.mxu0 }
 0x286   :  { %7404 = vmatprep.mubr.msk.bf16.mxu1 %vm90_vm0, %v925_v33  ;;  %v6922_v25 = vadd.f32 %v6921_v35, %v6920_v45 }
 0x287   :  { %v6923_v18 = vpop.f32.mrf.mxu0 }
 0x289   :  { %v6924_v22 = vpop.f32.mrf.mxu0 }
 0x28a   :  { %v6925_v61 = vadd.f32 %v6924_v22, %v6923_v18 }
 0x28b   :  { %v6926_v23 = vpop.f32.mrf.mxu0 }
 0x28c   :  { %v926_v49 = vpack.c.bf16 %v6925_v61, %v6922_v25 }
 0x28d   :  { %v6927_v15 = vpop.f32.mrf.mxu0 }
 0x28e   :  { %7405 = vmatmul.mubr.msk.bf16.gmra.mxu1 %vm90_vm0, %v926_v49  ;;  %v6928_v63 = vadd.f32 %v6927_v15, %v6926_v23 }
 0x28f   :  { %v6929_v32 = vpop.f32.mrf.mxu0 }
 0x291   :  { %v6930_v43 = vpop.f32.mrf.mxu0 }
 0x292   :  { %v6931_v53 = vadd.f32 %v6930_v43, %v6929_v32 }
 0x293   :  { %v6932_v4 = vpop.f32.mrf.mxu0 }
 0x294   :  { %v927_v52 = vpack.c.bf16 %v6931_v53, %v6928_v63 }
 0x295   :  { %v6933_v31 = vpop.f32.mrf.mxu0 }
 0x296   :  { %7408 = vmatprep.mubr.msk.bf16.mxu1 %vm90_vm0, %v927_v52  ;;  %v6934_v42 = vadd.f32 %v6933_v31, %v6932_v4 }
 0x297   :  { %v6935_v58 = vpop.f32.mrf.mxu0 }
 0x299   :  { %v6936_v60 = vpop.f32.mrf.mxu0 }
 0x29a   :  { %v6937_v41 = vadd.f32 %v6936_v60, %v6935_v58 }
 0x29b   :  { %v6938_v2 = vpop.f32.mrf.mxu0 }
 0x29c   :  { %v928_v19 = vpack.c.bf16 %v6937_v41, %v6934_v42  ;;  %v7854_v41 = vld [vmem:[%s12975_s4 + $0x38] sm:$0xff]  }
 0x29d   :  { %v6939_v56 = vpop.f32.mrf.mxu0  ;;  %7468 = vmatprep.subr.bf16.mxu1 %v7854_v41 }
 0x29e   :  { %7409 = vmatmul.mubr.msk.bf16.gmra.mxu1 %vm90_vm0, %v928_v19  ;;  %v6940_v26 = vadd.f32 %v6939_v56, %v6938_v2  ;;  %v9227_v56 = vld [vmem:[%s12972_s5] sm:$0xff] }
 0x29f   :  { %v6941_v55 = vpop.f32.mrf.mxu0 }
 0x2a1   :  { %v6942_v12 = vpop.f32.mrf.mxu0 }
 0x2a2   :  { %v6943_v45 = vadd.f32 %v6942_v12, %v6941_v55  ;;  %v9231_v55 = vrot.slane %v9227_v56, %v8881_v44 }
 0x2a3   :  { %v6944_v33 = vpop.f32.mrf.mxu0 }
 0x2a4   :  { %v929_v35 = vpack.c.bf16 %v6943_v45, %v6940_v26 }
 0x2a5   :  { %v6945_v18 = vpop.f32.mrf.mxu0 }
 0x2a6   :  { %7412 = vmatprep.mubr.msk.bf16.mxu1 %vm90_vm0, %v929_v35  ;;  %v6946_v61 = vadd.f32 %v6945_v18, %v6944_v33 }
 0x2a7   :  { %v6947_v22 = vpop.f32.mrf.mxu0 }
 0x2a9   :  { %v6948_v25 = vpop.f32.mrf.mxu0 }
 0x2aa   :  { %v6949_v23 = vadd.f32 %v6948_v25, %v6947_v22  ;;  %v7855_v22 = vld [vmem:[%s12975_s4 + $0x30] sm:$0xff]  }
 0x2ab   :  { %v6950_v49 = vpop.f32.mrf.mxu0 }
 0x2ac   :  { %v930_v15 = vpack.c.bf16 %v6949_v23, %v6946_v61  ;;  %v7856_v23 = vld [vmem:[%s12975_s4 + $0x28] sm:$0xff]  }
 0x2ad   :  { %v6951_v51 = vpop.f32.mrf.mxu0 }
 0x2ae   :  { %7413 = vmatmul.mubr.msk.bf16.gmra.mxu1 %vm90_vm0, %v930_v15  ;;  %v6952_v27 = vadd.f32 %v6951_v51, %v6950_v49  ;;  %v7857_v51 = vld [vmem:[%s12975_s4 + $0x20] sm:$0xff]  }
 0x2af   :  { %v6953_v32 = vpop.f32.mrf.mxu0 }
 0x2b1   :  { %v6954_v43 = vpop.f32.mrf.mxu0 }
 0x2b2   :  { %v6955_v63 = vadd.f32 %v6954_v43, %v6953_v32 }
 0x2b3   :  { %v6956_v53 = vpop.f32.mrf.mxu0 }
 0x2b4   :  { %v931_v4 = vpack.c.bf16 %v6955_v63, %v6952_v27  ;;  %v7858_v63 = vld [vmem:[%s12975_s4 + $0x18] sm:$0xff]  }
 0x2b5   :  { %v6957_v52 = vpop.f32.mrf.mxu0 }
 0x2b6   :  { %7416 = vmatprep.mubr.msk.bf16.mxu1 %vm90_vm0, %v931_v4  ;;  %v6958_v58 = vadd.f32 %v6957_v52, %v6956_v53 }
 0x2b7   :  { %v6959_v31 = vpop.f32.mrf.mxu0 }
 0x2b9   :  { %v6960_v57 = vpop.f32.mrf.mxu0 }
 0x2ba   :  { %v6961_v60 = vadd.f32 %v6960_v57, %v6959_v31 }
 0x2bc   :  { %v932_v42 = vpack.c.bf16 %v6961_v60, %v6958_v58 }
 0x2be   :  { %7417 = vmatmul.mubr.msk.bf16.gmra.mxu1 %vm90_vm0, %v932_v42 }
 0x30e   :  { %v7390_v2 = vpop.f32.mrf.mxu1 }
 0x30f   :  { %v1044_v18 = vadd.f32 %v7390_v2, %v9231_v55 }
 0x310   :  { %v1035_v19 = vpop.f32.mrf.mxu1 }
 0x311   :  { %v1036_v33 = vadd.f32 %v1035_v19, %v9231_v55 }
 0x312   :  { %v7391_v12 = vpop.f32.mrf.mxu1 }
 0x313   :  { %v1047_v26 = vadd.f32 %v7391_v12, %v9231_v55 }
 0x314   :  { %v1038_v45 = vpop.f32.mrf.mxu1 }
 0x315   :  { %v1039_v35 = vadd.f32 %v1038_v45, %v9231_v55  ;;  %v1163_v61 = vpack.c.bf16 %v1047_v26, %v1044_v18 }
 0x317   :  { %v1162_v25 = vpack.c.bf16 %v1039_v35, %v1036_v33 }
 0x319   :  { %7436 = vmatprep.mubr.bf16.mxu1 %v1162_v25 }
 0x31a   :  { %7437 = vmatmul.mubr.bf16.vlgmr.msra.gmra.mxu1 %v1163_v61 }
 0x31b   :  { %7469 = vmatpush3.bf16.msra.mxu1 %v7854_v41 }
 0x31c   :  { %7470 = vmatprep.subr.bf16.mxu1 %v7855_v22 }
 0x31e   :  { %v7394_v49 = vpop.f32.mrf.mxu1 }
 0x31f   :  { %7471 = vmatpush3.bf16.msra.mxu1 %v7855_v22  ;;  %v1060_v52 = vadd.f32 %v7394_v49, %v9231_v55 }
 0x320   :  { %v1051_v15 = vpop.f32.mrf.mxu1  ;;  %7472 = vmatprep.subr.bf16.mxu1 %v7856_v23 }
 0x321   :  { %v1052_v53 = vadd.f32 %v1051_v15, %v9231_v55 }
 0x322   :  { %v7395_v32 = vpop.f32.mrf.mxu1 }
 0x323   :  { %7473 = vmatpush3.bf16.msra.mxu1 %v7856_v23  ;;  %v1063_v43 = vadd.f32 %v7395_v32, %v9231_v55 }
 0x324   :  { %v1054_v27 = vpop.f32.mrf.mxu1  ;;  %7474 = vmatprep.subr.bf16.mxu1 %v7857_v51 }
 0x325   :  { %v1055_v4 = vadd.f32 %v1054_v27, %v9231_v55  ;;  %v1165_v57 = vpack.c.bf16 %v1063_v43, %v1060_v52 }
 0x327   :  { %v1164_v31 = vpack.c.bf16 %v1055_v4, %v1052_v53  ;;  %7475 = vmatpush3.bf16.msra.mxu1 %v7857_v51 }
 0x328   :  { %7476 = vmatprep.subr.bf16.mxu1 %v7858_v63 }
 0x329   :  { %7440 = vmatprep.mubr.bf16.mxu1 %v1164_v31 }
 0x32a   :  { %7441 = vmatmul.mubr.bf16.gmra.mxu1 %v1165_v57 }
 0x32b   :  { %7477 = vmatpush3.bf16.msra.mxu1 %v7858_v63 }
 0x32e   :  { %v7398_v58 = vpop.f32.mrf.mxu1 }
 0x32f   :  { %v1076_v26 = vadd.f32 %v7398_v58, %v9231_v55 }
 0x330   :  { %v1067_v60 = vpop.f32.mrf.mxu1 }
 0x331   :  { %v1068_v19 = vadd.f32 %v1067_v60, %v9231_v55 }
 0x332   :  { %v7399_v42 = vpop.f32.mrf.mxu1 }
 0x333   :  { %v1079_v41 = vadd.f32 %v7399_v42, %v9231_v55  ;;  %v7859_v42 = vld [vmem:[%s12975_s4 + $0x10] sm:$0xff]  }
 0x334   :  { %v1070_v2 = vpop.f32.mrf.mxu1  ;;  %7478 = vmatprep.subr.bf16.mxu1 %v7859_v42 }
 0x335   :  { %v1071_v12 = vadd.f32 %v1070_v2, %v9231_v55  ;;  %v1167_v33 = vpack.c.bf16 %v1079_v41, %v1076_v26  ;;  %7479 = vmatpush3.bf16.msra.mxu1 %v7859_v42  ;;  %v7860_v2 = vld [vmem:[%s12975_s4 + $0x8] sm:$0xff]   ;;  %v7861_v26 = vld [vmem:[%s12975_s4] sm:$0xff]  }
 0x336   :  { %7480 = vmatprep.subr.bf16.mxu1 %v7860_v2 }
 0x337   :  { %v1166_v45 = vpack.c.bf16 %v1071_v12, %v1068_v19 }
 0x339   :  { %7444 = vmatprep.mubr.bf16.mxu1 %v1166_v45  ;;  %7481 = vmatpush3.bf16.msra.mxu1 %v7860_v2 }
 0x33a   :  { %7445 = vmatmul.mubr.bf16.gmra.mxu1 %v1167_v33  ;;  %7482 = vmatprep.subr.bf16.mxu1 %v7861_v26 }
 0x33d   :  { %7483 = vmatpush3.bf16.msra.mxu1 %v7861_v26  ;;  %v9287_v26 = vsub.s32 1, %v8872_v36 }
 0x33e   :  { %v7402_v35 = vpop.f32.mrf.mxu1 }
 0x33f   :  { %v1092_v15 = vadd.f32 %v7402_v35, %v9231_v55  ;;  %13065 = vst [vmem:[#allocation18_spill] sm:$0xff] %v9287_v26 }
 0x340   :  { %v1083_v18 = vpop.f32.mrf.mxu1 }
 0x341   :  { %v1084_v23 = vadd.f32 %v1083_v18, %v9231_v55 }
 0x342   :  { %v7403_v22 = vpop.f32.mrf.mxu1 }
 0x343   :  { %v1095_v25 = vadd.f32 %v7403_v22, %v9231_v55 }
 0x344   :  { %v1086_v61 = vpop.f32.mrf.mxu1 }
 0x345   :  { %v1087_v49 = vadd.f32 %v1086_v61, %v9231_v55  ;;  %v1169_v32 = vpack.c.bf16 %v1095_v25, %v1092_v15 }
 0x347   :  { %v1168_v51 = vpack.c.bf16 %v1087_v49, %v1084_v23 }
 0x349   :  { %7448 = vmatprep.mubr.bf16.mxu1 %v1168_v51 }
 0x34a   :  { %7449 = vmatmul.mubr.bf16.gmra.mxu1 %v1169_v32 }
 0x34e   :  { %v7406_v43 = vpop.f32.mrf.mxu1 }
 0x34f   :  { %v1108_v57 = vadd.f32 %v7406_v43, %v9231_v55 }
 0x350   :  { %v1099_v27 = vpop.f32.mrf.mxu1 }
 0x351   :  { %v1100_v52 = vadd.f32 %v1099_v27, %v9231_v55 }
 0x352   :  { %v7407_v63 = vpop.f32.mrf.mxu1 }
 0x353   :  { %v1111_v53 = vadd.f32 %v7407_v63, %v9231_v55 }
 0x354   :  { %v1102_v4 = vpop.f32.mrf.mxu1 }
 0x355   :  { %v1103_v31 = vadd.f32 %v1102_v4, %v9231_v55  ;;  %v1171_v60 = vpack.c.bf16 %v1111_v53, %v1108_v57 }
 0x357   :  { %v1170_v58 = vpack.c.bf16 %v1103_v31, %v1100_v52 }
 0x359   :  { %7452 = vmatprep.mubr.bf16.mxu1 %v1170_v58 }
 0x35a   :  { %7453 = vmatmul.mubr.bf16.gmra.mxu1 %v1171_v60 }
 0x35e   :  { %v7410_v41 = vpop.f32.mrf.mxu1 }
 0x35f   :  { %v1124_v22 = vadd.f32 %v7410_v41, %v9231_v55 }
 0x360   :  { %v1115_v19 = vpop.f32.mrf.mxu1 }
 0x361   :  { %v1116_v35 = vadd.f32 %v1115_v19, %v9231_v55 }
 0x362   :  { %v7411_v12 = vpop.f32.mrf.mxu1 }
 0x363   :  { %v1127_v45 = vadd.f32 %v7411_v12, %v9231_v55 }
 0x364   :  { %v1118_v33 = vpop.f32.mrf.mxu1 }
 0x365   :  { %v1119_v18 = vadd.f32 %v1118_v33, %v9231_v55  ;;  %v1173_v61 = vpack.c.bf16 %v1127_v45, %v1124_v22  ;;  %v9291_v33 = vrot.slane %v9227_v56, %v9287_v26 }
 0x367   :  { %v1172_v25 = vpack.c.bf16 %v1119_v18, %v1116_v35 }
 0x369   :  { %7456 = vmatprep.mubr.bf16.mxu1 %v1172_v25 }
 0x36a   :  { %7457 = vmatmul.mubr.bf16.gmra.mxu1 %v1173_v61 }
 0x36e   :  { %v7414_v23 = vpop.f32.mrf.mxu1 }
 0x36f   :  { %v1140_v63 = vadd.f32 %v7414_v23, %v9231_v55 }
 0x370   :  { %v1131_v49 = vpop.f32.mrf.mxu1 }
 0x371   :  { %v1132_v43 = vadd.f32 %v1131_v49, %v9231_v55 }
 0x372   :  { %v7415_v15 = vpop.f32.mrf.mxu1 }
 0x373   :  { %v1143_v51 = vadd.f32 %v7415_v15, %v9231_v55 }
 0x374   :  { %v1134_v32 = vpop.f32.mrf.mxu1 }
 0x375   :  { %v1135_v27 = vadd.f32 %v1134_v32, %v9231_v55  ;;  %v1175_v4 = vpack.c.bf16 %v1143_v51, %v1140_v63 }
 0x377   :  { %v1174_v53 = vpack.c.bf16 %v1135_v27, %v1132_v43 }
 0x379   :  { %7460 = vmatprep.mubr.bf16.mxu1 %v1174_v53 }
 0x37a   :  { %7461 = vmatmul.mubr.bf16.gmra.mxu1 %v1175_v4 }
 0x37e   :  { %v7418_v52 = vpop.f32.mrf.mxu1 }
 0x37f   :  { %v1156_v2 = vadd.f32 %v7418_v52, %v9231_v55 }
 0x380   :  { %v1147_v31 = vpop.f32.mrf.mxu1 }
 0x381   :  { %v1148_v42 = vadd.f32 %v1147_v31, %v9231_v55 }
 0x382   :  { %v7419_v57 = vpop.f32.mrf.mxu1 }
 0x383   :  { %v1159_v58 = vadd.f32 %v7419_v57, %v9231_v55 }
 0x384   :  { %v1150_v60 = vpop.f32.mrf.mxu1 }
 0x385   :  { %v1151_v41 = vadd.f32 %v1150_v60, %v9231_v55  ;;  %v1177_v12 = vpack.c.bf16 %v1159_v58, %v1156_v2 }
 0x387   :  { %v1176_v19 = vpack.c.bf16 %v1151_v41, %v1148_v42 }
 0x389   :  { %7464 = vmatprep.mubr.bf16.mxu1 %v1176_v19 }
 0x38a   :  { %7465 = vmatmul.mubr.bf16.gmra.mxu1 %v1177_v12 }
 0x3da   :  { %v7438_v45 = vpop.f32.mrf.mxu1 }
 0x3db   :  { %v1289_v55 = vadd.f32 %v7438_v45, %v9291_v33 }
 0x3dc   :  { %v1280_v35 = vpop.f32.mrf.mxu1 }
 0x3dd   :  { %v1281_v22 = vadd.f32 %v1280_v35, %v9291_v33  ;;  %v1409_v32 = vmax.f32 %v1289_v55, 0.0 }
 0x3de   :  { %v7439_v18 = vpop.f32.mrf.mxu1 }
 0x3df   :  { %v1292_v25 = vadd.f32 %v7439_v18, %v9291_v33  ;;  %v1407_v15 = vmax.f32 %v1281_v22, 0.0 }
 0x3e0   :  { %v1283_v61 = vpop.f32.mrf.mxu1 }
 0x3e1   :  { %v1284_v23 = vadd.f32 %v1283_v61, %v9291_v33  ;;  %v1410_v49 = vmax.f32 %v1292_v25, 0.0 }
 0x3e3   :  { %v1408_v51 = vmax.f32 %v1284_v23, 0.0  ;;  %v1440_v27 = vpack.c.bf16 %v1410_v49, %v1409_v32 }
 0x3e5   :  { %v1439_v43 = vpack.c.bf16 %v1408_v51, %v1407_v15 }
 0x3e7   :  { %7484 = vmatprep.mubr.bf16.mxu1 %v1439_v43 }
 0x3e8   :  { %7485 = vmatmul.mubr.bf16.vlgmr.msra.gmra.mxu1 %v1440_v27 }
 0x3ea   :  { %v7442_v63 = vpop.f32.mrf.mxu1 }
 0x3eb   :  { %v1305_v57 = vadd.f32 %v7442_v63, %v9291_v33 }
 0x3ec   :  { %v1296_v53 = vpop.f32.mrf.mxu1 }
 0x3ed   :  { %v1297_v52 = vadd.f32 %v1296_v53, %v9291_v33  ;;  %v1413_v19 = vmax.f32 %v1305_v57, 0.0 }
 0x3ee   :  { %v7443_v4 = vpop.f32.mrf.mxu1 }
 0x3ef   :  { %v1308_v31 = vadd.f32 %v7443_v4, %v9291_v33  ;;  %v1411_v41 = vmax.f32 %v1297_v52, 0.0 }
 0x3f0   :  { %v1299_v58 = vpop.f32.mrf.mxu1 }
 0x3f1   :  { %v1300_v60 = vadd.f32 %v1299_v58, %v9291_v33  ;;  %v1414_v42 = vmax.f32 %v1308_v31, 0.0 }
 0x3f3   :  { %v1412_v2 = vmax.f32 %v1300_v60, 0.0  ;;  %v1442_v45 = vpack.c.bf16 %v1414_v42, %v1413_v19 }
 0x3f5   :  { %v1441_v12 = vpack.c.bf16 %v1412_v2, %v1411_v41 }
 0x3f7   :  { %7488 = vmatprep.mubr.bf16.mxu1 %v1441_v12 }
 0x3f8   :  { %7489 = vmatmul.mubr.bf16.gmra.mxu1 %v1442_v45 }
 0x3fa   :  { %v7446_v35 = vpop.f32.mrf.mxu1 }
 0x3fb   :  { %v1321_v61 = vadd.f32 %v7446_v35, %v9291_v33 }
 0x3fc   :  { %v1312_v18 = vpop.f32.mrf.mxu1 }
 0x3fd   :  { %v1313_v25 = vadd.f32 %v1312_v18, %v9291_v33  ;;  %v1417_v43 = vmax.f32 %v1321_v61, 0.0 }
 0x3fe   :  { %v7447_v22 = vpop.f32.mrf.mxu1 }
 0x3ff   :  { %v1324_v55 = vadd.f32 %v7447_v22, %v9291_v33  ;;  %v1415_v51 = vmax.f32 %v1313_v25, 0.0 }
 0x400   :  { %v1315_v23 = vpop.f32.mrf.mxu1 }
 0x401   :  { %v1316_v49 = vadd.f32 %v1315_v23, %v9291_v33  ;;  %v1418_v15 = vmax.f32 %v1324_v55, 0.0 }
 0x403   :  { %v1416_v32 = vmax.f32 %v1316_v49, 0.0  ;;  %v1444_v63 = vpack.c.bf16 %v1418_v15, %v1417_v43 }
 0x405   :  { %v1443_v27 = vpack.c.bf16 %v1416_v32, %v1415_v51 }
 0x407   :  { %7492 = vmatprep.mubr.bf16.mxu1 %v1443_v27 }
 0x408   :  { %7493 = vmatmul.mubr.bf16.gmra.mxu1 %v1444_v63 }
 0x40a   :  { %v7450_v53 = vpop.f32.mrf.mxu1 }
 0x40b   :  { %v1337_v58 = vadd.f32 %v7450_v53, %v9291_v33 }
 0x40c   :  { %v1328_v4 = vpop.f32.mrf.mxu1 }
 0x40d   :  { %v1329_v31 = vadd.f32 %v1328_v4, %v9291_v33  ;;  %v1421_v12 = vmax.f32 %v1337_v58, 0.0 }
 0x40e   :  { %v7451_v52 = vpop.f32.mrf.mxu1 }
 0x40f   :  { %v1340_v57 = vadd.f32 %v7451_v52, %v9291_v33  ;;  %v1419_v2 = vmax.f32 %v1329_v31, 0.0 }
 0x410   :  { %v1331_v60 = vpop.f32.mrf.mxu1 }
 0x411   :  { %v1332_v42 = vadd.f32 %v1331_v60, %v9291_v33  ;;  %v1422_v41 = vmax.f32 %v1340_v57, 0.0 }
 0x413   :  { %v1420_v19 = vmax.f32 %v1332_v42, 0.0  ;;  %v1446_v35 = vpack.c.bf16 %v1422_v41, %v1421_v12 }
 0x415   :  { %v1445_v45 = vpack.c.bf16 %v1420_v19, %v1419_v2 }
 0x417   :  { %7496 = vmatprep.mubr.bf16.mxu1 %v1445_v45 }
 0x418   :  { %7497 = vmatmul.mubr.bf16.gmra.mxu1 %v1446_v35 }
 0x41a   :  { %v7454_v18 = vpop.f32.mrf.mxu1 }
 0x41b   :  { %v1353_v23 = vadd.f32 %v7454_v18, %v9291_v33 }
 0x41c   :  { %v1344_v22 = vpop.f32.mrf.mxu1 }
 0x41d   :  { %v1345_v55 = vadd.f32 %v1344_v22, %v9291_v33  ;;  %v1425_v27 = vmax.f32 %v1353_v23, 0.0 }
 0x41e   :  { %v7455_v25 = vpop.f32.mrf.mxu1 }
 0x41f   :  { %v1356_v61 = vadd.f32 %v7455_v25, %v9291_v33  ;;  %v1423_v32 = vmax.f32 %v1345_v55, 0.0 }
 0x420   :  { %v1347_v49 = vpop.f32.mrf.mxu1 }
 0x421   :  { %v1348_v15 = vadd.f32 %v1347_v49, %v9291_v33  ;;  %v1426_v51 = vmax.f32 %v1356_v61, 0.0 }
 0x423   :  { %v1424_v43 = vmax.f32 %v1348_v15, 0.0  ;;  %v1448_v53 = vpack.c.bf16 %v1426_v51, %v1425_v27 }
 0x425   :  { %v1447_v63 = vpack.c.bf16 %v1424_v43, %v1423_v32 }
 0x427   :  { %7500 = vmatprep.mubr.bf16.mxu1 %v1447_v63 }
 0x428   :  { %7501 = vmatmul.mubr.bf16.gmra.mxu1 %v1448_v53 }
 0x42a   :  { %v7458_v4 = vpop.f32.mrf.mxu1 }
 0x42b   :  { %v1369_v60 = vadd.f32 %v7458_v4, %v9291_v33 }
 0x42c   :  { %v1360_v52 = vpop.f32.mrf.mxu1 }
 0x42d   :  { %v1361_v57 = vadd.f32 %v1360_v52, %v9291_v33  ;;  %v1429_v45 = vmax.f32 %v1369_v60, 0.0 }
 0x42e   :  { %v7459_v31 = vpop.f32.mrf.mxu1 }
 0x42f   :  { %v1372_v58 = vadd.f32 %v7459_v31, %v9291_v33  ;;  %v1427_v19 = vmax.f32 %v1361_v57, 0.0 }
 0x430   :  { %v1363_v42 = vpop.f32.mrf.mxu1 }
 0x431   :  { %v1364_v41 = vadd.f32 %v1363_v42, %v9291_v33  ;;  %v1430_v2 = vmax.f32 %v1372_v58, 0.0 }
 0x433   :  { %v1428_v12 = vmax.f32 %v1364_v41, 0.0  ;;  %v1450_v18 = vpack.c.bf16 %v1430_v2, %v1429_v45 }
 0x435   :  { %v1449_v35 = vpack.c.bf16 %v1428_v12, %v1427_v19 }
 0x437   :  { %7504 = vmatprep.mubr.bf16.mxu1 %v1449_v35 }
 0x438   :  { %7505 = vmatmul.mubr.bf16.gmra.mxu1 %v1450_v18 }
 0x43a   :  { %v7462_v22 = vpop.f32.mrf.mxu1 }
 0x43b   :  { %v1385_v49 = vadd.f32 %v7462_v22, %v9291_v33 }
 0x43c   :  { %v1376_v25 = vpop.f32.mrf.mxu1 }
 0x43d   :  { %v1377_v61 = vadd.f32 %v1376_v25, %v9291_v33  ;;  %v1433_v63 = vmax.f32 %v1385_v49, 0.0 }
 0x43e   :  { %v7463_v55 = vpop.f32.mrf.mxu1 }
 0x43f   :  { %v1388_v23 = vadd.f32 %v7463_v55, %v9291_v33  ;;  %v1431_v43 = vmax.f32 %v1377_v61, 0.0 }
 0x440   :  { %v1379_v15 = vpop.f32.mrf.mxu1 }
 0x441   :  { %v1380_v51 = vadd.f32 %v1379_v15, %v9291_v33  ;;  %v1434_v32 = vmax.f32 %v1388_v23, 0.0 }
 0x443   :  { %v1432_v27 = vmax.f32 %v1380_v51, 0.0  ;;  %v1452_v4 = vpack.c.bf16 %v1434_v32, %v1433_v63  ;;  %v9340_v51 = vsub.s32 2, %v8872_v36 }
 0x445   :  { %v1451_v53 = vpack.c.bf16 %v1432_v27, %v1431_v43  ;;  %13066 = vst [vmem:[#allocation19_spill] sm:$0xff] %v9340_v51  ;;  %v9346_v43 = vrot.slane %v9227_v56, %v9340_v51 }
 0x447   :  { %7508 = vmatprep.mubr.bf16.mxu1 %v1451_v53 }
 0x448   :  { %7509 = vmatmul.mubr.bf16.gmra.mxu1 %v1452_v4 }
 0x44a   :  { %v7466_v52 = vpop.f32.mrf.mxu1 }
 0x44b   :  { %v1401_v42 = vadd.f32 %v7466_v52, %v9291_v33 }
 0x44c   :  { %v1392_v31 = vpop.f32.mrf.mxu1 }
 0x44d   :  { %v1393_v58 = vadd.f32 %v1392_v31, %v9291_v33  ;;  %v1437_v35 = vmax.f32 %v1401_v42, 0.0 }
 0x44e   :  { %v7467_v57 = vpop.f32.mrf.mxu1 }
 0x44f   :  { %v1404_v60 = vadd.f32 %v7467_v57, %v9291_v33  ;;  %v1435_v12 = vmax.f32 %v1393_v58, 0.0 }
 0x450   :  { %v1395_v41 = vpop.f32.mrf.mxu1 }
 0x451   :  { %v1396_v2 = vadd.f32 %v1395_v41, %v9291_v33  ;;  %v1438_v19 = vmax.f32 %v1404_v60, 0.0 }
 0x453   :  { %v1436_v45 = vmax.f32 %v1396_v2, 0.0  ;;  %v1454_v22 = vpack.c.bf16 %v1438_v19, %v1437_v35 }
 0x455   :  { %v1453_v18 = vpack.c.bf16 %v1436_v45, %v1435_v12 }
 0x457   :  { %7512 = vmatprep.mubr.bf16.mxu1 %v1453_v18 }
 0x458   :  { %7513 = vmatmul.mubr.bf16.gmra.mxu1 %v1454_v22 }
 0x4a8   :  { %v9325_v25 = vpop.f32.mrf.mxu1 }
 0x4aa   :  { %v9327_v55 = vpop.f32.mrf.mxu1 }
 0x4ac   :  { %v9329_v61 = vpop.f32.mrf.mxu1 }
 0x4ae   :  { %v9331_v23 = vpop.f32.mrf.mxu1 }
 0x4b8   :  { %v9333_v49 = vpop.f32.mrf.mxu1 }
 0x4ba   :  { %v9335_v15 = vpop.f32.mrf.mxu1 }
 0x4bb   :  { %v9457_v62 = vadd.f32 %v9335_v15, %v9346_v43 }
 0x4bc   :  { %v9337_v33 = vpop.f32.mrf.mxu1 }
 0x4be   :  { %v9342_v32 = vpop.f32.mrf.mxu1 }
 0x4c8   :  { %v7494_v27 = vpop.f32.mrf.mxu1 }
 0x4c9   :  { %v9349_v63 = vadd.f32 %v7494_v27, %v9346_v43 }
 0x4ca   :  { %v1589_v53 = vpop.f32.mrf.mxu1 }
 0x4cb   :  { %v9352_v4 = vadd.f32 %v1589_v53, %v9346_v43  ;;  %v1714_v52 = vsel %vm90_vm0, %v9349_v63, 0.0 }
 0x4cc   :  { %1715 = vadd.xlane.f32.xlu0 %v1714_v52  ;;  %v7495_v31 = vpop.f32.mrf.mxu1 }
 0x4cd   :  { %v9357_v57 = vadd.f32 %v7495_v31, %v9346_v43  ;;  %v1708_v42 = vsel %vm90_vm0, %v9352_v4, 0.0 }
 0x4ce   :  { %v1592_v58 = vpop.f32.mrf.mxu1 }
 0x4cf   :  { %v9360_v56 = vadd.f32 %v1592_v58, %v9346_v43  ;;  %v1717_v60 = vsel %vm90_vm0, %v9357_v57, 0.0 }
 0x4d0   :  { %1718 = vadd.xlane.f32.xlu1 %v1717_v60  ;;  %1709 = vadd.xlane.f32.xlu0 %v1708_v42 }
 0x4d1   :  { %v1711_v41 = vsel %vm90_vm0, %v9360_v56, 0.0 }
 0x4d4   :  { %1712 = vadd.xlane.f32.xlu1 %v1711_v41 }
 0x4d8   :  { %v7498_v2 = vpop.f32.mrf.mxu1 }
 0x4d9   :  { %v9369_v19 = vadd.f32 %v7498_v2, %v9346_v43 }
 0x4da   :  { %v1605_v12 = vpop.f32.mrf.mxu1 }
 0x4db   :  { %v9372_v45 = vadd.f32 %v1605_v12, %v9346_v43  ;;  %v1726_v35 = vsel %vm90_vm0, %v9369_v19, 0.0 }
 0x4dc   :  { %v7499_v18 = vpop.f32.mrf.mxu1  ;;  %1727 = vadd.xlane.f32.xlu0 %v1726_v35 }
 0x4dd   :  { %v9377_v22 = vadd.f32 %v7499_v18, %v9346_v43  ;;  %v1720_v31 = vsel %vm90_vm0, %v9372_v45, 0.0 }
 0x4de   :  { %v1608_v27 = vpop.f32.mrf.mxu1 }
 0x4df   :  { %v9380_v53 = vadd.f32 %v1608_v27, %v9346_v43  ;;  %v1729_v52 = vsel %vm90_vm0, %v9377_v22, 0.0 }
 0x4e0   :  { %1730 = vadd.xlane.f32.xlu1 %v1729_v52  ;;  %1721 = vadd.xlane.f32.xlu0 %v1720_v31 }
 0x4e1   :  { %v1723_v58 = vsel %vm90_vm0, %v9380_v53, 0.0 }
 0x4e4   :  { %1724 = vadd.xlane.f32.xlu1 %v1723_v58 }
 0x4e8   :  { %v7502_v60 = vpop.f32.mrf.mxu1 }
 0x4ea   :  { %v9388_v42 = vpop.f32.mrf.mxu1 }
 0x4ec   :  { %v7503_v41 = vpop.f32.mrf.mxu1 }
 0x4ee   :  { %v9390_v2 = vpop.f32.mrf.mxu1 }
 0x4f8   :  { %v7506_v12 = vpop.f32.mrf.mxu1 }
 0x4f9   :  { %v9393_v35 = vadd.f32 %v7506_v12, %v9346_v43 }
 0x4fa   :  { %v1637_v18 = vpop.f32.mrf.mxu1 }
 0x4fb   :  { %v1750_v27 = vsel %vm90_vm0, %v9393_v35, 0.0 }
 0x4fc   :  { %v7507_v52 = vpop.f32.mrf.mxu1  ;;  %1751 = vadd.xlane.f32.xlu0 %v1750_v27 }
 0x4fd   :  { %v9398_v31 = vadd.f32 %v7507_v52, %v9346_v43 }
 0x4fe   :  { %v1640_v51 = vpop.f32.mrf.mxu1 }
 0x4ff   :  { %v1753_v58 = vsel %vm90_vm0, %v9398_v31, 0.0 }
 0x500   :  { %1754 = vadd.xlane.f32.xlu1 %v1753_v58 }
 0x508   :  { %v7510_v26 = vpop.f32.mrf.mxu1 }
 0x509   :  { %v9403_v44 = vadd.f32 %v7510_v26, %v9346_v43 }
 0x50a   :  { %v1653_v12 = vpop.f32.mrf.mxu1 }
 0x50b   :  { %v9406_v8 = vadd.f32 %v1653_v12, %v9346_v43  ;;  %v1762_v21 = vsel %vm90_vm0, %v9403_v44, 0.0 }
 0x50c   :  { %v7511_v27 = vpop.f32.mrf.mxu1  ;;  %1763 = vadd.xlane.f32.xlu0 %v1762_v21 }
 0x50d   :  { %v9411_v52 = vadd.f32 %v7511_v27, %v9346_v43  ;;  %v1756_v7 = vsel %vm90_vm0, %v9406_v8, 0.0 }
 0x50e   :  { %v1656_v29 = vpop.f32.mrf.mxu1 }
 0x50f   :  { %v9414_v58 = vadd.f32 %v1656_v29, %v9346_v43  ;;  %v1765_v26 = vsel %vm90_vm0, %v9411_v52, 0.0 }
 0x510   :  { %1766 = vadd.xlane.f32.xlu1 %v1765_v26  ;;  %1757 = vadd.xlane.f32.xlu0 %v1756_v7 }
 0x511   :  { %v1759_v12 = vsel %vm90_vm0, %v9414_v58, 0.0 }
 0x514   :  { %1760 = vadd.xlane.f32.xlu1 %v1759_v12  ;;  %v9435_v12 = vadd.f32 %v9333_v49, %v9346_v43 }
 0x518   :  { %v7514_v21 = vpop.f32.mrf.mxu1 }
 0x519   :  { %v9423_v27 = vadd.f32 %v7514_v21, %v9346_v43 }
 0x51a   :  { %v1669_v16 = vpop.f32.mrf.mxu1 }
 0x51b   :  { %v9426_v29 = vadd.f32 %v1669_v16, %v9346_v43  ;;  %v1774_v17 = vsel %vm90_vm0, %v9423_v27, 0.0 }
 0x51c   :  { %v7515_v11 = vpop.f32.mrf.mxu1  ;;  %1775 = vadd.xlane.f32.xlu0 %v1774_v17  ;;  %v9449_v17 = vadd.f32 %v1637_v18, %v9346_v43 }
 0x51d   :  { %v9431_v26 = vadd.f32 %v7515_v11, %v9346_v43  ;;  %v1768_v28 = vsel %vm90_vm0, %v9426_v29, 0.0  ;;  %v9446_v11 = vadd.f32 %v9337_v33, %v9346_v43 }
 0x51e   :  { %v1672_v7 = vpop.f32.mrf.mxu1  ;;  %v1744_v18 = vsel %vm90_vm0, %v9449_v17, 0.0 }
 0x51f   :  { %v9438_v21 = vadd.f32 %v1672_v7, %v9346_v43  ;;  %v1777_v16 = vsel %vm90_vm0, %v9431_v26, 0.0  ;;  %v1702_v7 = vsel %vm90_vm0, %v9435_v12, 0.0  ;;  %v1705_v33 = vsel %vm90_vm0, %v9446_v11, 0.0 }
 0x520   :  { %1778 = vadd.xlane.f32.xlu1 %v1777_v16  ;;  %1769 = vadd.xlane.f32.xlu0 %v1768_v28  ;;  %v9460_v28 = vadd.f32 %v1640_v51, %v9346_v43  ;;  %v9468_v16 = vadd.f32 %v9342_v32, %v9346_v43  ;;  %v1696_v51 = vsel %vm90_vm0, %v9457_v62, 0.0 }
 0x521   :  { %v1771_v49 = vsel %vm90_vm0, %v9438_v21, 0.0 }
 0x522   :  { %v1747_v15 = vsel %vm90_vm0, %v9460_v28, 0.0  ;;  %v1699_v32 = vsel %vm90_vm0, %v9468_v16, 0.0 }
 0x524   :  { %1772 = vadd.xlane.f32.xlu1 %v1771_v49  ;;  %1703 = vadd.xlane.f32.xlu0 %v1702_v7  ;;  %v9471_v49 = vadd.f32 %v7502_v60, %v9346_v43  ;;  %v9479_v7 = vadd.f32 %v9325_v25, %v9346_v43 }
 0x526   :  { %v1738_v60 = vsel %vm90_vm0, %v9471_v49, 0.0 }
 0x528   :  { %1706 = vadd.xlane.f32.xlu1 %v1705_v33  ;;  %1745 = vadd.xlane.f32.xlu0 %v1744_v18  ;;  %v9482_v33 = vadd.f32 %v7503_v41, %v9346_v43  ;;  %v9490_v18 = vadd.f32 %v9329_v61, %v9346_v43  ;;  %v1690_v41 = vsel %vm90_vm0, %v9479_v7, 0.0  ;;  %v9506_v61 = vadd.f32 %v9390_v2, %v9346_v43 }
 0x52a   :  { %v1741_v25 = vsel %vm90_vm0, %v9482_v33, 0.0 }
 0x52c   :  { %1748 = vadd.xlane.f32.xlu1 %v1747_v15  ;;  %1697 = vadd.xlane.f32.xlu0 %v1696_v51  ;;  %v9494_v15 = vadd.f32 %v9388_v42, %v9346_v43  ;;  %v9502_v51 = vadd.f32 %v9327_v55, %v9346_v43  ;;  %v1693_v42 = vsel %vm90_vm0, %v9490_v18, 0.0  ;;  %v1735_v55 = vsel %vm90_vm0, %v9506_v61, 0.0 }
 0x530   :  { %1700 = vadd.xlane.f32.xlu1 %v1699_v32  ;;  %1739 = vadd.xlane.f32.xlu0 %v1738_v60  ;;  %v1732_v32 = vsel %vm90_vm0, %v9494_v15, 0.0  ;;  %v9514_v60 = vadd.f32 %v9331_v23, %v9346_v43 }
 0x532   :  { %v1687_v2 = vsel %vm90_vm0, %v9514_v60, 0.0 }
 0x534   :  { %1742 = vadd.xlane.f32.xlu1 %v1741_v25  ;;  %1691 = vadd.xlane.f32.xlu0 %v1690_v41  ;;  %v1684_v25 = vsel %vm90_vm0, %v9502_v51, 0.0 }
 0x538   :  { %1694 = vadd.xlane.f32.xlu1 %v1693_v42  ;;  %1733 = vadd.xlane.f32.xlu0 %v1732_v32 }
 0x53c   :  { %1736 = vadd.xlane.f32.xlu1 %v1735_v55  ;;  %1685 = vadd.xlane.f32.xlu0 %v1684_v25 }
 0x540   :  { %1688 = vadd.xlane.f32.xlu1 %v1687_v2 }
 0x555   :  { %v1716_v41 = vpop.xlane.xlu0 %1715 }
 0x556   :  { %v1790_v59 = vmul.f32 0.03125, %v1716_v41 }
 0x558   :  { %v9523_v42 = vsub.f32 %v9349_v63, %v1790_v59 }
 0x559   :  { %v1719_v32 = vpop.xlane.xlu1 %1718  ;;  %v1710_v23 = vpop.xlane.xlu0 %1709 }
 0x55a   :  { %v1791_v43 = vmul.f32 0.03125, %v1719_v32  ;;  %v1788_v20 = vmul.f32 0.03125, %v1710_v23  ;;  %v1854_v37 = vmul.f32 %v9523_v42, %v9523_v42 }
 0x55c   :  { %v9528_v0 = vsub.f32 %v9357_v57, %v1791_v43  ;;  %v9531_v55 = vsub.f32 %v9352_v4, %v1788_v20  ;;  %v1906_v25 = vsel %vm90_vm0, %v1854_v37, 0.0 }
 0x55d   :  { %v1713_v2 = vpop.xlane.xlu1 %1712  ;;  %1907 = vadd.xlane.f32.xlu0 %v1906_v25 }
 0x55e   :  { %v1789_v41 = vmul.f32 0.03125, %v1713_v2  ;;  %v1855_v59 = vmul.f32 %v9528_v0, %v9528_v0  ;;  %v1852_v63 = vmul.f32 %v9531_v55, %v9531_v55 }
 0x560   :  { %v9539_v32 = vsub.f32 %v9360_v56, %v1789_v41  ;;  %v1909_v57 = vsel %vm90_vm0, %v1855_v59, 0.0  ;;  %v1900_v23 = vsel %vm90_vm0, %v1852_v63, 0.0 }
 0x561   :  { %1910 = vadd.xlane.f32.xlu1 %v1909_v57  ;;  %1901 = vadd.xlane.f32.xlu0 %v1900_v23 }
 0x562   :  { %v1853_v37 = vmul.f32 %v9539_v32, %v9539_v32 }
 0x564   :  { %v1903_v20 = vsel %vm90_vm0, %v1853_v37, 0.0 }
 0x565   :  { %v1728_v4 = vpop.xlane.xlu0 %1727  ;;  %1904 = vadd.xlane.f32.xlu1 %v1903_v20 }
 0x566   :  { %v1794_v43 = vmul.f32 0.03125, %v1728_v4 }
 0x568   :  { %v9547_v25 = vsub.f32 %v9369_v19, %v1794_v43 }
 0x569   :  { %v1731_v2 = vpop.xlane.xlu1 %1730  ;;  %v1722_v56 = vpop.xlane.xlu0 %1721 }
 0x56a   :  { %v1795_v41 = vmul.f32 0.03125, %v1731_v2  ;;  %v1792_v47 = vmul.f32 0.03125, %v1722_v56  ;;  %v1858_v59 = vmul.f32 %v9547_v25, %v9547_v25 }
 0x56c   :  { %v9552_v63 = vsub.f32 %v9377_v22, %v1795_v41  ;;  %v9555_v57 = vsub.f32 %v9372_v45, %v1792_v47  ;;  %v1918_v23 = vsel %vm90_vm0, %v1858_v59, 0.0 }
 0x56d   :  { %v1725_v37 = vpop.xlane.xlu1 %1724  ;;  %1919 = vadd.xlane.f32.xlu0 %v1918_v23 }
 0x56e   :  { %v1793_v20 = vmul.f32 0.03125, %v1725_v37  ;;  %v1859_v19 = vmul.f32 %v9552_v63, %v9552_v63  ;;  %v1856_v4 = vmul.f32 %v9555_v57, %v9555_v57 }
 0x570   :  { %v9563_v43 = vsub.f32 %v9380_v53, %v1793_v20  ;;  %v1921_v22 = vsel %vm90_vm0, %v1859_v19, 0.0  ;;  %v1912_v2 = vsel %vm90_vm0, %v1856_v4, 0.0 }
 0x571   :  { %1922 = vadd.xlane.f32.xlu1 %v1921_v22  ;;  %1913 = vadd.xlane.f32.xlu0 %v1912_v2 }
 0x572   :  { %v1857_v47 = vmul.f32 %v9563_v43, %v9563_v43 }
 0x574   :  { %v1915_v45 = vsel %vm90_vm0, %v1857_v47, 0.0 }
 0x575   :  { %1916 = vadd.xlane.f32.xlu1 %v1915_v45 }
 0x585   :  { %v1752_v56 = vpop.xlane.xlu0 %1751 }
 0x586   :  { %v1802_v41 = vmul.f32 0.03125, %v1752_v56 }
 0x588   :  { %v9571_v59 = vsub.f32 %v9393_v35, %v1802_v41 }
 0x589   :  { %v1755_v23 = vpop.xlane.xlu1 %1754 }
 0x58a   :  { %v1803_v53 = vmul.f32 0.03125, %v1755_v23  ;;  %v1866_v37 = vmul.f32 %v9571_v59, %v9571_v59 }
 0x58c   :  { %v9576_v20 = vsub.f32 %v9398_v31, %v1803_v53  ;;  %v1942_v19 = vsel %vm90_vm0, %v1866_v37, 0.0 }
 0x58d   :  { %1943 = vadd.xlane.f32.xlu0 %v1942_v19 }
 0x58e   :  { %v1867_v4 = vmul.f32 %v9576_v20, %v9576_v20 }
 0x590   :  { %v1945_v22 = vsel %vm90_vm0, %v1867_v4, 0.0 }
 0x591   :  { %1946 = vadd.xlane.f32.xlu1 %v1945_v22 }
 0x595   :  { %v1764_v2 = vpop.xlane.xlu0 %1763 }
 0x596   :  { %v1806_v35 = vmul.f32 0.03125, %v1764_v2 }
 0x598   :  { %v9583_v47 = vsub.f32 %v9403_v44, %v1806_v35 }
 0x599   :  { %v1767_v45 = vpop.xlane.xlu1 %1766  ;;  %v1758_v56 = vpop.xlane.xlu0 %1757 }
 0x59a   :  { %v1807_v41 = vmul.f32 0.03125, %v1767_v45  ;;  %v1804_v23 = vmul.f32 0.03125, %v1758_v56  ;;  %v1870_v31 = vmul.f32 %v9583_v47, %v9583_v47 }
 0x59c   :  { %v9588_v53 = vsub.f32 %v9411_v52, %v1807_v41  ;;  %v9591_v37 = vsub.f32 %v9406_v8, %v1804_v23  ;;  %v1954_v19 = vsel %vm90_vm0, %v1870_v31, 0.0 }
 0x59d   :  { %v1761_v4 = vpop.xlane.xlu1 %1760  ;;  %1955 = vadd.xlane.f32.xlu0 %v1954_v19 }
 0x59e   :  { %v1805_v22 = vmul.f32 0.03125, %v1761_v4  ;;  %v1871_v44 = vmul.f32 %v9588_v53, %v9588_v53  ;;  %v1868_v2 = vmul.f32 %v9591_v37, %v9591_v37 }
 0x5a0   :  { %v9599_v35 = vsub.f32 %v9414_v58, %v1805_v22  ;;  %v1957_v52 = vsel %vm90_vm0, %v1871_v44, 0.0  ;;  %v1948_v45 = vsel %vm90_vm0, %v1868_v2, 0.0 }
 0x5a1   :  { %1958 = vadd.xlane.f32.xlu1 %v1957_v52  ;;  %1949 = vadd.xlane.f32.xlu0 %v1948_v45 }
 0x5a2   :  { %v1869_v8 = vmul.f32 %v9599_v35, %v9599_v35 }
 0x5a4   :  { %v1951_v56 = vsel %vm90_vm0, %v1869_v8, 0.0 }
 0x5a5   :  { %v1776_v41 = vpop.xlane.xlu0 %1775  ;;  %1952 = vadd.xlane.f32.xlu1 %v1951_v56 }
 0x5a6   :  { %v1810_v23 = vmul.f32 0.03125, %v1776_v41 }
 0x5a8   :  { %v9607_v31 = vsub.f32 %v9423_v27, %v1810_v23 }
 0x5a9   :  { %v1779_v19 = vpop.xlane.xlu1 %1778  ;;  %v1770_v58 = vpop.xlane.xlu0 %1769 }
 0x5aa   :  { %v1811_v4 = vmul.f32 0.03125, %v1779_v19  ;;  %v1808_v22 = vmul.f32 0.03125, %v1770_v58  ;;  %v1874_v44 = vmul.f32 %v9607_v31, %v9607_v31 }
 0x5ac   :  { %v9612_v2 = vsub.f32 %v9431_v26, %v1811_v4  ;;  %v9615_v52 = vsub.f32 %v9426_v29, %v1808_v22  ;;  %v1966_v45 = vsel %vm90_vm0, %v1874_v44, 0.0 }
 0x5ad   :  { %v1773_v8 = vpop.xlane.xlu1 %1772  ;;  %v1704_v56 = vpop.xlane.xlu0 %1703  ;;  %1967 = vadd.xlane.f32.xlu0 %v1966_v45 }
 0x5ae   :  { %v1809_v27 = vmul.f32 0.03125, %v1773_v8  ;;  %v1786_v41 = vmul.f32 0.03125, %v1704_v56  ;;  %v1875_v23 = vmul.f32 %v9612_v2, %v9612_v2  ;;  %v1872_v19 = vmul.f32 %v9615_v52, %v9615_v52 }
 0x5b0   :  { %v9623_v58 = vsub.f32 %v9438_v21, %v1809_v27  ;;  %v9626_v26 = vsub.f32 %v9435_v12, %v1786_v41  ;;  %v1969_v29 = vsel %vm90_vm0, %v1875_v23, 0.0  ;;  %v1960_v4 = vsel %vm90_vm0, %v1872_v19, 0.0 }
 0x5b1   :  { %v1707_v22 = vpop.xlane.xlu1 %1706  ;;  %v1746_v44 = vpop.xlane.xlu0 %1745  ;;  %1970 = vadd.xlane.f32.xlu1 %v1969_v29  ;;  %1961 = vadd.xlane.f32.xlu0 %v1960_v4 }
 0x5b2   :  { %v1787_v45 = vmul.f32 0.03125, %v1707_v22  ;;  %v1800_v8 = vmul.f32 0.03125, %v1746_v44  ;;  %v1873_v56 = vmul.f32 %v9623_v58, %v9623_v58  ;;  %v1850_v21 = vmul.f32 %v9626_v26, %v9626_v26 }
 0x5b4   :  { %v9635_v27 = vsub.f32 %v9446_v11, %v1787_v45  ;;  %v9638_v12 = vsub.f32 %v9449_v17, %v1800_v8  ;;  %v1963_v41 = vsel %vm90_vm0, %v1873_v56, 0.0  ;;  %v1894_v23 = vsel %vm90_vm0, %v1850_v21, 0.0 }
 0x5b5   :  { %v1749_v19 = vpop.xlane.xlu1 %1748  ;;  %v1698_v29 = vpop.xlane.xlu0 %1697  ;;  %1964 = vadd.xlane.f32.xlu1 %v1963_v41  ;;  %1895 = vadd.xlane.f32.xlu0 %v1894_v23 }
 0x5b6   :  { %v1801_v4 = vmul.f32 0.03125, %v1749_v19  ;;  %v1784_v22 = vmul.f32 0.03125, %v1698_v29  ;;  %v1851_v44 = vmul.f32 %v9635_v27, %v9635_v27  ;;  %v1864_v11 = vmul.f32 %v9638_v12, %v9638_v12 }
 0x5b8   :  { %v9647_v45 = vsub.f32 %v9460_v28, %v1801_v4  ;;  %v9650_v17 = vsub.f32 %v9457_v62, %v1784_v22  ;;  %v1897_v8 = vsel %vm90_vm0, %v1851_v44, 0.0  ;;  %v1936_v56 = vsel %vm90_vm0, %v1864_v11, 0.0 }
 0x5b9   :  { %v1701_v21 = vpop.xlane.xlu1 %1700  ;;  %v1740_v41 = vpop.xlane.xlu0 %1739  ;;  %1898 = vadd.xlane.f32.xlu1 %v1897_v8  ;;  %1937 = vadd.xlane.f32.xlu0 %v1936_v56 }
 0x5ba   :  { %v1785_v23 = vmul.f32 0.03125, %v1701_v21  ;;  %v1798_v19 = vmul.f32 0.03125, %v1740_v41  ;;  %v1865_v29 = vmul.f32 %v9647_v45, %v9647_v45  ;;  %v1848_v28 = vmul.f32 %v9650_v17, %v9650_v17 }
 0x5bc   :  { %v9659_v4 = vsub.f32 %v9468_v16, %v1785_v23  ;;  %v9662_v62 = vsub.f32 %v9471_v49, %v1798_v19  ;;  %v1939_v22 = vsel %vm90_vm0, %v1865_v29, 0.0  ;;  %v1888_v44 = vsel %vm90_vm0, %v1848_v28, 0.0 }
 0x5bd   :  { %v1743_v11 = vpop.xlane.xlu1 %1742  ;;  %v1692_v8 = vpop.xlane.xlu0 %1691  ;;  %1940 = vadd.xlane.f32.xlu1 %v1939_v22  ;;  %1889 = vadd.xlane.f32.xlu0 %v1888_v44 }
 0x5be   :  { %v1799_v56 = vmul.f32 0.03125, %v1743_v11  ;;  %v1782_v21 = vmul.f32 0.03125, %v1692_v8  ;;  %v1849_v41 = vmul.f32 %v9659_v4, %v9659_v4  ;;  %v1862_v16 = vmul.f32 %v9662_v62, %v9662_v62 }
 0x5c0   :  { %v9671_v23 = vsub.f32 %v9482_v33, %v1799_v56  ;;  %v9674_v49 = vsub.f32 %v9479_v7, %v1782_v21  ;;  %v1891_v19 = vsel %vm90_vm0, %v1849_v41, 0.0  ;;  %v1930_v29 = vsel %vm90_vm0, %v1862_v16, 0.0 }
 0x5c1   :  { %v1695_v28 = vpop.xlane.xlu1 %1694  ;;  %v1734_v22 = vpop.xlane.xlu0 %1733  ;;  %1892 = vadd.xlane.f32.xlu1 %v1891_v19  ;;  %1931 = vadd.xlane.f32.xlu0 %v1930_v29 }
 0x5c2   :  { %v1783_v44 = vmul.f32 0.03125, %v1695_v28  ;;  %v1796_v11 = vmul.f32 0.03125, %v1734_v22  ;;  %v1863_v8 = vmul.f32 %v9671_v23, %v9671_v23  ;;  %v1846_v33 = vmul.f32 %v9674_v49, %v9674_v49 }
 0x5c4   :  { %v9683_v56 = vsub.f32 %v9490_v18, %v1783_v44  ;;  %v9686_v7 = vsub.f32 %v9494_v15, %v1796_v11  ;;  %v1933_v21 = vsel %vm90_vm0, %v1863_v8, 0.0  ;;  %v1882_v41 = vsel %vm90_vm0, %v1846_v33, 0.0 }
 0x5c5   :  { %v1737_v16 = vpop.xlane.xlu1 %1736  ;;  %1934 = vadd.xlane.f32.xlu1 %v1933_v21  ;;  %1883 = vadd.xlane.f32.xlu0 %v1882_v41  ;;  %v1686_v19 = vpop.xlane.xlu0 %1685 }
 0x5c6   :  { %13067 = vst [vmem:[#allocation20_spill] sm:$0xff] %v9683_v56  ;;  %13068 = vst [vmem:[#allocation21_spill] sm:$0xff] %v9686_v7  ;;  %v1797_v29 = vmul.f32 0.03125, %v1737_v16  ;;  %v1780_v28 = vmul.f32 0.03125, %v1686_v19  ;;  %v1847_v22 = vmul.f32 %v9683_v56, %v9683_v56  ;;  %v1860_v18 = vmul.f32 %v9686_v7, %v9686_v7 }
 0x5c8   :  { %v9695_v44 = vsub.f32 %v9506_v61, %v1797_v29  ;;  %v9698_v15 = vsub.f32 %v9502_v51, %v1780_v28  ;;  %v1885_v11 = vsel %vm90_vm0, %v1847_v22, 0.0  ;;  %v1924_v8 = vsel %vm90_vm0, %v1860_v18, 0.0 }
 0x5c9   :  { %1886 = vadd.xlane.f32.xlu1 %v1885_v11  ;;  %v1689_v33 = vpop.xlane.xlu1 %1688  ;;  %1925 = vadd.xlane.f32.xlu0 %v1924_v8 }
 0x5ca   :  { %13069 = vst [vmem:[#allocation22_spill] sm:$0xff] %v9695_v44  ;;  %13070 = vst [vmem:[#allocation23_spill] sm:$0xff] %v9698_v15  ;;  %v1781_v21 = vmul.f32 0.03125, %v1689_v33  ;;  %v1861_v41 = vmul.f32 %v9695_v44, %v9695_v44  ;;  %v1844_v16 = vmul.f32 %v9698_v15, %v9698_v15 }
 0x5cc   :  { %v9707_v61 = vsub.f32 %v9514_v60, %v1781_v21  ;;  %v1927_v51 = vsel %vm90_vm0, %v1861_v41, 0.0  ;;  %v1876_v19 = vsel %vm90_vm0, %v1844_v16, 0.0 }
 0x5cd   :  { %1928 = vadd.xlane.f32.xlu1 %v1927_v51  ;;  %1877 = vadd.xlane.f32.xlu0 %v1876_v19  ;;  %v9715_v19 = vsub.s32 3, %v8872_v36 }
 0x5ce   :  { %13071 = vst [vmem:[#allocation24_spill] sm:$0xff] %v9707_v61  ;;  %v1845_v29 = vmul.f32 %v9707_v61, %v9707_v61 }
 0x5cf   :  { %13072 = vst [vmem:[#allocation25_spill] sm:$0xff] %v9715_v19 }
 0x5d0   :  { %v1879_v28 = vsel %vm90_vm0, %v1845_v29, 0.0  ;;  %v9718_v29 = vsub.s32 4, %v8872_v36 }
 0x5d1   :  { %1880 = vadd.xlane.f32.xlu1 %v1879_v28 }
 0x5e6   :  { %v1908_v22 = vpop.xlane.xlu0 %1907 }
 0x5e7   :  { %v1982_v18 = vmul.f32 0.03125, %v1908_v22 }
 0x5e9   :  { %v2014_v11 = vadd.f32 1e-05, %v1982_v18  ;;  %v8347_v18 = vld [vmem:[%s12972_s5] sm:$0xff] }
 0x5ea   :  { %v1911_v8 = vpop.xlane.xlu1 %1910  ;;  %v1902_v33 = vpop.xlane.xlu0 %1901 }
 0x5eb   :  { %7962 = vrsqrt.f32 %v2014_v11  ;;  %v1983_v60 = vmul.f32 0.03125, %v1911_v8  ;;  %v1980_v21 = vmul.f32 0.03125, %v1902_v33  ;;  %v9724_v11 = vrot.slane %v8347_v18, %v9715_v19 }
 0x5ec   :  { %v9728_v33 = vrot.slane %v8347_v18, %v9718_v29 }
 0x5ed   :  { %v2015_v15 = vadd.f32 1e-05, %v1983_v60  ;;  %v2012_v41 = vadd.f32 1e-05, %v1980_v21 }
 0x5ee   :  { %v1905_v44 = vpop.xlane.xlu1 %1904 }
 0x5ef   :  { %7964 = vrsqrt.f32 %v2015_v15  ;;  %v1981_v16 = vmul.f32 0.03125, %v1905_v44 }
 0x5f0   :  { %7966 = vrsqrt.f32 %v2012_v41 }
 0x5f1   :  { %v2013_v51 = vadd.f32 1e-05, %v1981_v16 }
 0x5f3   :  { %7968 = vrsqrt.f32 %v2013_v51 }
 0x5f6   :  { %v1920_v28 = vpop.xlane.xlu0 %1919 }
 0x5f7   :  { %v1986_v22 = vmul.f32 0.03125, %v1920_v28 }
 0x5f8   :  { %v7963_v15 = vpop.eup %7962 }
 0x5f9   :  { %v2018_v44 = vadd.f32 1e-05, %v1986_v22  ;;  %v2078_v8 = vmul.f32 %v7963_v15, %v9523_v42 }
 0x5fa   :  { %v1923_v60 = vpop.xlane.xlu1 %1922  ;;  %v1914_v21 = vpop.xlane.xlu0 %1913 }
 0x5fb   :  { %7970 = vrsqrt.f32 %v2018_v44  ;;  %v1987_v41 = vmul.f32 0.03125, %v1923_v60  ;;  %v1984_v16 = vmul.f32 0.03125, %v1914_v21  ;;  %v2114_v51 = vmul.f32 %v9724_v11, %v2078_v8 }
 0x5fc   :  { %v7965_v28 = vpop.eup %7964 }
 0x5fd   :  { %v7967_v36 = vpop.eup %7966  ;;  %v2019_v61 = vadd.f32 1e-05, %v1987_v41  ;;  %v2016_v7 = vadd.f32 1e-05, %v1984_v16  ;;  %v2150_v19 = vadd.f32 %v9728_v33, %v2114_v51  ;;  %v2079_v22 = vmul.f32 %v7965_v28, %v9528_v0 }
 0x5fe   :  { %v1917_v56 = vpop.xlane.xlu1 %1916  ;;  %v2076_v42 = vmul.f32 %v7967_v36, %v9531_v55 }
 0x5ff   :  { %7972 = vrsqrt.f32 %v2019_v61  ;;  %v1985_v18 = vmul.f32 0.03125, %v1917_v56  ;;  %v9735_v15 = vadd.f32 %v2150_v19, %v8957_v34  ;;  %v2115_v44 = vmul.f32 %v9724_v11, %v2079_v22 }
 0x600   :  { %v7969_v60 = vpop.eup %7968  ;;  %7974 = vrsqrt.f32 %v2016_v7  ;;  %v2112_v8 = vmul.f32 %v9724_v11, %v2076_v42 }
 0x601   :  { %v2017_v21 = vadd.f32 1e-05, %v1985_v18  ;;  %v2234_v41 = vsel %vm90_vm0, %v9735_v15, 0.0  ;;  %v2151_v0 = vadd.f32 %v9728_v33, %v2115_v44  ;;  %v2077_v16 = vmul.f32 %v7969_v60, %v9539_v32 }
 0x602   :  { %2235 = vadd.xlane.f32.xlu0 %v2234_v41  ;;  %v2148_v36 = vadd.f32 %v9728_v33, %v2112_v8 }
 0x603   :  { %7976 = vrsqrt.f32 %v2017_v21  ;;  %v9745_v34 = vadd.f32 %v2151_v0, %v8960_v48  ;;  %v2113_v55 = vmul.f32 %v9724_v11, %v2077_v16 }
 0x604   :  { %v9749_v56 = vadd.f32 %v2148_v36, %v8981_v30 }
 0x605   :  { %v2237_v7 = vsel %vm90_vm0, %v9745_v34, 0.0  ;;  %v2149_v61 = vadd.f32 %v9728_v33, %v2113_v55 }
 0x606   :  { %2238 = vadd.xlane.f32.xlu1 %v2237_v7  ;;  %v2228_v32 = vsel %vm90_vm0, %v9749_v56, 0.0 }
 0x607   :  { %2229 = vadd.xlane.f32.xlu0 %v2228_v32  ;;  %v9757_v19 = vadd.f32 %v2149_v61, %v8984_v9 }
 0x608   :  { %v7971_v48 = vpop.eup %7970 }
 0x609   :  { %v2231_v51 = vsel %vm90_vm0, %v9757_v19, 0.0  ;;  %v2082_v30 = vmul.f32 %v7971_v48, %v9547_v25 }
 0x60a   :  { %2232 = vadd.xlane.f32.xlu1 %v2231_v51 }
 0x60b   :  { %v2118_v28 = vmul.f32 %v9724_v11, %v2082_v30 }
 0x60c   :  { %v7973_v22 = vpop.eup %7972 }
 0x60d   :  { %v7975_v42 = vpop.eup %7974  ;;  %v2154_v18 = vadd.f32 %v9728_v33, %v2118_v28  ;;  %v2083_v44 = vmul.f32 %v7973_v22, %v9552_v63 }
 0x60e   :  { %v2080_v60 = vmul.f32 %v7975_v42, %v9555_v57 }
 0x60f   :  { %v9767_v9 = vadd.f32 %v2154_v18, %v8909_v46  ;;  %v2119_v8 = vmul.f32 %v9724_v11, %v2083_v44 }
 0x610   :  { %v7977_v21 = vpop.eup %7976  ;;  %v2116_v41 = vmul.f32 %v9724_v11, %v2080_v60 }
 0x611   :  { %v2246_v25 = vsel %vm90_vm0, %v9767_v9, 0.0  ;;  %v2155_v0 = vadd.f32 %v9728_v33, %v2119_v8  ;;  %v2081_v16 = vmul.f32 %v7977_v21, %v9563_v43 }
 0x612   :  { %2247 = vadd.xlane.f32.xlu0 %v2246_v25  ;;  %v2152_v63 = vadd.f32 %v9728_v33, %v2116_v41 }
 0x613   :  { %v9777_v57 = vadd.f32 %v2155_v0, %v8912_v50  ;;  %v2117_v46 = vmul.f32 %v9724_v11, %v2081_v16 }
 0x614   :  { %v9781_v36 = vadd.f32 %v2152_v63, %v8933_v38 }
 0x615   :  { %v2249_v55 = vsel %vm90_vm0, %v9777_v57, 0.0  ;;  %v2153_v7 = vadd.f32 %v9728_v33, %v2117_v46 }
 0x616   :  { %2250 = vadd.xlane.f32.xlu1 %v2249_v55  ;;  %v2240_v43 = vsel %vm90_vm0, %v9781_v36, 0.0  ;;  %v1944_v61 = vpop.xlane.xlu0 %1943 }
 0x617   :  { %2241 = vadd.xlane.f32.xlu0 %v2240_v43  ;;  %v1994_v32 = vmul.f32 0.03125, %v1944_v61  ;;  %v9789_v50 = vadd.f32 %v2153_v7, %v8936_v39 }
 0x619   :  { %v2026_v48 = vadd.f32 1e-05, %v1994_v32  ;;  %v2243_v38 = vsel %vm90_vm0, %v9789_v50, 0.0 }
 0x61a   :  { %2244 = vadd.xlane.f32.xlu1 %v2243_v38  ;;  %v1947_v51 = vpop.xlane.xlu1 %1946 }
 0x61b   :  { %7978 = vrsqrt.f32 %v2026_v48  ;;  %v1995_v30 = vmul.f32 0.03125, %v1947_v51 }
 0x61d   :  { %v2027_v28 = vadd.f32 1e-05, %v1995_v30 }
 0x61f   :  { %7980 = vrsqrt.f32 %v2027_v28 }
 0x626   :  { %v1956_v22 = vpop.xlane.xlu0 %1955 }
 0x627   :  { %v1998_v42 = vmul.f32 0.03125, %v1956_v22 }
 0x628   :  { %v7979_v18 = vpop.eup %7978 }
 0x629   :  { %v2030_v44 = vadd.f32 1e-05, %v1998_v42  ;;  %v2090_v60 = vmul.f32 %v7979_v18, %v9571_v59 }
 0x62a   :  { %v1959_v8 = vpop.xlane.xlu1 %1958  ;;  %v1950_v21 = vpop.xlane.xlu0 %1949 }
 0x62b   :  { %7982 = vrsqrt.f32 %v2030_v44  ;;  %v1999_v39 = vmul.f32 0.03125, %v1959_v8  ;;  %v1996_v41 = vmul.f32 0.03125, %v1950_v21  ;;  %v2126_v25 = vmul.f32 %v9724_v11, %v2090_v60 }
 0x62c   :  { %v7981_v0 = vpop.eup %7980 }
 0x62d   :  { %v2031_v16 = vadd.f32 1e-05, %v1999_v39  ;;  %v2028_v63 = vadd.f32 1e-05, %v1996_v41  ;;  %v2162_v46 = vadd.f32 %v9728_v33, %v2126_v25  ;;  %v2091_v55 = vmul.f32 %v7981_v0, %v9576_v20 }
 0x62e   :  { %v1953_v7 = vpop.xlane.xlu1 %1952 }
 0x62f   :  { %7984 = vrsqrt.f32 %v2031_v16  ;;  %v1997_v43 = vmul.f32 0.03125, %v1953_v7  ;;  %v9798_v61 = vadd.f32 %v2162_v46, %v8991_v1  ;;  %v2127_v59 = vmul.f32 %v9724_v11, %v2091_v55 }
 0x630   :  { %7986 = vrsqrt.f32 %v2028_v63 }
 0x631   :  { %v2029_v32 = vadd.f32 1e-05, %v1997_v43  ;;  %v2270_v48 = vsel %vm90_vm0, %v9798_v61, 0.0  ;;  %v2163_v38 = vadd.f32 %v9728_v33, %v2127_v59 }
 0x632   :  { %2271 = vadd.xlane.f32.xlu0 %v2270_v48 }
 0x633   :  { %7988 = vrsqrt.f32 %v2029_v32  ;;  %v9805_v51 = vadd.f32 %v2163_v38, %v8994_v13 }
 0x635   :  { %v2273_v20 = vsel %vm90_vm0, %v9805_v51, 0.0 }
 0x636   :  { %2274 = vadd.xlane.f32.xlu1 %v2273_v20  ;;  %v1968_v1 = vpop.xlane.xlu0 %1967 }
 0x637   :  { %v2002_v30 = vmul.f32 0.03125, %v1968_v1 }
 0x638   :  { %v7983_v28 = vpop.eup %7982 }
 0x639   :  { %v2034_v22 = vadd.f32 1e-05, %v2002_v30  ;;  %v2094_v42 = vmul.f32 %v7983_v28, %v9583_v47 }
 0x63a   :  { %v1971_v18 = vpop.xlane.xlu1 %1970  ;;  %v1962_v44 = vpop.xlane.xlu0 %1961 }
 0x63b   :  { %7990 = vrsqrt.f32 %v2034_v22  ;;  %v2003_v60 = vmul.f32 0.03125, %v1971_v18  ;;  %v2000_v8 = vmul.f32 0.03125, %v1962_v44  ;;  %v2130_v21 = vmul.f32 %v9724_v11, %v2094_v42 }
 0x63c   :  { %v7985_v39 = vpop.eup %7984 }
 0x63d   :  { %v7987_v13 = vpop.eup %7986  ;;  %v2035_v41 = vadd.f32 1e-05, %v2003_v60  ;;  %v2032_v25 = vadd.f32 1e-05, %v2000_v8  ;;  %v2166_v0 = vadd.f32 %v9728_v33, %v2130_v21  ;;  %v2095_v16 = vmul.f32 %v7985_v39, %v9588_v53 }
 0x63e   :  { %v1965_v63 = vpop.xlane.xlu1 %1964  ;;  %v1896_v46 = vpop.xlane.xlu0 %1895  ;;  %v2092_v55 = vmul.f32 %v7987_v13, %v9591_v37 }
 0x63f   :  { %7992 = vrsqrt.f32 %v2035_v41  ;;  %v2001_v47 = vmul.f32 0.03125, %v1965_v63  ;;  %v1978_v7 = vmul.f32 0.03125, %v1896_v46  ;;  %v9815_v43 = vadd.f32 %v2166_v0, %v8943_v10 }
 0x640   :  { %v7989_v59 = vpop.eup %7988  ;;  %7994 = vrsqrt.f32 %v2032_v25  ;;  %v2131_v32 = vmul.f32 %v9724_v11, %v2095_v16  ;;  %v2128_v48 = vmul.f32 %v9724_v11, %v2092_v55 }
 0x641   :  { %v2033_v38 = vadd.f32 1e-05, %v2001_v47  ;;  %v2010_v20 = vadd.f32 1e-05, %v1978_v7  ;;  %v2282_v53 = vsel %vm90_vm0, %v9815_v43, 0.0  ;;  %v2093_v1 = vmul.f32 %v7989_v59, %v9599_v35 }
 0x642   :  { %v1899_v37 = vpop.xlane.xlu1 %1898  ;;  %2283 = vadd.xlane.f32.xlu0 %v2282_v53  ;;  %v1938_v30 = vpop.xlane.xlu0 %1937  ;;  %v2167_v28 = vadd.f32 %v9728_v33, %v2131_v32  ;;  %v2164_v10 = vadd.f32 %v9728_v33, %v2128_v48 }
 0x643   :  { %7996 = vrsqrt.f32 %v2033_v38  ;;  %v1979_v22 = vmul.f32 0.03125, %v1899_v37  ;;  %v1992_v42 = vmul.f32 0.03125, %v1938_v30  ;;  %v2129_v18 = vmul.f32 %v9724_v11, %v2093_v1 }
 0x644   :  { %7998 = vrsqrt.f32 %v2010_v20  ;;  %v9826_v44 = vadd.f32 %v2167_v28, %v8946_v40  ;;  %v9829_v60 = vadd.f32 %v2164_v10, %v8967_v54 }
 0x645   :  { %v2011_v35 = vadd.f32 1e-05, %v1979_v22  ;;  %v2024_v8 = vadd.f32 1e-05, %v1992_v42  ;;  %v2165_v21 = vadd.f32 %v9728_v33, %v2129_v18 }
 0x646   :  { %v2285_v39 = vsel %vm90_vm0, %v9826_v44, 0.0  ;;  %v1941_v13 = vpop.xlane.xlu1 %1940  ;;  %v2276_v41 = vsel %vm90_vm0, %v9829_v60, 0.0  ;;  %v1890_v25 = vpop.xlane.xlu0 %1889 }
 0x647   :  { %8000 = vrsqrt.f32 %v2011_v35  ;;  %2286 = vadd.xlane.f32.xlu1 %v2285_v39  ;;  %v1993_v0 = vmul.f32 0.03125, %v1941_v13  ;;  %2277 = vadd.xlane.f32.xlu0 %v2276_v41  ;;  %v1976_v40 = vmul.f32 0.03125, %v1890_v25  ;;  %v9837_v54 = vadd.f32 %v2165_v21, %v8970_v5 }
 0x648   :  { %v7991_v16 = vpop.eup %7990  ;;  %8002 = vrsqrt.f32 %v2024_v8 }
 0x649   :  { %v2025_v63 = vadd.f32 1e-05, %v1993_v0  ;;  %v2008_v46 = vadd.f32 1e-05, %v1976_v40  ;;  %v2279_v55 = vsel %vm90_vm0, %v9837_v54, 0.0  ;;  %v2098_v47 = vmul.f32 %v7991_v16, %v9607_v31 }
 0x64a   :  { %v1893_v7 = vpop.xlane.xlu1 %1892  ;;  %v1932_v59 = vpop.xlane.xlu0 %1931 }
 0x64b   :  { %8004 = vrsqrt.f32 %v2025_v63  ;;  %2280 = vadd.xlane.f32.xlu1 %v2279_v55  ;;  %v1977_v32 = vmul.f32 0.03125, %v1893_v7  ;;  %v1990_v48 = vmul.f32 0.03125, %v1932_v59  ;;  %v2134_v38 = vmul.f32 %v9724_v11, %v2098_v47 }
 0x64c   :  { %v7993_v20 = vpop.eup %7992  ;;  %8006 = vrsqrt.f32 %v2008_v46 }
 0x64d   :  { %v7995_v5 = vpop.eup %7994  ;;  %v2009_v53 = vadd.f32 1e-05, %v1977_v32  ;;  %v2022_v1 = vadd.f32 1e-05, %v1990_v48  ;;  %v2170_v37 = vadd.f32 %v9728_v33, %v2134_v38  ;;  %v2099_v30 = vmul.f32 %v7993_v20, %v9612_v2 }
 0x64e   :  { %v1935_v28 = vpop.xlane.xlu1 %1934  ;;  %v1884_v10 = vpop.xlane.xlu0 %1883  ;;  %v2096_v31 = vmul.f32 %v7995_v5, %v9615_v52 }
 0x64f   :  { %8008 = vrsqrt.f32 %v2009_v53  ;;  %v1991_v22 = vmul.f32 0.03125, %v1935_v28  ;;  %v1974_v42 = vmul.f32 0.03125, %v1884_v10  ;;  %v9847_v18 = vadd.f32 %v2170_v37, %v8895_v3 }
 0x650   :  { %v7997_v35 = vpop.eup %7996  ;;  %8010 = vrsqrt.f32 %v2022_v1  ;;  %v2135_v8 = vmul.f32 %v9724_v11, %v2099_v30  ;;  %v2132_v21 = vmul.f32 %v9724_v11, %v2096_v31  ;;  %v13073_v31 = vld [vmem:[#allocation4_spill] sm:$0xff] }
 0x651   :  { %v7999_v39 = vpop.eup %7998  ;;  %v2023_v13 = vadd.f32 1e-05, %v1991_v22  ;;  %v2006_v41 = vadd.f32 1e-05, %v1974_v42  ;;  %v2294_v2 = vsel %vm90_vm0, %v9847_v18, 0.0  ;;  %v2097_v52 = vmul.f32 %v7997_v35, %v9623_v58 }
 0x652   :  { %v1887_v25 = vpop.xlane.xlu1 %1886  ;;  %2295 = vadd.xlane.f32.xlu0 %v2294_v2  ;;  %v1926_v0 = vpop.xlane.xlu0 %1925  ;;  %v2171_v3 = vadd.f32 %v9728_v33, %v2135_v8  ;;  %v2168_v40 = vadd.f32 %v9728_v33, %v2132_v21  ;;  %v2074_v16 = vmul.f32 %v7999_v39, %v9626_v26 }
 0x653   :  { %8012 = vrsqrt.f32 %v2023_v13  ;;  %v1975_v63 = vmul.f32 0.03125, %v1887_v25  ;;  %v1988_v46 = vmul.f32 0.03125, %v1926_v0  ;;  %v2133_v55 = vmul.f32 %v9724_v11, %v2097_v52 }
 0x654   :  { %v8001_v47 = vpop.eup %8000  ;;  %8014 = vrsqrt.f32 %v2006_v41  ;;  %v9859_v7 = vadd.f32 %v2171_v3, %v8898_v14  ;;  %v9862_v58 = vadd.f32 %v2168_v40, %v8919_v24  ;;  %v2110_v59 = vmul.f32 %v9724_v11, %v2074_v16  ;;  %v13074_v16 = vld [vmem:[#allocation5_spill] sm:$0xff] }
 0x655   :  { %v8003_v32 = vpop.eup %8002  ;;  %v2007_v48 = vadd.f32 1e-05, %v1975_v63  ;;  %v2020_v38 = vadd.f32 1e-05, %v1988_v46  ;;  %v2169_v26 = vadd.f32 %v9728_v33, %v2133_v55  ;;  %v2075_v20 = vmul.f32 %v8001_v47, %v9635_v27  ;;  %v13075_v63 = vld [vmem:[#allocation6_spill] sm:$0xff] }
 0x656   :  { %v2297_v5 = vsel %vm90_vm0, %v9859_v7, 0.0  ;;  %v1929_v53 = vpop.xlane.xlu1 %1928  ;;  %v2288_v14 = vsel %vm90_vm0, %v9862_v58, 0.0  ;;  %v1878_v1 = vpop.xlane.xlu0 %1877  ;;  %v2146_v24 = vadd.f32 %v9728_v33, %v2110_v59  ;;  %v2088_v37 = vmul.f32 %v8003_v32, %v9638_v12 }
 0x657   :  { %8016 = vrsqrt.f32 %v2007_v48  ;;  %2298 = vadd.xlane.f32.xlu1 %v2297_v5  ;;  %v1989_v30 = vmul.f32 0.03125, %v1929_v53  ;;  %2289 = vadd.xlane.f32.xlu0 %v2288_v14  ;;  %v1972_v28 = vmul.f32 0.03125, %v1878_v1  ;;  %v9874_v10 = vadd.f32 %v2169_v26, %v8922_v6  ;;  %v13076_v5 = vld [vmem:[#allocation7_spill] sm:$0xff] }
 0x658   :  { %v8005_v27 = vpop.eup %8004  ;;  %8018 = vrsqrt.f32 %v2020_v38  ;;  %v9877_v22 = vadd.f32 %v2146_v24, %v13073_v31  ;;  %v2111_v42 = vmul.f32 %v9724_v11, %v2075_v20  ;;  %v2124_v35 = vmul.f32 %v9724_v11, %v2088_v37 }
 0x659   :  { %v8007_v8 = vpop.eup %8006  ;;  %v2021_v21 = vadd.f32 1e-05, %v1989_v30  ;;  %v2004_v12 = vadd.f32 1e-05, %v1972_v28  ;;  %v2291_v39 = vsel %vm90_vm0, %v9874_v10, 0.0  ;;  %v2089_v13 = vmul.f32 %v8005_v27, %v9647_v45 }
 0x65a   :  { %v1881_v41 = vpop.xlane.xlu1 %1880  ;;  %v2222_v6 = vsel %vm90_vm0, %v9877_v22, 0.0  ;;  %v2147_v2 = vadd.f32 %v9728_v33, %v2111_v42  ;;  %v2160_v52 = vadd.f32 %v9728_v33, %v2124_v35  ;;  %v2072_v25 = vmul.f32 %v8007_v8, %v9650_v17  ;;  %v13078_v8 = vld [vmem:[#allocation9_spill] sm:$0xff] }
 0x65b   :  { %8020 = vrsqrt.f32 %v2021_v21  ;;  %2292 = vadd.xlane.f32.xlu1 %v2291_v39  ;;  %v1973_v0 = vmul.f32 0.03125, %v1881_v41  ;;  %2223 = vadd.xlane.f32.xlu0 %v2222_v6  ;;  %v2125_v3 = vmul.f32 %v9724_v11, %v2089_v13  ;;  %v13079_v13 = vld [vmem:[#allocation10_spill] sm:$0xff] }
 0x65c   :  { %v8009_v40 = vpop.eup %8008  ;;  %8022 = vrsqrt.f32 %v2004_v12  ;;  %v9891_v45 = vadd.f32 %v2147_v2, %v13074_v16  ;;  %v9894_v46 = vadd.f32 %v2160_v52, %v13075_v63  ;;  %v2108_v55 = vmul.f32 %v9724_v11, %v2072_v25  ;;  %v13082_v63 = vld [vmem:[#allocation11_spill] sm:$0xff] }
 0x65d   :  { %v8011_v47 = vpop.eup %8010  ;;  %v2005_v59 = vadd.f32 1e-05, %v1973_v0  ;;  %v2161_v17 = vadd.f32 %v9728_v33, %v2125_v3  ;;  %v2073_v32 = vmul.f32 %v8009_v40, %v9659_v4  ;;  %v13077_v4 = vld [vmem:[#allocation8_spill] sm:$0xff]  ;;  %v13081_v40 = vld [vmem:[#allocation21_spill] sm:$0xff] }
 0x65e   :  { %v2225_v48 = vsel %vm90_vm0, %v9891_v45, 0.0  ;;  %v2264_v38 = vsel %vm90_vm0, %v9894_v46, 0.0  ;;  %v2144_v26 = vadd.f32 %v9728_v33, %v2108_v55  ;;  %v2086_v20 = vmul.f32 %v8011_v47, %v9662_v62 }
 0x65f   :  { %8024 = vrsqrt.f32 %v2005_v59  ;;  %2226 = vadd.xlane.f32.xlu1 %v2225_v48  ;;  %2265 = vadd.xlane.f32.xlu0 %v2264_v38  ;;  %v9906_v53 = vadd.f32 %v2161_v17, %v13076_v5  ;;  %v2109_v14 = vmul.f32 %v9724_v11, %v2073_v32  ;;  %v13083_v17 = vld [vmem:[#allocation12_spill] sm:$0xff]  ;;  %v13084_v5 = vld [vmem:[#allocation22_spill] sm:$0xff] }
 0x660   :  { %v8013_v1 = vpop.eup %8012  ;;  %v9910_v24 = vadd.f32 %v2144_v26, %v13077_v4  ;;  %v2122_v37 = vmul.f32 %v9724_v11, %v2086_v20 }
 0x661   :  { %v8015_v30 = vpop.eup %8014  ;;  %v2267_v28 = vsel %vm90_vm0, %v9906_v53, 0.0  ;;  %v2145_v62 = vadd.f32 %v9728_v33, %v2109_v14  ;;  %v2087_v27 = vmul.f32 %v8013_v1, %v9671_v23 }
 0x662   :  { %v2216_v31 = vsel %vm90_vm0, %v9910_v24, 0.0  ;;  %v2158_v42 = vadd.f32 %v9728_v33, %v2122_v37  ;;  %v2070_v35 = vmul.f32 %v8015_v30, %v9674_v49  ;;  %v13080_v49 = vld [vmem:[#allocation20_spill] sm:$0xff]  ;;  %v13085_v37 = vld [vmem:[#allocation23_spill] sm:$0xff] }
 0x663   :  { %2268 = vadd.xlane.f32.xlu1 %v2267_v28  ;;  %2217 = vadd.xlane.f32.xlu0 %v2216_v31  ;;  %v9922_v21 = vadd.f32 %v2145_v62, %v13078_v8  ;;  %v2123_v12 = vmul.f32 %v9724_v11, %v2087_v27  ;;  %v13086_v28 = vld [vmem:[#allocation13_spill] sm:$0xff] }
 0x664   :  { %v8017_v39 = vpop.eup %8016  ;;  %v9926_v41 = vadd.f32 %v2158_v42, %v13079_v13  ;;  %v2106_v23 = vmul.f32 %v9724_v11, %v2070_v35  ;;  %v13087_v42 = vld [vmem:[#allocation14_spill] sm:$0xff]  ;;  %v13088_v13 = vld [vmem:[#allocation24_spill] sm:$0xff] }
 0x665   :  { %v8019_v6 = vpop.eup %8018  ;;  %v2219_v2 = vsel %vm90_vm0, %v9922_v21, 0.0  ;;  %v2159_v52 = vadd.f32 %v9728_v33, %v2123_v12  ;;  %v2071_v25 = vmul.f32 %v8017_v39, %v13080_v49 }
 0x666   :  { %v2258_v0 = vsel %vm90_vm0, %v9926_v41, 0.0  ;;  %v2142_v3 = vadd.f32 %v9728_v33, %v2106_v23  ;;  %v2084_v16 = vmul.f32 %v8019_v6, %v13081_v40 }
 0x667   :  { %2220 = vadd.xlane.f32.xlu1 %v2219_v2  ;;  %2259 = vadd.xlane.f32.xlu0 %v2258_v0  ;;  %v9938_v55 = vadd.f32 %v2159_v52, %v13082_v63  ;;  %v2107_v47 = vmul.f32 %v9724_v11, %v2071_v25  ;;  %v13089_v52 = vld [vmem:[#allocation15_spill] sm:$0xff]  ;;  %v13090_v0 = vld [vmem:[#allocation16_spill] sm:$0xff] }
 0x668   :  { %v8021_v59 = vpop.eup %8020  ;;  %v9942_v32 = vadd.f32 %v2142_v3, %v13083_v17  ;;  %v2120_v48 = vmul.f32 %v9724_v11, %v2084_v16 }
 0x669   :  { %v8023_v38 = vpop.eup %8022  ;;  %v2261_v26 = vsel %vm90_vm0, %v9938_v55, 0.0  ;;  %v2143_v20 = vadd.f32 %v9728_v33, %v2107_v47  ;;  %v2085_v14 = vmul.f32 %v8021_v59, %v13084_v5  ;;  %v13091_v47 = vld [vmem:[#allocation17_spill] sm:$0xff] }
 0x66a   :  { %v2210_v1 = vsel %vm90_vm0, %v9942_v32, 0.0  ;;  %v2156_v4 = vadd.f32 %v9728_v33, %v2120_v48  ;;  %v2068_v30 = vmul.f32 %v8023_v38, %v13085_v37 }
 0x66b   :  { %2262 = vadd.xlane.f32.xlu1 %v2261_v26  ;;  %2211 = vadd.xlane.f32.xlu0 %v2210_v1  ;;  %v9954_v62 = vadd.f32 %v2143_v20, %v13086_v28  ;;  %v2121_v27 = vmul.f32 %v9724_v11, %v2085_v14 }
 0x66c   :  { %v8025_v31 = vpop.eup %8024  ;;  %v9958_v35 = vadd.f32 %v2156_v4, %v13087_v42  ;;  %v2104_v8 = vmul.f32 %v9724_v11, %v2068_v30 }
 0x66d   :  { %v2213_v12 = vsel %vm90_vm0, %v9954_v62, 0.0  ;;  %v2157_v39 = vadd.f32 %v9728_v33, %v2121_v27  ;;  %v2069_v23 = vmul.f32 %v8025_v31, %v13088_v13 }
 0x66e   :  { %v2252_v6 = vsel %vm90_vm0, %v9958_v35, 0.0  ;;  %v2140_v2 = vadd.f32 %v9728_v33, %v2104_v8 }
 0x66f   :  { %2214 = vadd.xlane.f32.xlu1 %v2213_v12  ;;  %2253 = vadd.xlane.f32.xlu0 %v2252_v6  ;;  %v9969_v49 = vadd.f32 %v2157_v39, %v13089_v52  ;;  %v2105_v25 = vmul.f32 %v9724_v11, %v2069_v23 }
 0x670   :  { %v9973_v3 = vadd.f32 %v2140_v2, %v13090_v0 }
 0x671   :  { %v2255_v40 = vsel %vm90_vm0, %v9969_v49, 0.0  ;;  %v2141_v16 = vadd.f32 %v9728_v33, %v2105_v25 }
 0x672   :  { %v2204_v63 = vsel %vm90_vm0, %v9973_v3, 0.0 }
 0x673   :  { %2256 = vadd.xlane.f32.xlu1 %v2255_v40  ;;  %2205 = vadd.xlane.f32.xlu0 %v2204_v63  ;;  %v9981_v59 = vadd.f32 %v2141_v16, %v13091_v47 }
 0x675   :  { %v2207_v17 = vsel %vm90_vm0, %v9981_v59, 0.0 }
 0x677   :  { %2208 = vadd.xlane.f32.xlu1 %v2207_v17 }
 0x68b   :  { %v2236_v11 = vpop.xlane.xlu0 %2235 }
 0x68c   :  { %v2310_v48 = vmul.f32 0.03125, %v2236_v11 }
 0x68e   :  { %v9986_v38 = vsub.f32 %v9735_v15, %v2310_v48 }
 0x68f   :  { %v2239_v26 = vpop.xlane.xlu1 %2238 }
 0x690   :  { %v2311_v20 = vmul.f32 0.03125, %v2239_v26  ;;  %v2230_v33 = vpop.xlane.xlu0 %2229  ;;  %v2374_v5 = vmul.f32 %v9986_v38, %v9986_v38 }
 0x691   :  { %v2308_v14 = vmul.f32 0.03125, %v2230_v33 }
 0x692   :  { %v9991_v1 = vsub.f32 %v9745_v34, %v2311_v20  ;;  %v2426_v4 = vsel %vm90_vm0, %v2374_v5, 0.0 }
 0x693   :  { %v9995_v37 = vsub.f32 %v9749_v56, %v2308_v14  ;;  %v2233_v30 = vpop.xlane.xlu1 %2232  ;;  %2427 = vadd.xlane.f32.xlu0 %v2426_v4 }
 0x694   :  { %v2309_v28 = vmul.f32 0.03125, %v2233_v30  ;;  %v2375_v15 = vmul.f32 %v9991_v1, %v9991_v1 }
 0x695   :  { %v2372_v27 = vmul.f32 %v9995_v37, %v9995_v37 }
 0x696   :  { %v10002_v31 = vsub.f32 %v9757_v19, %v2309_v28  ;;  %v2429_v34 = vsel %vm90_vm0, %v2375_v15, 0.0 }
 0x697   :  { %2430 = vadd.xlane.f32.xlu1 %v2429_v34  ;;  %v2420_v42 = vsel %vm90_vm0, %v2372_v27, 0.0 }
 0x698   :  { %2421 = vadd.xlane.f32.xlu0 %v2420_v42  ;;  %v2373_v56 = vmul.f32 %v10002_v31, %v10002_v31 }
 0x69a   :  { %v2423_v8 = vsel %vm90_vm0, %v2373_v56, 0.0 }
 0x69b   :  { %2424 = vadd.xlane.f32.xlu1 %v2423_v8  ;;  %v2248_v12 = vpop.xlane.xlu0 %2247 }
 0x69c   :  { %v2314_v39 = vmul.f32 0.03125, %v2248_v12 }
 0x69e   :  { %v10010_v13 = vsub.f32 %v9767_v9, %v2314_v39 }
 0x69f   :  { %v2251_v23 = vpop.xlane.xlu1 %2250 }
 0x6a0   :  { %v2315_v19 = vmul.f32 0.03125, %v2251_v23  ;;  %v2242_v6 = vpop.xlane.xlu0 %2241  ;;  %v2378_v2 = vmul.f32 %v10010_v13, %v10010_v13 }
 0x6a1   :  { %v2312_v52 = vmul.f32 0.03125, %v2242_v6 }
 0x6a2   :  { %v10015_v25 = vsub.f32 %v9777_v57, %v2315_v19  ;;  %v2438_v0 = vsel %vm90_vm0, %v2378_v2, 0.0 }
 0x6a3   :  { %v10019_v40 = vsub.f32 %v9781_v36, %v2312_v52  ;;  %v2245_v16 = vpop.xlane.xlu1 %2244  ;;  %2439 = vadd.xlane.f32.xlu0 %v2438_v0 }
 0x6a4   :  { %v2313_v63 = vmul.f32 0.03125, %v2245_v16  ;;  %v2379_v9 = vmul.f32 %v10015_v25, %v10015_v25 }
 0x6a5   :  { %v2376_v47 = vmul.f32 %v10019_v40, %v10019_v40 }
 0x6a6   :  { %v10026_v17 = vsub.f32 %v9789_v50, %v2313_v63  ;;  %v2441_v57 = vsel %vm90_vm0, %v2379_v9, 0.0 }
 0x6a7   :  { %2442 = vadd.xlane.f32.xlu1 %v2441_v57  ;;  %v2432_v11 = vsel %vm90_vm0, %v2376_v47, 0.0 }
 0x6a8   :  { %2433 = vadd.xlane.f32.xlu0 %v2432_v11  ;;  %v2377_v36 = vmul.f32 %v10026_v17, %v10026_v17 }
 0x6aa   :  { %v2435_v48 = vsel %vm90_vm0, %v2377_v36, 0.0 }
 0x6ab   :  { %2436 = vadd.xlane.f32.xlu1 %v2435_v48 }
 0x6bb   :  { %v2272_v26 = vpop.xlane.xlu0 %2271 }
 0x6bc   :  { %v2322_v20 = vmul.f32 0.03125, %v2272_v26 }
 0x6be   :  { %v10034_v33 = vsub.f32 %v9798_v61, %v2322_v20 }
 0x6bf   :  { %v2275_v5 = vpop.xlane.xlu1 %2274 }
 0x6c0   :  { %v2323_v50 = vmul.f32 0.03125, %v2275_v5  ;;  %v2386_v14 = vmul.f32 %v10034_v33, %v10034_v33 }
 0x6c2   :  { %v10039_v4 = vsub.f32 %v9805_v51, %v2323_v50  ;;  %v2462_v30 = vsel %vm90_vm0, %v2386_v14, 0.0 }
 0x6c3   :  { %2463 = vadd.xlane.f32.xlu0 %v2462_v30 }
 0x6c4   :  { %v2387_v28 = vmul.f32 %v10039_v4, %v10039_v4 }
 0x6c6   :  { %v2465_v15 = vsel %vm90_vm0, %v2387_v28, 0.0 }
 0x6c7   :  { %2466 = vadd.xlane.f32.xlu1 %v2465_v15 }
 0x6cb   :  { %v2284_v27 = vpop.xlane.xlu0 %2283 }
 0x6cc   :  { %v2326_v61 = vmul.f32 0.03125, %v2284_v27 }
 0x6ce   :  { %v10046_v34 = vsub.f32 %v9815_v43, %v2326_v61 }
 0x6d0   :  { %v2287_v42 = vpop.xlane.xlu1 %2286  ;;  %v2278_v56 = vpop.xlane.xlu0 %2277  ;;  %v2390_v51 = vmul.f32 %v10046_v34, %v10046_v34 }
 0x6d1   :  { %v2327_v8 = vmul.f32 0.03125, %v2287_v42  ;;  %v2324_v12 = vmul.f32 0.03125, %v2278_v56 }
 0x6d2   :  { %v2474_v39 = vsel %vm90_vm0, %v2390_v51, 0.0 }
 0x6d3   :  { %v10052_v23 = vsub.f32 %v9826_v44, %v2327_v8  ;;  %v10055_v19 = vsub.f32 %v9829_v60, %v2324_v12  ;;  %2475 = vadd.xlane.f32.xlu0 %v2474_v39 }
 0x6d4   :  { %v2281_v6 = vpop.xlane.xlu1 %2280 }
 0x6d5   :  { %v2325_v2 = vmul.f32 0.03125, %v2281_v6  ;;  %v2391_v43 = vmul.f32 %v10052_v23, %v10052_v23  ;;  %v2388_v52 = vmul.f32 %v10055_v19, %v10055_v19 }
 0x6d7   :  { %v10062_v0 = vsub.f32 %v9837_v54, %v2325_v2  ;;  %v2477_v16 = vsel %vm90_vm0, %v2391_v43, 0.0  ;;  %v2468_v44 = vsel %vm90_vm0, %v2388_v52, 0.0 }
 0x6d8   :  { %2478 = vadd.xlane.f32.xlu1 %v2477_v16  ;;  %2469 = vadd.xlane.f32.xlu0 %v2468_v44 }
 0x6d9   :  { %v2389_v60 = vmul.f32 %v10062_v0, %v10062_v0 }
 0x6db   :  { %v2471_v63 = vsel %vm90_vm0, %v2389_v60, 0.0  ;;  %v2296_v9 = vpop.xlane.xlu0 %2295 }
 0x6dc   :  { %2472 = vadd.xlane.f32.xlu1 %v2471_v63  ;;  %v2330_v47 = vmul.f32 0.03125, %v2296_v9 }
 0x6de   :  { %v10070_v57 = vsub.f32 %v9847_v18, %v2330_v47 }
 0x6e0   :  { %v2299_v11 = vpop.xlane.xlu1 %2298  ;;  %v2290_v54 = vpop.xlane.xlu0 %2289  ;;  %v2394_v36 = vmul.f32 %v10070_v57, %v10070_v57 }
 0x6e1   :  { %v2331_v48 = vmul.f32 0.03125, %v2299_v11  ;;  %v2328_v26 = vmul.f32 0.03125, %v2290_v54 }
 0x6e2   :  { %v2486_v20 = vsel %vm90_vm0, %v2394_v36, 0.0 }
 0x6e3   :  { %v10076_v5 = vsub.f32 %v9859_v7, %v2331_v48  ;;  %v10079_v50 = vsub.f32 %v9862_v58, %v2328_v26  ;;  %2487 = vadd.xlane.f32.xlu0 %v2486_v20 }
 0x6e4   :  { %v2293_v14 = vpop.xlane.xlu1 %2292  ;;  %v2224_v30 = vpop.xlane.xlu0 %2223 }
 0x6e5   :  { %v2329_v18 = vmul.f32 0.03125, %v2293_v14  ;;  %v2306_v28 = vmul.f32 0.03125, %v2224_v30  ;;  %v2395_v15 = vmul.f32 %v10076_v5, %v10076_v5  ;;  %v2392_v27 = vmul.f32 %v10079_v50, %v10079_v50 }
 0x6e7   :  { %v10086_v61 = vsub.f32 %v9874_v10, %v2329_v18  ;;  %v10089_v7 = vsub.f32 %v9877_v22, %v2306_v28  ;;  %v2489_v58 = vsel %vm90_vm0, %v2395_v15, 0.0  ;;  %v2480_v42 = vsel %vm90_vm0, %v2392_v27, 0.0 }
 0x6e8   :  { %2490 = vadd.xlane.f32.xlu1 %v2489_v58  ;;  %v2227_v56 = vpop.xlane.xlu1 %2226  ;;  %2481 = vadd.xlane.f32.xlu0 %v2480_v42  ;;  %v2266_v51 = vpop.xlane.xlu0 %2265 }
 0x6e9   :  { %v2307_v8 = vmul.f32 0.03125, %v2227_v56  ;;  %v2320_v12 = vmul.f32 0.03125, %v2266_v51  ;;  %v2393_v39 = vmul.f32 %v10086_v61, %v10086_v61  ;;  %v2370_v10 = vmul.f32 %v10089_v7, %v10089_v7 }
 0x6eb   :  { %v10098_v6 = vsub.f32 %v9891_v45, %v2307_v8  ;;  %v10101_v22 = vsub.f32 %v9894_v46, %v2320_v12  ;;  %v2483_v2 = vsel %vm90_vm0, %v2393_v39, 0.0  ;;  %v2414_v43 = vsel %vm90_vm0, %v2370_v10, 0.0 }
 0x6ec   :  { %2484 = vadd.xlane.f32.xlu1 %v2483_v2  ;;  %v2269_v52 = vpop.xlane.xlu1 %2268  ;;  %2415 = vadd.xlane.f32.xlu0 %v2414_v43  ;;  %v2218_v16 = vpop.xlane.xlu0 %2217 }
 0x6ed   :  { %v2321_v44 = vmul.f32 0.03125, %v2269_v52  ;;  %v2304_v60 = vmul.f32 0.03125, %v2218_v16  ;;  %v2371_v63 = vmul.f32 %v10098_v6, %v10098_v6  ;;  %v2384_v45 = vmul.f32 %v10101_v22, %v10101_v22 }
 0x6ef   :  { %v10110_v9 = vsub.f32 %v9906_v53, %v2321_v44  ;;  %v10113_v46 = vsub.f32 %v9910_v24, %v2304_v60  ;;  %v2417_v47 = vsel %vm90_vm0, %v2371_v63, 0.0  ;;  %v2456_v11 = vsel %vm90_vm0, %v2384_v45, 0.0 }
 0x6f0   :  { %2418 = vadd.xlane.f32.xlu1 %v2417_v47  ;;  %v2221_v54 = vpop.xlane.xlu1 %2220  ;;  %2457 = vadd.xlane.f32.xlu0 %v2456_v11  ;;  %v2260_v36 = vpop.xlane.xlu0 %2259 }
 0x6f1   :  { %v2305_v48 = vmul.f32 0.03125, %v2221_v54  ;;  %v2318_v26 = vmul.f32 0.03125, %v2260_v36  ;;  %v2385_v20 = vmul.f32 %v10110_v9, %v10110_v9  ;;  %v2368_v53 = vmul.f32 %v10113_v46, %v10113_v46 }
 0x6f3   :  { %v10122_v14 = vsub.f32 %v9922_v21, %v2305_v48  ;;  %v10125_v24 = vsub.f32 %v9926_v41, %v2318_v26  ;;  %v2459_v30 = vsel %vm90_vm0, %v2385_v20, 0.0  ;;  %v2408_v18 = vsel %vm90_vm0, %v2368_v53, 0.0 }
 0x6f4   :  { %2460 = vadd.xlane.f32.xlu1 %v2459_v30  ;;  %v2263_v28 = vpop.xlane.xlu1 %2262  ;;  %2409 = vadd.xlane.f32.xlu0 %v2408_v18  ;;  %v2212_v15 = vpop.xlane.xlu0 %2211 }
 0x6f5   :  { %v2319_v27 = vmul.f32 0.03125, %v2263_v28  ;;  %v2302_v58 = vmul.f32 0.03125, %v2212_v15  ;;  %v2369_v42 = vmul.f32 %v10122_v14, %v10122_v14  ;;  %v2382_v21 = vmul.f32 %v10125_v24, %v10125_v24 }
 0x6f7   :  { %v10134_v56 = vsub.f32 %v9938_v55, %v2319_v27  ;;  %v10137_v41 = vsub.f32 %v9942_v32, %v2302_v58  ;;  %v2411_v51 = vsel %vm90_vm0, %v2369_v42, 0.0  ;;  %v2450_v8 = vsel %vm90_vm0, %v2382_v21, 0.0 }
 0x6f8   :  { %2412 = vadd.xlane.f32.xlu1 %v2411_v51  ;;  %v2215_v12 = vpop.xlane.xlu1 %2214  ;;  %2451 = vadd.xlane.f32.xlu0 %v2450_v8  ;;  %v2254_v39 = vpop.xlane.xlu0 %2253 }
 0x6f9   :  { %v2303_v10 = vmul.f32 0.03125, %v2215_v12  ;;  %v2316_v2 = vmul.f32 0.03125, %v2254_v39  ;;  %v2383_v43 = vmul.f32 %v10134_v56, %v10134_v56  ;;  %v2366_v55 = vmul.f32 %v10137_v41, %v10137_v41 }
 0x6fb   :  { %v10146_v52 = vsub.f32 %v9954_v62, %v2303_v10  ;;  %v10149_v32 = vsub.f32 %v9958_v35, %v2316_v2  ;;  %v2453_v16 = vsel %vm90_vm0, %v2383_v43, 0.0  ;;  %v2402_v44 = vsel %vm90_vm0, %v2366_v55, 0.0 }
 0x6fc   :  { %2454 = vadd.xlane.f32.xlu1 %v2453_v16  ;;  %v2257_v60 = vpop.xlane.xlu1 %2256  ;;  %2403 = vadd.xlane.f32.xlu0 %v2402_v44  ;;  %v2206_v63 = vpop.xlane.xlu0 %2205 }
 0x6fd   :  { %v2317_v45 = vmul.f32 0.03125, %v2257_v60  ;;  %v2300_v47 = vmul.f32 0.03125, %v2206_v63  ;;  %v2367_v11 = vmul.f32 %v10146_v52, %v10146_v52  ;;  %v2380_v62 = vmul.f32 %v10149_v32, %v10149_v32 }
 0x6ff   :  { %v10158_v54 = vsub.f32 %v9969_v49, %v2317_v45  ;;  %v10161_v35 = vsub.f32 %v9973_v3, %v2300_v47  ;;  %v2405_v36 = vsel %vm90_vm0, %v2367_v11, 0.0  ;;  %v2444_v48 = vsel %vm90_vm0, %v2380_v62, 0.0 }
 0x700   :  { %2406 = vadd.xlane.f32.xlu1 %v2405_v36  ;;  %v2209_v26 = vpop.xlane.xlu1 %2208  ;;  %2445 = vadd.xlane.f32.xlu0 %v2444_v48 }
 0x701   :  { %v2301_v20 = vmul.f32 0.03125, %v2209_v26  ;;  %v2381_v53 = vmul.f32 %v10158_v54, %v10158_v54  ;;  %v2364_v30 = vmul.f32 %v10161_v35, %v10161_v35 }
 0x703   :  { %v10170_v49 = vsub.f32 %v9981_v59, %v2301_v20  ;;  %v2447_v3 = vsel %vm90_vm0, %v2381_v53, 0.0  ;;  %v2396_v18 = vsel %vm90_vm0, %v2364_v30, 0.0 }
 0x704   :  { %2448 = vadd.xlane.f32.xlu1 %v2447_v3  ;;  %2397 = vadd.xlane.f32.xlu0 %v2396_v18 }
 0x705   :  { %v2365_v28 = vmul.f32 %v10170_v49, %v10170_v49 }
 0x707   :  { %v2399_v15 = vsel %vm90_vm0, %v2365_v28, 0.0 }
 0x708   :  { %2400 = vadd.xlane.f32.xlu1 %v2399_v15 }
 0x71c   :  { %v2428_v27 = vpop.xlane.xlu0 %2427 }
 0x71d   :  { %v2502_v39 = vmul.f32 0.03125, %v2428_v27 }
 0x71f   :  { %v2534_v16 = vadd.f32 1e-05, %v2502_v39 }
 0x720   :  { %v2431_v58 = vpop.xlane.xlu1 %2430 }
 0x721   :  { %v2422_v42 = vpop.xlane.xlu0 %2421  ;;  %v2503_v2 = vmul.f32 0.03125, %v2431_v58  ;;  %8026 = vrsqrt.f32 %v2534_v16 }
 0x722   :  { %v2500_v43 = vmul.f32 0.03125, %v2422_v42 }
 0x723   :  { %v2535_v45 = vadd.f32 1e-05, %v2503_v2 }
 0x724   :  { %v2425_v51 = vpop.xlane.xlu1 %2424  ;;  %v2532_v11 = vadd.f32 1e-05, %v2500_v43 }
 0x725   :  { %v2501_v62 = vmul.f32 0.03125, %v2425_v51  ;;  %8028 = vrsqrt.f32 %v2535_v45 }
 0x726   :  { %8030 = vrsqrt.f32 %v2532_v11 }
 0x727   :  { %v2533_v30 = vadd.f32 1e-05, %v2501_v62 }
 0x72c   :  { %v2440_v21 = vpop.xlane.xlu0 %2439 }
 0x72d   :  { %v2506_v44 = vmul.f32 0.03125, %v2440_v21 }
 0x72f   :  { %v2538_v36 = vadd.f32 1e-05, %v2506_v44  ;;  %v13092_v44 = vld [vmem:[#allocation2_spill] sm:$0xff] }
 0x730   :  { %v2443_v8 = vpop.xlane.xlu1 %2442 }
 0x731   :  { %v2434_v59 = vpop.xlane.xlu0 %2433  ;;  %v2507_v63 = vmul.f32 0.03125, %v2443_v8  ;;  %8032 = vrsqrt.f32 %v2538_v36 }
 0x732   :  { %v2504_v47 = vmul.f32 0.03125, %v2434_v59 }
 0x733   :  { %v2539_v26 = vadd.f32 1e-05, %v2507_v63  ;;  %v8027_v63 = vpop.eup %8026 }
 0x734   :  { %v2437_v10 = vpop.xlane.xlu1 %2436  ;;  %v2536_v53 = vadd.f32 1e-05, %v2504_v47 }
 0x735   :  { %v2505_v3 = vmul.f32 0.03125, %v2437_v10  ;;  %8034 = vrsqrt.f32 %v2539_v26  ;;  %v8029_v26 = vpop.eup %8028 }
 0x736   :  { %8036 = vrsqrt.f32 %v2536_v53 }
 0x737   :  { %8038 = vrsqrt.f32 %v2533_v30  ;;  %v2537_v42 = vadd.f32 1e-05, %v2505_v3  ;;  %v10181_v3 = vsub.s32 6, %v13092_v44 }
 0x739   :  { %13094 = vst [vmem:[#allocation5_spill] sm:$0xff] %v10181_v3 }
 0x74c   :  { %v2464_v12 = vpop.xlane.xlu0 %2463 }
 0x74d   :  { %v2514_v53 = vmul.f32 0.03125, %v2464_v12 }
 0x750   :  { %v2467_v60 = vpop.xlane.xlu1 %2466 }
 0x751   :  { %v2515_v45 = vmul.f32 0.03125, %v2467_v60  ;;  %v8348_v60 = vld [vmem:[%s12972_s5] sm:$0xff] }
 0x75c   :  { %v2476_v55 = vpop.xlane.xlu0 %2475 }
 0x75d   :  { %v2518_v18 = vmul.f32 0.03125, %v2476_v55  ;;  %v10178_v55 = vsub.s32 5, %v13092_v44 }
 0x75f   :  { %v2550_v51 = vadd.f32 1e-05, %v2518_v18  ;;  %13093 = vst [vmem:[#allocation4_spill] sm:$0xff] %v10178_v55 }
 0x761   :  { %v2479_v48 = vpop.xlane.xlu1 %2478  ;;  %v2470_v20 = vpop.xlane.xlu0 %2469 }
 0x762   :  { %v2519_v15 = vmul.f32 0.03125, %v2479_v48  ;;  %v2516_v10 = vmul.f32 0.03125, %v2470_v20  ;;  %v8031_v20 = vpop.eup %8030 }
 0x764   :  { %v2551_v8 = vadd.f32 1e-05, %v2519_v15  ;;  %v2548_v18 = vadd.f32 1e-05, %v2516_v10  ;;  %v2598_v15 = vmul.f32 %v8027_v63, %v9986_v38 }
 0x765   :  { %v2473_v27 = vpop.xlane.xlu1 %2472 }
 0x766   :  { %v2517_v59 = vmul.f32 0.03125, %v2473_v27  ;;  %v8033_v27 = vpop.eup %8032 }
 0x767   :  { %v2602_v44 = vmul.f32 %v8033_v27, %v10010_v13 }
 0x768   :  { %v2549_v62 = vadd.f32 1e-05, %v2517_v59  ;;  %v2599_v59 = vmul.f32 %v8029_v26, %v9991_v1  ;;  %v2596_v1 = vmul.f32 %v8031_v20, %v9995_v37 }
 0x76c   :  { %v2488_v28 = vpop.xlane.xlu0 %2487 }
 0x76d   :  { %v2522_v58 = vmul.f32 0.03125, %v2488_v28  ;;  %v10187_v28 = vrot.slane %v8348_v60, %v10178_v55 }
 0x76f   :  { %v2554_v21 = vadd.f32 1e-05, %v2522_v58  ;;  %v2547_v58 = vadd.f32 1e-05, %v2515_v45  ;;  %v2634_v63 = vmul.f32 %v10187_v28, %v2598_v15  ;;  %v2635_v26 = vmul.f32 %v10187_v28, %v2599_v59 }
 0x771   :  { %8040 = vrsqrt.f32 %v2554_v21  ;;  %v2491_v39 = vpop.xlane.xlu1 %2490  ;;  %v2482_v2 = vpop.xlane.xlu0 %2481 }
 0x772   :  { %v2523_v43 = vmul.f32 0.03125, %v2491_v39  ;;  %v2520_v16 = vmul.f32 0.03125, %v2482_v2  ;;  %8042 = vrsqrt.f32 %v2537_v42  ;;  %v8035_v42 = vpop.eup %8034  ;;  %v2546_v2 = vadd.f32 1e-05, %v2514_v53 }
 0x773   :  { %8044 = vrsqrt.f32 %v2550_v51  ;;  %v8037_v39 = vpop.eup %8036 }
 0x774   :  { %v2555_v47 = vadd.f32 1e-05, %v2523_v43  ;;  %v2552_v11 = vadd.f32 1e-05, %v2520_v16  ;;  %8046 = vrsqrt.f32 %v2551_v8  ;;  %v10192_v16 = vrot.slane %v8348_v60, %v10181_v3  ;;  %v8039_v10 = vpop.eup %8038 }
 0x775   :  { %v2485_v36 = vpop.xlane.xlu1 %2484  ;;  %v2416_v48 = vpop.xlane.xlu0 %2415  ;;  %v2597_v13 = vmul.f32 %v8039_v10, %v10002_v31 }
 0x776   :  { %8048 = vrsqrt.f32 %v2555_v47  ;;  %v2521_v30 = vmul.f32 0.03125, %v2485_v36  ;;  %v2498_v21 = vmul.f32 0.03125, %v2416_v48  ;;  %v2603_v47 = vmul.f32 %v8035_v42, %v10015_v25 }
 0x777   :  { %8050 = vrsqrt.f32 %v2552_v11  ;;  %v2600_v48 = vmul.f32 %v8037_v39, %v10019_v40  ;;  %v2638_v25 = vmul.f32 %v10187_v28, %v2602_v44  ;;  %v10204_v37 = vadd.f32 %v10192_v16, %v2634_v63 }
 0x778   :  { %v2553_v12 = vadd.f32 1e-05, %v2521_v30  ;;  %8052 = vrsqrt.f32 %v2549_v62  ;;  %v2530_v11 = vadd.f32 1e-05, %v2498_v21  ;;  %v2639_v40 = vmul.f32 %v10187_v28, %v2603_v47 }
 0x779   :  { %v2419_v51 = vpop.xlane.xlu1 %2418  ;;  %v2458_v8 = vpop.xlane.xlu0 %2457 }
 0x77a   :  { %8054 = vrsqrt.f32 %v2553_v12  ;;  %v2499_v43 = vmul.f32 0.03125, %v2419_v51  ;;  %v2512_v38 = vmul.f32 0.03125, %v2458_v8  ;;  %v10212_v51 = vadd.f32 %v10192_v16, %v2635_v26 }
 0x77b   :  { %8056 = vrsqrt.f32 %v2548_v18 }
 0x77c   :  { %8058 = vrsqrt.f32 %v2547_v58  ;;  %v2531_v45 = vadd.f32 1e-05, %v2499_v43  ;;  %v2544_v60 = vadd.f32 1e-05, %v2512_v38  ;;  %v10208_v58 = vmul.f32 %v10187_v28, %v2596_v1 }
 0x77d   :  { %v2461_v62 = vpop.xlane.xlu1 %2460  ;;  %v2410_v36 = vpop.xlane.xlu0 %2409  ;;  %8060 = vrsqrt.f32 %v2546_v2  ;;  %v10215_v2 = vmul.f32 %v10187_v28, %v2597_v13  ;;  %v10219_v38 = vadd.f32 %v10192_v16, %v2638_v25 }
 0x77e   :  { %v8041_v53 = vpop.eup %8040  ;;  %v2513_v30 = vmul.f32 0.03125, %v2461_v62  ;;  %v2496_v18 = vmul.f32 0.03125, %v2410_v36  ;;  %8062 = vrsqrt.f32 %v2531_v45 }
 0x77f   :  { %v2618_v15 = vmul.f32 %v8041_v53, %v10070_v57  ;;  %v8043_v20 = vpop.eup %8042  ;;  %8064 = vrsqrt.f32 %v2530_v11  ;;  %v2636_v57 = vmul.f32 %v10187_v28, %v2600_v48  ;;  %v10224_v11 = vadd.f32 %v10192_v16, %v2639_v40 }
 0x780   :  { %v2545_v27 = vadd.f32 1e-05, %v2513_v30  ;;  %v8045_v12 = vpop.eup %8044  ;;  %v2528_v42 = vadd.f32 1e-05, %v2496_v18  ;;  %v2601_v44 = vmul.f32 %v8043_v20, %v10026_v17 }
 0x781   :  { %v2413_v31 = vpop.xlane.xlu1 %2412  ;;  %v2452_v21 = vpop.xlane.xlu0 %2451  ;;  %v2654_v10 = vmul.f32 %v10187_v28, %v2618_v15  ;;  %v10228_v26 = vadd.f32 %v10192_v16, %v2636_v57  ;;  %v2701_v57 = vpack.c.bf16 %v10224_v11, %v10219_v38 }
 0x782   :  { %v8047_v8 = vpop.eup %8046  ;;  %8066 = vrsqrt.f32 %v2545_v27  ;;  %v2497_v59 = vmul.f32 0.03125, %v2413_v31  ;;  %v2510_v39 = vmul.f32 0.03125, %v2452_v21  ;;  %v2637_v15 = vmul.f32 %v10187_v28, %v2601_v44 }
 0x783   :  { %v8049_v43 = vpop.eup %8048  ;;  %8068 = vrsqrt.f32 %v2544_v60  ;;  %v2615_v53 = vmul.f32 %v8047_v8, %v10052_v23  ;;  %v10233_v60 = vadd.f32 %v10192_v16, %v2654_v10 }
 0x784   :  { %v8051_v63 = vpop.eup %8050  ;;  %v2529_v45 = vadd.f32 1e-05, %v2497_v59  ;;  %v2542_v47 = vadd.f32 1e-05, %v2510_v39  ;;  %v2619_v1 = vmul.f32 %v8049_v43, %v10076_v5  ;;  %8070 = vrsqrt.f32 %v2528_v42 }
 0x785   :  { %v2455_v62 = vpop.xlane.xlu1 %2454  ;;  %v2404_v36 = vpop.xlane.xlu0 %2403  ;;  %v2616_v48 = vmul.f32 %v8051_v63, %v10079_v50  ;;  %v2614_v50 = vmul.f32 %v8045_v12, %v10046_v34  ;;  %v2651_v59 = vmul.f32 %v10187_v28, %v2615_v53 }
 0x786   :  { %v8053_v30 = vpop.eup %8052  ;;  %8072 = vrsqrt.f32 %v2529_v45  ;;  %v2511_v17 = vmul.f32 0.03125, %v2455_v62  ;;  %v2494_v18 = vmul.f32 0.03125, %v2404_v36  ;;  %v2655_v13 = vmul.f32 %v10187_v28, %v2619_v1 }
 0x787   :  { %v8055_v5 = vpop.eup %8054  ;;  %8074 = vrsqrt.f32 %v2542_v47  ;;  %v2652_v8 = vmul.f32 %v10187_v28, %v2616_v48  ;;  %v2613_v34 = vmul.f32 %v8053_v30, %v10062_v0  ;;  %v2650_v44 = vmul.f32 %v10187_v28, %v2614_v50 }
 0x788   :  { %v8057_v25 = vpop.eup %8056  ;;  %v2543_v20 = vadd.f32 1e-05, %v2511_v17  ;;  %v2526_v27 = vadd.f32 1e-05, %v2494_v18  ;;  %v10238_v23 = vadd.f32 %v10192_v16, %v2655_v13  ;;  %v2617_v40 = vmul.f32 %v8055_v5, %v10086_v61 }
 0x789   :  { %v8059_v42 = vpop.eup %8058  ;;  %v2407_v31 = vpop.xlane.xlu1 %2406  ;;  %v2612_v63 = vmul.f32 %v8057_v25, %v10055_v19  ;;  %v10252_v1 = vadd.f32 %v10192_v16, %v2637_v15  ;;  %v10256_v53 = vadd.f32 %v10192_v16, %v2652_v8  ;;  %v10262_v19 = vadd.f32 %v10192_v16, %v2651_v59 }
 0x78a   :  { %v2446_v21 = vpop.xlane.xlu0 %2445  ;;  %8076 = vrsqrt.f32 %v2543_v20  ;;  %v2495_v12 = vmul.f32 0.03125, %v2407_v31  ;;  %v2709_v43 = vpack.c.bf16 %v10238_v23, %v10233_v60  ;;  %v8061_v10 = vpop.eup %8060  ;;  %v2653_v61 = vmul.f32 %v10187_v28, %v2617_v40 }
 0x78b   :  { %v2508_v39 = vmul.f32 0.03125, %v2446_v21  ;;  %8078 = vrsqrt.f32 %v2526_v27  ;;  %v2611_v0 = vmul.f32 %v8059_v42, %v10039_v4  ;;  %v8063_v62 = vpop.eup %8062  ;;  %v2649_v17 = vmul.f32 %v10187_v28, %v2613_v34 }
 0x78c   :  { %v2527_v45 = vadd.f32 1e-05, %v2495_v12  ;;  %7028 = vmatprep.subr.bf16.mxu0 %v2709_v43  ;;  %v10259_v30 = vadd.f32 %v10192_v16, %v2653_v61  ;;  %v8065_v18 = vpop.eup %8064  ;;  %v2610_v4 = vmul.f32 %v8061_v10, %v10034_v33  ;;  %v10269_v25 = vadd.f32 %v10192_v16, %v2650_v44 }
 0x78d   :  { %v2540_v47 = vadd.f32 1e-05, %v2508_v39  ;;  %v2449_v36 = vpop.xlane.xlu1 %2448  ;;  %7029 = vmatpush3.bf16.msra.mxu0 %v2701_v57  ;;  %v2648_v20 = vmul.f32 %v10187_v28, %v2612_v63  ;;  %v2700_v31 = vpack.c.bf16 %v10252_v1, %v10228_v26  ;;  %v2595_v21 = vmul.f32 %v8063_v62, %v10098_v6 }
 0x78e   :  { %v2398_v48 = vpop.xlane.xlu0 %2397  ;;  %8080 = vrsqrt.f32 %v2527_v45  ;;  %v2509_v13 = vmul.f32 0.03125, %v2449_v36  ;;  %v2708_v50 = vpack.c.bf16 %v10259_v30, %v10256_v53  ;;  %v2707_v57 = vpack.c.bf16 %v10262_v19, %v10269_v25 }
 0x78f   :  { %v2492_v5 = vmul.f32 0.03125, %v2398_v48  ;;  %v8067_v15 = vpop.eup %8066  ;;  %8082 = vrsqrt.f32 %v2540_v47  ;;  %v10278_v8 = vadd.f32 %v10192_v16, %v2649_v17  ;;  %v2647_v59 = vmul.f32 %v10187_v28, %v2611_v0 }
 0x790   :  { %v8069_v27 = vpop.eup %8068  ;;  %v2541_v40 = vadd.f32 1e-05, %v2509_v13  ;;  %7030 = vmatprep.subr.bf16.mxu0 %v2708_v50  ;;  %v2609_v34 = vmul.f32 %v8067_v15, %v10110_v9  ;;  %v2699_v43 = vpack.c.bf16 %v10212_v51, %v10204_v37  ;;  %v2594_v6 = vmul.f32 %v8065_v18, %v10089_v7 }
 0x791   :  { %v2524_v42 = vadd.f32 1e-05, %v2492_v5  ;;  %v2401_v33 = vpop.xlane.xlu1 %2400  ;;  %v8071_v12 = vpop.eup %8070  ;;  %7031 = vmatpush3.bf16.msra.mxu0 %v2700_v31  ;;  %v10286_v61 = vadd.f32 %v10192_v16, %v2648_v20  ;;  %v2646_v44 = vmul.f32 %v10187_v28, %v2610_v4  ;;  %v2608_v63 = vmul.f32 %v8069_v27, %v10101_v22 }
 0x792   :  { %8084 = vrsqrt.f32 %v2541_v40  ;;  %v2493_v39 = vmul.f32 0.03125, %v2401_v33  ;;  %7032 = vmatprep.subr.bf16.mxu0 %v2707_v57  ;;  %v10292_v47 = vadd.f32 %v10192_v16, %v10215_v2  ;;  %v2631_v0 = vmul.f32 %v10187_v28, %v2595_v21 }
 0x793   :  { %v8073_v10 = vpop.eup %8072  ;;  %8086 = vrsqrt.f32 %v2524_v42  ;;  %v2706_v62 = vpack.c.bf16 %v10278_v8, %v10286_v61  ;;  %v10299_v36 = vadd.f32 %v10192_v16, %v2647_v59  ;;  %v2645_v48 = vmul.f32 %v10187_v28, %v2609_v34 }
 0x794   :  { %v8075_v9 = vpop.eup %8074  ;;  %v2525_v45 = vadd.f32 1e-05, %v2493_v39  ;;  %v2593_v7 = vmul.f32 %v8073_v10, %v10122_v14  ;;  %v2592_v22 = vmul.f32 %v8071_v12, %v10113_v46  ;;  %v10305_v2 = vadd.f32 %v10192_v16, %v10208_v58 }
 0x795   :  { %7033 = vmatpush3.bf16.msra.mxu0 %v2699_v43  ;;  %v2630_v17 = vmul.f32 %v10187_v28, %v2594_v6  ;;  %v10309_v14 = vadd.f32 %v10192_v16, %v2646_v44  ;;  %v2644_v13 = vmul.f32 %v10187_v28, %v2608_v63  ;;  %v2606_v4 = vmul.f32 %v8075_v9, %v10125_v24 }
 0x796   :  { %8088 = vrsqrt.f32 %v2525_v45  ;;  %7034 = vmatprep.subr.bf16.mxu0 %v2706_v62  ;;  %v2629_v5 = vmul.f32 %v10187_v28, %v2593_v7  ;;  %v2698_v15 = vpack.c.bf16 %v10292_v47, %v10305_v2  ;;  %v10317_v58 = vadd.f32 %v10192_v16, %v2631_v0 }
 0x797   :  { %v8077_v18 = vpop.eup %8076  ;;  %v2705_v20 = vpack.c.bf16 %v10299_v36, %v10309_v14  ;;  %v10323_v27 = vadd.f32 %v10192_v16, %v2645_v48  ;;  %v2628_v40 = vmul.f32 %v10187_v28, %v2592_v22  ;;  %v10328_v24 = vadd.f32 %v10192_v16, %v2630_v17 }
 0x798   :  { %v8079_v46 = vpop.eup %8078  ;;  %13095 = vst [vmem:[#allocation6_spill] sm:$0xff] %v10317_v58  ;;  %v2607_v50 = vmul.f32 %v8077_v18, %v10134_v56  ;;  %v10332_v56 = vadd.f32 %v10192_v16, %v2644_v13  ;;  %v10335_v33 = vadd.f32 %v10192_v16, %v2629_v5  ;;  %v2642_v57 = vmul.f32 %v10187_v28, %v2606_v4 }
 0x799   :  { %13096 = vst [vmem:[#allocation7_spill] sm:$0xff] %v10323_v27  ;;  %v2590_v42 = vmul.f32 %v8079_v46, %v10137_v41  ;;  %7035 = vmatpush3.bf16.msra.mxu0 %v2698_v15  ;;  %13097 = vst [vmem:[#allocation8_spill] sm:$0xff] %v10328_v24  ;;  %v2697_v41 = vpack.c.bf16 %v10317_v58, %v10328_v24  ;;  %v10345_v43 = vadd.f32 %v10192_v16, %v2628_v40 }
 0x79a   :  { %v2643_v31 = vmul.f32 %v10187_v28, %v2607_v50  ;;  %7036 = vmatprep.subr.bf16.mxu0 %v2705_v20  ;;  %13098 = vst [vmem:[#allocation9_spill] sm:$0xff] %v10332_v56  ;;  %13099 = vst [vmem:[#allocation10_spill] sm:$0xff] %v10335_v33  ;;  %v2704_v39 = vpack.c.bf16 %v10323_v27, %v10332_v56  ;;  %v10355_v9 = vadd.f32 %v10192_v16, %v2642_v57  ;;  %v8355_v57 = vld [vmem:[%s12971_s0 + $0x30] ss:$8 sps:$4 sm:$0xff]  }
 0x79b   :  { %v8081_v21 = vpop.eup %8080  ;;  %v2626_v12 = vmul.f32 %v10187_v28, %v2590_v42  ;;  %13100 = vst [vmem:[#allocation20_spill] sm:$0xff] %v10345_v43  ;;  %v8351_v42 = vld [vmem:[%s12971_s0 + $0x10] ss:$8 sps:$4 sm:$0xff]  }
 0x79c   :  { %v8083_v59 = vpop.eup %8082  ;;  %v2591_v34 = vmul.f32 %v8081_v21, %v10146_v52  ;;  %v10348_v6 = vadd.f32 %v10192_v16, %v2643_v31  ;;  %v2696_v52 = vpack.c.bf16 %v10335_v33, %v10345_v43  ;;  %13102 = vst [vmem:[#allocation11_spill] sm:$0xff] %v10355_v9  ;;  %v8353_v31 = vld [vmem:[%s12971_s0 + $0x20] ss:$8 sps:$4 sm:$0xff]   ;;  %v8354_v21 = vld [vmem:[%s12971_s0 + $0x34] ss:$8 sps:$4 sm:$0xff]  }
 0x79d   :  { %v2604_v10 = vmul.f32 %v8083_v59, %v10149_v32  ;;  %7037 = vmatpush3.bf16.msra.mxu0 %v2697_v41  ;;  %v10358_v0 = vadd.f32 %v10192_v16, %v2626_v12  ;;  %v8356_v59 = vld [vmem:[%s12971_s0 + $0x44] ss:$8 sps:$4 sm:$0xff]   ;;  %v8357_v41 = vld [vmem:[%s12971_s0 + $0x40] ss:$8 sps:$4 sm:$0xff]   ;;  %v8359_v12 = vld [vmem:[%s12971_s0 + $0x50] ss:$8 sps:$4 sm:$0xff]  }
 0x79e   :  { %13101 = vst [vmem:[#allocation21_spill] sm:$0xff] %v10348_v6  ;;  %v2627_v44 = vmul.f32 %v10187_v28, %v2591_v34  ;;  %7038 = vmatprep.subr.bf16.mxu0 %v2704_v39  ;;  %v2703_v48 = vpack.c.bf16 %v10348_v6, %v10355_v9  ;;  %v8358_v34 = vld [vmem:[%s12971_s0 + $0x54] ss:$8 sps:$4 sm:$0xff]   ;;  %v8360_v39 = vld [vmem:[%s12971_s0 + $0x64] ss:$8 sps:$4 sm:$0xff]  }
 0x79f   :  { %v8085_v63 = vpop.eup %8084  ;;  %13103 = vst [vmem:[#allocation12_spill] sm:$0xff] %v10358_v0  ;;  %v2640_v62 = vmul.f32 %v10187_v28, %v2604_v10  ;;  %v8361_v10 = vld [vmem:[%s12971_s0 + $0x60] ss:$8 sps:$4 sm:$0xff]  }
 0x7a0   :  { %v8087_v45 = vpop.eup %8086  ;;  %v10361_v7 = vadd.f32 %v10192_v16, %v2627_v44  ;;  %v2605_v32 = vmul.f32 %v8085_v63, %v10158_v54  ;;  %v8362_v44 = vld [vmem:[%s12971_s0 + $0x74] ss:$8 sps:$4 sm:$0xff]   ;;  %v8363_v63 = vld [vmem:[%s12971_s0 + $0x70] ss:$8 sps:$4 sm:$0xff]  }
 0x7a1   :  { %v2588_v22 = vmul.f32 %v8087_v45, %v10161_v35  ;;  %7039 = vmatpush3.bf16.msra.mxu0 %v2696_v52  ;;  %v10372_v5 = vadd.f32 %v10192_v16, %v2640_v62  ;;  %v8364_v52 = vld [vmem:[%s12971_s0 + $0x84] ss:$8 sps:$4 sm:$0xff]   ;;  %v8365_v45 = vld [vmem:[%s12971_s0 + $0x80] ss:$8 sps:$4 sm:$0xff]   ;;  %v8367_v62 = vld [vmem:[%s12971_s0 + $0x90] ss:$8 sps:$4 sm:$0xff]  }
 0x7a2   :  { %13104 = vst [vmem:[#allocation22_spill] sm:$0xff] %v10361_v7  ;;  %v2695_v17 = vpack.c.bf16 %v10361_v7, %v10358_v0  ;;  %v2641_v18 = vmul.f32 %v10187_v28, %v2605_v32  ;;  %7040 = vmatprep.subr.bf16.mxu0 %v2703_v48  ;;  %v8366_v32 = vld [vmem:[%s12971_s0 + $0x94] ss:$8 sps:$4 sm:$0xff]   ;;  %v8368_v48 = vld [vmem:[%s12971_s0 + $0xa4] ss:$8 sps:$4 sm:$0xff]  }
 0x7a3   :  { %v8089_v13 = vpop.eup %8088  ;;  %13105 = vst [vmem:[#allocation23_spill] sm:$0xff] %v10372_v5  ;;  %v2624_v46 = vmul.f32 %v10187_v28, %v2588_v22  ;;  %v7862_v22 = vld [vmem:[%s12973_s2 + $0x18] sm:$0xff]  }
 0x7a4   :  { %v10375_v54 = vadd.f32 %v10192_v16, %v2641_v18  ;;  %v2589_v4 = vmul.f32 %v8089_v13, %v10170_v49  ;;  %v8349_v49 = vld [vmem:[%s12971_s0] ss:$8 sps:$4 sm:$0xff]   ;;  %7516 = vmatprep.subr.bf16.mxu1 %v7862_v22  ;;  %v8370_v13 = vld [vmem:[%s12971_s0 + $0xb4] ss:$8 sps:$4 sm:$0xff]  }
 0x7a5   :  { %7041 = vmatpush3.bf16.msra.mxu0 %v2695_v17  ;;  %v10383_v50 = vadd.f32 %v10192_v16, %v2624_v46  ;;  %7517 = vmatpush3.bf16.msra.mxu1 %v7862_v22  ;;  %v7863_v17 = vld [vmem:[%s12973_s2 + $0x10] sm:$0xff]   ;;  %v8369_v18 = vld [vmem:[%s12971_s0 + $0xa0] ss:$8 sps:$4 sm:$0xff]   ;;  %v8372_v46 = vld [vmem:[%s12971_s0 + $0xc4] ss:$8 sps:$4 sm:$0xff]  }
 0x7a6   :  { %13106 = vst [vmem:[#allocation13_spill] sm:$0xff] %v10375_v54  ;;  %v2702_v35 = vpack.c.bf16 %v10375_v54, %v10372_v5  ;;  %v2625_v15 = vmul.f32 %v10187_v28, %v2589_v4  ;;  %v8350_v28 = vld [vmem:[%s12971_s0 + $0x14] ss:$8 sps:$4 sm:$0xff]   ;;  %7518 = vmatprep.subr.bf16.mxu1 %v7863_v17  ;;  %v8371_v4 = vld [vmem:[%s12971_s0 + $0xb0] ss:$8 sps:$4 sm:$0xff]  }
 0x7a7   :  { %13107 = vst [vmem:[#allocation14_spill] sm:$0xff] %v10383_v50 }
 0x7a8   :  { %7042 = vmatprep.subr.bf16.mxu0 %v2702_v35  ;;  %v10386_v20 = vadd.f32 %v10192_v16, %v2625_v15  ;;  %v10402_v16 = vld [vmem:[%s12971_s0 + $0x24] ss:$8 sps:$4 sm:$0xff]   ;;  %v8373_v35 = vld [vmem:[%s12971_s0 + $0xc0] ss:$8 sps:$4 sm:$0xff]   ;;  %v8374_v15 = vld [vmem:[%s12971_s0 + $0xd4] ss:$8 sps:$4 sm:$0xff]  }
 0x7a9   :  { %7519 = vmatpush3.bf16.msra.mxu1 %v7863_v17  ;;  %v7865_v17 = vld [vmem:[%s12974_s3 + $0x70] sm:$0xff]  }
 0x7aa   :  { %13108 = vst [vmem:[#allocation24_spill] sm:$0xff] %v10386_v20  ;;  %v2694_v40 = vpack.c.bf16 %v10386_v20, %v10383_v50 }
 0x7ac   :  { %7043 = vmatpush3.bf16.msra.mxu0 %v2694_v40  ;;  %v8375_v40 = vld [vmem:[%s12971_s0 + $0xd0] ss:$8 sps:$4 sm:$0xff]  }
 0x7af   :  { %2743 = vmatmul.mubr.bf16.vlgmr.msra.gmra.mxu0 %v8349_v49  ;;  %v8376_v49 = vld [vmem:[%s12971_s0 + $0xe4] ss:$8 sps:$4 sm:$0xff]  }
 0x7b0   :  { %2750 = vmatprep.mubr.bf16.mxu0 %v8350_v28  ;;  %v8377_v28 = vld [vmem:[%s12971_s0 + $0xe0] ss:$8 sps:$4 sm:$0xff]  }
 0x7b7   :  { %2751 = vmatmul.mubr.bf16.gmra.mxu0 %v8351_v42  ;;  %v8378_v42 = vld [vmem:[%s12971_s0 + $0xf4] ss:$8 sps:$4 sm:$0xff]  }
 0x7b8   :  { %2758 = vmatprep.mubr.bf16.mxu0 %v10402_v16 }
 0x7bf   :  { %2759 = vmatmul.mubr.bf16.gmra.mxu0 %v8353_v31  ;;  %v8379_v31 = vld [vmem:[%s12971_s0 + $0xf0] ss:$8 sps:$4 sm:$0xff]  }
 0x7c0   :  { %2766 = vmatprep.mubr.bf16.mxu0 %v8354_v21 }
 0x7c7   :  { %2767 = vmatmul.mubr.bf16.gmra.mxu0 %v8355_v57 }
 0x7c8   :  { %2774 = vmatprep.mubr.bf16.mxu0 %v8356_v59  ;;  %v7864_v59 = vld [vmem:[%s12974_s3 + $0x78] sm:$0xff]  }
 0x7c9   :  { %7552 = vmatprep.subr.bf16.mxu1 %v7864_v59 }
 0x7cf   :  { %2775 = vmatmul.mubr.bf16.gmra.mxu0 %v8357_v41 }
 0x7d0   :  { %2782 = vmatprep.mubr.bf16.mxu0 %v8358_v34 }
 0x7d7   :  { %2783 = vmatmul.mubr.bf16.gmra.mxu0 %v8359_v12 }
 0x7d8   :  { %2790 = vmatprep.mubr.bf16.mxu0 %v8360_v39 }
 0x7df   :  { %2791 = vmatmul.mubr.bf16.gmra.mxu0 %v8361_v10 }
 0x7e0   :  { %2798 = vmatprep.mubr.bf16.mxu0 %v8362_v44 }
 0x7e7   :  { %2799 = vmatmul.mubr.bf16.gmra.mxu0 %v8363_v63 }
 0x7e8   :  { %2806 = vmatprep.mubr.bf16.mxu0 %v8364_v52 }
 0x7ef   :  { %2807 = vmatmul.mubr.bf16.gmra.mxu0 %v8365_v45 }
 0x7f0   :  { %2814 = vmatprep.mubr.bf16.mxu0 %v8366_v32 }
 0x7f7   :  { %2815 = vmatmul.mubr.bf16.gmra.mxu0 %v8367_v62 }
 0x7f8   :  { %2822 = vmatprep.mubr.bf16.mxu0 %v8368_v48 }
 0x7ff   :  { %2823 = vmatmul.mubr.bf16.gmra.mxu0 %v8369_v18 }
 0x800   :  { %2830 = vmatprep.mubr.bf16.mxu0 %v8370_v13 }
 0x807   :  { %2831 = vmatmul.mubr.bf16.gmra.mxu0 %v8371_v4  ;;  %v7866_v4 = vld [vmem:[%s12974_s3 + $0x68] sm:$0xff]  }
 0x808   :  { %2838 = vmatprep.mubr.bf16.mxu0 %v8372_v46 }
 0x80f   :  { %2839 = vmatmul.mubr.bf16.gmra.mxu0 %v8373_v35 }
 0x810   :  { %2846 = vmatprep.mubr.bf16.mxu0 %v8374_v15 }
 0x817   :  { %2847 = vmatmul.mubr.bf16.gmra.mxu0 %v8375_v40 }
 0x818   :  { %2854 = vmatprep.mubr.bf16.mxu0 %v8376_v49 }
 0x81f   :  { %2855 = vmatmul.mubr.bf16.gmra.mxu0 %v8377_v28  ;;  %v7867_v28 = vld [vmem:[%s12974_s3 + $0x60] sm:$0xff]  }
 0x820   :  { %2862 = vmatprep.mubr.bf16.mxu0 %v8378_v42 }
 0x827   :  { %2863 = vmatmul.mubr.bf16.gmra.mxu0 %v8379_v31 }
 0x86f   :  { %v7044_v21 = vpop.f32.mrf.mxu0 }
 0x871   :  { %v7045_v57 = vpop.f32.mrf.mxu0 }
 0x872   :  { %v7046_v12 = vadd.f32 %v7045_v57, %v7044_v21  ;;  %v7868_v21 = vld [vmem:[%s12974_s3 + $0x58] sm:$0xff]  }
 0x873   :  { %v7047_v41 = vpop.f32.mrf.mxu0 }
 0x875   :  { %v7048_v34 = vpop.f32.mrf.mxu0 }
 0x876   :  { %v7049_v39 = vadd.f32 %v7048_v34, %v7047_v41 }
 0x877   :  { %v7050_v10 = vpop.f32.mrf.mxu0 }
 0x878   :  { %v2871_v44 = vpack.c.bf16 %v7049_v39, %v7046_v12 }
 0x879   :  { %v7051_v63 = vpop.f32.mrf.mxu0 }
 0x87a   :  { %7520 = vmatprep.mubr.msk.bf16.mxu1 %vm90_vm0, %v2871_v44  ;;  %v7052_v32 = vadd.f32 %v7051_v63, %v7050_v10 }
 0x87b   :  { %v7053_v52 = vpop.f32.mrf.mxu0 }
 0x87d   :  { %v7054_v45 = vpop.f32.mrf.mxu0 }
 0x87e   :  { %v7055_v62 = vadd.f32 %v7054_v45, %v7053_v52 }
 0x87f   :  { %v7056_v48 = vpop.f32.mrf.mxu0 }
 0x880   :  { %v2872_v22 = vpack.c.bf16 %v7055_v62, %v7052_v32 }
 0x881   :  { %v7057_v18 = vpop.f32.mrf.mxu0 }
 0x882   :  { %7521 = vmatmul.mubr.msk.bf16.vlgmr.msra.gmra.mxu1 %vm90_vm0, %v2872_v22  ;;  %v7058_v35 = vadd.f32 %v7057_v18, %v7056_v48 }
 0x883   :  { %v7059_v13 = vpop.f32.mrf.mxu0  ;;  %7553 = vmatpush3.bf16.msra.mxu1 %v7864_v59 }
 0x884   :  { %7554 = vmatprep.subr.bf16.mxu1 %v7865_v17 }
 0x885   :  { %v7060_v46 = vpop.f32.mrf.mxu0 }
 0x886   :  { %v7061_v15 = vadd.f32 %v7060_v46, %v7059_v13 }
 0x887   :  { %v7062_v40 = vpop.f32.mrf.mxu0  ;;  %7555 = vmatpush3.bf16.msra.mxu1 %v7865_v17 }
 0x888   :  { %v2873_v49 = vpack.c.bf16 %v7061_v15, %v7058_v35  ;;  %7556 = vmatprep.subr.bf16.mxu1 %v7866_v4 }
 0x889   :  { %v7063_v42 = vpop.f32.mrf.mxu0 }
 0x88a   :  { %7524 = vmatprep.mubr.msk.bf16.mxu1 %vm90_vm0, %v2873_v49  ;;  %v7064_v59 = vadd.f32 %v7063_v42, %v7062_v40 }
 0x88b   :  { %v7065_v31 = vpop.f32.mrf.mxu0  ;;  %7557 = vmatpush3.bf16.msra.mxu1 %v7866_v4 }
 0x88c   :  { %7558 = vmatprep.subr.bf16.mxu1 %v7867_v28 }
 0x88d   :  { %v7066_v57 = vpop.f32.mrf.mxu0 }
 0x88e   :  { %v7067_v41 = vadd.f32 %v7066_v57, %v7065_v31 }
 0x88f   :  { %v7068_v34 = vpop.f32.mrf.mxu0  ;;  %7559 = vmatpush3.bf16.msra.mxu1 %v7867_v28 }
 0x890   :  { %v2874_v12 = vpack.c.bf16 %v7067_v41, %v7064_v59  ;;  %7560 = vmatprep.subr.bf16.mxu1 %v7868_v21 }
 0x891   :  { %v7069_v39 = vpop.f32.mrf.mxu0 }
 0x892   :  { %7525 = vmatmul.mubr.msk.bf16.gmra.mxu1 %vm90_vm0, %v2874_v12  ;;  %v7070_v63 = vadd.f32 %v7069_v39, %v7068_v34 }
 0x893   :  { %v7071_v10 = vpop.f32.mrf.mxu0  ;;  %7561 = vmatpush3.bf16.msra.mxu1 %v7868_v21 }
 0x895   :  { %v7072_v44 = vpop.f32.mrf.mxu0 }
 0x896   :  { %v7073_v52 = vadd.f32 %v7072_v44, %v7071_v10 }
 0x897   :  { %v7074_v45 = vpop.f32.mrf.mxu0 }
 0x898   :  { %v2875_v32 = vpack.c.bf16 %v7073_v52, %v7070_v63 }
 0x899   :  { %v7075_v62 = vpop.f32.mrf.mxu0 }
 0x89a   :  { %7528 = vmatprep.mubr.msk.bf16.mxu1 %vm90_vm0, %v2875_v32  ;;  %v7076_v17 = vadd.f32 %v7075_v62, %v7074_v45 }
 0x89b   :  { %v7077_v48 = vpop.f32.mrf.mxu0 }
 0x89d   :  { %v7078_v22 = vpop.f32.mrf.mxu0 }
 0x89e   :  { %v7079_v18 = vadd.f32 %v7078_v22, %v7077_v48 }
 0x89f   :  { %v7080_v13 = vpop.f32.mrf.mxu0 }
 0x8a0   :  { %v2876_v4 = vpack.c.bf16 %v7079_v18, %v7076_v17 }
 0x8a1   :  { %v7081_v46 = vpop.f32.mrf.mxu0 }
 0x8a2   :  { %7529 = vmatmul.mubr.msk.bf16.gmra.mxu1 %vm90_vm0, %v2876_v4  ;;  %v7082_v40 = vadd.f32 %v7081_v46, %v7080_v13 }
 0x8a3   :  { %v7083_v35 = vpop.f32.mrf.mxu0 }
 0x8a5   :  { %v7084_v15 = vpop.f32.mrf.mxu0 }
 0x8a6   :  { %v7085_v49 = vadd.f32 %v7084_v15, %v7083_v35  ;;  %v7869_v35 = vld [vmem:[%s12974_s3 + $0x50] sm:$0xff]  }
 0x8a7   :  { %v7086_v28 = vpop.f32.mrf.mxu0  ;;  %7562 = vmatprep.subr.bf16.mxu1 %v7869_v35 }
 0x8a8   :  { %v2877_v42 = vpack.c.bf16 %v7085_v49, %v7082_v40  ;;  %7563 = vmatpush3.bf16.msra.mxu1 %v7869_v35  ;;  %v7870_v49 = vld [vmem:[%s12974_s3 + $0x48] sm:$0xff]  }
 0x8a9   :  { %v7087_v31 = vpop.f32.mrf.mxu0  ;;  %7564 = vmatprep.subr.bf16.mxu1 %v7870_v49 }
 0x8aa   :  { %7532 = vmatprep.mubr.msk.bf16.mxu1 %vm90_vm0, %v2877_v42  ;;  %v7088_v59 = vadd.f32 %v7087_v31, %v7086_v28 }
 0x8ab   :  { %v7089_v21 = vpop.f32.mrf.mxu0 }
 0x8ac   :  { %7565 = vmatpush3.bf16.msra.mxu1 %v7870_v49 }
 0x8ad   :  { %v7090_v57 = vpop.f32.mrf.mxu0 }
 0x8ae   :  { %v7091_v41 = vadd.f32 %v7090_v57, %v7089_v21 }
 0x8af   :  { %v7092_v34 = vpop.f32.mrf.mxu0 }
 0x8b0   :  { %v2878_v12 = vpack.c.bf16 %v7091_v41, %v7088_v59  ;;  %v7871_v59 = vld [vmem:[%s12974_s3 + $0x40] sm:$0xff]  }
 0x8b1   :  { %v7093_v39 = vpop.f32.mrf.mxu0  ;;  %7566 = vmatprep.subr.bf16.mxu1 %v7871_v59 }
 0x8b2   :  { %7533 = vmatmul.mubr.msk.bf16.gmra.mxu1 %vm90_vm0, %v2878_v12  ;;  %v7094_v63 = vadd.f32 %v7093_v39, %v7092_v34 }
 0x8b3   :  { %v7095_v10 = vpop.f32.mrf.mxu0  ;;  %7567 = vmatpush3.bf16.msra.mxu1 %v7871_v59 }
 0x8b5   :  { %v7096_v44 = vpop.f32.mrf.mxu0 }
 0x8b6   :  { %v7097_v52 = vadd.f32 %v7096_v44, %v7095_v10 }
 0x8b7   :  { %v7098_v45 = vpop.f32.mrf.mxu0 }
 0x8b8   :  { %v2879_v32 = vpack.c.bf16 %v7097_v52, %v7094_v63 }
 0x8b9   :  { %v7099_v62 = vpop.f32.mrf.mxu0 }
 0x8ba   :  { %7536 = vmatprep.mubr.msk.bf16.mxu1 %vm90_vm0, %v2879_v32  ;;  %v7100_v17 = vadd.f32 %v7099_v62, %v7098_v45 }
 0x8bb   :  { %v7101_v48 = vpop.f32.mrf.mxu0 }
 0x8bd   :  { %v7102_v22 = vpop.f32.mrf.mxu0 }
 0x8be   :  { %v7103_v18 = vadd.f32 %v7102_v22, %v7101_v48 }
 0x8bf   :  { %v7104_v13 = vpop.f32.mrf.mxu0 }
 0x8c0   :  { %v2880_v4 = vpack.c.bf16 %v7103_v18, %v7100_v17 }
 0x8c1   :  { %v7105_v46 = vpop.f32.mrf.mxu0 }
 0x8c2   :  { %7537 = vmatmul.mubr.msk.bf16.gmra.mxu1 %vm90_vm0, %v2880_v4  ;;  %v7106_v28 = vadd.f32 %v7105_v46, %v7104_v13 }
 0x8c3   :  { %v7107_v15 = vpop.f32.mrf.mxu0 }
 0x8c5   :  { %v7108_v40 = vpop.f32.mrf.mxu0 }
 0x8c6   :  { %v7109_v42 = vadd.f32 %v7108_v40, %v7107_v15 }
 0x8c7   :  { %v7110_v31 = vpop.f32.mrf.mxu0 }
 0x8c8   :  { %v2881_v21 = vpack.c.bf16 %v7109_v42, %v7106_v28 }
 0x8c9   :  { %v7111_v57 = vpop.f32.mrf.mxu0 }
 0x8ca   :  { %7540 = vmatprep.mubr.msk.bf16.mxu1 %vm90_vm0, %v2881_v21  ;;  %v7112_v12 = vadd.f32 %v7111_v57, %v7110_v31 }
 0x8cb   :  { %v7113_v41 = vpop.f32.mrf.mxu0 }
 0x8cd   :  { %v7114_v34 = vpop.f32.mrf.mxu0 }
 0x8ce   :  { %v7115_v39 = vadd.f32 %v7114_v34, %v7113_v41 }
 0x8cf   :  { %v7116_v10 = vpop.f32.mrf.mxu0 }
 0x8d0   :  { %v2882_v44 = vpack.c.bf16 %v7115_v39, %v7112_v12 }
 0x8d1   :  { %v7117_v63 = vpop.f32.mrf.mxu0 }
 0x8d2   :  { %7541 = vmatmul.mubr.msk.bf16.gmra.mxu1 %vm90_vm0, %v2882_v44  ;;  %v7118_v32 = vadd.f32 %v7117_v63, %v7116_v10  ;;  %v7872_v44 = vld [vmem:[%s12975_s4 + $0x78] sm:$0xff]   ;;  %v7873_v63 = vld [vmem:[%s12975_s4 + $0x70] sm:$0xff]  }
 0x8d3   :  { %v7119_v52 = vpop.f32.mrf.mxu0  ;;  %7600 = vmatprep.subr.bf16.mxu0 %v7872_v44 }
 0x8d4   :  { %7601 = vmatpush3.bf16.msra.mxu0 %v7872_v44 }
 0x8d5   :  { %v7120_v45 = vpop.f32.mrf.mxu0  ;;  %7602 = vmatprep.subr.bf16.mxu0 %v7873_v63 }
 0x8d6   :  { %v7121_v62 = vadd.f32 %v7120_v45, %v7119_v52  ;;  %v7874_v45 = vld [vmem:[%s12975_s4 + $0x68] sm:$0xff]  }
 0x8d7   :  { %v7122_v48 = vpop.f32.mrf.mxu0 }
 0x8d8   :  { %v2883_v22 = vpack.c.bf16 %v7121_v62, %v7118_v32  ;;  %v10544_v32 = vld [vmem:[%s12972_s5 + $0x10] sm:$0xff]  ;;  %7603 = vmatpush3.bf16.msra.mxu0 %v7873_v63 }
 0x8d9   :  { %v7123_v17 = vpop.f32.mrf.mxu0  ;;  %7604 = vmatprep.subr.bf16.mxu0 %v7874_v45 }
 0x8da   :  { %7544 = vmatprep.mubr.msk.bf16.mxu1 %vm90_vm0, %v2883_v22  ;;  %v7124_v4 = vadd.f32 %v7123_v17, %v7122_v48  ;;  %v13109_v48 = vld [vmem:[#allocation3_spill] sm:$0xff] }
 0x8db   :  { %v7125_v18 = vpop.f32.mrf.mxu0  ;;  %v10548_v22 = vrot.slane %v10544_v32, %v13109_v48 }
 0x8dc   :  { %7605 = vmatpush3.bf16.msra.mxu0 %v7874_v45 }
 0x8dd   :  { %v7126_v13 = vpop.f32.mrf.mxu0 }
 0x8de   :  { %v7127_v46 = vadd.f32 %v7126_v13, %v7125_v18  ;;  %v7875_v18 = vld [vmem:[%s12975_s4 + $0x60] sm:$0xff]  }
 0x8df   :  { %v7128_v35 = vpop.f32.mrf.mxu0  ;;  %7606 = vmatprep.subr.bf16.mxu0 %v7875_v18 }
 0x8e0   :  { %v2884_v15 = vpack.c.bf16 %v7127_v46, %v7124_v4  ;;  %7607 = vmatpush3.bf16.msra.mxu0 %v7875_v18 }
 0x8e1   :  { %v7129_v40 = vpop.f32.mrf.mxu0 }
 0x8e2   :  { %7545 = vmatmul.mubr.msk.bf16.gmra.mxu1 %vm90_vm0, %v2884_v15  ;;  %v7130_v42 = vadd.f32 %v7129_v40, %v7128_v35  ;;  %v7876_v40 = vld [vmem:[%s12975_s4 + $0x58] sm:$0xff]  }
 0x8e3   :  { %v7131_v49 = vpop.f32.mrf.mxu0  ;;  %7608 = vmatprep.subr.bf16.mxu0 %v7876_v40 }
 0x8e4   :  { %7609 = vmatpush3.bf16.msra.mxu0 %v7876_v40 }
 0x8e5   :  { %v7132_v28 = vpop.f32.mrf.mxu0 }
 0x8e6   :  { %v7133_v31 = vadd.f32 %v7132_v28, %v7131_v49 }
 0x8e7   :  { %v7134_v21 = vpop.f32.mrf.mxu0 }
 0x8e8   :  { %v2885_v57 = vpack.c.bf16 %v7133_v31, %v7130_v42 }
 0x8e9   :  { %v7135_v59 = vpop.f32.mrf.mxu0 }
 0x8ea   :  { %7548 = vmatprep.mubr.msk.bf16.mxu1 %vm90_vm0, %v2885_v57  ;;  %v7136_v12 = vadd.f32 %v7135_v59, %v7134_v21 }
 0x8eb   :  { %v7137_v41 = vpop.f32.mrf.mxu0 }
 0x8ed   :  { %v7138_v34 = vpop.f32.mrf.mxu0 }
 0x8ee   :  { %v7139_v39 = vadd.f32 %v7138_v34, %v7137_v41 }
 0x8f0   :  { %v2886_v10 = vpack.c.bf16 %v7139_v39, %v7136_v12 }
 0x8f2   :  { %7549 = vmatmul.mubr.msk.bf16.gmra.mxu1 %vm90_vm0, %v2886_v10 }
 0x942   :  { %v7522_v52 = vpop.f32.mrf.mxu1 }
 0x943   :  { %v2999_v15 = vadd.f32 %v7522_v52, %v10548_v22 }
 0x944   :  { %v2990_v62 = vpop.f32.mrf.mxu1 }
 0x945   :  { %v2991_v46 = vadd.f32 %v2990_v62, %v10548_v22 }
 0x946   :  { %v7523_v17 = vpop.f32.mrf.mxu1 }
 0x947   :  { %v3002_v13 = vadd.f32 %v7523_v17, %v10548_v22 }
 0x948   :  { %v2993_v4 = vpop.f32.mrf.mxu1 }
 0x949   :  { %v2994_v35 = vadd.f32 %v2993_v4, %v10548_v22  ;;  %v3118_v28 = vpack.c.bf16 %v3002_v13, %v2999_v15 }
 0x94b   :  { %v3117_v49 = vpack.c.bf16 %v2994_v35, %v2991_v46 }
 0x94d   :  { %7568 = vmatprep.mubr.bf16.mxu1 %v3117_v49 }
 0x94e   :  { %7569 = vmatmul.mubr.bf16.vlgmr.msra.gmra.mxu1 %v3118_v28 }
 0x952   :  { %v7526_v42 = vpop.f32.mrf.mxu1 }
 0x953   :  { %v3015_v12 = vadd.f32 %v7526_v42, %v10548_v22 }
 0x954   :  { %v3006_v31 = vpop.f32.mrf.mxu1 }
 0x955   :  { %v3007_v41 = vadd.f32 %v3006_v31, %v10548_v22 }
 0x956   :  { %v7527_v21 = vpop.f32.mrf.mxu1 }
 0x957   :  { %v3018_v57 = vadd.f32 %v7527_v21, %v10548_v22 }
 0x958   :  { %v3009_v59 = vpop.f32.mrf.mxu1 }
 0x959   :  { %v3010_v34 = vadd.f32 %v3009_v59, %v10548_v22  ;;  %v3120_v10 = vpack.c.bf16 %v3018_v57, %v3015_v12 }
 0x95b   :  { %v3119_v39 = vpack.c.bf16 %v3010_v34, %v3007_v41 }
 0x95d   :  { %7572 = vmatprep.mubr.bf16.mxu1 %v3119_v39 }
 0x95e   :  { %7573 = vmatmul.mubr.bf16.gmra.mxu1 %v3120_v10 }
 0x962   :  { %v7530_v44 = vpop.f32.mrf.mxu1 }
 0x963   :  { %v3031_v13 = vadd.f32 %v7530_v44, %v10548_v22 }
 0x964   :  { %v3022_v63 = vpop.f32.mrf.mxu1 }
 0x965   :  { %v3023_v17 = vadd.f32 %v3022_v63, %v10548_v22 }
 0x966   :  { %v7531_v52 = vpop.f32.mrf.mxu1 }
 0x967   :  { %v3034_v45 = vadd.f32 %v7531_v52, %v10548_v22 }
 0x968   :  { %v3025_v62 = vpop.f32.mrf.mxu1 }
 0x969   :  { %v3026_v18 = vadd.f32 %v3025_v62, %v10548_v22  ;;  %v3122_v46 = vpack.c.bf16 %v3034_v45, %v3031_v13  ;;  %v7878_v13 = vld [vmem:[%s12975_s4 + $0x48] sm:$0xff]  }
 0x96b   :  { %v3121_v4 = vpack.c.bf16 %v3026_v18, %v3023_v17  ;;  %v7877_v17 = vld [vmem:[%s12975_s4 + $0x50] sm:$0xff]  }
 0x96c   :  { %7610 = vmatprep.subr.bf16.mxu0 %v7877_v17 }
 0x96d   :  { %7576 = vmatprep.mubr.bf16.mxu1 %v3121_v4  ;;  %7611 = vmatpush3.bf16.msra.mxu0 %v7877_v17 }
 0x96e   :  { %7577 = vmatmul.mubr.bf16.gmra.mxu1 %v3122_v46  ;;  %7612 = vmatprep.subr.bf16.mxu0 %v7878_v13 }
 0x971   :  { %7613 = vmatpush3.bf16.msra.mxu0 %v7878_v13 }
 0x972   :  { %v7534_v35 = vpop.f32.mrf.mxu1 }
 0x973   :  { %v3047_v21 = vadd.f32 %v7534_v35, %v10548_v22  ;;  %v7879_v35 = vld [vmem:[%s12975_s4 + $0x40] sm:$0xff]  }
 0x974   :  { %v3038_v15 = vpop.f32.mrf.mxu1  ;;  %7614 = vmatprep.subr.bf16.mxu0 %v7879_v35 }
 0x975   :  { %v3039_v42 = vadd.f32 %v3038_v15, %v10548_v22  ;;  %7615 = vmatpush3.bf16.msra.mxu0 %v7879_v35 }
 0x976   :  { %v7535_v40 = vpop.f32.mrf.mxu1 }
 0x977   :  { %v3050_v49 = vadd.f32 %v7535_v40, %v10548_v22 }
 0x978   :  { %v3041_v28 = vpop.f32.mrf.mxu1 }
 0x979   :  { %v3042_v31 = vadd.f32 %v3041_v28, %v10548_v22  ;;  %v3124_v59 = vpack.c.bf16 %v3050_v49, %v3047_v21 }
 0x97b   :  { %v3123_v57 = vpack.c.bf16 %v3042_v31, %v3039_v42 }
 0x97d   :  { %7580 = vmatprep.mubr.bf16.mxu1 %v3123_v57 }
 0x97e   :  { %7581 = vmatmul.mubr.bf16.gmra.mxu1 %v3124_v59 }
 0x982   :  { %v7538_v41 = vpop.f32.mrf.mxu1 }
 0x983   :  { %v3063_v52 = vadd.f32 %v7538_v41, %v10548_v22 }
 0x984   :  { %v3054_v34 = vpop.f32.mrf.mxu1 }
 0x985   :  { %v3055_v44 = vadd.f32 %v3054_v34, %v10548_v22 }
 0x986   :  { %v7539_v12 = vpop.f32.mrf.mxu1 }
 0x987   :  { %v3066_v39 = vadd.f32 %v7539_v12, %v10548_v22 }
 0x988   :  { %v3057_v10 = vpop.f32.mrf.mxu1 }
 0x989   :  { %v3058_v63 = vadd.f32 %v3057_v10, %v10548_v22  ;;  %v3126_v62 = vpack.c.bf16 %v3066_v39, %v3063_v52 }
 0x98b   :  { %v3125_v45 = vpack.c.bf16 %v3058_v63, %v3055_v44 }
 0x98d   :  { %7584 = vmatprep.mubr.bf16.mxu1 %v3125_v45 }
 0x98e   :  { %7585 = vmatmul.mubr.bf16.gmra.mxu1 %v3126_v62 }
 0x992   :  { %v7542_v18 = vpop.f32.mrf.mxu1 }
 0x993   :  { %v3079_v42 = vadd.f32 %v7542_v18, %v10548_v22 }
 0x994   :  { %v3070_v4 = vpop.f32.mrf.mxu1 }
 0x995   :  { %v3071_v49 = vadd.f32 %v3070_v4, %v10548_v22 }
 0x996   :  { %v7543_v46 = vpop.f32.mrf.mxu1 }
 0x997   :  { %v3082_v15 = vadd.f32 %v7543_v46, %v10548_v22 }
 0x998   :  { %v3073_v40 = vpop.f32.mrf.mxu1 }
 0x999   :  { %v3074_v28 = vadd.f32 %v3073_v40, %v10548_v22  ;;  %v3128_v21 = vpack.c.bf16 %v3082_v15, %v3079_v42 }
 0x99b   :  { %v3127_v31 = vpack.c.bf16 %v3074_v28, %v3071_v49  ;;  %v13110_v28 = vld [vmem:[#allocation18_spill] sm:$0xff] }
 0x99c   :  { %v10600_v42 = vrot.slane %v10544_v32, %v13110_v28 }
 0x99d   :  { %7588 = vmatprep.mubr.bf16.mxu1 %v3127_v31 }
 0x99e   :  { %7589 = vmatmul.mubr.bf16.gmra.mxu1 %v3128_v21 }
 0x9a2   :  { %v7546_v57 = vpop.f32.mrf.mxu1 }
 0x9a3   :  { %v3095_v44 = vadd.f32 %v7546_v57, %v10548_v22 }
 0x9a4   :  { %v3086_v59 = vpop.f32.mrf.mxu1 }
 0x9a5   :  { %v3087_v39 = vadd.f32 %v3086_v59, %v10548_v22 }
 0x9a6   :  { %v7547_v41 = vpop.f32.mrf.mxu1 }
 0x9a7   :  { %v3098_v34 = vadd.f32 %v7547_v41, %v10548_v22 }
 0x9a8   :  { %v3089_v12 = vpop.f32.mrf.mxu1 }
 0x9a9   :  { %v3090_v10 = vadd.f32 %v3089_v12, %v10548_v22  ;;  %v3130_v52 = vpack.c.bf16 %v3098_v34, %v3095_v44 }
 0x9ab   :  { %v3129_v63 = vpack.c.bf16 %v3090_v10, %v3087_v39 }
 0x9ad   :  { %7592 = vmatprep.mubr.bf16.mxu1 %v3129_v63 }
 0x9ae   :  { %7593 = vmatmul.mubr.bf16.gmra.mxu1 %v3130_v52 }
 0x9b2   :  { %v7550_v45 = vpop.f32.mrf.mxu1 }
 0x9b3   :  { %v3111_v35 = vadd.f32 %v7550_v45, %v10548_v22 }
 0x9b4   :  { %v3102_v62 = vpop.f32.mrf.mxu1 }
 0x9b5   :  { %v3103_v4 = vadd.f32 %v3102_v62, %v10548_v22 }
 0x9b6   :  { %v7551_v17 = vpop.f32.mrf.mxu1 }
 0x9b7   :  { %v3114_v18 = vadd.f32 %v7551_v17, %v10548_v22 }
 0x9b8   :  { %v3105_v13 = vpop.f32.mrf.mxu1 }
 0x9b9   :  { %v3106_v46 = vadd.f32 %v3105_v13, %v10548_v22  ;;  %v3132_v40 = vpack.c.bf16 %v3114_v18, %v3111_v35 }
 0x9bb   :  { %v3131_v15 = vpack.c.bf16 %v3106_v46, %v3103_v4 }
 0x9bd   :  { %7596 = vmatprep.mubr.bf16.mxu1 %v3131_v15 }
 0x9be   :  { %7597 = vmatmul.mubr.bf16.gmra.mxu1 %v3132_v40 }
 0x9bf   :  { %4715 = vmatprep.mubr.bf16.mxu1 %v10402_v16 }
 0xa0e   :  { %v7570_v49 = vpop.f32.mrf.mxu1 }
 0xa0f   :  { %v3245_v41 = vadd.f32 %v7570_v49, %v10600_v42 }
 0xa10   :  { %v3236_v31 = vpop.f32.mrf.mxu1 }
 0xa11   :  { %v3237_v57 = vadd.f32 %v3236_v31, %v10600_v42  ;;  %v3365_v16 = vmax.f32 %v3245_v41, 0.0 }
 0xa12   :  { %v7571_v21 = vpop.f32.mrf.mxu1 }
 0xa13   :  { %v3248_v59 = vadd.f32 %v7571_v21, %v10600_v42  ;;  %v3363_v39 = vmax.f32 %v3237_v57, 0.0 }
 0xa14   :  { %v3239_v22 = vpop.f32.mrf.mxu1 }
 0xa15   :  { %v3240_v34 = vadd.f32 %v3239_v22, %v10600_v42  ;;  %v3366_v12 = vmax.f32 %v3248_v59, 0.0 }
 0xa17   :  { %v3364_v10 = vmax.f32 %v3240_v34, 0.0  ;;  %v3396_v63 = vpack.c.bf16 %v3366_v12, %v3365_v16 }
 0xa19   :  { %v3395_v44 = vpack.c.bf16 %v3364_v10, %v3363_v39 }
 0xa1b   :  { %7616 = vmatprep.mubr.bf16.mxu0 %v3395_v44 }
 0xa1c   :  { %7617 = vmatmul.mubr.bf16.vlgmr.msra.gmra.mxu0 %v3396_v63 }
 0xa1e   :  { %v7574_v52 = vpop.f32.mrf.mxu1 }
 0xa1f   :  { %v3261_v13 = vadd.f32 %v7574_v52, %v10600_v42 }
 0xa20   :  { %v3252_v45 = vpop.f32.mrf.mxu1 }
 0xa21   :  { %v3253_v17 = vadd.f32 %v3252_v45, %v10600_v42  ;;  %v3369_v49 = vmax.f32 %v3261_v13, 0.0 }
 0xa22   :  { %v7575_v62 = vpop.f32.mrf.mxu1 }
 0xa23   :  { %v3264_v18 = vadd.f32 %v7575_v62, %v10600_v42  ;;  %v3367_v15 = vmax.f32 %v3253_v17, 0.0 }
 0xa24   :  { %v3255_v4 = vpop.f32.mrf.mxu1 }
 0xa25   :  { %v3256_v46 = vadd.f32 %v3255_v4, %v10600_v42  ;;  %v3370_v35 = vmax.f32 %v3264_v18, 0.0 }
 0xa27   :  { %v3368_v40 = vmax.f32 %v3256_v46, 0.0  ;;  %v3398_v21 = vpack.c.bf16 %v3370_v35, %v3369_v49 }
 0xa29   :  { %v3397_v31 = vpack.c.bf16 %v3368_v40, %v3367_v15 }
 0xa2b   :  { %7620 = vmatprep.mubr.bf16.mxu0 %v3397_v31 }
 0xa2c   :  { %7621 = vmatmul.mubr.bf16.gmra.mxu0 %v3398_v21 }
 0xa2e   :  { %v7578_v57 = vpop.f32.mrf.mxu1 }
 0xa2f   :  { %v3277_v12 = vadd.f32 %v7578_v57, %v10600_v42 }
 0xa30   :  { %v3268_v59 = vpop.f32.mrf.mxu1 }
 0xa31   :  { %v3269_v22 = vadd.f32 %v3268_v59, %v10600_v42  ;;  %v3373_v52 = vmax.f32 %v3277_v12, 0.0 }
 0xa32   :  { %v7579_v41 = vpop.f32.mrf.mxu1 }
 0xa33   :  { %v3280_v34 = vadd.f32 %v7579_v41, %v10600_v42  ;;  %v3371_v44 = vmax.f32 %v3269_v22, 0.0 }
 0xa34   :  { %v3271_v39 = vpop.f32.mrf.mxu1 }
 0xa35   :  { %v3272_v10 = vadd.f32 %v3271_v39, %v10600_v42  ;;  %v3374_v16 = vmax.f32 %v3280_v34, 0.0 }
 0xa37   :  { %v3372_v63 = vmax.f32 %v3272_v10, 0.0  ;;  %v3400_v62 = vpack.c.bf16 %v3374_v16, %v3373_v52 }
 0xa39   :  { %v3399_v45 = vpack.c.bf16 %v3372_v63, %v3371_v44 }
 0xa3b   :  { %7624 = vmatprep.mubr.bf16.mxu0 %v3399_v45 }
 0xa3c   :  { %7625 = vmatmul.mubr.bf16.gmra.mxu0 %v3400_v62 }
 0xa3e   :  { %v7582_v17 = vpop.f32.mrf.mxu1 }
 0xa3f   :  { %v3293_v35 = vadd.f32 %v7582_v17, %v10600_v42 }
 0xa40   :  { %v3284_v18 = vpop.f32.mrf.mxu1 }
 0xa41   :  { %v3285_v4 = vadd.f32 %v3284_v18, %v10600_v42  ;;  %v3377_v57 = vmax.f32 %v3293_v35, 0.0 }
 0xa42   :  { %v7583_v13 = vpop.f32.mrf.mxu1 }
 0xa43   :  { %v3296_v46 = vadd.f32 %v7583_v13, %v10600_v42  ;;  %v3375_v31 = vmax.f32 %v3285_v4, 0.0 }
 0xa44   :  { %v3287_v15 = vpop.f32.mrf.mxu1 }
 0xa45   :  { %v3288_v40 = vadd.f32 %v3287_v15, %v10600_v42  ;;  %v3378_v49 = vmax.f32 %v3296_v46, 0.0 }
 0xa47   :  { %v3376_v21 = vmax.f32 %v3288_v40, 0.0  ;;  %v3402_v41 = vpack.c.bf16 %v3378_v49, %v3377_v57 }
 0xa49   :  { %v3401_v59 = vpack.c.bf16 %v3376_v21, %v3375_v31 }
 0xa4b   :  { %7628 = vmatprep.mubr.bf16.mxu0 %v3401_v59 }
 0xa4c   :  { %7629 = vmatmul.mubr.bf16.gmra.mxu0 %v3402_v41 }
 0xa4e   :  { %v7586_v22 = vpop.f32.mrf.mxu1 }
 0xa4f   :  { %v3309_v16 = vadd.f32 %v7586_v22, %v10600_v42 }
 0xa50   :  { %v3300_v34 = vpop.f32.mrf.mxu1 }
 0xa51   :  { %v3301_v39 = vadd.f32 %v3300_v34, %v10600_v42  ;;  %v3381_v17 = vmax.f32 %v3309_v16, 0.0 }
 0xa52   :  { %v7587_v12 = vpop.f32.mrf.mxu1 }
 0xa53   :  { %v3312_v10 = vadd.f32 %v7587_v12, %v10600_v42  ;;  %v3379_v45 = vmax.f32 %v3301_v39, 0.0 }
 0xa54   :  { %v3303_v44 = vpop.f32.mrf.mxu1 }
 0xa55   :  { %v3304_v63 = vadd.f32 %v3303_v44, %v10600_v42  ;;  %v3382_v52 = vmax.f32 %v3312_v10, 0.0 }
 0xa57   :  { %v3380_v62 = vmax.f32 %v3304_v63, 0.0  ;;  %v3404_v13 = vpack.c.bf16 %v3382_v52, %v3381_v17 }
 0xa59   :  { %v3403_v18 = vpack.c.bf16 %v3380_v62, %v3379_v45 }
 0xa5b   :  { %7632 = vmatprep.mubr.bf16.mxu0 %v3403_v18 }
 0xa5c   :  { %7633 = vmatmul.mubr.bf16.gmra.mxu0 %v3404_v13 }
 0xa5e   :  { %v7590_v4 = vpop.f32.mrf.mxu1 }
 0xa5f   :  { %v3325_v49 = vadd.f32 %v7590_v4, %v10600_v42 }
 0xa60   :  { %v3316_v46 = vpop.f32.mrf.mxu1 }
 0xa61   :  { %v3317_v15 = vadd.f32 %v3316_v46, %v10600_v42  ;;  %v3385_v22 = vmax.f32 %v3325_v49, 0.0 }
 0xa62   :  { %v7591_v35 = vpop.f32.mrf.mxu1 }
 0xa63   :  { %v3328_v40 = vadd.f32 %v7591_v35, %v10600_v42  ;;  %v3383_v59 = vmax.f32 %v3317_v15, 0.0 }
 0xa64   :  { %v3319_v31 = vpop.f32.mrf.mxu1 }
 0xa65   :  { %v3320_v21 = vadd.f32 %v3319_v31, %v10600_v42  ;;  %v3386_v57 = vmax.f32 %v3328_v40, 0.0 }
 0xa67   :  { %v3384_v41 = vmax.f32 %v3320_v21, 0.0  ;;  %v3406_v12 = vpack.c.bf16 %v3386_v57, %v3385_v22 }
 0xa69   :  { %v3405_v34 = vpack.c.bf16 %v3384_v41, %v3383_v59 }
 0xa6b   :  { %7636 = vmatprep.mubr.bf16.mxu0 %v3405_v34 }
 0xa6c   :  { %7637 = vmatmul.mubr.bf16.gmra.mxu0 %v3406_v12 }
 0xa6e   :  { %v7594_v39 = vpop.f32.mrf.mxu1 }
 0xa6f   :  { %v3341_v52 = vadd.f32 %v7594_v39, %v10600_v42 }
 0xa70   :  { %v3332_v10 = vpop.f32.mrf.mxu1 }
 0xa71   :  { %v3333_v44 = vadd.f32 %v3332_v10, %v10600_v42  ;;  %v3389_v4 = vmax.f32 %v3341_v52, 0.0 }
 0xa72   :  { %v7595_v16 = vpop.f32.mrf.mxu1 }
 0xa73   :  { %v3344_v63 = vadd.f32 %v7595_v16, %v10600_v42  ;;  %v3387_v18 = vmax.f32 %v3333_v44, 0.0  ;;  %v8380_v44 = vld [vmem:[%s12971_s0 + $0x4] ss:$8 sps:$4 sm:$0xff]  }
 0xa74   :  { %v3335_v45 = vpop.f32.mrf.mxu1 }
 0xa75   :  { %v3336_v62 = vadd.f32 %v3335_v45, %v10600_v42  ;;  %v3390_v17 = vmax.f32 %v3344_v63, 0.0 }
 0xa77   :  { %v3388_v13 = vmax.f32 %v3336_v62, 0.0  ;;  %v3408_v35 = vpack.c.bf16 %v3390_v17, %v3389_v4  ;;  %v13111_v4 = vld [vmem:[#allocation19_spill] sm:$0xff] }
 0xa79   :  { %v3407_v46 = vpack.c.bf16 %v3388_v13, %v3387_v18 }
 0xa7b   :  { %7640 = vmatprep.mubr.bf16.mxu0 %v3407_v46  ;;  %v10655_v46 = vrot.slane %v10544_v32, %v13111_v4 }
 0xa7c   :  { %7641 = vmatmul.mubr.bf16.gmra.mxu0 %v3408_v35 }
 0xa7e   :  { %v7598_v15 = vpop.f32.mrf.mxu1 }
 0xa7f   :  { %v3357_v57 = vadd.f32 %v7598_v15, %v10600_v42 }
 0xa80   :  { %v3348_v40 = vpop.f32.mrf.mxu1 }
 0xa81   :  { %v3349_v31 = vadd.f32 %v3348_v40, %v10600_v42  ;;  %v3393_v39 = vmax.f32 %v3357_v57, 0.0 }
 0xa82   :  { %v7599_v49 = vpop.f32.mrf.mxu1 }
 0xa83   :  { %v3360_v21 = vadd.f32 %v7599_v49, %v10600_v42  ;;  %v3391_v34 = vmax.f32 %v3349_v31, 0.0 }
 0xa84   :  { %v3351_v59 = vpop.f32.mrf.mxu1 }
 0xa85   :  { %v3352_v41 = vadd.f32 %v3351_v59, %v10600_v42  ;;  %v3394_v22 = vmax.f32 %v3360_v21, 0.0 }
 0xa87   :  { %v3392_v12 = vmax.f32 %v3352_v41, 0.0  ;;  %v3410_v16 = vpack.c.bf16 %v3394_v22, %v3393_v39 }
 0xa89   :  { %v3409_v10 = vpack.c.bf16 %v3392_v12, %v3391_v34 }
 0xa8b   :  { %7644 = vmatprep.mubr.bf16.mxu0 %v3409_v10 }
 0xa8c   :  { %7645 = vmatmul.mubr.bf16.gmra.mxu0 %v3410_v16 }
 0xa8d   :  { %4699 = vmatprep.mubr.bf16.mxu0 %v8380_v44 }
 0xadc   :  { %v10637_v63 = vpop.f32.mrf.mxu0 }
 0xade   :  { %v10639_v52 = vpop.f32.mrf.mxu0 }
 0xae0   :  { %v10641_v45 = vpop.f32.mrf.mxu0 }
 0xae2   :  { %v10643_v42 = vpop.f32.mrf.mxu0 }
 0xaec   :  { %v10645_v62 = vpop.f32.mrf.mxu0 }
 0xaee   :  { %v10647_v17 = vpop.f32.mrf.mxu0 }
 0xaef   :  { %v10766_v33 = vadd.f32 %v10647_v17, %v10655_v46 }
 0xaf0   :  { %v10649_v18 = vpop.f32.mrf.mxu0 }
 0xaf2   :  { %v10651_v13 = vpop.f32.mrf.mxu0 }
 0xafc   :  { %v7626_v35 = vpop.f32.mrf.mxu0 }
 0xafd   :  { %v10658_v15 = vadd.f32 %v7626_v35, %v10655_v46 }
 0xafe   :  { %v3546_v40 = vpop.f32.mrf.mxu0 }
 0xaff   :  { %v10661_v49 = vadd.f32 %v3546_v40, %v10655_v46  ;;  %v3671_v31 = vsel %vm90_vm0, %v10658_v15, 0.0 }
 0xb00   :  { %3672 = vadd.xlane.f32.xlu0 %v3671_v31  ;;  %v7627_v21 = vpop.f32.mrf.mxu0 }
 0xb01   :  { %v10666_v57 = vadd.f32 %v7627_v21, %v10655_v46  ;;  %v3665_v22 = vsel %vm90_vm0, %v10661_v49, 0.0 }
 0xb02   :  { %v3549_v59 = vpop.f32.mrf.mxu0 }
 0xb03   :  { %v3674_v32 = vsel %vm90_vm0, %v10666_v57, 0.0  ;;  %v10671_v41 = vadd.f32 %v3549_v59, %v10655_v46 }
 0xb04   :  { %3675 = vadd.xlane.f32.xlu1 %v3674_v32  ;;  %3666 = vadd.xlane.f32.xlu0 %v3665_v22 }
 0xb05   :  { %v3668_v34 = vsel %vm90_vm0, %v10671_v41, 0.0 }
 0xb08   :  { %3669 = vadd.xlane.f32.xlu1 %v3668_v34 }
 0xb0c   :  { %v7630_v12 = vpop.f32.mrf.mxu0 }
 0xb0d   :  { %v10678_v39 = vadd.f32 %v7630_v12, %v10655_v46 }
 0xb0e   :  { %v3562_v10 = vpop.f32.mrf.mxu0 }
 0xb0f   :  { %v10681_v16 = vadd.f32 %v3562_v10, %v10655_v46  ;;  %v3683_v44 = vsel %vm90_vm0, %v10678_v39, 0.0 }
 0xb10   :  { %v7631_v35 = vpop.f32.mrf.mxu0  ;;  %3684 = vadd.xlane.f32.xlu0 %v3683_v44 }
 0xb11   :  { %v10686_v40 = vadd.f32 %v7631_v35, %v10655_v46  ;;  %v3677_v32 = vsel %vm90_vm0, %v10681_v16, 0.0 }
 0xb12   :  { %v3565_v31 = vpop.f32.mrf.mxu0 }
 0xb13   :  { %v10689_v21 = vadd.f32 %v3565_v31, %v10655_v46  ;;  %v3686_v59 = vsel %vm90_vm0, %v10686_v40, 0.0 }
 0xb14   :  { %3687 = vadd.xlane.f32.xlu1 %v3686_v59  ;;  %3678 = vadd.xlane.f32.xlu0 %v3677_v32 }
 0xb15   :  { %v3680_v22 = vsel %vm90_vm0, %v10689_v21, 0.0 }
 0xb18   :  { %3681 = vadd.xlane.f32.xlu1 %v3680_v22 }
 0xb1c   :  { %v7634_v34 = vpop.f32.mrf.mxu0 }
 0xb1e   :  { %v10697_v12 = vpop.f32.mrf.mxu0 }
 0xb20   :  { %v7635_v10 = vpop.f32.mrf.mxu0 }
 0xb22   :  { %v10699_v44 = vpop.f32.mrf.mxu0 }
 0xb2c   :  { %v7638_v35 = vpop.f32.mrf.mxu0 }
 0xb2d   :  { %v10702_v31 = vadd.f32 %v7638_v35, %v10655_v46 }
 0xb2e   :  { %v3594_v4 = vpop.f32.mrf.mxu0 }
 0xb2f   :  { %v3707_v28 = vsel %vm90_vm0, %v10702_v31, 0.0 }
 0xb30   :  { %v7639_v59 = vpop.f32.mrf.mxu0  ;;  %3708 = vadd.xlane.f32.xlu0 %v3707_v28 }
 0xb31   :  { %v10707_v32 = vadd.f32 %v7639_v59, %v10655_v46 }
 0xb32   :  { %v3597_v48 = vpop.f32.mrf.mxu0 }
 0xb33   :  { %v3710_v22 = vsel %vm90_vm0, %v10707_v32, 0.0 }
 0xb34   :  { %3711 = vadd.xlane.f32.xlu1 %v3710_v22 }
 0xb3c   :  { %v7642_v3 = vpop.f32.mrf.mxu0 }
 0xb3d   :  { %v10712_v55 = vadd.f32 %v7642_v3, %v10655_v46 }
 0xb3e   :  { %v3610_v35 = vpop.f32.mrf.mxu0 }
 0xb3f   :  { %v10715_v20 = vadd.f32 %v3610_v35, %v10655_v46  ;;  %v3719_v50 = vsel %vm90_vm0, %v10712_v55, 0.0 }
 0xb40   :  { %v7643_v28 = vpop.f32.mrf.mxu0  ;;  %3720 = vadd.xlane.f32.xlu0 %v3719_v50 }
 0xb41   :  { %v10720_v59 = vadd.f32 %v7643_v28, %v10655_v46  ;;  %v3713_v5 = vsel %vm90_vm0, %v10715_v20, 0.0 }
 0xb42   :  { %v3613_v54 = vpop.f32.mrf.mxu0 }
 0xb43   :  { %v10723_v22 = vadd.f32 %v3613_v54, %v10655_v46  ;;  %v3722_v3 = vsel %vm90_vm0, %v10720_v59, 0.0 }
 0xb44   :  { %3723 = vadd.xlane.f32.xlu1 %v3722_v3  ;;  %3714 = vadd.xlane.f32.xlu0 %v3713_v5 }
 0xb45   :  { %v3716_v35 = vsel %vm90_vm0, %v10723_v22, 0.0 }
 0xb48   :  { %3717 = vadd.xlane.f32.xlu1 %v3716_v35  ;;  %v10744_v35 = vadd.f32 %v10645_v62, %v10655_v46 }
 0xb4c   :  { %v7646_v50 = vpop.f32.mrf.mxu0 }
 0xb4d   :  { %v10732_v28 = vadd.f32 %v7646_v50, %v10655_v46 }
 0xb4e   :  { %v3626_v7 = vpop.f32.mrf.mxu0 }
 0xb4f   :  { %v10735_v54 = vadd.f32 %v3626_v7, %v10655_v46  ;;  %v3731_v0 = vsel %vm90_vm0, %v10732_v28, 0.0 }
 0xb50   :  { %v7647_v6 = vpop.f32.mrf.mxu0  ;;  %3732 = vadd.xlane.f32.xlu0 %v3731_v0  ;;  %v10758_v0 = vadd.f32 %v3594_v4, %v10655_v46 }
 0xb51   :  { %v10740_v3 = vadd.f32 %v7647_v6, %v10655_v46  ;;  %v3725_v9 = vsel %vm90_vm0, %v10735_v54, 0.0  ;;  %v10755_v6 = vadd.f32 %v10649_v18, %v10655_v46 }
 0xb52   :  { %v3629_v5 = vpop.f32.mrf.mxu0  ;;  %v3701_v4 = vsel %vm90_vm0, %v10758_v0, 0.0 }
 0xb53   :  { %v10747_v50 = vadd.f32 %v3629_v5, %v10655_v46  ;;  %v3734_v7 = vsel %vm90_vm0, %v10740_v3, 0.0  ;;  %v3659_v5 = vsel %vm90_vm0, %v10744_v35, 0.0  ;;  %v3662_v18 = vsel %vm90_vm0, %v10755_v6, 0.0 }
 0xb54   :  { %3735 = vadd.xlane.f32.xlu1 %v3734_v7  ;;  %3726 = vadd.xlane.f32.xlu0 %v3725_v9  ;;  %v10769_v9 = vadd.f32 %v3597_v48, %v10655_v46  ;;  %v10777_v7 = vadd.f32 %v10651_v13, %v10655_v46  ;;  %v3653_v48 = vsel %vm90_vm0, %v10766_v33, 0.0 }
 0xb55   :  { %v3728_v62 = vsel %vm90_vm0, %v10747_v50, 0.0 }
 0xb56   :  { %v3704_v17 = vsel %vm90_vm0, %v10769_v9, 0.0  ;;  %v3656_v13 = vsel %vm90_vm0, %v10777_v7, 0.0 }
 0xb58   :  { %3729 = vadd.xlane.f32.xlu1 %v3728_v62  ;;  %3660 = vadd.xlane.f32.xlu0 %v3659_v5  ;;  %v10780_v62 = vadd.f32 %v7634_v34, %v10655_v46  ;;  %v10788_v5 = vadd.f32 %v10637_v63, %v10655_v46 }
 0xb5a   :  { %v3695_v34 = vsel %vm90_vm0, %v10780_v62, 0.0 }
 0xb5c   :  { %3663 = vadd.xlane.f32.xlu1 %v3662_v18  ;;  %3702 = vadd.xlane.f32.xlu0 %v3701_v4  ;;  %v10791_v18 = vadd.f32 %v7635_v10, %v10655_v46  ;;  %v10799_v4 = vadd.f32 %v10641_v45, %v10655_v46  ;;  %v3647_v10 = vsel %vm90_vm0, %v10788_v5, 0.0  ;;  %v10815_v45 = vadd.f32 %v10699_v44, %v10655_v46 }
 0xb5e   :  { %v3698_v63 = vsel %vm90_vm0, %v10791_v18, 0.0 }
 0xb60   :  { %3705 = vadd.xlane.f32.xlu1 %v3704_v17  ;;  %3654 = vadd.xlane.f32.xlu0 %v3653_v48  ;;  %v10803_v17 = vadd.f32 %v10697_v12, %v10655_v46  ;;  %v10811_v48 = vadd.f32 %v10639_v52, %v10655_v46  ;;  %v3650_v12 = vsel %vm90_vm0, %v10799_v4, 0.0  ;;  %v3692_v52 = vsel %vm90_vm0, %v10815_v45, 0.0 }
 0xb64   :  { %3657 = vadd.xlane.f32.xlu1 %v3656_v13  ;;  %3696 = vadd.xlane.f32.xlu0 %v3695_v34  ;;  %v3689_v13 = vsel %vm90_vm0, %v10803_v17, 0.0  ;;  %v10823_v34 = vadd.f32 %v10643_v42, %v10655_v46 }
 0xb66   :  { %v3644_v44 = vsel %vm90_vm0, %v10823_v34, 0.0 }
 0xb68   :  { %3699 = vadd.xlane.f32.xlu1 %v3698_v63  ;;  %3648 = vadd.xlane.f32.xlu0 %v3647_v10  ;;  %v3641_v63 = vsel %vm90_vm0, %v10811_v48, 0.0 }
 0xb6c   :  { %3651 = vadd.xlane.f32.xlu1 %v3650_v12  ;;  %3690 = vadd.xlane.f32.xlu0 %v3689_v13 }
 0xb70   :  { %3693 = vadd.xlane.f32.xlu1 %v3692_v52  ;;  %3642 = vadd.xlane.f32.xlu0 %v3641_v63 }
 0xb74   :  { %3645 = vadd.xlane.f32.xlu1 %v3644_v44 }
 0xb89   :  { %v3673_v10 = vpop.xlane.xlu0 %3672 }
 0xb8a   :  { %v3747_v43 = vmul.f32 0.03125, %v3673_v10 }
 0xb8c   :  { %v10832_v12 = vsub.f32 %v10658_v15, %v3747_v43 }
 0xb8d   :  { %v3676_v13 = vpop.xlane.xlu1 %3675  ;;  %v3667_v42 = vpop.xlane.xlu0 %3666 }
 0xb8e   :  { %v3748_v46 = vmul.f32 0.03125, %v3676_v13  ;;  %v3745_v27 = vmul.f32 0.03125, %v3667_v42  ;;  %v3811_v56 = vmul.f32 %v10832_v12, %v10832_v12 }
 0xb90   :  { %v10837_v58 = vsub.f32 %v10666_v57, %v3748_v46  ;;  %v10840_v52 = vsub.f32 %v10661_v49, %v3745_v27  ;;  %v3863_v63 = vsel %vm90_vm0, %v3811_v56, 0.0 }
 0xb91   :  { %v3670_v44 = vpop.xlane.xlu1 %3669  ;;  %3864 = vadd.xlane.f32.xlu0 %v3863_v63 }
 0xb92   :  { %v3746_v10 = vmul.f32 0.03125, %v3670_v44  ;;  %v3812_v43 = vmul.f32 %v10837_v58, %v10837_v58  ;;  %v3809_v15 = vmul.f32 %v10840_v52, %v10840_v52 }
 0xb94   :  { %v10848_v13 = vsub.f32 %v10671_v41, %v3746_v10  ;;  %v3866_v57 = vsel %vm90_vm0, %v3812_v43, 0.0  ;;  %v3857_v42 = vsel %vm90_vm0, %v3809_v15, 0.0 }
 0xb95   :  { %3867 = vadd.xlane.f32.xlu1 %v3866_v57  ;;  %3858 = vadd.xlane.f32.xlu0 %v3857_v42 }
 0xb96   :  { %v3810_v27 = vmul.f32 %v10848_v13, %v10848_v13 }
 0xb98   :  { %v3860_v56 = vsel %vm90_vm0, %v3810_v27, 0.0 }
 0xb99   :  { %v3685_v49 = vpop.xlane.xlu0 %3684  ;;  %3861 = vadd.xlane.f32.xlu1 %v3860_v56 }
 0xb9a   :  { %v3751_v46 = vmul.f32 0.03125, %v3685_v49 }
 0xb9c   :  { %v10856_v63 = vsub.f32 %v10678_v39, %v3751_v46 }
 0xb9d   :  { %v3688_v44 = vpop.xlane.xlu1 %3687  ;;  %v3679_v41 = vpop.xlane.xlu0 %3678 }
 0xb9e   :  { %v3752_v10 = vmul.f32 0.03125, %v3688_v44  ;;  %v3749_v24 = vmul.f32 0.03125, %v3679_v41  ;;  %v3815_v43 = vmul.f32 %v10856_v63, %v10856_v63 }
 0xba0   :  { %v10861_v15 = vsub.f32 %v10686_v40, %v3752_v10  ;;  %v10864_v57 = vsub.f32 %v10681_v16, %v3749_v24  ;;  %v3875_v42 = vsel %vm90_vm0, %v3815_v43, 0.0 }
 0xba1   :  { %v3682_v27 = vpop.xlane.xlu1 %3681  ;;  %3876 = vadd.xlane.f32.xlu0 %v3875_v42 }
 0xba2   :  { %v3750_v56 = vmul.f32 0.03125, %v3682_v27  ;;  %v3816_v39 = vmul.f32 %v10861_v15, %v10861_v15  ;;  %v3813_v49 = vmul.f32 %v10864_v57, %v10864_v57 }
 0xba4   :  { %v10872_v46 = vsub.f32 %v10689_v21, %v3750_v56  ;;  %v3878_v40 = vsel %vm90_vm0, %v3816_v39, 0.0  ;;  %v3869_v44 = vsel %vm90_vm0, %v3813_v49, 0.0 }
 0xba5   :  { %3879 = vadd.xlane.f32.xlu1 %v3878_v40  ;;  %3870 = vadd.xlane.f32.xlu0 %v3869_v44 }
 0xba6   :  { %v3814_v24 = vmul.f32 %v10872_v46, %v10872_v46 }
 0xba8   :  { %v3872_v16 = vsel %vm90_vm0, %v3814_v24, 0.0 }
 0xba9   :  { %3873 = vadd.xlane.f32.xlu1 %v3872_v16 }
 0xbb9   :  { %v3709_v41 = vpop.xlane.xlu0 %3708 }
 0xbba   :  { %v3759_v10 = vmul.f32 0.03125, %v3709_v41 }
 0xbbc   :  { %v10880_v43 = vsub.f32 %v10702_v31, %v3759_v10 }
 0xbbd   :  { %v3712_v42 = vpop.xlane.xlu1 %3711 }
 0xbbe   :  { %v3760_v21 = vmul.f32 0.03125, %v3712_v42  ;;  %v3823_v27 = vmul.f32 %v10880_v43, %v10880_v43 }
 0xbc0   :  { %v10885_v56 = vsub.f32 %v10707_v32, %v3760_v21  ;;  %v3899_v39 = vsel %vm90_vm0, %v3823_v27, 0.0 }
 0xbc1   :  { %3900 = vadd.xlane.f32.xlu0 %v3899_v39 }
 0xbc2   :  { %v3824_v49 = vmul.f32 %v10885_v56, %v10885_v56 }
 0xbc4   :  { %v3902_v40 = vsel %vm90_vm0, %v3824_v49, 0.0 }
 0xbc5   :  { %3903 = vadd.xlane.f32.xlu1 %v3902_v40 }
 0xbc9   :  { %v3721_v44 = vpop.xlane.xlu0 %3720 }
 0xbca   :  { %v3763_v31 = vmul.f32 0.03125, %v3721_v44 }
 0xbcc   :  { %v10892_v24 = vsub.f32 %v10712_v55, %v3763_v31 }
 0xbcd   :  { %v3724_v16 = vpop.xlane.xlu1 %3723  ;;  %v3715_v41 = vpop.xlane.xlu0 %3714 }
 0xbce   :  { %v3764_v10 = vmul.f32 0.03125, %v3724_v16  ;;  %v3761_v42 = vmul.f32 0.03125, %v3715_v41  ;;  %v3827_v32 = vmul.f32 %v10892_v24, %v10892_v24 }
 0xbd0   :  { %v10897_v21 = vsub.f32 %v10720_v59, %v3764_v10  ;;  %v10900_v27 = vsub.f32 %v10715_v20, %v3761_v42  ;;  %v3911_v39 = vsel %vm90_vm0, %v3827_v32, 0.0 }
 0xbd1   :  { %v3718_v49 = vpop.xlane.xlu1 %3717  ;;  %3912 = vadd.xlane.f32.xlu0 %v3911_v39 }
 0xbd2   :  { %v3762_v40 = vmul.f32 0.03125, %v3718_v49  ;;  %v3828_v55 = vmul.f32 %v10897_v21, %v10897_v21  ;;  %v3825_v44 = vmul.f32 %v10900_v27, %v10900_v27 }
 0xbd4   :  { %v10908_v31 = vsub.f32 %v10723_v22, %v3762_v40  ;;  %v3914_v59 = vsel %vm90_vm0, %v3828_v55, 0.0  ;;  %v3905_v16 = vsel %vm90_vm0, %v3825_v44, 0.0 }
 0xbd5   :  { %3915 = vadd.xlane.f32.xlu1 %v3914_v59  ;;  %3906 = vadd.xlane.f32.xlu0 %v3905_v16 }
 0xbd6   :  { %v3826_v20 = vmul.f32 %v10908_v31, %v10908_v31 }
 0xbd8   :  { %v3908_v41 = vsel %vm90_vm0, %v3826_v20, 0.0 }
 0xbd9   :  { %v3733_v10 = vpop.xlane.xlu0 %3732  ;;  %3909 = vadd.xlane.f32.xlu1 %v3908_v41 }
 0xbda   :  { %v3767_v42 = vmul.f32 0.03125, %v3733_v10 }
 0xbdc   :  { %v10916_v32 = vsub.f32 %v10732_v28, %v3767_v42 }
 0xbdd   :  { %v3736_v39 = vpop.xlane.xlu1 %3735  ;;  %v3727_v22 = vpop.xlane.xlu0 %3726 }
 0xbde   :  { %v3768_v49 = vmul.f32 0.03125, %v3736_v39  ;;  %v3765_v40 = vmul.f32 0.03125, %v3727_v22  ;;  %v3831_v55 = vmul.f32 %v10916_v32, %v10916_v32 }
 0xbe0   :  { %v10921_v44 = vsub.f32 %v10740_v3, %v3768_v49  ;;  %v10924_v59 = vsub.f32 %v10735_v54, %v3765_v40  ;;  %v3923_v16 = vsel %vm90_vm0, %v3831_v55, 0.0 }
 0xbe1   :  { %v3730_v20 = vpop.xlane.xlu1 %3729  ;;  %v3661_v41 = vpop.xlane.xlu0 %3660  ;;  %3924 = vadd.xlane.f32.xlu0 %v3923_v16 }
 0xbe2   :  { %v3766_v28 = vmul.f32 0.03125, %v3730_v20  ;;  %v3743_v10 = vmul.f32 0.03125, %v3661_v41  ;;  %v3832_v42 = vmul.f32 %v10921_v44, %v10921_v44  ;;  %v3829_v39 = vmul.f32 %v10924_v59, %v10924_v59 }
 0xbe4   :  { %v10932_v22 = vsub.f32 %v10747_v50, %v3766_v28  ;;  %v10935_v3 = vsub.f32 %v10744_v35, %v3743_v10  ;;  %v3926_v54 = vsel %vm90_vm0, %v3832_v42, 0.0  ;;  %v3917_v49 = vsel %vm90_vm0, %v3829_v39, 0.0 }
 0xbe5   :  { %v3664_v40 = vpop.xlane.xlu1 %3663  ;;  %v3703_v55 = vpop.xlane.xlu0 %3702  ;;  %3927 = vadd.xlane.f32.xlu1 %v3926_v54  ;;  %3918 = vadd.xlane.f32.xlu0 %v3917_v49 }
 0xbe6   :  { %v3744_v16 = vmul.f32 0.03125, %v3664_v40  ;;  %v3757_v20 = vmul.f32 0.03125, %v3703_v55  ;;  %v3830_v41 = vmul.f32 %v10932_v22, %v10932_v22  ;;  %v3807_v50 = vmul.f32 %v10935_v3, %v10935_v3 }
 0xbe8   :  { %v10944_v28 = vsub.f32 %v10755_v6, %v3744_v16  ;;  %v10947_v35 = vsub.f32 %v10758_v0, %v3757_v20  ;;  %v3920_v10 = vsel %vm90_vm0, %v3830_v41, 0.0  ;;  %v3851_v42 = vsel %vm90_vm0, %v3807_v50, 0.0 }
 0xbe9   :  { %v3706_v39 = vpop.xlane.xlu1 %3705  ;;  %v3655_v54 = vpop.xlane.xlu0 %3654  ;;  %3921 = vadd.xlane.f32.xlu1 %v3920_v10  ;;  %3852 = vadd.xlane.f32.xlu0 %v3851_v42 }
 0xbea   :  { %v3758_v49 = vmul.f32 0.03125, %v3706_v39  ;;  %v3741_v40 = vmul.f32 0.03125, %v3655_v54  ;;  %v3808_v55 = vmul.f32 %v10944_v28, %v10944_v28  ;;  %v3821_v6 = vmul.f32 %v10947_v35, %v10947_v35 }
 0xbec   :  { %v10956_v16 = vsub.f32 %v10769_v9, %v3758_v49  ;;  %v10959_v0 = vsub.f32 %v10766_v33, %v3741_v40  ;;  %v3854_v20 = vsel %vm90_vm0, %v3808_v55, 0.0  ;;  %v3893_v41 = vsel %vm90_vm0, %v3821_v6, 0.0 }
 0xbed   :  { %v3658_v50 = vpop.xlane.xlu1 %3657  ;;  %v3697_v10 = vpop.xlane.xlu0 %3696  ;;  %3855 = vadd.xlane.f32.xlu1 %v3854_v20  ;;  %3894 = vadd.xlane.f32.xlu0 %v3893_v41 }
 0xbee   :  { %v3742_v42 = vmul.f32 0.03125, %v3658_v50  ;;  %v3755_v39 = vmul.f32 0.03125, %v3697_v10  ;;  %v3822_v54 = vmul.f32 %v10956_v16, %v10956_v16  ;;  %v3805_v9 = vmul.f32 %v10959_v0, %v10959_v0 }
 0xbf0   :  { %v10968_v49 = vsub.f32 %v10777_v7, %v3742_v42  ;;  %v10971_v33 = vsub.f32 %v10780_v62, %v3755_v39  ;;  %v3896_v40 = vsel %vm90_vm0, %v3822_v54, 0.0  ;;  %v3845_v55 = vsel %vm90_vm0, %v3805_v9, 0.0 }
 0xbf1   :  { %v3700_v6 = vpop.xlane.xlu1 %3699  ;;  %v3649_v20 = vpop.xlane.xlu0 %3648  ;;  %3897 = vadd.xlane.f32.xlu1 %v3896_v40  ;;  %3846 = vadd.xlane.f32.xlu0 %v3845_v55 }
 0xbf2   :  { %v3756_v41 = vmul.f32 0.03125, %v3700_v6  ;;  %v3739_v50 = vmul.f32 0.03125, %v3649_v20  ;;  %v3806_v10 = vmul.f32 %v10968_v49, %v10968_v49  ;;  %v3819_v7 = vmul.f32 %v10971_v33, %v10971_v33 }
 0xbf4   :  { %v10980_v42 = vsub.f32 %v10791_v18, %v3756_v41  ;;  %v10983_v62 = vsub.f32 %v10788_v5, %v3739_v50  ;;  %v3848_v39 = vsel %vm90_vm0, %v3806_v10, 0.0  ;;  %v3887_v54 = vsel %vm90_vm0, %v3819_v7, 0.0 }
 0xbf5   :  { %v3652_v9 = vpop.xlane.xlu1 %3651  ;;  %v3691_v40 = vpop.xlane.xlu0 %3690  ;;  %3849 = vadd.xlane.f32.xlu1 %v3848_v39  ;;  %3888 = vadd.xlane.f32.xlu0 %v3887_v54 }
 0xbf6   :  { %v3740_v55 = vmul.f32 0.03125, %v3652_v9  ;;  %v3753_v6 = vmul.f32 0.03125, %v3691_v40  ;;  %v3820_v20 = vmul.f32 %v10980_v42, %v10980_v42  ;;  %v3803_v18 = vmul.f32 %v10983_v62, %v10983_v62 }
 0xbf8   :  { %v10992_v41 = vsub.f32 %v10799_v4, %v3740_v55  ;;  %v10995_v5 = vsub.f32 %v10803_v17, %v3753_v6  ;;  %v3890_v50 = vsel %vm90_vm0, %v3820_v20, 0.0  ;;  %v3839_v10 = vsel %vm90_vm0, %v3803_v18, 0.0 }
 0xbf9   :  { %v3694_v7 = vpop.xlane.xlu1 %3693  ;;  %3891 = vadd.xlane.f32.xlu1 %v3890_v50  ;;  %3840 = vadd.xlane.f32.xlu0 %v3839_v10  ;;  %v3643_v39 = vpop.xlane.xlu0 %3642 }
 0xbfa   :  { %13112 = vst [vmem:[#allocation15_spill] sm:$0xff] %v10992_v41  ;;  %13113 = vst [vmem:[#allocation16_spill] sm:$0xff] %v10995_v5  ;;  %v3754_v54 = vmul.f32 0.03125, %v3694_v7  ;;  %v3737_v9 = vmul.f32 0.03125, %v3643_v39  ;;  %v3804_v40 = vmul.f32 %v10992_v41, %v10992_v41  ;;  %v3817_v4 = vmul.f32 %v10995_v5, %v10995_v5 }
 0xbfc   :  { %v11004_v55 = vsub.f32 %v10815_v45, %v3754_v54  ;;  %v11007_v17 = vsub.f32 %v10811_v48, %v3737_v9  ;;  %v3842_v6 = vsel %vm90_vm0, %v3804_v40, 0.0  ;;  %v3881_v20 = vsel %vm90_vm0, %v3817_v4, 0.0 }
 0xbfd   :  { %3843 = vadd.xlane.f32.xlu1 %v3842_v6  ;;  %v3646_v18 = vpop.xlane.xlu1 %3645  ;;  %3882 = vadd.xlane.f32.xlu0 %v3881_v20 }
 0xbfe   :  { %13114 = vst [vmem:[#allocation17_spill] sm:$0xff] %v11004_v55  ;;  %13115 = vst [vmem:[#allocation2_spill] sm:$0xff] %v11007_v17  ;;  %v3738_v50 = vmul.f32 0.03125, %v3646_v18  ;;  %v3818_v10 = vmul.f32 %v11004_v55, %v11004_v55  ;;  %v3801_v7 = vmul.f32 %v11007_v17, %v11007_v17 }
 0xc00   :  { %v11016_v45 = vsub.f32 %v10823_v34, %v3738_v50  ;;  %v3884_v48 = vsel %vm90_vm0, %v3818_v10, 0.0  ;;  %v3833_v39 = vsel %vm90_vm0, %v3801_v7, 0.0 }
 0xc01   :  { %3885 = vadd.xlane.f32.xlu1 %v3884_v48  ;;  %3834 = vadd.xlane.f32.xlu0 %v3833_v39 }
 0xc02   :  { %13116 = vst [vmem:[#allocation26_spill] sm:$0xff] %v11016_v45  ;;  %v3802_v54 = vmul.f32 %v11016_v45, %v11016_v45 }
 0xc04   :  { %v3836_v9 = vsel %vm90_vm0, %v3802_v54, 0.0  ;;  %v8381_v54 = vld [vmem:[%s12972_s5 + $0x10] sm:$0xff] }
 0xc05   :  { %3837 = vadd.xlane.f32.xlu1 %v3836_v9  ;;  %v13117_v9 = vld [vmem:[#allocation25_spill] sm:$0xff] }
 0xc1a   :  { %v3865_v40 = vpop.xlane.xlu0 %3864 }
 0xc1b   :  { %v3939_v4 = vmul.f32 0.03125, %v3865_v40  ;;  %v11027_v40 = vrot.slane %v8381_v54, %v13117_v9 }
 0xc1d   :  { %v3971_v6 = vadd.f32 1e-05, %v3939_v4 }
 0xc1e   :  { %v3868_v20 = vpop.xlane.xlu1 %3867  ;;  %v3859_v18 = vpop.xlane.xlu0 %3858 }
 0xc1f   :  { %8090 = vrsqrt.f32 %v3971_v6  ;;  %v3940_v34 = vmul.f32 0.03125, %v3868_v20  ;;  %v3937_v50 = vmul.f32 0.03125, %v3859_v18  ;;  %v11031_v18 = vrot.slane %v8381_v54, %v9718_v29 }
 0xc21   :  { %v3972_v17 = vadd.f32 1e-05, %v3940_v34  ;;  %v3969_v10 = vadd.f32 1e-05, %v3937_v50 }
 0xc22   :  { %v3862_v55 = vpop.xlane.xlu1 %3861 }
 0xc23   :  { %8092 = vrsqrt.f32 %v3972_v17  ;;  %v3938_v7 = vmul.f32 0.03125, %v3862_v55 }
 0xc24   :  { %8094 = vrsqrt.f32 %v3969_v10 }
 0xc25   :  { %v3970_v48 = vadd.f32 1e-05, %v3938_v7 }
 0xc27   :  { %8096 = vrsqrt.f32 %v3970_v48 }
 0xc2a   :  { %v3877_v39 = vpop.xlane.xlu0 %3876 }
 0xc2b   :  { %v3943_v45 = vmul.f32 0.03125, %v3877_v39 }
 0xc2c   :  { %v8091_v4 = vpop.eup %8090 }
 0xc2d   :  { %v3975_v6 = vadd.f32 1e-05, %v3943_v45  ;;  %v4035_v20 = vmul.f32 %v8091_v4, %v10832_v12 }
 0xc2e   :  { %v3880_v55 = vpop.xlane.xlu1 %3879  ;;  %v3871_v17 = vpop.xlane.xlu0 %3870 }
 0xc2f   :  { %8098 = vrsqrt.f32 %v3975_v6  ;;  %v3944_v34 = vmul.f32 0.03125, %v3880_v55  ;;  %v3941_v50 = vmul.f32 0.03125, %v3871_v17  ;;  %v4071_v10 = vmul.f32 %v11027_v40, %v4035_v20 }
 0xc30   :  { %v8093_v7 = vpop.eup %8092 }
 0xc31   :  { %v8095_v48 = vpop.eup %8094  ;;  %v3976_v39 = vadd.f32 1e-05, %v3944_v34  ;;  %v3973_v5 = vadd.f32 1e-05, %v3941_v50  ;;  %v4107_v9 = vadd.f32 %v11031_v18, %v4071_v10  ;;  %v4036_v45 = vmul.f32 %v8093_v7, %v10837_v58 }
 0xc32   :  { %v3874_v41 = vpop.xlane.xlu1 %3873  ;;  %v4033_v12 = vmul.f32 %v8095_v48, %v10840_v52 }
 0xc33   :  { %8100 = vrsqrt.f32 %v3976_v39  ;;  %v3942_v54 = vmul.f32 0.03125, %v3874_v41  ;;  %v11038_v4 = vadd.f32 %v4107_v9, %v10204_v37  ;;  %v4072_v6 = vmul.f32 %v11027_v40, %v4036_v45 }
 0xc34   :  { %v8097_v55 = vpop.eup %8096  ;;  %8102 = vrsqrt.f32 %v3973_v5  ;;  %v4069_v20 = vmul.f32 %v11027_v40, %v4033_v12 }
 0xc35   :  { %v3974_v17 = vadd.f32 1e-05, %v3942_v54  ;;  %v4191_v34 = vsel %vm90_vm0, %v11038_v4, 0.0  ;;  %v4108_v58 = vadd.f32 %v11031_v18, %v4072_v6  ;;  %v4034_v50 = vmul.f32 %v8097_v55, %v10848_v13 }
 0xc36   :  { %4192 = vadd.xlane.f32.xlu0 %v4191_v34  ;;  %v4105_v52 = vadd.f32 %v11031_v18, %v4069_v20 }
 0xc37   :  { %8104 = vrsqrt.f32 %v3974_v17  ;;  %v11048_v37 = vadd.f32 %v4108_v58, %v10212_v51  ;;  %v4070_v41 = vmul.f32 %v11027_v40, %v4034_v50 }
 0xc38   :  { %v11052_v5 = vadd.f32 %v4105_v52, %v10305_v2 }
 0xc39   :  { %v4194_v9 = vsel %vm90_vm0, %v11048_v37, 0.0  ;;  %v4106_v10 = vadd.f32 %v11031_v18, %v4070_v41 }
 0xc3a   :  { %4195 = vadd.xlane.f32.xlu1 %v4194_v9  ;;  %v4185_v13 = vsel %vm90_vm0, %v11052_v5, 0.0 }
 0xc3b   :  { %4186 = vadd.xlane.f32.xlu0 %v4185_v13  ;;  %v11060_v7 = vadd.f32 %v4106_v10, %v10292_v47 }
 0xc3c   :  { %v8099_v51 = vpop.eup %8098 }
 0xc3d   :  { %v4188_v48 = vsel %vm90_vm0, %v11060_v7, 0.0  ;;  %v4039_v2 = vmul.f32 %v8099_v51, %v10856_v63 }
 0xc3e   :  { %4189 = vadd.xlane.f32.xlu1 %v4188_v48 }
 0xc3f   :  { %v4075_v39 = vmul.f32 %v11027_v40, %v4039_v2 }
 0xc40   :  { %v8101_v45 = vpop.eup %8100 }
 0xc41   :  { %v8103_v12 = vpop.eup %8102  ;;  %v4111_v54 = vadd.f32 %v11031_v18, %v4075_v39  ;;  %v4040_v6 = vmul.f32 %v8101_v45, %v10861_v15 }
 0xc42   :  { %v4037_v55 = vmul.f32 %v8103_v12, %v10864_v57 }
 0xc43   :  { %v11070_v47 = vadd.f32 %v4111_v54, %v10219_v38  ;;  %v4076_v20 = vmul.f32 %v11027_v40, %v4040_v6 }
 0xc44   :  { %v8105_v17 = vpop.eup %8104  ;;  %v4073_v34 = vmul.f32 %v11027_v40, %v4037_v55 }
 0xc45   :  { %v4203_v63 = vsel %vm90_vm0, %v11070_v47, 0.0  ;;  %v4112_v58 = vadd.f32 %v11031_v18, %v4076_v20  ;;  %v4038_v50 = vmul.f32 %v8105_v17, %v10872_v46 }
 0xc46   :  { %4204 = vadd.xlane.f32.xlu0 %v4203_v63  ;;  %v4109_v15 = vadd.f32 %v11031_v18, %v4073_v34 }
 0xc47   :  { %v11080_v57 = vadd.f32 %v4112_v58, %v10224_v11  ;;  %v4074_v38 = vmul.f32 %v11027_v40, %v4038_v50 }
 0xc48   :  { %v11084_v52 = vadd.f32 %v4109_v15, %v10228_v26 }
 0xc49   :  { %v4206_v41 = vsel %vm90_vm0, %v11080_v57, 0.0  ;;  %v4110_v9 = vadd.f32 %v11031_v18, %v4074_v38 }
 0xc4a   :  { %4207 = vadd.xlane.f32.xlu1 %v4206_v41  ;;  %v4197_v46 = vsel %vm90_vm0, %v11084_v52, 0.0  ;;  %v3901_v10 = vpop.xlane.xlu0 %3900 }
 0xc4b   :  { %4198 = vadd.xlane.f32.xlu0 %v4197_v46  ;;  %v3951_v13 = vmul.f32 0.03125, %v3901_v10  ;;  %v11092_v11 = vadd.f32 %v4110_v9, %v10252_v1 }
 0xc4d   :  { %v3983_v51 = vadd.f32 1e-05, %v3951_v13  ;;  %v4200_v26 = vsel %vm90_vm0, %v11092_v11, 0.0 }
 0xc4e   :  { %4201 = vadd.xlane.f32.xlu1 %v4200_v26  ;;  %v3904_v48 = vpop.xlane.xlu1 %3903 }
 0xc4f   :  { %8106 = vrsqrt.f32 %v3983_v51  ;;  %v3952_v2 = vmul.f32 0.03125, %v3904_v48 }
 0xc51   :  { %v3984_v39 = vadd.f32 1e-05, %v3952_v2 }
 0xc53   :  { %8108 = vrsqrt.f32 %v3984_v39 }
 0xc5a   :  { %v3913_v45 = vpop.xlane.xlu0 %3912 }
 0xc5b   :  { %v3955_v12 = vmul.f32 0.03125, %v3913_v45 }
 0xc5c   :  { %v8107_v54 = vpop.eup %8106 }
 0xc5d   :  { %v3987_v6 = vadd.f32 1e-05, %v3955_v12  ;;  %v4047_v55 = vmul.f32 %v8107_v54, %v10880_v43 }
 0xc5e   :  { %v3916_v20 = vpop.xlane.xlu1 %3915  ;;  %v3907_v17 = vpop.xlane.xlu0 %3906 }
 0xc5f   :  { %8110 = vrsqrt.f32 %v3987_v6  ;;  %v3956_v1 = vmul.f32 0.03125, %v3916_v20  ;;  %v3953_v34 = vmul.f32 0.03125, %v3907_v17  ;;  %v4083_v63 = vmul.f32 %v11027_v40, %v4047_v55 }
 0xc60   :  { %v8109_v58 = vpop.eup %8108 }
 0xc61   :  { %v3988_v50 = vadd.f32 1e-05, %v3956_v1  ;;  %v3985_v15 = vadd.f32 1e-05, %v3953_v34  ;;  %v4119_v38 = vadd.f32 %v11031_v18, %v4083_v63  ;;  %v4048_v41 = vmul.f32 %v8109_v58, %v10885_v56 }
 0xc62   :  { %v3910_v9 = vpop.xlane.xlu1 %3909 }
 0xc63   :  { %8112 = vrsqrt.f32 %v3988_v50  ;;  %v3954_v46 = vmul.f32 0.03125, %v3910_v9  ;;  %v11101_v10 = vadd.f32 %v4119_v38, %v10309_v14  ;;  %v4084_v43 = vmul.f32 %v11027_v40, %v4048_v41 }
 0xc64   :  { %8114 = vrsqrt.f32 %v3985_v15 }
 0xc65   :  { %v3986_v13 = vadd.f32 1e-05, %v3954_v46  ;;  %v4227_v51 = vsel %vm90_vm0, %v11101_v10, 0.0  ;;  %v4120_v26 = vadd.f32 %v11031_v18, %v4084_v43 }
 0xc66   :  { %4228 = vadd.xlane.f32.xlu0 %v4227_v51 }
 0xc67   :  { %8116 = vrsqrt.f32 %v3986_v13  ;;  %v11108_v48 = vadd.f32 %v4120_v26, %v10299_v36 }
 0xc69   :  { %v4230_v56 = vsel %vm90_vm0, %v11108_v48, 0.0 }
 0xc6a   :  { %4231 = vadd.xlane.f32.xlu1 %v4230_v56  ;;  %v3925_v14 = vpop.xlane.xlu0 %3924 }
 0xc6b   :  { %v3959_v2 = vmul.f32 0.03125, %v3925_v14 }
 0xc6c   :  { %v8111_v39 = vpop.eup %8110 }
 0xc6d   :  { %v3991_v45 = vadd.f32 1e-05, %v3959_v2  ;;  %v4051_v12 = vmul.f32 %v8111_v39, %v10892_v24 }
 0xc6e   :  { %v3928_v54 = vpop.xlane.xlu1 %3927  ;;  %v3919_v6 = vpop.xlane.xlu0 %3918 }
 0xc6f   :  { %8118 = vrsqrt.f32 %v3991_v45  ;;  %v3960_v55 = vmul.f32 0.03125, %v3928_v54  ;;  %v3957_v20 = vmul.f32 0.03125, %v3919_v6  ;;  %v4087_v17 = vmul.f32 %v11027_v40, %v4051_v12 }
 0xc70   :  { %v8113_v1 = vpop.eup %8112 }
 0xc71   :  { %v8115_v36 = vpop.eup %8114  ;;  %v3992_v34 = vadd.f32 1e-05, %v3960_v55  ;;  %v3989_v63 = vadd.f32 1e-05, %v3957_v20  ;;  %v4123_v58 = vadd.f32 %v11031_v18, %v4087_v17  ;;  %v4052_v50 = vmul.f32 %v8113_v1, %v10897_v21 }
 0xc72   :  { %v3922_v15 = vpop.xlane.xlu1 %3921  ;;  %v3853_v38 = vpop.xlane.xlu0 %3852  ;;  %v4049_v41 = vmul.f32 %v8115_v36, %v10900_v27 }
 0xc73   :  { %8120 = vrsqrt.f32 %v3992_v34  ;;  %v3958_v24 = vmul.f32 0.03125, %v3922_v15  ;;  %v3935_v9 = vmul.f32 0.03125, %v3853_v38  ;;  %v11118_v46 = vadd.f32 %v4123_v58, %v10269_v25 }
 0xc74   :  { %v8117_v43 = vpop.eup %8116  ;;  %8122 = vrsqrt.f32 %v3989_v63  ;;  %v4088_v13 = vmul.f32 %v11027_v40, %v4052_v50  ;;  %v4085_v51 = vmul.f32 %v11027_v40, %v4049_v41 }
 0xc75   :  { %v3990_v26 = vadd.f32 1e-05, %v3958_v24  ;;  %v3967_v56 = vadd.f32 1e-05, %v3935_v9  ;;  %v4239_v21 = vsel %vm90_vm0, %v11118_v46, 0.0  ;;  %v4050_v14 = vmul.f32 %v8117_v43, %v10908_v31 }
 0xc76   :  { %v3856_v27 = vpop.xlane.xlu1 %3855  ;;  %4240 = vadd.xlane.f32.xlu0 %v4239_v21  ;;  %v3895_v2 = vpop.xlane.xlu0 %3894  ;;  %v4124_v39 = vadd.f32 %v11031_v18, %v4088_v13  ;;  %v4121_v25 = vadd.f32 %v11031_v18, %v4085_v51 }
 0xc77   :  { %8124 = vrsqrt.f32 %v3990_v26  ;;  %v3936_v45 = vmul.f32 0.03125, %v3856_v27  ;;  %v3949_v12 = vmul.f32 0.03125, %v3895_v2  ;;  %v4086_v54 = vmul.f32 %v11027_v40, %v4050_v14 }
 0xc78   :  { %8126 = vrsqrt.f32 %v3967_v56  ;;  %v11129_v6 = vadd.f32 %v4124_v39, %v10262_v19  ;;  %v11132_v55 = vadd.f32 %v4121_v25, %v10286_v61 }
 0xc79   :  { %v3968_v31 = vadd.f32 1e-05, %v3936_v45  ;;  %v3981_v20 = vadd.f32 1e-05, %v3949_v12  ;;  %v4122_v17 = vadd.f32 %v11031_v18, %v4086_v54 }
 0xc7a   :  { %v4242_v1 = vsel %vm90_vm0, %v11129_v6, 0.0  ;;  %v3898_v36 = vpop.xlane.xlu1 %3897  ;;  %v4233_v34 = vsel %vm90_vm0, %v11132_v55, 0.0  ;;  %v3847_v63 = vpop.xlane.xlu0 %3846 }
 0xc7b   :  { %8128 = vrsqrt.f32 %v3968_v31  ;;  %4243 = vadd.xlane.f32.xlu1 %v4242_v1  ;;  %v3950_v58 = vmul.f32 0.03125, %v3898_v36  ;;  %4234 = vadd.xlane.f32.xlu0 %v4233_v34  ;;  %v3933_v19 = vmul.f32 0.03125, %v3847_v63  ;;  %v11140_v61 = vadd.f32 %v4122_v17, %v10278_v8 }
 0xc7c   :  { %v8119_v50 = vpop.eup %8118  ;;  %8130 = vrsqrt.f32 %v3981_v20 }
 0xc7d   :  { %v3982_v15 = vadd.f32 1e-05, %v3950_v58  ;;  %v3965_v38 = vadd.f32 1e-05, %v3933_v19  ;;  %v4236_v41 = vsel %vm90_vm0, %v11140_v61, 0.0  ;;  %v4055_v24 = vmul.f32 %v8119_v50, %v10916_v32 }
 0xc7e   :  { %v3850_v9 = vpop.xlane.xlu1 %3849  ;;  %v3889_v43 = vpop.xlane.xlu0 %3888 }
 0xc7f   :  { %8132 = vrsqrt.f32 %v3982_v15  ;;  %4237 = vadd.xlane.f32.xlu1 %v4236_v41  ;;  %v3934_v13 = vmul.f32 0.03125, %v3850_v9  ;;  %v3947_v51 = vmul.f32 0.03125, %v3889_v43  ;;  %v4091_v26 = vmul.f32 %v11027_v40, %v4055_v24 }
 0xc80   :  { %v8121_v56 = vpop.eup %8120  ;;  %8134 = vrsqrt.f32 %v3965_v38 }
 0xc81   :  { %v8123_v8 = vpop.eup %8122  ;;  %v3966_v21 = vadd.f32 1e-05, %v3934_v13  ;;  %v3979_v14 = vadd.f32 1e-05, %v3947_v51  ;;  %v4127_v27 = vadd.f32 %v11031_v18, %v4091_v26  ;;  %v4056_v2 = vmul.f32 %v8121_v56, %v10921_v44 }
 0xc82   :  { %v3892_v39 = vpop.xlane.xlu1 %3891  ;;  %v3841_v25 = vpop.xlane.xlu0 %3840  ;;  %v4053_v32 = vmul.f32 %v8123_v8, %v10924_v59 }
 0xc83   :  { %8136 = vrsqrt.f32 %v3966_v21  ;;  %v3948_v45 = vmul.f32 0.03125, %v3892_v39  ;;  %v3931_v12 = vmul.f32 0.03125, %v3841_v25  ;;  %v11150_v54 = vadd.f32 %v4127_v27, %v10233_v60 }
 0xc84   :  { %v8125_v31 = vpop.eup %8124  ;;  %8138 = vrsqrt.f32 %v3979_v14  ;;  %v4092_v20 = vmul.f32 %v11027_v40, %v4056_v2  ;;  %v4089_v17 = vmul.f32 %v11027_v40, %v4053_v32  ;;  %v13118_v32 = vld [vmem:[#allocation8_spill] sm:$0xff] }
 0xc85   :  { %v8127_v1 = vpop.eup %8126  ;;  %v3980_v36 = vadd.f32 1e-05, %v3948_v45  ;;  %v3963_v34 = vadd.f32 1e-05, %v3931_v12  ;;  %v4251_v44 = vsel %vm90_vm0, %v11150_v54, 0.0  ;;  %v4054_v59 = vmul.f32 %v8125_v31, %v10932_v22 }
 0xc86   :  { %v3844_v63 = vpop.xlane.xlu1 %3843  ;;  %4252 = vadd.xlane.f32.xlu0 %v4251_v44  ;;  %v3883_v58 = vpop.xlane.xlu0 %3882  ;;  %v4128_v60 = vadd.f32 %v11031_v18, %v4092_v20  ;;  %v4125_v19 = vadd.f32 %v11031_v18, %v4089_v17  ;;  %v4031_v50 = vmul.f32 %v8127_v1, %v10935_v3 }
 0xc87   :  { %8140 = vrsqrt.f32 %v3980_v36  ;;  %v3932_v15 = vmul.f32 0.03125, %v3844_v63  ;;  %v3945_v38 = vmul.f32 0.03125, %v3883_v58  ;;  %v4090_v41 = vmul.f32 %v11027_v40, %v4054_v59 }
 0xc88   :  { %v8129_v24 = vpop.eup %8128  ;;  %8142 = vrsqrt.f32 %v3963_v34  ;;  %v11162_v9 = vadd.f32 %v4128_v60, %v10238_v23  ;;  %v11165_v22 = vadd.f32 %v4125_v19, %v10256_v53  ;;  %v4067_v43 = vmul.f32 %v11027_v40, %v4031_v50  ;;  %v13119_v50 = vld [vmem:[#allocation6_spill] sm:$0xff] }
 0xc89   :  { %v8131_v13 = vpop.eup %8130  ;;  %v3964_v51 = vadd.f32 1e-05, %v3932_v15  ;;  %v3977_v26 = vadd.f32 1e-05, %v3945_v38  ;;  %v4126_v3 = vadd.f32 %v11031_v18, %v4090_v41  ;;  %v4032_v56 = vmul.f32 %v8129_v24, %v10944_v28  ;;  %v13120_v15 = vld [vmem:[#allocation9_spill] sm:$0xff] }
 0xc8a   :  { %v4254_v8 = vsel %vm90_vm0, %v11162_v9, 0.0  ;;  %v3886_v21 = vpop.xlane.xlu1 %3885  ;;  %v4245_v23 = vsel %vm90_vm0, %v11165_v22, 0.0  ;;  %v3835_v14 = vpop.xlane.xlu0 %3834  ;;  %v4103_v53 = vadd.f32 %v11031_v18, %v4067_v43  ;;  %v4045_v27 = vmul.f32 %v8131_v13, %v10947_v35 }
 0xc8b   :  { %8144 = vrsqrt.f32 %v3964_v51  ;;  %4255 = vadd.xlane.f32.xlu1 %v4254_v8  ;;  %v3946_v2 = vmul.f32 0.03125, %v3886_v21  ;;  %4246 = vadd.xlane.f32.xlu0 %v4245_v23  ;;  %v3929_v39 = vmul.f32 0.03125, %v3835_v14  ;;  %v11177_v25 = vadd.f32 %v4126_v3, %v10259_v30  ;;  %v13121_v8 = vld [vmem:[#allocation7_spill] sm:$0xff] }
 0xc8c   :  { %v8133_v28 = vpop.eup %8132  ;;  %8146 = vrsqrt.f32 %v3977_v26  ;;  %v11180_v45 = vadd.f32 %v4103_v53, %v13118_v32  ;;  %v4068_v12 = vmul.f32 %v11027_v40, %v4032_v56  ;;  %v4081_v31 = vmul.f32 %v11027_v40, %v4045_v27 }
 0xc8d   :  { %v8135_v20 = vpop.eup %8134  ;;  %v3978_v17 = vadd.f32 1e-05, %v3946_v2  ;;  %v3961_v35 = vadd.f32 1e-05, %v3929_v39  ;;  %v4248_v1 = vsel %vm90_vm0, %v11177_v25, 0.0  ;;  %v4046_v36 = vmul.f32 %v8133_v28, %v10956_v16 }
 0xc8e   :  { %v3838_v34 = vpop.xlane.xlu1 %3837  ;;  %v4179_v30 = vsel %vm90_vm0, %v11180_v45, 0.0  ;;  %v4104_v44 = vadd.f32 %v11031_v18, %v4068_v12  ;;  %v4117_v59 = vadd.f32 %v11031_v18, %v4081_v31  ;;  %v4029_v63 = vmul.f32 %v8135_v20, %v10959_v0  ;;  %v13123_v20 = vld [vmem:[#allocation10_spill] sm:$0xff] }
 0xc8f   :  { %8148 = vrsqrt.f32 %v3978_v17  ;;  %4249 = vadd.xlane.f32.xlu1 %v4248_v1  ;;  %v3930_v58 = vmul.f32 0.03125, %v3838_v34  ;;  %4180 = vadd.xlane.f32.xlu0 %v4179_v30  ;;  %v4082_v60 = vmul.f32 %v11027_v40, %v4046_v36  ;;  %v13124_v36 = vld [vmem:[#allocation11_spill] sm:$0xff] }
 0xc90   :  { %v8137_v19 = vpop.eup %8136  ;;  %8150 = vrsqrt.f32 %v3961_v35  ;;  %v11194_v16 = vadd.f32 %v4104_v44, %v13119_v50  ;;  %v11197_v38 = vadd.f32 %v4117_v59, %v13120_v15  ;;  %v4065_v41 = vmul.f32 %v11027_v40, %v4029_v63  ;;  %v13127_v15 = vld [vmem:[#allocation21_spill] sm:$0xff] }
 0xc91   :  { %v8139_v24 = vpop.eup %8138  ;;  %v3962_v43 = vadd.f32 1e-05, %v3930_v58  ;;  %v4118_v0 = vadd.f32 %v11031_v18, %v4082_v60  ;;  %v4030_v13 = vmul.f32 %v8137_v19, %v10968_v49  ;;  %v13122_v49 = vld [vmem:[#allocation20_spill] sm:$0xff] }
 0xc92   :  { %v4182_v51 = vsel %vm90_vm0, %v11194_v16, 0.0  ;;  %v4221_v26 = vsel %vm90_vm0, %v11197_v38, 0.0  ;;  %v4101_v3 = vadd.f32 %v11031_v18, %v4065_v41  ;;  %v4043_v56 = vmul.f32 %v8139_v24, %v10971_v33  ;;  %v13126_v19 = vld [vmem:[#allocation16_spill] sm:$0xff] }
 0xc93   :  { %8152 = vrsqrt.f32 %v3962_v43  ;;  %4183 = vadd.xlane.f32.xlu1 %v4182_v51  ;;  %4222 = vadd.xlane.f32.xlu0 %v4221_v26  ;;  %v11209_v21 = vadd.f32 %v4118_v0, %v13121_v8  ;;  %v4066_v23 = vmul.f32 %v11027_v40, %v4030_v13  ;;  %v13128_v0 = vld [vmem:[#allocation12_spill] sm:$0xff]  ;;  %v13129_v8 = vld [vmem:[#allocation17_spill] sm:$0xff] }
 0xc94   :  { %v8141_v14 = vpop.eup %8140  ;;  %v11213_v53 = vadd.f32 %v4101_v3, %v13122_v49  ;;  %v4079_v27 = vmul.f32 %v11027_v40, %v4043_v56 }
 0xc95   :  { %v8143_v2 = vpop.eup %8142  ;;  %v4224_v39 = vsel %vm90_vm0, %v11209_v21, 0.0  ;;  %v4102_v33 = vadd.f32 %v11031_v18, %v4066_v23  ;;  %v4044_v28 = vmul.f32 %v8141_v14, %v10980_v42 }
 0xc96   :  { %v4173_v32 = vsel %vm90_vm0, %v11213_v53, 0.0  ;;  %v4115_v12 = vadd.f32 %v11031_v18, %v4079_v27  ;;  %v4027_v31 = vmul.f32 %v8143_v2, %v10983_v62  ;;  %v13125_v62 = vld [vmem:[#allocation15_spill] sm:$0xff]  ;;  %v13130_v27 = vld [vmem:[#allocation2_spill] sm:$0xff] }
 0xc97   :  { %4225 = vadd.xlane.f32.xlu1 %v4224_v39  ;;  %4174 = vadd.xlane.f32.xlu0 %v4173_v32  ;;  %v11225_v17 = vadd.f32 %v4102_v33, %v13123_v20  ;;  %v4080_v35 = vmul.f32 %v11027_v40, %v4044_v28  ;;  %v13131_v39 = vld [vmem:[#allocation22_spill] sm:$0xff] }
 0xc98   :  { %v8145_v1 = vpop.eup %8144  ;;  %v11229_v34 = vadd.f32 %v4115_v12, %v13124_v36  ;;  %v4063_v42 = vmul.f32 %v11027_v40, %v4027_v31  ;;  %v13132_v12 = vld [vmem:[#allocation23_spill] sm:$0xff]  ;;  %v13133_v36 = vld [vmem:[#allocation26_spill] sm:$0xff] }
 0xc99   :  { %v8147_v30 = vpop.eup %8146  ;;  %v4176_v44 = vsel %vm90_vm0, %v11225_v17, 0.0  ;;  %v4116_v59 = vadd.f32 %v11031_v18, %v4080_v35  ;;  %v4028_v63 = vmul.f32 %v8145_v1, %v13125_v62 }
 0xc9a   :  { %v4215_v58 = vsel %vm90_vm0, %v11229_v34, 0.0  ;;  %v4099_v60 = vadd.f32 %v11031_v18, %v4063_v42  ;;  %v4041_v50 = vmul.f32 %v8147_v30, %v13126_v19 }
 0xc9b   :  { %4177 = vadd.xlane.f32.xlu1 %v4176_v44  ;;  %4216 = vadd.xlane.f32.xlu0 %v4215_v58  ;;  %v11241_v41 = vadd.f32 %v4116_v59, %v13127_v15  ;;  %v4064_v24 = vmul.f32 %v11027_v40, %v4028_v63  ;;  %v13134_v59 = vld [vmem:[#allocation13_spill] sm:$0xff]  ;;  %v13135_v58 = vld [vmem:[#allocation14_spill] sm:$0xff] }
 0xc9c   :  { %v8149_v43 = vpop.eup %8148  ;;  %v11245_v13 = vadd.f32 %v4099_v60, %v13128_v0  ;;  %v4077_v51 = vmul.f32 %v11027_v40, %v4041_v50 }
 0xc9d   :  { %v8151_v26 = vpop.eup %8150  ;;  %v4218_v3 = vsel %vm90_vm0, %v11241_v41, 0.0  ;;  %v4100_v56 = vadd.f32 %v11031_v18, %v4064_v24  ;;  %v4042_v23 = vmul.f32 %v8149_v43, %v13129_v8  ;;  %v13136_v24 = vld [vmem:[#allocation24_spill] sm:$0xff] }
 0xc9e   :  { %v4167_v14 = vsel %vm90_vm0, %v11245_v13, 0.0  ;;  %v4113_v49 = vadd.f32 %v11031_v18, %v4077_v51  ;;  %v4025_v2 = vmul.f32 %v8151_v26, %v13130_v27 }
 0xc9f   :  { %4219 = vadd.xlane.f32.xlu1 %v4218_v3  ;;  %4168 = vadd.xlane.f32.xlu0 %v4167_v14  ;;  %v11257_v33 = vadd.f32 %v4100_v56, %v13131_v39  ;;  %v4078_v28 = vmul.f32 %v11027_v40, %v4042_v23 }
 0xca0   :  { %v8153_v32 = vpop.eup %8152  ;;  %v11261_v31 = vadd.f32 %v4113_v49, %v13132_v12  ;;  %v4061_v20 = vmul.f32 %v11027_v40, %v4025_v2 }
 0xca1   :  { %v4170_v35 = vsel %vm90_vm0, %v11257_v33, 0.0  ;;  %v4114_v1 = vadd.f32 %v11031_v18, %v4078_v28  ;;  %v4026_v42 = vmul.f32 %v8153_v32, %v13133_v36 }
 0xca2   :  { %v4209_v30 = vsel %vm90_vm0, %v11261_v31, 0.0  ;;  %v4097_v44 = vadd.f32 %v11031_v18, %v4061_v20 }
 0xca3   :  { %4171 = vadd.xlane.f32.xlu1 %v4170_v35  ;;  %4210 = vadd.xlane.f32.xlu0 %v4209_v30  ;;  %v11272_v62 = vadd.f32 %v4114_v1, %v13134_v59  ;;  %v4062_v63 = vmul.f32 %v11027_v40, %v4026_v42 }
 0xca4   :  { %v11276_v60 = vadd.f32 %v4097_v44, %v13135_v58 }
 0xca5   :  { %v4212_v19 = vsel %vm90_vm0, %v11272_v62, 0.0  ;;  %v4098_v50 = vadd.f32 %v11031_v18, %v4062_v63 }
 0xca6   :  { %v4161_v15 = vsel %vm90_vm0, %v11276_v60, 0.0 }
 0xca7   :  { %4213 = vadd.xlane.f32.xlu1 %v4212_v19  ;;  %4162 = vadd.xlane.f32.xlu0 %v4161_v15  ;;  %v11284_v43 = vadd.f32 %v4098_v50, %v13136_v24 }
 0xca9   :  { %v4164_v0 = vsel %vm90_vm0, %v11284_v43, 0.0 }
 0xcab   :  { %4165 = vadd.xlane.f32.xlu1 %v4164_v0 }
 0xcbf   :  { %v4193_v40 = vpop.xlane.xlu0 %4192 }
 0xcc0   :  { %v4267_v51 = vmul.f32 0.03125, %v4193_v40 }
 0xcc2   :  { %v11289_v26 = vsub.f32 %v11038_v4, %v4267_v51 }
 0xcc3   :  { %v4196_v3 = vpop.xlane.xlu1 %4195 }
 0xcc4   :  { %v4268_v56 = vmul.f32 0.03125, %v4196_v3  ;;  %v4187_v18 = vpop.xlane.xlu0 %4186  ;;  %v4331_v8 = vmul.f32 %v11289_v26, %v11289_v26 }
 0xcc5   :  { %v4265_v23 = vmul.f32 0.03125, %v4187_v18 }
 0xcc6   :  { %v11294_v14 = vsub.f32 %v11048_v37, %v4268_v56  ;;  %v4383_v49 = vsel %vm90_vm0, %v4331_v8, 0.0 }
 0xcc7   :  { %v11298_v27 = vsub.f32 %v11052_v5, %v4265_v23  ;;  %v4190_v2 = vpop.xlane.xlu1 %4189  ;;  %4384 = vadd.xlane.f32.xlu0 %v4383_v49 }
 0xcc8   :  { %v4266_v39 = vmul.f32 0.03125, %v4190_v2  ;;  %v4332_v4 = vmul.f32 %v11294_v14, %v11294_v14 }
 0xcc9   :  { %v4329_v28 = vmul.f32 %v11298_v27, %v11298_v27 }
 0xcca   :  { %v11305_v32 = vsub.f32 %v11060_v7, %v4266_v39  ;;  %v4386_v37 = vsel %vm90_vm0, %v4332_v4, 0.0 }
 0xccb   :  { %4387 = vadd.xlane.f32.xlu1 %v4386_v37  ;;  %v4377_v12 = vsel %vm90_vm0, %v4329_v28, 0.0 }
 0xccc   :  { %4378 = vadd.xlane.f32.xlu0 %v4377_v12  ;;  %v4330_v5 = vmul.f32 %v11305_v32, %v11305_v32 }
 0xcce   :  { %v4380_v20 = vsel %vm90_vm0, %v4330_v5, 0.0 }
 0xccf   :  { %4381 = vadd.xlane.f32.xlu1 %v4380_v20  ;;  %v4205_v35 = vpop.xlane.xlu0 %4204 }
 0xcd0   :  { %v4271_v1 = vmul.f32 0.03125, %v4205_v35 }
 0xcd2   :  { %v11313_v36 = vsub.f32 %v11070_v47, %v4271_v1 }
 0xcd3   :  { %v4208_v42 = vpop.xlane.xlu1 %4207 }
 0xcd4   :  { %v4272_v7 = vmul.f32 0.03125, %v4208_v42  ;;  %v4199_v30 = vpop.xlane.xlu0 %4198  ;;  %v4335_v44 = vmul.f32 %v11313_v36, %v11313_v36 }
 0xcd5   :  { %v4269_v59 = vmul.f32 0.03125, %v4199_v30 }
 0xcd6   :  { %v11318_v63 = vsub.f32 %v11080_v57, %v4272_v7  ;;  %v4395_v58 = vsel %vm90_vm0, %v4335_v44, 0.0 }
 0xcd7   :  { %v11322_v19 = vsub.f32 %v11084_v52, %v4269_v59  ;;  %v4202_v50 = vpop.xlane.xlu1 %4201  ;;  %4396 = vadd.xlane.f32.xlu0 %v4395_v58 }
 0xcd8   :  { %v4270_v15 = vmul.f32 0.03125, %v4202_v50  ;;  %v4336_v47 = vmul.f32 %v11318_v63, %v11318_v63 }
 0xcd9   :  { %v4333_v24 = vmul.f32 %v11322_v19, %v11322_v19 }
 0xcda   :  { %v11329_v0 = vsub.f32 %v11092_v11, %v4270_v15  ;;  %v4398_v57 = vsel %vm90_vm0, %v4336_v47, 0.0 }
 0xcdb   :  { %4399 = vadd.xlane.f32.xlu1 %v4398_v57  ;;  %v4389_v40 = vsel %vm90_vm0, %v4333_v24, 0.0 }
 0xcdc   :  { %4390 = vadd.xlane.f32.xlu0 %v4389_v40  ;;  %v4334_v52 = vmul.f32 %v11329_v0, %v11329_v0 }
 0xcde   :  { %v4392_v51 = vsel %vm90_vm0, %v4334_v52, 0.0 }
 0xcdf   :  { %4393 = vadd.xlane.f32.xlu1 %v4392_v51 }
 0xcef   :  { %v4229_v3 = vpop.xlane.xlu0 %4228 }
 0xcf0   :  { %v4279_v56 = vmul.f32 0.03125, %v4229_v3 }
 0xcf2   :  { %v11337_v18 = vsub.f32 %v11101_v10, %v4279_v56 }
 0xcf3   :  { %v4232_v8 = vpop.xlane.xlu1 %4231 }
 0xcf4   :  { %v4280_v11 = vmul.f32 0.03125, %v4232_v8  ;;  %v4343_v23 = vmul.f32 %v11337_v18, %v11337_v18 }
 0xcf6   :  { %v11342_v49 = vsub.f32 %v11108_v48, %v4280_v11  ;;  %v4419_v2 = vsel %vm90_vm0, %v4343_v23, 0.0 }
 0xcf7   :  { %4420 = vadd.xlane.f32.xlu0 %v4419_v2 }
 0xcf8   :  { %v4344_v39 = vmul.f32 %v11342_v49, %v11342_v49 }
 0xcfa   :  { %v4422_v4 = vsel %vm90_vm0, %v4344_v39, 0.0 }
 0xcfb   :  { %4423 = vadd.xlane.f32.xlu1 %v4422_v4 }
 0xcff   :  { %v4241_v28 = vpop.xlane.xlu0 %4240 }
 0xd00   :  { %v4283_v10 = vmul.f32 0.03125, %v4241_v28 }
 0xd02   :  { %v11349_v37 = vsub.f32 %v11118_v46, %v4283_v10 }
 0xd04   :  { %v4244_v12 = vpop.xlane.xlu1 %4243  ;;  %v4235_v5 = vpop.xlane.xlu0 %4234  ;;  %v4347_v48 = vmul.f32 %v11349_v37, %v11349_v37 }
 0xd05   :  { %v4284_v20 = vmul.f32 0.03125, %v4244_v12  ;;  %v4281_v35 = vmul.f32 0.03125, %v4235_v5 }
 0xd06   :  { %v4431_v1 = vsel %vm90_vm0, %v4347_v48, 0.0 }
 0xd07   :  { %v11355_v42 = vsub.f32 %v11129_v6, %v4284_v20  ;;  %v11358_v7 = vsub.f32 %v11132_v55, %v4281_v35  ;;  %4432 = vadd.xlane.f32.xlu0 %v4431_v1 }
 0xd08   :  { %v4238_v30 = vpop.xlane.xlu1 %4237 }
 0xd09   :  { %v4282_v44 = vmul.f32 0.03125, %v4238_v30  ;;  %v4348_v46 = vmul.f32 %v11355_v42, %v11355_v42  ;;  %v4345_v59 = vmul.f32 %v11358_v7, %v11358_v7 }
 0xd0b   :  { %v11365_v58 = vsub.f32 %v11140_v61, %v4282_v44  ;;  %v4434_v50 = vsel %vm90_vm0, %v4348_v46, 0.0  ;;  %v4425_v6 = vsel %vm90_vm0, %v4345_v59, 0.0 }
 0xd0c   :  { %4435 = vadd.xlane.f32.xlu1 %v4434_v50  ;;  %4426 = vadd.xlane.f32.xlu0 %v4425_v6 }
 0xd0d   :  { %v4346_v55 = vmul.f32 %v11365_v58, %v11365_v58 }
 0xd0f   :  { %v4428_v15 = vsel %vm90_vm0, %v4346_v55, 0.0  ;;  %v4253_v47 = vpop.xlane.xlu0 %4252 }
 0xd10   :  { %4429 = vadd.xlane.f32.xlu1 %v4428_v15  ;;  %v4287_v24 = vmul.f32 0.03125, %v4253_v47 }
 0xd12   :  { %v11373_v57 = vsub.f32 %v11150_v54, %v4287_v24 }
 0xd14   :  { %v4256_v40 = vpop.xlane.xlu1 %4255  ;;  %v4247_v61 = vpop.xlane.xlu0 %4246  ;;  %v4351_v52 = vmul.f32 %v11373_v57, %v11373_v57 }
 0xd15   :  { %v4288_v51 = vmul.f32 0.03125, %v4256_v40  ;;  %v4285_v3 = vmul.f32 0.03125, %v4247_v61 }
 0xd16   :  { %v4443_v56 = vsel %vm90_vm0, %v4351_v52, 0.0 }
 0xd17   :  { %v11379_v8 = vsub.f32 %v11162_v9, %v4288_v51  ;;  %v11382_v11 = vsub.f32 %v11165_v22, %v4285_v3  ;;  %4444 = vadd.xlane.f32.xlu0 %v4443_v56 }
 0xd18   :  { %v4250_v23 = vpop.xlane.xlu1 %4249  ;;  %v4181_v2 = vpop.xlane.xlu0 %4180 }
 0xd19   :  { %v4286_v54 = vmul.f32 0.03125, %v4250_v23  ;;  %v4263_v39 = vmul.f32 0.03125, %v4181_v2  ;;  %v4352_v4 = vmul.f32 %v11379_v8, %v11379_v8  ;;  %v4349_v28 = vmul.f32 %v11382_v11, %v11382_v11 }
 0xd1b   :  { %v11389_v10 = vsub.f32 %v11177_v25, %v4286_v54  ;;  %v11392_v9 = vsub.f32 %v11180_v45, %v4263_v39  ;;  %v4446_v22 = vsel %vm90_vm0, %v4352_v4, 0.0  ;;  %v4437_v12 = vsel %vm90_vm0, %v4349_v28, 0.0 }
 0xd1c   :  { %4447 = vadd.xlane.f32.xlu1 %v4446_v22  ;;  %v4184_v5 = vpop.xlane.xlu1 %4183  ;;  %4438 = vadd.xlane.f32.xlu0 %v4437_v12  ;;  %v4223_v48 = vpop.xlane.xlu0 %4222 }
 0xd1d   :  { %v4264_v20 = vmul.f32 0.03125, %v4184_v5  ;;  %v4277_v35 = vmul.f32 0.03125, %v4223_v48  ;;  %v4350_v1 = vmul.f32 %v11389_v10, %v11389_v10  ;;  %v4327_v25 = vmul.f32 %v11392_v9, %v11392_v9 }
 0xd1f   :  { %v11401_v30 = vsub.f32 %v11194_v16, %v4264_v20  ;;  %v11404_v45 = vsub.f32 %v11197_v38, %v4277_v35  ;;  %v4440_v44 = vsel %vm90_vm0, %v4350_v1, 0.0  ;;  %v4371_v46 = vsel %vm90_vm0, %v4327_v25, 0.0 }
 0xd20   :  { %4441 = vadd.xlane.f32.xlu1 %v4440_v44  ;;  %v4226_v59 = vpop.xlane.xlu1 %4225  ;;  %4372 = vadd.xlane.f32.xlu0 %v4371_v46  ;;  %v4175_v50 = vpop.xlane.xlu0 %4174 }
 0xd21   :  { %v4278_v6 = vmul.f32 0.03125, %v4226_v59  ;;  %v4261_v55 = vmul.f32 0.03125, %v4175_v50  ;;  %v4328_v15 = vmul.f32 %v11401_v30, %v11401_v30  ;;  %v4341_v16 = vmul.f32 %v11404_v45, %v11404_v45 }
 0xd23   :  { %v11413_v47 = vsub.f32 %v11209_v21, %v4278_v6  ;;  %v11416_v38 = vsub.f32 %v11213_v53, %v4261_v55  ;;  %v4374_v24 = vsel %vm90_vm0, %v4328_v15, 0.0  ;;  %v4413_v40 = vsel %vm90_vm0, %v4341_v16, 0.0 }
 0xd24   :  { %4375 = vadd.xlane.f32.xlu1 %v4374_v24  ;;  %v4178_v61 = vpop.xlane.xlu1 %4177  ;;  %4414 = vadd.xlane.f32.xlu0 %v4413_v40  ;;  %v4217_v52 = vpop.xlane.xlu0 %4216 }
 0xd25   :  { %v4262_v51 = vmul.f32 0.03125, %v4178_v61  ;;  %v4275_v3 = vmul.f32 0.03125, %v4217_v52  ;;  %v4342_v56 = vmul.f32 %v11413_v47, %v11413_v47  ;;  %v4325_v21 = vmul.f32 %v11416_v38, %v11416_v38 }
 0xd27   :  { %v11425_v23 = vsub.f32 %v11225_v17, %v4262_v51  ;;  %v11428_v53 = vsub.f32 %v11229_v34, %v4275_v3  ;;  %v4416_v2 = vsel %vm90_vm0, %v4342_v56, 0.0  ;;  %v4365_v54 = vsel %vm90_vm0, %v4325_v21, 0.0 }
 0xd28   :  { %4417 = vadd.xlane.f32.xlu1 %v4416_v2  ;;  %v4220_v39 = vpop.xlane.xlu1 %4219  ;;  %4366 = vadd.xlane.f32.xlu0 %v4365_v54  ;;  %v4169_v4 = vpop.xlane.xlu0 %4168 }
 0xd29   :  { %v4276_v28 = vmul.f32 0.03125, %v4220_v39  ;;  %v4259_v22 = vmul.f32 0.03125, %v4169_v4  ;;  %v4326_v12 = vmul.f32 %v11425_v23, %v11425_v23  ;;  %v4339_v17 = vmul.f32 %v11428_v53, %v11428_v53 }
 0xd2b   :  { %v11437_v5 = vsub.f32 %v11241_v41, %v4276_v28  ;;  %v11440_v34 = vsub.f32 %v11245_v13, %v4259_v22  ;;  %v4368_v48 = vsel %vm90_vm0, %v4326_v12, 0.0  ;;  %v4407_v20 = vsel %vm90_vm0, %v4339_v17, 0.0 }
 0xd2c   :  { %4369 = vadd.xlane.f32.xlu1 %v4368_v48  ;;  %v4172_v35 = vpop.xlane.xlu1 %4171  ;;  %4408 = vadd.xlane.f32.xlu0 %v4407_v20  ;;  %v4211_v1 = vpop.xlane.xlu0 %4210 }
 0xd2d   :  { %v4260_v25 = vmul.f32 0.03125, %v4172_v35  ;;  %v4273_v44 = vmul.f32 0.03125, %v4211_v1  ;;  %v4340_v46 = vmul.f32 %v11437_v5, %v11437_v5  ;;  %v4323_v41 = vmul.f32 %v11440_v34, %v11440_v34 }
 0xd2f   :  { %v11449_v59 = vsub.f32 %v11257_v33, %v4260_v25  ;;  %v11452_v13 = vsub.f32 %v11261_v31, %v4273_v44  ;;  %v4410_v50 = vsel %vm90_vm0, %v4340_v46, 0.0  ;;  %v4359_v6 = vsel %vm90_vm0, %v4323_v41, 0.0 }
 0xd30   :  { %4411 = vadd.xlane.f32.xlu1 %v4410_v50  ;;  %v4214_v55 = vpop.xlane.xlu1 %4213  ;;  %4360 = vadd.xlane.f32.xlu0 %v4359_v6  ;;  %v4163_v15 = vpop.xlane.xlu0 %4162 }
 0xd31   :  { %v4274_v16 = vmul.f32 0.03125, %v4214_v55  ;;  %v4257_v24 = vmul.f32 0.03125, %v4163_v15  ;;  %v4324_v40 = vmul.f32 %v11449_v59, %v11449_v59  ;;  %v4337_v33 = vmul.f32 %v11452_v13, %v11452_v13 }
 0xd33   :  { %v11461_v61 = vsub.f32 %v11272_v62, %v4274_v16  ;;  %v11464_v31 = vsub.f32 %v11276_v60, %v4257_v24  ;;  %v4362_v52 = vsel %vm90_vm0, %v4324_v40, 0.0  ;;  %v4401_v51 = vsel %vm90_vm0, %v4337_v33, 0.0 }
 0xd34   :  { %4363 = vadd.xlane.f32.xlu1 %v4362_v52  ;;  %v4166_v3 = vpop.xlane.xlu1 %4165  ;;  %4402 = vadd.xlane.f32.xlu0 %v4401_v51 }
 0xd35   :  { %v4258_v56 = vmul.f32 0.03125, %v4166_v3  ;;  %v4338_v21 = vmul.f32 %v11461_v61, %v11461_v61  ;;  %v4321_v2 = vmul.f32 %v11464_v31, %v11464_v31 }
 0xd37   :  { %v11473_v62 = vsub.f32 %v11284_v43, %v4258_v56  ;;  %v4404_v60 = vsel %vm90_vm0, %v4338_v21, 0.0  ;;  %v4353_v54 = vsel %vm90_vm0, %v4321_v2, 0.0 }
 0xd38   :  { %4405 = vadd.xlane.f32.xlu1 %v4404_v60  ;;  %4354 = vadd.xlane.f32.xlu0 %v4353_v54 }
 0xd39   :  { %v4322_v39 = vmul.f32 %v11473_v62, %v11473_v62 }
 0xd3b   :  { %v4356_v4 = vsel %vm90_vm0, %v4322_v39, 0.0 }
 0xd3c   :  { %4357 = vadd.xlane.f32.xlu1 %v4356_v4 }
 0xd50   :  { %v4385_v28 = vpop.xlane.xlu0 %4384 }
 0xd51   :  { %v4459_v35 = vmul.f32 0.03125, %v4385_v28 }
 0xd53   :  { %v4491_v46 = vadd.f32 1e-05, %v4459_v35 }
 0xd54   :  { %v4388_v22 = vpop.xlane.xlu1 %4387 }
 0xd55   :  { %v4379_v12 = vpop.xlane.xlu0 %4378  ;;  %v4460_v44 = vmul.f32 0.03125, %v4388_v22  ;;  %8154 = vrsqrt.f32 %v4491_v46 }
 0xd56   :  { %v4457_v41 = vmul.f32 0.03125, %v4379_v12 }
 0xd57   :  { %v4492_v16 = vadd.f32 1e-05, %v4460_v44 }
 0xd58   :  { %v4382_v48 = vpop.xlane.xlu1 %4381  ;;  %v4489_v40 = vadd.f32 1e-05, %v4457_v41 }
 0xd59   :  { %v4458_v52 = vmul.f32 0.03125, %v4382_v48  ;;  %8156 = vrsqrt.f32 %v4492_v16 }
 0xd5a   :  { %8158 = vrsqrt.f32 %v4489_v40 }
 0xd5b   :  { %v4490_v54 = vadd.f32 1e-05, %v4458_v52 }
 0xd60   :  { %v4397_v17 = vpop.xlane.xlu0 %4396 }
 0xd61   :  { %v4463_v50 = vmul.f32 0.03125, %v4397_v17 }
 0xd62   :  { %v8155_v44 = vpop.eup %8154 }
 0xd63   :  { %v4495_v51 = vadd.f32 1e-05, %v4463_v50 }
 0xd64   :  { %v4400_v20 = vpop.xlane.xlu1 %4399 }
 0xd65   :  { %v4391_v43 = vpop.xlane.xlu0 %4390  ;;  %v4464_v55 = vmul.f32 0.03125, %v4400_v20  ;;  %8160 = vrsqrt.f32 %v4495_v51  ;;  %v8382_v51 = vld [vmem:[%s12972_s5 + $0x10] sm:$0xff] }
 0xd66   :  { %v4461_v24 = vmul.f32 0.03125, %v4391_v43  ;;  %v8157_v40 = vpop.eup %8156 }
 0xd67   :  { %v4496_v3 = vadd.f32 1e-05, %v4464_v55 }
 0xd68   :  { %v4394_v25 = vpop.xlane.xlu1 %4393  ;;  %v4493_v21 = vadd.f32 1e-05, %v4461_v24 }
 0xd69   :  { %v4462_v33 = vmul.f32 0.03125, %v4394_v25  ;;  %8162 = vrsqrt.f32 %v4496_v3  ;;  %v13137_v3 = vld [vmem:[#allocation4_spill] sm:$0xff] }
 0xd6a   :  { %8164 = vrsqrt.f32 %v4493_v21  ;;  %v4555_v21 = vmul.f32 %v8155_v44, %v11289_v26 }
 0xd6b   :  { %v4494_v60 = vadd.f32 1e-05, %v4462_v33 }
 0xd6d   :  { %8166 = vrsqrt.f32 %v4494_v60  ;;  %v8159_v60 = vpop.eup %8158 }
 0xd6e   :  { %8168 = vrsqrt.f32 %v4490_v54 }
 0xd80   :  { %v4421_v1 = vpop.xlane.xlu0 %4420 }
 0xd81   :  { %v4471_v54 = vmul.f32 0.03125, %v4421_v1 }
 0xd83   :  { %v4503_v44 = vadd.f32 1e-05, %v4471_v54 }
 0xd84   :  { %v4424_v15 = vpop.xlane.xlu1 %4423 }
 0xd85   :  { %v4472_v55 = vmul.f32 0.03125, %v4424_v15 }
 0xd90   :  { %v4433_v6 = vpop.xlane.xlu0 %4432 }
 0xd91   :  { %v4475_v28 = vmul.f32 0.03125, %v4433_v6 }
 0xd93   :  { %v4507_v20 = vadd.f32 1e-05, %v4475_v28  ;;  %v4504_v28 = vadd.f32 1e-05, %v4472_v55 }
 0xd95   :  { %v4436_v56 = vpop.xlane.xlu1 %4435  ;;  %v4427_v2 = vpop.xlane.xlu0 %4426 }
 0xd96   :  { %v4476_v39 = vmul.f32 0.03125, %v4436_v56  ;;  %v4473_v50 = vmul.f32 0.03125, %v4427_v2  ;;  %v11484_v56 = vrot.slane %v8382_v51, %v13137_v3  ;;  %v8161_v2 = vpop.eup %8160 }
 0xd97   :  { %v4559_v55 = vmul.f32 %v8161_v2, %v11313_v36 }
 0xd98   :  { %v4508_v17 = vadd.f32 1e-05, %v4476_v39  ;;  %v4505_v39 = vadd.f32 1e-05, %v4473_v50  ;;  %v4591_v26 = vmul.f32 %v11484_v56, %v4555_v21 }
 0xd99   :  { %v4430_v22 = vpop.xlane.xlu1 %4429 }
 0xd9a   :  { %v4474_v43 = vmul.f32 0.03125, %v4430_v22 }
 0xd9c   :  { %v4506_v6 = vadd.f32 1e-05, %v4474_v43 }
 0xda0   :  { %v4445_v4 = vpop.xlane.xlu0 %4444 }
 0xda1   :  { %v4479_v12 = vmul.f32 0.03125, %v4445_v4  ;;  %v8163_v4 = vpop.eup %8162 }
 0xda3   :  { %v4511_v48 = vadd.f32 1e-05, %v4479_v12  ;;  %v4556_v12 = vmul.f32 %v8157_v40, %v11294_v14  ;;  %v4553_v14 = vmul.f32 %v8159_v60, %v11298_v27 }
 0xda5   :  { %8170 = vrsqrt.f32 %v4511_v48  ;;  %v4448_v35 = vpop.xlane.xlu1 %4447  ;;  %v4439_v25 = vpop.xlane.xlu0 %4438  ;;  %v4592_v40 = vmul.f32 %v11484_v56, %v4556_v12 }
 0xda6   :  { %v4480_v46 = vmul.f32 0.03125, %v4448_v35  ;;  %v4477_v41 = vmul.f32 0.03125, %v4439_v25  ;;  %8172 = vrsqrt.f32 %v4508_v17  ;;  %v8165_v17 = vpop.eup %8164  ;;  %v13138_v35 = vld [vmem:[#allocation5_spill] sm:$0xff] }
 0xda7   :  { %8174 = vrsqrt.f32 %v4507_v20  ;;  %v11489_v25 = vrot.slane %v8382_v51, %v13138_v35  ;;  %v8167_v1 = vpop.eup %8166  ;;  %v4557_v51 = vmul.f32 %v8165_v17, %v11322_v19 }
 0xda8   :  { %v4512_v16 = vadd.f32 1e-05, %v4480_v46  ;;  %v4509_v24 = vadd.f32 1e-05, %v4477_v41  ;;  %v8169_v41 = vpop.eup %8168  ;;  %v4558_v21 = vmul.f32 %v8167_v1, %v11329_v0 }
 0xda9   :  { %v4442_v33 = vpop.xlane.xlu1 %4441  ;;  %v4373_v52 = vpop.xlane.xlu0 %4372  ;;  %v11499_v54 = vadd.f32 %v11489_v25, %v4591_v26  ;;  %v4554_v60 = vmul.f32 %v8169_v41, %v11305_v32 }
 0xdaa   :  { %8176 = vrsqrt.f32 %v4512_v16  ;;  %v4478_v15 = vmul.f32 0.03125, %v4442_v33  ;;  %v4455_v48 = vmul.f32 0.03125, %v4373_v52 }
 0xdab   :  { %8178 = vrsqrt.f32 %v4509_v24  ;;  %v4560_v24 = vmul.f32 %v8163_v4, %v11318_v63  ;;  %v11505_v4 = vmul.f32 %v11484_v56, %v4553_v14  ;;  %v11514_v1 = vmul.f32 %v11484_v56, %v4554_v60 }
 0xdac   :  { %v4510_v22 = vadd.f32 1e-05, %v4478_v15  ;;  %8180 = vrsqrt.f32 %v4506_v6  ;;  %v4487_v6 = vadd.f32 1e-05, %v4455_v48  ;;  %v4593_v48 = vmul.f32 %v11484_v56, %v4557_v51 }
 0xdad   :  { %v4376_v20 = vpop.xlane.xlu1 %4375  ;;  %v4415_v43 = vpop.xlane.xlu0 %4414 }
 0xdae   :  { %8182 = vrsqrt.f32 %v4510_v22  ;;  %v4456_v46 = vmul.f32 0.03125, %v4376_v20  ;;  %v4469_v50 = vmul.f32 0.03125, %v4415_v43  ;;  %v11509_v22 = vadd.f32 %v11489_v25, %v4592_v40 }
 0xdaf   :  { %8184 = vrsqrt.f32 %v4505_v39  ;;  %v4595_v39 = vmul.f32 %v11484_v56, %v4559_v55  ;;  %v11527_v51 = vadd.f32 %v11489_v25, %v4593_v48 }
 0xdb0   :  { %8186 = vrsqrt.f32 %v4504_v28  ;;  %v4488_v16 = vadd.f32 1e-05, %v4456_v46  ;;  %v4501_v2 = vadd.f32 1e-05, %v4469_v50  ;;  %v4596_v28 = vmul.f32 %v11484_v56, %v4560_v24 }
 0xdb1   :  { %v4418_v33 = vpop.xlane.xlu1 %4417  ;;  %v4367_v52 = vpop.xlane.xlu0 %4366  ;;  %8188 = vrsqrt.f32 %v4503_v44  ;;  %v11518_v41 = vadd.f32 %v11489_v25, %v4595_v39 }
 0xdb2   :  { %v8171_v15 = vpop.eup %8170  ;;  %v4470_v36 = vmul.f32 0.03125, %v4418_v33  ;;  %v4453_v27 = vmul.f32 0.03125, %v4367_v52  ;;  %8190 = vrsqrt.f32 %v4488_v16  ;;  %v11523_v40 = vadd.f32 %v11489_v25, %v4596_v28 }
 0xdb3   :  { %v4575_v63 = vmul.f32 %v8171_v15, %v11373_v57  ;;  %v8173_v19 = vpop.eup %8172  ;;  %8192 = vrsqrt.f32 %v4487_v6  ;;  %v4594_v57 = vmul.f32 %v11484_v56, %v4558_v21 }
 0xdb4   :  { %v4502_v0 = vadd.f32 1e-05, %v4470_v36  ;;  %v4485_v12 = vadd.f32 1e-05, %v4453_v27  ;;  %v8175_v20 = vpop.eup %8174  ;;  %v4572_v50 = vmul.f32 %v8173_v19, %v11355_v42  ;;  %v4658_v48 = vpack.c.bf16 %v11523_v40, %v11518_v41 }
 0xdb5   :  { %v4370_v17 = vpop.xlane.xlu1 %4369  ;;  %v4409_v32 = vpop.xlane.xlu0 %4408  ;;  %v4611_v46 = vmul.f32 %v11484_v56, %v4575_v63  ;;  %v11530_v21 = vadd.f32 %v11489_v25, %v4594_v57 }
 0xdb6   :  { %8194 = vrsqrt.f32 %v4502_v0  ;;  %v4454_v43 = vmul.f32 0.03125, %v4370_v17  ;;  %v4467_v26 = vmul.f32 0.03125, %v4409_v32 }
 0xdb7   :  { %v8177_v44 = vpop.eup %8176  ;;  %8196 = vrsqrt.f32 %v4501_v2  ;;  %v11534_v60 = vadd.f32 %v11489_v25, %v4611_v46  ;;  %v4571_v2 = vmul.f32 %v8175_v20, %v11349_v37  ;;  %v4657_v37 = vpack.c.bf16 %v11530_v21, %v11527_v51 }
 0xdb8   :  { %v8179_v55 = vpop.eup %8178  ;;  %v4486_v14 = vadd.f32 1e-05, %v4454_v43  ;;  %v4499_v16 = vadd.f32 1e-05, %v4467_v26  ;;  %v4576_v24 = vmul.f32 %v8177_v44, %v11379_v8  ;;  %8198 = vrsqrt.f32 %v4485_v12 }
 0xdb9   :  { %v4412_v6 = vpop.xlane.xlu1 %4411  ;;  %v4361_v33 = vpop.xlane.xlu0 %4360  ;;  %v4573_v52 = vmul.f32 %v8179_v55, %v11382_v11  ;;  %13139 = vst [vmem:[#allocation8_spill] sm:$0xff] %v11534_v60  ;;  %v4608_v11 = vmul.f32 %v11484_v56, %v4572_v50  ;;  %v4607_v50 = vmul.f32 %v11484_v56, %v4571_v2 }
 0xdba   :  { %v8181_v42 = vpop.eup %8180  ;;  %8200 = vrsqrt.f32 %v4486_v14  ;;  %v4468_v15 = vmul.f32 0.03125, %v4412_v6  ;;  %v4451_v36 = vmul.f32 0.03125, %v4361_v33  ;;  %v4612_v8 = vmul.f32 %v11484_v56, %v4576_v24 }
 0xdbb   :  { %v8183_v27 = vpop.eup %8182  ;;  %8202 = vrsqrt.f32 %v4499_v16  ;;  %v4609_v57 = vmul.f32 %v11484_v56, %v4573_v52  ;;  %v4570_v20 = vmul.f32 %v8181_v42, %v11365_v58  ;;  %v11554_v58 = vadd.f32 %v11489_v25, %v4608_v11 }
 0xdbc   :  { %v8185_v63 = vpop.eup %8184  ;;  %v4500_v39 = vadd.f32 1e-05, %v4468_v15  ;;  %v4483_v19 = vadd.f32 1e-05, %v4451_v36  ;;  %v11539_v0 = vadd.f32 %v11489_v25, %v4612_v8  ;;  %v4574_v28 = vmul.f32 %v8183_v27, %v11389_v10 }
 0xdbd   :  { %v8187_v12 = vpop.eup %8186  ;;  %v4364_v17 = vpop.xlane.xlu1 %4363  ;;  %v4569_v55 = vmul.f32 %v8185_v63, %v11358_v7  ;;  %13141 = vst [vmem:[#allocation9_spill] sm:$0xff] %v11554_v58  ;;  %v11558_v42 = vadd.f32 %v11489_v25, %v4609_v57  ;;  %v4606_v7 = vmul.f32 %v11484_v56, %v4570_v20  ;;  %v11568_v63 = vadd.f32 %v11489_v25, %v4607_v50 }
 0xdbe   :  { %13140 = vst [vmem:[#allocation6_spill] sm:$0xff] %v11539_v0  ;;  %v4403_v32 = vpop.xlane.xlu0 %4402  ;;  %8204 = vrsqrt.f32 %v4500_v39  ;;  %v4452_v43 = vmul.f32 0.03125, %v4364_v17  ;;  %v4666_v44 = vpack.c.bf16 %v11539_v0, %v11534_v60  ;;  %v8189_v10 = vpop.eup %8188  ;;  %v4610_v46 = vmul.f32 %v11484_v56, %v4574_v28 }
 0xdbf   :  { %v4465_v26 = vmul.f32 0.03125, %v4403_v32  ;;  %8206 = vrsqrt.f32 %v4483_v19  ;;  %v4568_v24 = vmul.f32 %v8187_v12, %v11342_v49  ;;  %v8191_v6 = vpop.eup %8190  ;;  %13142 = vst [vmem:[#allocation7_spill] sm:$0xff] %v11558_v42  ;;  %v4567_v2 = vmul.f32 %v8189_v10, %v11337_v18  ;;  %13144 = vst [vmem:[#allocation10_spill] sm:$0xff] %v11568_v63 }
 0xdc0   :  { %v4484_v14 = vadd.f32 1e-05, %v4452_v43  ;;  %7206 = vmatprep.subr.bf16.mxu0 %v4666_v44  ;;  %7780 = vmatprep.subr.bf16.mxu1 %v4666_v44  ;;  %v11561_v15 = vadd.f32 %v11489_v25, %v4610_v46  ;;  %v8193_v36 = vpop.eup %8192  ;;  %v4605_v39 = vmul.f32 %v11484_v56, %v4569_v55  ;;  %v4552_v32 = vmul.f32 %v8191_v6, %v11401_v30 }
 0xdc1   :  { %v4497_v16 = vadd.f32 1e-05, %v4465_v26  ;;  %v4406_v33 = vpop.xlane.xlu1 %4405  ;;  %7207 = vmatpush3.bf16.msra.mxu0 %v4658_v48  ;;  %7788 = vmatpush3.bf16.msra.mxu1 %v4658_v48  ;;  %v4604_v17 = vmul.f32 %v11484_v56, %v4568_v24  ;;  %v4664_v48 = vpack.c.bf16 %v11554_v58, %v11568_v63  ;;  %v11576_v57 = vadd.f32 %v11489_v25, %v4606_v7 }
 0xdc2   :  { %v4355_v52 = vpop.xlane.xlu0 %4354  ;;  %13143 = vst [vmem:[#allocation20_spill] sm:$0xff] %v11561_v15  ;;  %8208 = vrsqrt.f32 %v4484_v14  ;;  %v4466_v8 = vmul.f32 0.03125, %v4406_v33  ;;  %v4665_v11 = vpack.c.bf16 %v11561_v15, %v11558_v42  ;;  %v4603_v44 = vmul.f32 %v11484_v56, %v4567_v2 }
 0xdc3   :  { %v4449_v27 = vmul.f32 0.03125, %v4355_v52  ;;  %v8195_v49 = vpop.eup %8194  ;;  %8210 = vrsqrt.f32 %v4497_v16  ;;  %13145 = vst [vmem:[#allocation11_spill] sm:$0xff] %v11576_v57  ;;  %v4551_v30 = vmul.f32 %v8193_v36, %v11392_v9  ;;  %v4656_v46 = vpack.c.bf16 %v11509_v22, %v11499_v54 }
 0xdc4   :  { %v8197_v19 = vpop.eup %8196  ;;  %v4498_v28 = vadd.f32 1e-05, %v4466_v8  ;;  %7208 = vmatprep.subr.bf16.mxu0 %v4665_v11  ;;  %7781 = vmatprep.subr.bf16.mxu1 %v4665_v11  ;;  %v4566_v20 = vmul.f32 %v8195_v49, %v11413_v47  ;;  %v11584_v50 = vadd.f32 %v11489_v25, %v4605_v39  ;;  %v4588_v9 = vmul.f32 %v11484_v56, %v4552_v32 }
 0xdc5   :  { %v4481_v12 = vadd.f32 1e-05, %v4449_v27  ;;  %v4358_v18 = vpop.xlane.xlu1 %4357  ;;  %v8199_v43 = vpop.eup %8198  ;;  %7209 = vmatpush3.bf16.msra.mxu0 %v4657_v37  ;;  %7789 = vmatpush3.bf16.msra.mxu1 %v4657_v37  ;;  %v4565_v47 = vmul.f32 %v8197_v19, %v11404_v45  ;;  %v11589_v37 = vadd.f32 %v11489_v25, %v11514_v1  ;;  %v11596_v6 = vadd.f32 %v11489_v25, %v4604_v17 }
 0xdc6   :  { %8212 = vrsqrt.f32 %v4498_v28  ;;  %v4450_v26 = vmul.f32 0.03125, %v4358_v18  ;;  %7210 = vmatprep.subr.bf16.mxu0 %v4664_v48  ;;  %7782 = vmatprep.subr.bf16.mxu1 %v4664_v48  ;;  %13146 = vst [vmem:[#allocation15_spill] sm:$0xff] %v11584_v50  ;;  %v4663_v24 = vpack.c.bf16 %v11576_v57, %v11584_v50  ;;  %v4602_v33 = vmul.f32 %v11484_v56, %v4566_v20 }
 0xdc7   :  { %v8201_v10 = vpop.eup %8200  ;;  %8214 = vrsqrt.f32 %v4481_v12  ;;  %13147 = vst [vmem:[#allocation16_spill] sm:$0xff] %v11596_v6  ;;  %v4549_v45 = vmul.f32 %v8199_v43, %v11416_v38  ;;  %v11602_v1 = vadd.f32 %v11489_v25, %v11505_v4  ;;  %v11605_v52 = vadd.f32 %v11489_v25, %v4603_v44 }
 0xdc8   :  { %v8203_v55 = vpop.eup %8202  ;;  %v4482_v14 = vadd.f32 1e-05, %v4450_v26  ;;  %v4550_v16 = vmul.f32 %v8201_v10, %v11425_v23  ;;  %v4587_v23 = vmul.f32 %v11484_v56, %v4551_v30  ;;  %v4601_v36 = vmul.f32 %v11484_v56, %v4565_v47 }
 0xdc9   :  { %7211 = vmatpush3.bf16.msra.mxu0 %v4656_v46  ;;  %7790 = vmatpush3.bf16.msra.mxu1 %v4656_v46  ;;  %13148 = vst [vmem:[#allocation21_spill] sm:$0xff] %v11605_v52  ;;  %v4563_v38 = vmul.f32 %v8203_v55, %v11428_v53  ;;  %v4655_v2 = vpack.c.bf16 %v11589_v37, %v11602_v1 }
 0xdca   :  { %8216 = vrsqrt.f32 %v4482_v14  ;;  %7212 = vmatprep.subr.bf16.mxu0 %v4663_v24  ;;  %7783 = vmatprep.subr.bf16.mxu1 %v4663_v24  ;;  %v4586_v8 = vmul.f32 %v11484_v56, %v4550_v16  ;;  %v11614_v4 = vadd.f32 %v11489_v25, %v4588_v9  ;;  %v4662_v11 = vpack.c.bf16 %v11596_v6, %v11605_v52 }
 0xdcb   :  { %v8205_v7 = vpop.eup %8204  ;;  %v11620_v39 = vadd.f32 %v11489_v25, %v4602_v33  ;;  %v4585_v19 = vmul.f32 %v11484_v56, %v4549_v45  ;;  %v11625_v53 = vadd.f32 %v11489_v25, %v4587_v23  ;;  %v4599_v18 = vmul.f32 %v11484_v56, %v4563_v38 }
 0xdcc   :  { %v8207_v27 = vpop.eup %8206  ;;  %v4564_v49 = vmul.f32 %v8205_v7, %v11437_v5  ;;  %v11629_v5 = vadd.f32 %v11489_v25, %v4601_v36  ;;  %v11632_v32 = vadd.f32 %v11489_v25, %v4586_v8 }
 0xdcd   :  { %13149 = vst [vmem:[#allocation12_spill] sm:$0xff] %v11620_v39  ;;  %v4547_v28 = vmul.f32 %v8207_v27, %v11440_v34  ;;  %7213 = vmatpush3.bf16.msra.mxu0 %v4655_v2  ;;  %7791 = vmatpush3.bf16.msra.mxu1 %v4655_v2  ;;  %v4654_v34 = vpack.c.bf16 %v11614_v4, %v11625_v53 }
 0xdce   :  { %v4600_v12 = vmul.f32 %v11484_v56, %v4564_v49  ;;  %7214 = vmatprep.subr.bf16.mxu0 %v4662_v11  ;;  %7784 = vmatprep.subr.bf16.mxu1 %v4662_v11  ;;  %13150 = vst [vmem:[#allocation17_spill] sm:$0xff] %v11629_v5  ;;  %v4661_v26 = vpack.c.bf16 %v11620_v39, %v11629_v5 }
 0xdcf   :  { %v8209_v17 = vpop.eup %8208  ;;  %v4583_v43 = vmul.f32 %v11484_v56, %v4547_v28  ;;  %v11642_v44 = vadd.f32 %v11489_v25, %v4585_v19  ;;  %v11652_v55 = vadd.f32 %v11489_v25, %v4599_v18  ;;  %v8383_v19 = vld [vmem:[%s12971_s0] ss:$8 sps:$4 sm:$0xff]   ;;  %v8386_v28 = vld [vmem:[%s12971_s0 + $0x34] ss:$8 sps:$4 sm:$0xff]   ;;  %v8389_v18 = vld [vmem:[%s12971_s0 + $0x44] ss:$8 sps:$4 sm:$0xff]  }
 0xdd0   :  { %v8211_v48 = vpop.eup %8210  ;;  %v4548_v20 = vmul.f32 %v8209_v17, %v11449_v59  ;;  %v11645_v30 = vadd.f32 %v11489_v25, %v4600_v12  ;;  %v8387_v12 = vld [vmem:[%s12971_s0 + $0x10] ss:$8 sps:$4 sm:$0xff]  }
 0xdd1   :  { %v4561_v10 = vmul.f32 %v8211_v48, %v11452_v13  ;;  %7215 = vmatpush3.bf16.msra.mxu0 %v4654_v34  ;;  %7792 = vmatpush3.bf16.msra.mxu1 %v4654_v34  ;;  %v4653_v59 = vpack.c.bf16 %v11632_v32, %v11642_v44  ;;  %v11655_v9 = vadd.f32 %v11489_v25, %v4583_v43  ;;  %v8388_v17 = vld [vmem:[%s12971_s0 + $0x30] ss:$8 sps:$4 sm:$0xff]   ;;  %v8390_v48 = vld [vmem:[%s12971_s0 + $0x40] ss:$8 sps:$4 sm:$0xff]   ;;  %v8391_v34 = vld [vmem:[%s12971_s0 + $0x54] ss:$8 sps:$4 sm:$0xff]  }
 0xdd2   :  { %v4584_v46 = vmul.f32 %v11484_v56, %v4548_v20  ;;  %7216 = vmatprep.subr.bf16.mxu0 %v4661_v26  ;;  %7785 = vmatprep.subr.bf16.mxu1 %v4661_v26  ;;  %v4660_v33 = vpack.c.bf16 %v11645_v30, %v11652_v55  ;;  %v8392_v20 = vld [vmem:[%s12971_s0 + $0x50] ss:$8 sps:$4 sm:$0xff]   ;;  %v8393_v43 = vld [vmem:[%s12971_s0 + $0x64] ss:$8 sps:$4 sm:$0xff]   ;;  %v8394_v26 = vld [vmem:[%s12971_s0 + $0x60] ss:$8 sps:$4 sm:$0xff]  }
 0xdd3   :  { %v8213_v47 = vpop.eup %8212  ;;  %v4597_v24 = vmul.f32 %v11484_v56, %v4561_v10  ;;  %v8395_v10 = vld [vmem:[%s12971_s0 + $0x74] ss:$8 sps:$4 sm:$0xff]  }
 0xdd4   :  { %v8215_v14 = vpop.eup %8214  ;;  %v11658_v16 = vadd.f32 %v11489_v25, %v4584_v46  ;;  %v4562_v13 = vmul.f32 %v8213_v47, %v11461_v61  ;;  %v8396_v46 = vld [vmem:[%s12971_s0 + $0x70] ss:$8 sps:$4 sm:$0xff]   ;;  %v8397_v47 = vld [vmem:[%s12971_s0 + $0x84] ss:$8 sps:$4 sm:$0xff]  }
 0xdd5   :  { %v4545_v45 = vmul.f32 %v8215_v14, %v11464_v31  ;;  %7217 = vmatpush3.bf16.msra.mxu0 %v4653_v59  ;;  %7793 = vmatpush3.bf16.msra.mxu1 %v4653_v59  ;;  %v11669_v8 = vadd.f32 %v11489_v25, %v4597_v24  ;;  %v8398_v59 = vld [vmem:[%s12971_s0 + $0x80] ss:$8 sps:$4 sm:$0xff]   ;;  %v8399_v14 = vld [vmem:[%s12971_s0 + $0x94] ss:$8 sps:$4 sm:$0xff]   ;;  %v8401_v24 = vld [vmem:[%s12971_s0 + $0xa4] ss:$8 sps:$4 sm:$0xff]  }
 0xdd6   :  { %v4652_v23 = vpack.c.bf16 %v11658_v16, %v11655_v9  ;;  %v4598_v7 = vmul.f32 %v11484_v56, %v4562_v13  ;;  %7218 = vmatprep.subr.bf16.mxu0 %v4660_v33  ;;  %7786 = vmatprep.subr.bf16.mxu1 %v4660_v33  ;;  %v8400_v13 = vld [vmem:[%s12971_s0 + $0x90] ss:$8 sps:$4 sm:$0xff]   ;;  %v8402_v33 = vld [vmem:[%s12971_s0 + $0xa0] ss:$8 sps:$4 sm:$0xff]  }
 0xdd7   :  { %v8217_v36 = vpop.eup %8216  ;;  %13151 = vst [vmem:[#allocation2_spill] sm:$0xff] %v11669_v8  ;;  %v4581_v31 = vmul.f32 %v11484_v56, %v4545_v45  ;;  %v8403_v45 = vld [vmem:[%s12971_s0 + $0xb4] ss:$8 sps:$4 sm:$0xff]  }
 0xdd8   :  { %v11672_v61 = vadd.f32 %v11489_v25, %v4598_v7  ;;  %v4546_v38 = vmul.f32 %v8217_v36, %v11473_v62  ;;  %v8405_v7 = vld [vmem:[%s12971_s0 + $0xc4] ss:$8 sps:$4 sm:$0xff]  }
 0xdd9   :  { %7219 = vmatpush3.bf16.msra.mxu0 %v4652_v23  ;;  %7794 = vmatpush3.bf16.msra.mxu1 %v4652_v23  ;;  %v11680_v49 = vadd.f32 %v11489_v25, %v4581_v31  ;;  %v8404_v23 = vld [vmem:[%s12971_s0 + $0xb0] ss:$8 sps:$4 sm:$0xff]   ;;  %v7880_v36 = vld [vmem:[%s12973_s2 + $0x28] sm:$0xff]  }
 0xdda   :  { %13152 = vst [vmem:[#allocation22_spill] sm:$0xff] %v11672_v61  ;;  %v4659_v27 = vpack.c.bf16 %v11672_v61, %v11669_v8  ;;  %v4582_v2 = vmul.f32 %v11484_v56, %v4546_v38  ;;  %v8384_v56 = vld [vmem:[%s12971_s0 + $0x20] ss:$8 sps:$4 sm:$0xff]  }
 0xddb   :  { %v7881_v38 = vld [vmem:[%s12973_s2 + $0x20] sm:$0xff]  }
 0xddc   :  { %7220 = vmatprep.subr.bf16.mxu0 %v4659_v27  ;;  %7787 = vmatprep.subr.bf16.mxu1 %v4659_v27  ;;  %v11683_v11 = vadd.f32 %v11489_v25, %v4582_v2  ;;  %v8385_v25 = vld [vmem:[%s12971_s0 + $0x14] ss:$8 sps:$4 sm:$0xff]   ;;  %v8406_v31 = vld [vmem:[%s12971_s0 + $0xc0] ss:$8 sps:$4 sm:$0xff]   ;;  %v8408_v2 = vld [vmem:[%s12971_s0 + $0xd0] ss:$8 sps:$4 sm:$0xff]  }
 0xddd   :  { %v8407_v27 = vld [vmem:[%s12971_s0 + $0xd4] ss:$8 sps:$4 sm:$0xff]  }
 0xdde   :  { %v4651_v62 = vpack.c.bf16 %v11683_v11, %v11680_v49 }
 0xde0   :  { %7221 = vmatpush3.bf16.msra.mxu0 %v4651_v62  ;;  %7795 = vmatpush3.bf16.msra.mxu1 %v4651_v62  ;;  %v8409_v62 = vld [vmem:[%s12971_s0 + $0xe4] ss:$8 sps:$4 sm:$0xff]  }
 0xde1   :  { %7648 = vmatprep.subr.bf16.mxu0 %v7880_v36 }
 0xde3   :  { %4700 = vmatmul.mubr.bf16.vlgmr.msra.gmra.mxu0 %v8383_v19  ;;  %4716 = vmatmul.mubr.bf16.vlgmr.msra.gmra.mxu1 %v8384_v56  ;;  %v8410_v19 = vld [vmem:[%s12971_s0 + $0xe0] ss:$8 sps:$4 sm:$0xff]   ;;  %v8411_v56 = vld [vmem:[%s12971_s0 + $0xf4] ss:$8 sps:$4 sm:$0xff]  }
 0xde4   :  { %4707 = vmatprep.mubr.bf16.mxu0 %v8385_v25  ;;  %4723 = vmatprep.mubr.bf16.mxu1 %v8386_v28  ;;  %v8412_v25 = vld [vmem:[%s12971_s0 + $0xf0] ss:$8 sps:$4 sm:$0xff]  }
 0xde5   :  { %7649 = vmatpush3.bf16.msra.mxu0 %v7880_v36  ;;  %v7882_v28 = vld [vmem:[%s12974_s3 + $0xb8] sm:$0xff]  }
 0xde6   :  { %7650 = vmatprep.subr.bf16.mxu0 %v7881_v38 }
 0xde9   :  { %7651 = vmatpush3.bf16.msra.mxu0 %v7881_v38 }
 0xdea   :  { %7684 = vmatprep.subr.bf16.mxu0 %v7882_v28 }
 0xdeb   :  { %4708 = vmatmul.mubr.bf16.gmra.mxu0 %v8387_v12  ;;  %4724 = vmatmul.mubr.bf16.gmra.mxu1 %v8388_v17 }
 0xdec   :  { %4731 = vmatprep.mubr.bf16.mxu1 %v8389_v18 }
 0xdf3   :  { %4732 = vmatmul.mubr.bf16.gmra.mxu1 %v8390_v48 }
 0xdf4   :  { %4739 = vmatprep.mubr.bf16.mxu1 %v8391_v34 }
 0xdfb   :  { %4740 = vmatmul.mubr.bf16.gmra.mxu1 %v8392_v20 }
 0xdfc   :  { %4747 = vmatprep.mubr.bf16.mxu1 %v8393_v43 }
 0xe03   :  { %4748 = vmatmul.mubr.bf16.gmra.mxu1 %v8394_v26 }
 0xe04   :  { %4755 = vmatprep.mubr.bf16.mxu1 %v8395_v10 }
 0xe0b   :  { %4756 = vmatmul.mubr.bf16.gmra.mxu1 %v8396_v46 }
 0xe0c   :  { %4763 = vmatprep.mubr.bf16.mxu1 %v8397_v47 }
 0xe13   :  { %4764 = vmatmul.mubr.bf16.gmra.mxu1 %v8398_v59 }
 0xe14   :  { %4771 = vmatprep.mubr.bf16.mxu1 %v8399_v14 }
 0xe1b   :  { %4772 = vmatmul.mubr.bf16.gmra.mxu1 %v8400_v13 }
 0xe1c   :  { %4779 = vmatprep.mubr.bf16.mxu1 %v8401_v24 }
 0xe23   :  { %4780 = vmatmul.mubr.bf16.gmra.mxu1 %v8402_v33 }
 0xe24   :  { %4787 = vmatprep.mubr.bf16.mxu1 %v8403_v45 }
 0xe2b   :  { %4788 = vmatmul.mubr.bf16.gmra.mxu1 %v8404_v23 }
 0xe2c   :  { %4795 = vmatprep.mubr.bf16.mxu1 %v8405_v7 }
 0xe33   :  { %4796 = vmatmul.mubr.bf16.gmra.mxu1 %v8406_v31 }
 0xe34   :  { %4803 = vmatprep.mubr.bf16.mxu1 %v8407_v27 }
 0xe3b   :  { %4804 = vmatmul.mubr.bf16.gmra.mxu1 %v8408_v2 }
 0xe3c   :  { %4811 = vmatprep.mubr.bf16.mxu1 %v8409_v62 }
 0xe43   :  { %4812 = vmatmul.mubr.bf16.gmra.mxu1 %v8410_v19  ;;  %v7883_v19 = vld [vmem:[%s12974_s3 + $0xb0] sm:$0xff]  }
 0xe44   :  { %4819 = vmatprep.mubr.bf16.mxu1 %v8411_v56 }
 0xe4b   :  { %4820 = vmatmul.mubr.bf16.gmra.mxu1 %v8412_v25 }
 0xea3   :  { %v7222_v12 = vpop.f32.mrf.mxu0  ;;  %v7234_v17 = vpop.f32.mrf.mxu1 }
 0xea5   :  { %v7223_v18 = vpop.f32.mrf.mxu0  ;;  %v7235_v48 = vpop.f32.mrf.mxu1 }
 0xea6   :  { %v7224_v43 = vadd.f32 %v7223_v18, %v7222_v12  ;;  %v7236_v27 = vadd.f32 %v7235_v48, %v7234_v17  ;;  %v7884_v17 = vld [vmem:[%s12974_s3 + $0xa8] sm:$0xff]  }
 0xea7   :  { %v7225_v34 = vpop.f32.mrf.mxu0  ;;  %v7237_v20 = vpop.f32.mrf.mxu1 }
 0xea9   :  { %v7226_v26 = vpop.f32.mrf.mxu0  ;;  %v7238_v10 = vpop.f32.mrf.mxu1 }
 0xeaa   :  { %v7227_v46 = vadd.f32 %v7226_v26, %v7225_v34  ;;  %v7239_v7 = vadd.f32 %v7238_v10, %v7237_v20 }
 0xeab   :  { %v7228_v47 = vpop.f32.mrf.mxu0  ;;  %v7240_v59 = vpop.f32.mrf.mxu1 }
 0xeac   :  { %v4828_v14 = vpack.c.bf16 %v7227_v46, %v7224_v43  ;;  %v4830_v56 = vpack.c.bf16 %v7239_v7, %v7236_v27 }
 0xead   :  { %v7229_v13 = vpop.f32.mrf.mxu0  ;;  %v7241_v24 = vpop.f32.mrf.mxu1 }
 0xeae   :  { %7652 = vmatprep.mubr.msk.bf16.mxu0 %vm90_vm0, %v4828_v14  ;;  %v7230_v23 = vadd.f32 %v7229_v13, %v7228_v47  ;;  %v7242_v34 = vadd.f32 %v7241_v24, %v7240_v59  ;;  %v7885_v47 = vld [vmem:[%s12974_s3 + $0xa0] sm:$0xff]   ;;  %v7886_v59 = vld [vmem:[%s12974_s3 + $0x98] sm:$0xff]  }
 0xeaf   :  { %v7231_v33 = vpop.f32.mrf.mxu0  ;;  %v7243_v45 = vpop.f32.mrf.mxu1 }
 0xeb1   :  { %v7232_v36 = vpop.f32.mrf.mxu0  ;;  %v7244_v38 = vpop.f32.mrf.mxu1 }
 0xeb2   :  { %v7233_v31 = vadd.f32 %v7232_v36, %v7231_v33  ;;  %v7245_v18 = vadd.f32 %v7244_v38, %v7243_v45 }
 0xeb3   :  { %v7246_v2 = vpop.f32.mrf.mxu1 }
 0xeb4   :  { %v4829_v62 = vpack.c.bf16 %v7233_v31, %v7230_v23  ;;  %v4831_v10 = vpack.c.bf16 %v7245_v18, %v7242_v34 }
 0xeb5   :  { %v7247_v25 = vpop.f32.mrf.mxu1 }
 0xeb6   :  { %7653 = vmatmul.mubr.msk.bf16.vlgmr.msra.gmra.mxu0 %vm90_vm0, %v4829_v62  ;;  %v7248_v20 = vadd.f32 %v7247_v25, %v7246_v2 }
 0xeb7   :  { %v7249_v12 = vpop.f32.mrf.mxu1  ;;  %7656 = vmatprep.mubr.msk.bf16.mxu0 %vm90_vm0, %v4830_v56  ;;  %7685 = vmatpush3.bf16.msra.mxu0 %v7882_v28 }
 0xeb8   :  { %7686 = vmatprep.subr.bf16.mxu0 %v7883_v19 }
 0xeb9   :  { %v7250_v48 = vpop.f32.mrf.mxu1 }
 0xeba   :  { %v7251_v43 = vadd.f32 %v7250_v48, %v7249_v12 }
 0xebb   :  { %v7252_v26 = vpop.f32.mrf.mxu1  ;;  %7687 = vmatpush3.bf16.msra.mxu0 %v7883_v19 }
 0xebc   :  { %v4832_v46 = vpack.c.bf16 %v7251_v43, %v7248_v20  ;;  %7688 = vmatprep.subr.bf16.mxu0 %v7884_v17 }
 0xebd   :  { %v7253_v28 = vpop.f32.mrf.mxu1 }
 0xebe   :  { %7657 = vmatmul.mubr.msk.bf16.gmra.mxu0 %vm90_vm0, %v4831_v10  ;;  %v7254_v24 = vadd.f32 %v7253_v28, %v7252_v26 }
 0xebf   :  { %v7255_v14 = vpop.f32.mrf.mxu1  ;;  %7660 = vmatprep.mubr.msk.bf16.mxu0 %vm90_vm0, %v4832_v46  ;;  %7689 = vmatpush3.bf16.msra.mxu0 %v7884_v17 }
 0xec0   :  { %7690 = vmatprep.subr.bf16.mxu0 %v7885_v47 }
 0xec1   :  { %v7256_v13 = vpop.f32.mrf.mxu1 }
 0xec2   :  { %v7257_v33 = vadd.f32 %v7256_v13, %v7255_v14 }
 0xec3   :  { %v7258_v45 = vpop.f32.mrf.mxu1  ;;  %7691 = vmatpush3.bf16.msra.mxu0 %v7885_v47 }
 0xec4   :  { %v4833_v23 = vpack.c.bf16 %v7257_v33, %v7254_v24  ;;  %7692 = vmatprep.subr.bf16.mxu0 %v7886_v59 }
 0xec5   :  { %v7259_v7 = vpop.f32.mrf.mxu1 }
 0xec6   :  { %7661 = vmatmul.mubr.msk.bf16.gmra.mxu0 %vm90_vm0, %v4833_v23  ;;  %v7260_v31 = vadd.f32 %v7259_v7, %v7258_v45 }
 0xec7   :  { %v7261_v36 = vpop.f32.mrf.mxu1  ;;  %7693 = vmatpush3.bf16.msra.mxu0 %v7886_v59 }
 0xec9   :  { %v7262_v38 = vpop.f32.mrf.mxu1 }
 0xeca   :  { %v7263_v27 = vadd.f32 %v7262_v38, %v7261_v36 }
 0xecb   :  { %v7264_v2 = vpop.f32.mrf.mxu1 }
 0xecc   :  { %v4834_v62 = vpack.c.bf16 %v7263_v27, %v7260_v31 }
 0xecd   :  { %v7265_v19 = vpop.f32.mrf.mxu1 }
 0xece   :  { %7664 = vmatprep.mubr.msk.bf16.mxu0 %vm90_vm0, %v4834_v62  ;;  %v7266_v12 = vadd.f32 %v7265_v19, %v7264_v2 }
 0xecf   :  { %v7267_v56 = vpop.f32.mrf.mxu1 }
 0xed1   :  { %v7268_v25 = vpop.f32.mrf.mxu1 }
 0xed2   :  { %v7269_v18 = vadd.f32 %v7268_v25, %v7267_v56 }
 0xed3   :  { %v7270_v17 = vpop.f32.mrf.mxu1 }
 0xed4   :  { %v4835_v48 = vpack.c.bf16 %v7269_v18, %v7266_v12 }
 0xed5   :  { %v7271_v34 = vpop.f32.mrf.mxu1 }
 0xed6   :  { %7665 = vmatmul.mubr.msk.bf16.gmra.mxu0 %vm90_vm0, %v4835_v48  ;;  %v7272_v26 = vadd.f32 %v7271_v34, %v7270_v17  ;;  %v7887_v34 = vld [vmem:[%s12974_s3 + $0x90] sm:$0xff]  }
 0xed7   :  { %v7273_v20 = vpop.f32.mrf.mxu1  ;;  %7694 = vmatprep.subr.bf16.mxu0 %v7887_v34 }
 0xed8   :  { %7695 = vmatpush3.bf16.msra.mxu0 %v7887_v34  ;;  %v7890_v34 = vld [vmem:[%s12975_s4 + $0xb8] sm:$0xff]  }
 0xed9   :  { %v7274_v43 = vpop.f32.mrf.mxu1  ;;  %7732 = vmatprep.subr.bf16.mxu1 %v7890_v34 }
 0xeda   :  { %v7275_v10 = vadd.f32 %v7274_v43, %v7273_v20  ;;  %7733 = vmatpush3.bf16.msra.mxu1 %v7890_v34 }
 0xedb   :  { %v7276_v46 = vpop.f32.mrf.mxu1 }
 0xedc   :  { %v4836_v47 = vpack.c.bf16 %v7275_v10, %v7272_v26  ;;  %v7888_v26 = vld [vmem:[%s12974_s3 + $0x88] sm:$0xff]  }
 0xedd   :  { %v7277_v28 = vpop.f32.mrf.mxu1  ;;  %7696 = vmatprep.subr.bf16.mxu0 %v7888_v26 }
 0xede   :  { %7668 = vmatprep.mubr.msk.bf16.mxu0 %vm90_vm0, %v4836_v47  ;;  %v7278_v13 = vadd.f32 %v7277_v28, %v7276_v46  ;;  %7697 = vmatpush3.bf16.msra.mxu0 %v7888_v26  ;;  %v7893_v26 = vld [vmem:[%s12975_s4 + $0xa0] sm:$0xff]  }
 0xedf   :  { %v7279_v14 = vpop.f32.mrf.mxu1 }
 0xee1   :  { %v7280_v59 = vpop.f32.mrf.mxu1 }
 0xee2   :  { %v7281_v24 = vadd.f32 %v7280_v59, %v7279_v14  ;;  %v7889_v59 = vld [vmem:[%s12974_s3 + $0x80] sm:$0xff]  }
 0xee3   :  { %v7282_v33 = vpop.f32.mrf.mxu1  ;;  %7698 = vmatprep.subr.bf16.mxu0 %v7889_v59 }
 0xee4   :  { %v4837_v45 = vpack.c.bf16 %v7281_v24, %v7278_v13  ;;  %7699 = vmatpush3.bf16.msra.mxu0 %v7889_v59 }
 0xee5   :  { %v7283_v23 = vpop.f32.mrf.mxu1 }
 0xee6   :  { %7669 = vmatmul.mubr.msk.bf16.gmra.mxu0 %vm90_vm0, %v4837_v45  ;;  %v7284_v38 = vadd.f32 %v7283_v23, %v7282_v33 }
 0xee7   :  { %v7285_v7 = vpop.f32.mrf.mxu1 }
 0xee9   :  { %v7286_v36 = vpop.f32.mrf.mxu1 }
 0xeea   :  { %v7287_v31 = vadd.f32 %v7286_v36, %v7285_v7 }
 0xeeb   :  { %v7288_v27 = vpop.f32.mrf.mxu1 }
 0xeec   :  { %v4838_v2 = vpack.c.bf16 %v7287_v31, %v7284_v38 }
 0xeed   :  { %v7289_v62 = vpop.f32.mrf.mxu1 }
 0xeee   :  { %7672 = vmatprep.mubr.msk.bf16.mxu0 %vm90_vm0, %v4838_v2  ;;  %v7290_v25 = vadd.f32 %v7289_v62, %v7288_v27 }
 0xeef   :  { %v7291_v19 = vpop.f32.mrf.mxu1 }
 0xef1   :  { %v7292_v56 = vpop.f32.mrf.mxu1 }
 0xef2   :  { %v7293_v12 = vadd.f32 %v7292_v56, %v7291_v19 }
 0xef3   :  { %v7294_v18 = vpop.f32.mrf.mxu1 }
 0xef4   :  { %v4839_v17 = vpack.c.bf16 %v7293_v12, %v7290_v25 }
 0xef5   :  { %v7295_v48 = vpop.f32.mrf.mxu1 }
 0xef6   :  { %7673 = vmatmul.mubr.msk.bf16.gmra.mxu0 %vm90_vm0, %v4839_v17  ;;  %v7296_v10 = vadd.f32 %v7295_v48, %v7294_v18 }
 0xef7   :  { %v7297_v20 = vpop.f32.mrf.mxu1 }
 0xef9   :  { %v7298_v43 = vpop.f32.mrf.mxu1 }
 0xefa   :  { %v7299_v46 = vadd.f32 %v7298_v43, %v7297_v20  ;;  %v7891_v20 = vld [vmem:[%s12975_s4 + $0xb0] sm:$0xff]   ;;  %v7892_v43 = vld [vmem:[%s12975_s4 + $0xa8] sm:$0xff]  }
 0xefb   :  { %v7300_v47 = vpop.f32.mrf.mxu1  ;;  %7734 = vmatprep.subr.bf16.mxu1 %v7891_v20 }
 0xefc   :  { %v4840_v28 = vpack.c.bf16 %v7299_v46, %v7296_v10  ;;  %7735 = vmatpush3.bf16.msra.mxu1 %v7891_v20  ;;  %v7894_v10 = vld [vmem:[%s12975_s4 + $0x98] sm:$0xff]   ;;  %v11841_v46 = vld [vmem:[%s12972_s5 + $0x20] sm:$0xff] }
 0xefd   :  { %v7301_v14 = vpop.f32.mrf.mxu1  ;;  %7736 = vmatprep.subr.bf16.mxu1 %v7892_v43 }
 0xefe   :  { %7676 = vmatprep.mubr.msk.bf16.mxu0 %vm90_vm0, %v4840_v28  ;;  %v7302_v33 = vadd.f32 %v7301_v14, %v7300_v47  ;;  %v13153_v47 = vld [vmem:[#allocation3_spill] sm:$0xff] }
 0xeff   :  { %v7303_v13 = vpop.f32.mrf.mxu1  ;;  %v11845_v28 = vrot.slane %v11841_v46, %v13153_v47 }
 0xf00   :  { %7737 = vmatpush3.bf16.msra.mxu1 %v7892_v43 }
 0xf01   :  { %v7304_v24 = vpop.f32.mrf.mxu1  ;;  %7738 = vmatprep.subr.bf16.mxu1 %v7893_v26 }
 0xf02   :  { %v7305_v45 = vadd.f32 %v7304_v24, %v7303_v13 }
 0xf03   :  { %v7306_v23 = vpop.f32.mrf.mxu1 }
 0xf04   :  { %v4841_v7 = vpack.c.bf16 %v7305_v45, %v7302_v33  ;;  %7739 = vmatpush3.bf16.msra.mxu1 %v7893_v26 }
 0xf05   :  { %v7307_v36 = vpop.f32.mrf.mxu1  ;;  %7740 = vmatprep.subr.bf16.mxu1 %v7894_v10 }
 0xf06   :  { %7677 = vmatmul.mubr.msk.bf16.gmra.mxu0 %vm90_vm0, %v4841_v7  ;;  %v7308_v27 = vadd.f32 %v7307_v36, %v7306_v23 }
 0xf07   :  { %v7309_v38 = vpop.f32.mrf.mxu1 }
 0xf08   :  { %7741 = vmatpush3.bf16.msra.mxu1 %v7894_v10 }
 0xf09   :  { %v7310_v31 = vpop.f32.mrf.mxu1 }
 0xf0a   :  { %v7311_v2 = vadd.f32 %v7310_v31, %v7309_v38 }
 0xf0b   :  { %v7312_v62 = vpop.f32.mrf.mxu1 }
 0xf0c   :  { %v4842_v19 = vpack.c.bf16 %v7311_v2, %v7308_v27 }
 0xf0d   :  { %v7313_v56 = vpop.f32.mrf.mxu1 }
 0xf0e   :  { %7680 = vmatprep.mubr.msk.bf16.mxu0 %vm90_vm0, %v4842_v19  ;;  %v7314_v18 = vadd.f32 %v7313_v56, %v7312_v62 }
 0xf0f   :  { %v7315_v25 = vpop.f32.mrf.mxu1 }
 0xf11   :  { %v7316_v12 = vpop.f32.mrf.mxu1 }
 0xf12   :  { %v7317_v17 = vadd.f32 %v7316_v12, %v7315_v25 }
 0xf14   :  { %v4843_v48 = vpack.c.bf16 %v7317_v17, %v7314_v18 }
 0xf16   :  { %7681 = vmatmul.mubr.msk.bf16.gmra.mxu0 %vm90_vm0, %v4843_v48 }
 0xf76   :  { %v7654_v14 = vpop.f32.mrf.mxu0 }
 0xf77   :  { %v4956_v13 = vadd.f32 %v7654_v14, %v11845_v28 }
 0xf78   :  { %v4947_v59 = vpop.f32.mrf.mxu0 }
 0xf79   :  { %v4948_v33 = vadd.f32 %v4947_v59, %v11845_v28 }
 0xf7a   :  { %v7655_v24 = vpop.f32.mrf.mxu0 }
 0xf7b   :  { %v4959_v45 = vadd.f32 %v7655_v24, %v11845_v28 }
 0xf7c   :  { %v4950_v23 = vpop.f32.mrf.mxu0 }
 0xf7d   :  { %v4951_v7 = vadd.f32 %v4950_v23, %v11845_v28  ;;  %v5075_v36 = vpack.c.bf16 %v4959_v45, %v4956_v13 }
 0xf7e   :  { %v7658_v38 = vpop.f32.mrf.mxu0 }
 0xf7f   :  { %v5074_v31 = vpack.c.bf16 %v4951_v7, %v4948_v33  ;;  %v4972_v12 = vadd.f32 %v7658_v38, %v11845_v28 }
 0xf80   :  { %v4963_v27 = vpop.f32.mrf.mxu0 }
 0xf81   :  { %7700 = vmatprep.mubr.bf16.mxu0 %v5074_v31  ;;  %v4964_v56 = vadd.f32 %v4963_v27, %v11845_v28 }
 0xf82   :  { %v7659_v2 = vpop.f32.mrf.mxu0  ;;  %7701 = vmatmul.mubr.bf16.vlgmr.msra.gmra.mxu0 %v5075_v36 }
 0xf83   :  { %v4975_v62 = vadd.f32 %v7659_v2, %v11845_v28 }
 0xf84   :  { %v4966_v19 = vpop.f32.mrf.mxu0 }
 0xf85   :  { %v4967_v25 = vadd.f32 %v4966_v19, %v11845_v28  ;;  %v5077_v48 = vpack.c.bf16 %v4975_v62, %v4972_v12 }
 0xf86   :  { %v7662_v18 = vpop.f32.mrf.mxu0 }
 0xf87   :  { %v5076_v17 = vpack.c.bf16 %v4967_v25, %v4964_v56  ;;  %v4988_v14 = vadd.f32 %v7662_v18, %v11845_v28 }
 0xf88   :  { %v4979_v34 = vpop.f32.mrf.mxu0 }
 0xf89   :  { %7704 = vmatprep.mubr.bf16.mxu0 %v5076_v17  ;;  %v4980_v10 = vadd.f32 %v4979_v34, %v11845_v28 }
 0xf8a   :  { %v7663_v20 = vpop.f32.mrf.mxu0  ;;  %7705 = vmatmul.mubr.bf16.gmra.mxu0 %v5077_v48 }
 0xf8b   :  { %v4991_v43 = vadd.f32 %v7663_v20, %v11845_v28 }
 0xf8c   :  { %v4982_v26 = vpop.f32.mrf.mxu0 }
 0xf8d   :  { %v4983_v47 = vadd.f32 %v4982_v26, %v11845_v28  ;;  %v5079_v13 = vpack.c.bf16 %v4991_v43, %v4988_v14 }
 0xf8f   :  { %v5078_v59 = vpack.c.bf16 %v4983_v47, %v4980_v10 }
 0xf91   :  { %7708 = vmatprep.mubr.bf16.mxu0 %v5078_v59 }
 0xf92   :  { %7709 = vmatmul.mubr.bf16.gmra.mxu0 %v5079_v13 }
 0xf96   :  { %v7666_v24 = vpop.f32.mrf.mxu0 }
 0xf97   :  { %v5004_v31 = vadd.f32 %v7666_v24, %v11845_v28 }
 0xf98   :  { %v4995_v33 = vpop.f32.mrf.mxu0 }
 0xf99   :  { %v4996_v36 = vadd.f32 %v4995_v33, %v11845_v28 }
 0xf9a   :  { %v7667_v45 = vpop.f32.mrf.mxu0 }
 0xf9b   :  { %v5007_v23 = vadd.f32 %v7667_v45, %v11845_v28 }
 0xf9c   :  { %v4998_v7 = vpop.f32.mrf.mxu0 }
 0xf9d   :  { %v4999_v38 = vadd.f32 %v4998_v7, %v11845_v28  ;;  %v5081_v2 = vpack.c.bf16 %v5007_v23, %v5004_v31  ;;  %v7895_v23 = vld [vmem:[%s12975_s4 + $0x90] sm:$0xff]  }
 0xf9e   :  { %7742 = vmatprep.subr.bf16.mxu1 %v7895_v23 }
 0xf9f   :  { %v5080_v27 = vpack.c.bf16 %v4999_v38, %v4996_v36  ;;  %7743 = vmatpush3.bf16.msra.mxu1 %v7895_v23  ;;  %v7896_v36 = vld [vmem:[%s12975_s4 + $0x88] sm:$0xff]  }
 0xfa0   :  { %7744 = vmatprep.subr.bf16.mxu1 %v7896_v36 }
 0xfa1   :  { %7712 = vmatprep.mubr.bf16.mxu0 %v5080_v27  ;;  %v7897_v27 = vld [vmem:[%s12975_s4 + $0x80] sm:$0xff]  }
 0xfa2   :  { %7713 = vmatmul.mubr.bf16.gmra.mxu0 %v5081_v2 }
 0xfa3   :  { %7745 = vmatpush3.bf16.msra.mxu1 %v7896_v36 }
 0xfa4   :  { %7746 = vmatprep.subr.bf16.mxu1 %v7897_v27 }
 0xfa6   :  { %v7670_v62 = vpop.f32.mrf.mxu0 }
 0xfa7   :  { %v5020_v48 = vadd.f32 %v7670_v62, %v11845_v28  ;;  %7747 = vmatpush3.bf16.msra.mxu1 %v7897_v27 }
 0xfa8   :  { %v5011_v19 = vpop.f32.mrf.mxu0 }
 0xfa9   :  { %v5012_v18 = vadd.f32 %v5011_v19, %v11845_v28 }
 0xfaa   :  { %v7671_v56 = vpop.f32.mrf.mxu0 }
 0xfab   :  { %v5023_v25 = vadd.f32 %v7671_v56, %v11845_v28 }
 0xfac   :  { %v5014_v12 = vpop.f32.mrf.mxu0 }
 0xfad   :  { %v5015_v17 = vadd.f32 %v5014_v12, %v11845_v28  ;;  %v5083_v20 = vpack.c.bf16 %v5023_v25, %v5020_v48 }
 0xfaf   :  { %v5082_v34 = vpack.c.bf16 %v5015_v17, %v5012_v18 }
 0xfb1   :  { %7716 = vmatprep.mubr.bf16.mxu0 %v5082_v34 }
 0xfb2   :  { %7717 = vmatmul.mubr.bf16.gmra.mxu0 %v5083_v20 }
 0xfb6   :  { %v7674_v43 = vpop.f32.mrf.mxu0 }
 0xfb7   :  { %v5036_v24 = vadd.f32 %v7674_v43, %v11845_v28 }
 0xfb8   :  { %v5027_v26 = vpop.f32.mrf.mxu0 }
 0xfb9   :  { %v5028_v59 = vadd.f32 %v5027_v26, %v11845_v28 }
 0xfba   :  { %v7675_v10 = vpop.f32.mrf.mxu0 }
 0xfbb   :  { %v5039_v47 = vadd.f32 %v7675_v10, %v11845_v28 }
 0xfbc   :  { %v5030_v14 = vpop.f32.mrf.mxu0 }
 0xfbd   :  { %v5031_v13 = vadd.f32 %v5030_v14, %v11845_v28  ;;  %v5085_v45 = vpack.c.bf16 %v5039_v47, %v5036_v24 }
 0xfbf   :  { %v5084_v33 = vpack.c.bf16 %v5031_v13, %v5028_v59  ;;  %v13154_v13 = vld [vmem:[#allocation18_spill] sm:$0xff] }
 0xfc0   :  { %v11890_v24 = vrot.slane %v11841_v46, %v13154_v13 }
 0xfc1   :  { %7720 = vmatprep.mubr.bf16.mxu0 %v5084_v33 }
 0xfc2   :  { %7721 = vmatmul.mubr.bf16.gmra.mxu0 %v5085_v45 }
 0xfc6   :  { %v7678_v7 = vpop.f32.mrf.mxu0 }
 0xfc7   :  { %v5052_v25 = vadd.f32 %v7678_v7, %v11845_v28 }
 0xfc8   :  { %v5043_v38 = vpop.f32.mrf.mxu0 }
 0xfc9   :  { %v5044_v19 = vadd.f32 %v5043_v38, %v11845_v28 }
 0xfca   :  { %v7679_v31 = vpop.f32.mrf.mxu0 }
 0xfcb   :  { %v5055_v2 = vadd.f32 %v7679_v31, %v11845_v28 }
 0xfcc   :  { %v5046_v62 = vpop.f32.mrf.mxu0 }
 0xfcd   :  { %v5047_v56 = vadd.f32 %v5046_v62, %v11845_v28  ;;  %v5087_v18 = vpack.c.bf16 %v5055_v2, %v5052_v25 }
 0xfcf   :  { %v5086_v12 = vpack.c.bf16 %v5047_v56, %v5044_v19 }
 0xfd1   :  { %7724 = vmatprep.mubr.bf16.mxu0 %v5086_v12 }
 0xfd2   :  { %7725 = vmatmul.mubr.bf16.gmra.mxu0 %v5087_v18 }
 0xfd6   :  { %v7682_v17 = vpop.f32.mrf.mxu0 }
 0xfd7   :  { %v5068_v47 = vadd.f32 %v7682_v17, %v11845_v28 }
 0xfd8   :  { %v5059_v48 = vpop.f32.mrf.mxu0 }
 0xfd9   :  { %v5060_v26 = vadd.f32 %v5059_v48, %v11845_v28 }
 0xfda   :  { %v7683_v34 = vpop.f32.mrf.mxu0 }
 0xfdb   :  { %v5071_v20 = vadd.f32 %v7683_v34, %v11845_v28 }
 0xfdc   :  { %v5062_v43 = vpop.f32.mrf.mxu0 }
 0xfdd   :  { %v5063_v10 = vadd.f32 %v5062_v43, %v11845_v28  ;;  %v5089_v59 = vpack.c.bf16 %v5071_v20, %v5068_v47 }
 0xfdf   :  { %v5088_v14 = vpack.c.bf16 %v5063_v10, %v5060_v26 }
 0xfe1   :  { %7728 = vmatprep.mubr.bf16.mxu0 %v5088_v14 }
 0xfe2   :  { %7729 = vmatmul.mubr.bf16.gmra.mxu0 %v5089_v59 }
0x1042   :  { %v7702_v33 = vpop.f32.mrf.mxu0 }
0x1043   :  { %v5202_v45 = vadd.f32 %v7702_v33, %v11890_v24 }
0x1044   :  { %v5193_v23 = vpop.f32.mrf.mxu0 }
0x1045   :  { %v5194_v7 = vadd.f32 %v5193_v23, %v11890_v24  ;;  %v5322_v31 = vmax.f32 %v5202_v45, 0.0 }
0x1046   :  { %v7703_v36 = vpop.f32.mrf.mxu0 }
0x1047   :  { %v5205_v38 = vadd.f32 %v7703_v36, %v11890_v24  ;;  %v5320_v28 = vmax.f32 %v5194_v7, 0.0 }
0x1048   :  { %v5196_v27 = vpop.f32.mrf.mxu0 }
0x1049   :  { %v5323_v2 = vmax.f32 %v5205_v38, 0.0  ;;  %v5197_v62 = vadd.f32 %v5196_v27, %v11890_v24 }
0x104a   :  { %v7706_v19 = vpop.f32.mrf.mxu0 }
0x104b   :  { %v5321_v56 = vmax.f32 %v5197_v62, 0.0  ;;  %v5353_v25 = vpack.c.bf16 %v5323_v2, %v5322_v31  ;;  %v5218_v20 = vadd.f32 %v7706_v19, %v11890_v24 }
0x104c   :  { %v5209_v12 = vpop.f32.mrf.mxu0 }
0x104d   :  { %v5352_v18 = vpack.c.bf16 %v5321_v56, %v5320_v28  ;;  %v5210_v48 = vadd.f32 %v5209_v12, %v11890_v24  ;;  %v5326_v13 = vmax.f32 %v5218_v20, 0.0 }
0x104e   :  { %v7707_v17 = vpop.f32.mrf.mxu0 }
0x104f   :  { %v5221_v34 = vadd.f32 %v7707_v17, %v11890_v24  ;;  %7748 = vmatprep.mubr.bf16.mxu1 %v5352_v18  ;;  %v5324_v14 = vmax.f32 %v5210_v48, 0.0 }
0x1050   :  { %v5212_v43 = vpop.f32.mrf.mxu0  ;;  %7749 = vmatmul.mubr.bf16.vlgmr.msra.gmra.mxu1 %v5353_v25 }
0x1051   :  { %v5213_v26 = vadd.f32 %v5212_v43, %v11890_v24  ;;  %v5327_v10 = vmax.f32 %v5221_v34, 0.0 }
0x1052   :  { %v7710_v47 = vpop.f32.mrf.mxu0 }
0x1053   :  { %v5325_v59 = vmax.f32 %v5213_v26, 0.0  ;;  %v5355_v23 = vpack.c.bf16 %v5327_v10, %v5326_v13  ;;  %v5234_v31 = vadd.f32 %v7710_v47, %v11890_v24 }
0x1054   :  { %v5225_v33 = vpop.f32.mrf.mxu0 }
0x1055   :  { %v5354_v45 = vpack.c.bf16 %v5325_v59, %v5324_v14  ;;  %v5226_v36 = vadd.f32 %v5225_v33, %v11890_v24  ;;  %v5330_v56 = vmax.f32 %v5234_v31, 0.0 }
0x1056   :  { %v7711_v7 = vpop.f32.mrf.mxu0 }
0x1057   :  { %v5237_v38 = vadd.f32 %v7711_v7, %v11890_v24  ;;  %7752 = vmatprep.mubr.bf16.mxu1 %v5354_v45  ;;  %v5328_v62 = vmax.f32 %v5226_v36, 0.0 }
0x1058   :  { %v5228_v27 = vpop.f32.mrf.mxu0  ;;  %7753 = vmatmul.mubr.bf16.gmra.mxu1 %v5355_v23 }
0x1059   :  { %v5229_v28 = vadd.f32 %v5228_v27, %v11890_v24  ;;  %v5331_v2 = vmax.f32 %v5237_v38, 0.0 }
0x105b   :  { %v5329_v19 = vmax.f32 %v5229_v28, 0.0  ;;  %v5357_v12 = vpack.c.bf16 %v5331_v2, %v5330_v56 }
0x105d   :  { %v5356_v25 = vpack.c.bf16 %v5329_v19, %v5328_v62 }
0x105f   :  { %7756 = vmatprep.mubr.bf16.mxu1 %v5356_v25 }
0x1060   :  { %7757 = vmatmul.mubr.bf16.gmra.mxu1 %v5357_v12 }
0x1062   :  { %v7714_v18 = vpop.f32.mrf.mxu0 }
0x1063   :  { %v5250_v43 = vadd.f32 %v7714_v18, %v11890_v24 }
0x1064   :  { %v5241_v17 = vpop.f32.mrf.mxu0 }
0x1065   :  { %v5242_v34 = vadd.f32 %v5241_v17, %v11890_v24  ;;  %v5334_v13 = vmax.f32 %v5250_v43, 0.0 }
0x1066   :  { %v7715_v48 = vpop.f32.mrf.mxu0 }
0x1067   :  { %v5253_v20 = vadd.f32 %v7715_v48, %v11890_v24  ;;  %v5332_v14 = vmax.f32 %v5242_v34, 0.0 }
0x1068   :  { %v5244_v26 = vpop.f32.mrf.mxu0 }
0x1069   :  { %v5245_v10 = vadd.f32 %v5244_v26, %v11890_v24  ;;  %v5335_v47 = vmax.f32 %v5253_v20, 0.0 }
0x106b   :  { %v5333_v59 = vmax.f32 %v5245_v10, 0.0  ;;  %v5359_v45 = vpack.c.bf16 %v5335_v47, %v5334_v13 }
0x106d   :  { %v5358_v33 = vpack.c.bf16 %v5333_v59, %v5332_v14 }
0x106f   :  { %7760 = vmatprep.mubr.bf16.mxu1 %v5358_v33 }
0x1070   :  { %7761 = vmatmul.mubr.bf16.gmra.mxu1 %v5359_v45 }
0x1072   :  { %v7718_v23 = vpop.f32.mrf.mxu0 }
0x1073   :  { %v5266_v27 = vadd.f32 %v7718_v23, %v11890_v24 }
0x1074   :  { %v5257_v7 = vpop.f32.mrf.mxu0 }
0x1075   :  { %v5258_v38 = vadd.f32 %v5257_v7, %v11890_v24  ;;  %v5338_v25 = vmax.f32 %v5266_v27, 0.0 }
0x1076   :  { %v7719_v36 = vpop.f32.mrf.mxu0 }
0x1077   :  { %v5269_v31 = vadd.f32 %v7719_v36, %v11890_v24  ;;  %v5336_v19 = vmax.f32 %v5258_v38, 0.0 }
0x1078   :  { %v5260_v28 = vpop.f32.mrf.mxu0 }
0x1079   :  { %v5261_v2 = vadd.f32 %v5260_v28, %v11890_v24  ;;  %v5339_v62 = vmax.f32 %v5269_v31, 0.0 }
0x107b   :  { %v5337_v56 = vmax.f32 %v5261_v2, 0.0  ;;  %v5361_v18 = vpack.c.bf16 %v5339_v62, %v5338_v25 }
0x107d   :  { %v5360_v12 = vpack.c.bf16 %v5337_v56, %v5336_v19 }
0x107f   :  { %7764 = vmatprep.mubr.bf16.mxu1 %v5360_v12 }
0x1080   :  { %7765 = vmatmul.mubr.bf16.gmra.mxu1 %v5361_v18 }
0x1082   :  { %v7722_v17 = vpop.f32.mrf.mxu0 }
0x1083   :  { %v5282_v26 = vadd.f32 %v7722_v17, %v11890_v24 }
0x1084   :  { %v5273_v48 = vpop.f32.mrf.mxu0 }
0x1085   :  { %v5274_v20 = vadd.f32 %v5273_v48, %v11890_v24  ;;  %v5342_v33 = vmax.f32 %v5282_v26, 0.0 }
0x1086   :  { %v7723_v34 = vpop.f32.mrf.mxu0 }
0x1087   :  { %v5285_v43 = vadd.f32 %v7723_v34, %v11890_v24  ;;  %v5340_v59 = vmax.f32 %v5274_v20, 0.0 }
0x1088   :  { %v5276_v10 = vpop.f32.mrf.mxu0 }
0x1089   :  { %v5277_v47 = vadd.f32 %v5276_v10, %v11890_v24  ;;  %v5343_v14 = vmax.f32 %v5285_v43, 0.0 }
0x108b   :  { %v5341_v13 = vmax.f32 %v5277_v47, 0.0  ;;  %v5363_v23 = vpack.c.bf16 %v5343_v14, %v5342_v33 }
0x108d   :  { %v5362_v45 = vpack.c.bf16 %v5341_v13, %v5340_v59 }
0x108f   :  { %7768 = vmatprep.mubr.bf16.mxu1 %v5362_v45 }
0x1090   :  { %7769 = vmatmul.mubr.bf16.gmra.mxu1 %v5363_v23 }
0x1092   :  { %v7726_v7 = vpop.f32.mrf.mxu0 }
0x1093   :  { %v5298_v28 = vadd.f32 %v7726_v7, %v11890_v24 }
0x1094   :  { %v5289_v36 = vpop.f32.mrf.mxu0 }
0x1095   :  { %v5290_v31 = vadd.f32 %v5289_v36, %v11890_v24  ;;  %v5346_v12 = vmax.f32 %v5298_v28, 0.0  ;;  %v13155_v36 = vld [vmem:[#allocation19_spill] sm:$0xff] }
0x1096   :  { %v7727_v38 = vpop.f32.mrf.mxu0 }
0x1097   :  { %v5301_v27 = vadd.f32 %v7727_v38, %v11890_v24  ;;  %v5344_v56 = vmax.f32 %v5290_v31, 0.0  ;;  %v11926_v38 = vrot.slane %v11841_v46, %v13155_v36 }
0x1098   :  { %v5292_v2 = vpop.f32.mrf.mxu0 }
0x1099   :  { %v5293_v62 = vadd.f32 %v5292_v2, %v11890_v24  ;;  %v5347_v19 = vmax.f32 %v5301_v27, 0.0 }
0x109b   :  { %v5345_v25 = vmax.f32 %v5293_v62, 0.0  ;;  %v5365_v17 = vpack.c.bf16 %v5347_v19, %v5346_v12 }
0x109d   :  { %v5364_v18 = vpack.c.bf16 %v5345_v25, %v5344_v56 }
0x109f   :  { %7772 = vmatprep.mubr.bf16.mxu1 %v5364_v18 }
0x10a0   :  { %7773 = vmatmul.mubr.bf16.gmra.mxu1 %v5365_v17 }
0x10a2   :  { %v7730_v48 = vpop.f32.mrf.mxu0 }
0x10a3   :  { %v5314_v10 = vadd.f32 %v7730_v48, %v11890_v24 }
0x10a4   :  { %v5305_v34 = vpop.f32.mrf.mxu0 }
0x10a5   :  { %v5306_v43 = vadd.f32 %v5305_v34, %v11890_v24  ;;  %v5350_v45 = vmax.f32 %v5314_v10, 0.0 }
0x10a6   :  { %v7731_v20 = vpop.f32.mrf.mxu0 }
0x10a7   :  { %v5317_v26 = vadd.f32 %v7731_v20, %v11890_v24  ;;  %v5348_v13 = vmax.f32 %v5306_v43, 0.0 }
0x10a8   :  { %v5308_v47 = vpop.f32.mrf.mxu0 }
0x10a9   :  { %v5309_v14 = vadd.f32 %v5308_v47, %v11890_v24  ;;  %v5351_v59 = vmax.f32 %v5317_v26, 0.0 }
0x10ab   :  { %v5349_v33 = vmax.f32 %v5309_v14, 0.0  ;;  %v5367_v7 = vpack.c.bf16 %v5351_v59, %v5350_v45 }
0x10ad   :  { %v5366_v23 = vpack.c.bf16 %v5349_v33, %v5348_v13 }
0x10af   :  { %7776 = vmatprep.mubr.bf16.mxu1 %v5366_v23 }
0x10b0   :  { %7777 = vmatmul.mubr.bf16.gmra.mxu1 %v5367_v7 }
0x1110   :  { %v7750_v31 = vpop.f32.mrf.mxu1 }
0x1111   :  { %v11929_v27 = vadd.f32 %v7750_v31, %v11926_v38 }
0x1112   :  { %v5471_v28 = vpop.f32.mrf.mxu1 }
0x1113   :  { %v11932_v2 = vadd.f32 %v5471_v28, %v11926_v38  ;;  %v5604_v24 = vsel %vm90_vm0, %v11929_v27, 0.0 }
0x1114   :  { %5605 = vadd.xlane.f32.xlu0 %v5604_v24  ;;  %v7751_v62 = vpop.f32.mrf.mxu1 }
0x1115   :  { %v11937_v19 = vadd.f32 %v7751_v62, %v11926_v38  ;;  %v5598_v46 = vsel %vm90_vm0, %v11932_v2, 0.0 }
0x1116   :  { %v5474_v56 = vpop.f32.mrf.mxu1 }
0x1117   :  { %v11942_v25 = vadd.f32 %v5474_v56, %v11926_v38  ;;  %v5607_v12 = vsel %vm90_vm0, %v11937_v19, 0.0 }
0x1118   :  { %5608 = vadd.xlane.f32.xlu1 %v5607_v12  ;;  %v7754_v18 = vpop.f32.mrf.mxu1  ;;  %5599 = vadd.xlane.f32.xlu0 %v5598_v46 }
0x1119   :  { %v11947_v17 = vadd.f32 %v7754_v18, %v11926_v38  ;;  %v5601_v48 = vsel %vm90_vm0, %v11942_v25, 0.0 }
0x111a   :  { %v5487_v34 = vpop.f32.mrf.mxu1 }
0x111b   :  { %v11952_v20 = vadd.f32 %v5487_v34, %v11926_v38  ;;  %v5616_v43 = vsel %vm90_vm0, %v11947_v17, 0.0 }
0x111c   :  { %v7755_v26 = vpop.f32.mrf.mxu1  ;;  %5602 = vadd.xlane.f32.xlu1 %v5601_v48  ;;  %5617 = vadd.xlane.f32.xlu0 %v5616_v43 }
0x111d   :  { %v11957_v10 = vadd.f32 %v7755_v26, %v11926_v38  ;;  %v5610_v13 = vsel %vm90_vm0, %v11952_v20, 0.0 }
0x111e   :  { %v5490_v47 = vpop.f32.mrf.mxu1 }
0x111f   :  { %v11960_v14 = vadd.f32 %v5490_v47, %v11926_v38  ;;  %v5619_v59 = vsel %vm90_vm0, %v11957_v10, 0.0 }
0x1120   :  { %v7758_v33 = vpop.f32.mrf.mxu1  ;;  %5620 = vadd.xlane.f32.xlu1 %v5619_v59  ;;  %5611 = vadd.xlane.f32.xlu0 %v5610_v13 }
0x1121   :  { %v11967_v45 = vadd.f32 %v7758_v33, %v11926_v38  ;;  %v5613_v36 = vsel %vm90_vm0, %v11960_v14, 0.0 }
0x1122   :  { %v5503_v23 = vpop.f32.mrf.mxu1 }
0x1123   :  { %v11970_v7 = vadd.f32 %v5503_v23, %v11926_v38  ;;  %v5628_v31 = vsel %vm90_vm0, %v11967_v45, 0.0 }
0x1124   :  { %v7759_v28 = vpop.f32.mrf.mxu1  ;;  %5614 = vadd.xlane.f32.xlu1 %v5613_v36  ;;  %5629 = vadd.xlane.f32.xlu0 %v5628_v31 }
0x1125   :  { %v11977_v24 = vadd.f32 %v7759_v28, %v11926_v38  ;;  %v5622_v12 = vsel %vm90_vm0, %v11970_v7, 0.0 }
0x1126   :  { %v5506_v62 = vpop.f32.mrf.mxu1 }
0x1127   :  { %v11980_v46 = vadd.f32 %v5506_v62, %v11926_v38  ;;  %v5631_v56 = vsel %vm90_vm0, %v11977_v24, 0.0 }
0x1128   :  { %5632 = vadd.xlane.f32.xlu1 %v5631_v56  ;;  %5623 = vadd.xlane.f32.xlu0 %v5622_v12 }
0x1129   :  { %v5625_v18 = vsel %vm90_vm0, %v11980_v46, 0.0 }
0x112c   :  { %5626 = vadd.xlane.f32.xlu1 %v5625_v18 }
0x1130   :  { %v7762_v48 = vpop.f32.mrf.mxu1 }
0x1131   :  { %v11989_v34 = vadd.f32 %v7762_v48, %v11926_v38 }
0x1132   :  { %v5519_v43 = vpop.f32.mrf.mxu1 }
0x1133   :  { %v11992_v26 = vadd.f32 %v5519_v43, %v11926_v38  ;;  %v5640_v47 = vsel %vm90_vm0, %v11989_v34, 0.0 }
0x1134   :  { %v7763_v59 = vpop.f32.mrf.mxu1  ;;  %5641 = vadd.xlane.f32.xlu0 %v5640_v47 }
0x1135   :  { %v11997_v13 = vadd.f32 %v7763_v59, %v11926_v38  ;;  %v5634_v31 = vsel %vm90_vm0, %v11992_v26, 0.0 }
0x1136   :  { %v5522_v33 = vpop.f32.mrf.mxu1 }
0x1137   :  { %v12000_v23 = vadd.f32 %v5522_v33, %v11926_v38  ;;  %v5643_v36 = vsel %vm90_vm0, %v11997_v13, 0.0 }
0x1138   :  { %5644 = vadd.xlane.f32.xlu1 %v5643_v36  ;;  %5635 = vadd.xlane.f32.xlu0 %v5634_v31 }
0x1139   :  { %v5637_v28 = vsel %vm90_vm0, %v12000_v23, 0.0 }
0x113c   :  { %5638 = vadd.xlane.f32.xlu1 %v5637_v28 }
0x1140   :  { %v7766_v62 = vpop.f32.mrf.mxu1 }
0x1141   :  { %v12009_v56 = vadd.f32 %v7766_v62, %v11926_v38 }
0x1142   :  { %v5535_v12 = vpop.f32.mrf.mxu1 }
0x1143   :  { %v12012_v18 = vadd.f32 %v5535_v12, %v11926_v38  ;;  %v5652_v48 = vsel %vm90_vm0, %v12009_v56, 0.0 }
0x1144   :  { %v7767_v43 = vpop.f32.mrf.mxu1  ;;  %5653 = vadd.xlane.f32.xlu0 %v5652_v48 }
0x1145   :  { %v12017_v47 = vadd.f32 %v7767_v43, %v11926_v38  ;;  %v5646_v31 = vsel %vm90_vm0, %v12012_v18, 0.0 }
0x1146   :  { %v5538_v59 = vpop.f32.mrf.mxu1 }
0x1147   :  { %v12020_v33 = vadd.f32 %v5538_v59, %v11926_v38  ;;  %v5655_v36 = vsel %vm90_vm0, %v12017_v47, 0.0 }
0x1148   :  { %5656 = vadd.xlane.f32.xlu1 %v5655_v36  ;;  %5647 = vadd.xlane.f32.xlu0 %v5646_v31 }
0x1149   :  { %v5649_v28 = vsel %vm90_vm0, %v12020_v33, 0.0 }
0x114c   :  { %5650 = vadd.xlane.f32.xlu1 %v5649_v28 }
0x1150   :  { %v7770_v62 = vpop.f32.mrf.mxu1 }
0x1151   :  { %v12029_v12 = vadd.f32 %v7770_v62, %v11926_v38 }
0x1152   :  { %v5551_v48 = vpop.f32.mrf.mxu1 }
0x1153   :  { %v12032_v43 = vadd.f32 %v5551_v48, %v11926_v38  ;;  %v5664_v59 = vsel %vm90_vm0, %v12029_v12, 0.0 }
0x1154   :  { %v7771_v35 = vpop.f32.mrf.mxu1  ;;  %5665 = vadd.xlane.f32.xlu0 %v5664_v59 }
0x1155   :  { %v12037_v36 = vadd.f32 %v7771_v35, %v11926_v38  ;;  %v5658_v62 = vsel %vm90_vm0, %v12032_v43, 0.0 }
0x1156   :  { %v5554_v31 = vpop.f32.mrf.mxu1 }
0x1157   :  { %v12040_v3 = vadd.f32 %v5554_v31, %v11926_v38  ;;  %v5667_v28 = vsel %vm90_vm0, %v12037_v36, 0.0 }
0x1158   :  { %5668 = vadd.xlane.f32.xlu1 %v5667_v28  ;;  %5659 = vadd.xlane.f32.xlu0 %v5658_v62 }
0x1159   :  { %v5661_v48 = vsel %vm90_vm0, %v12040_v3, 0.0 }
0x115c   :  { %5662 = vadd.xlane.f32.xlu1 %v5661_v48 }
0x1160   :  { %v7774_v59 = vpop.f32.mrf.mxu1 }
0x1161   :  { %v12049_v35 = vadd.f32 %v7774_v59, %v11926_v38 }
0x1162   :  { %v5567_v0 = vpop.f32.mrf.mxu1 }
0x1163   :  { %v12052_v31 = vadd.f32 %v5567_v0, %v11926_v38  ;;  %v5676_v60 = vsel %vm90_vm0, %v12049_v35, 0.0 }
0x1164   :  { %v7775_v15 = vpop.f32.mrf.mxu1  ;;  %5677 = vadd.xlane.f32.xlu0 %v5676_v60 }
0x1165   :  { %v12057_v28 = vadd.f32 %v7775_v15, %v11926_v38  ;;  %v5670_v59 = vsel %vm90_vm0, %v12052_v31, 0.0 }
0x1166   :  { %v5570_v62 = vpop.f32.mrf.mxu1 }
0x1167   :  { %v12060_v42 = vadd.f32 %v5570_v62, %v11926_v38  ;;  %v5679_v48 = vsel %vm90_vm0, %v12057_v28, 0.0 }
0x1168   :  { %5680 = vadd.xlane.f32.xlu1 %v5679_v48  ;;  %5671 = vadd.xlane.f32.xlu0 %v5670_v59 }
0x1169   :  { %v5673_v0 = vsel %vm90_vm0, %v12060_v42, 0.0 }
0x116c   :  { %5674 = vadd.xlane.f32.xlu1 %v5673_v0 }
0x1170   :  { %v7778_v60 = vpop.f32.mrf.mxu1 }
0x1171   :  { %v12072_v62 = vadd.f32 %v7778_v60, %v11926_v38 }
0x1172   :  { %v5583_v57 = vpop.f32.mrf.mxu1 }
0x1173   :  { %v12069_v15 = vadd.f32 %v5583_v57, %v11926_v38  ;;  %v5688_v57 = vsel %vm90_vm0, %v12072_v62, 0.0 }
0x1174   :  { %v7779_v50 = vpop.f32.mrf.mxu1 }
0x1175   :  { %v5682_v58 = vsel %vm90_vm0, %v12069_v15, 0.0  ;;  %v12080_v59 = vadd.f32 %v7779_v50, %v11926_v38 }
0x1176   :  { %v5586_v63 = vpop.f32.mrf.mxu1  ;;  %5683 = vadd.xlane.f32.xlu0 %v5682_v58 }
0x1177   :  { %v12077_v48 = vadd.f32 %v5586_v63, %v11926_v38  ;;  %v5691_v60 = vsel %vm90_vm0, %v12080_v59, 0.0 }
0x1179   :  { %v5685_v0 = vsel %vm90_vm0, %v12077_v48, 0.0 }
0x117a   :  { %5686 = vadd.xlane.f32.xlu1 %v5685_v0  ;;  %5689 = vadd.xlane.f32.xlu0 %v5688_v57 }
0x117e   :  { %5692 = vadd.xlane.f32.xlu1 %v5691_v60 }
0x119d   :  { %v5606_v39 = vpop.xlane.xlu0 %5605 }
0x119e   :  { %v5696_v58 = vmul.f32 0.03125, %v5606_v39 }
0x11a0   :  { %v12089_v63 = vsub.f32 %v11929_v27, %v5696_v58 }
0x11a1   :  { %v5609_v5 = vpop.xlane.xlu1 %5608  ;;  %v5600_v50 = vpop.xlane.xlu0 %5599 }
0x11a2   :  { %v5697_v38 = vmul.f32 0.03125, %v5609_v5  ;;  %v5694_v6 = vmul.f32 0.03125, %v5600_v50  ;;  %v5760_v52 = vmul.f32 %v12089_v63, %v12089_v63 }
0x11a4   :  { %v12094_v61 = vsub.f32 %v11937_v19, %v5697_v38  ;;  %v12097_v0 = vsub.f32 %v11932_v2, %v5694_v6  ;;  %v5796_v57 = vsel %vm90_vm0, %v5760_v52, 0.0 }
0x11a5   :  { %v5603_v60 = vpop.xlane.xlu1 %5602  ;;  %5797 = vadd.xlane.f32.xlu0 %v5796_v57  ;;  %v5618_v39 = vpop.xlane.xlu0 %5617 }
0x11a6   :  { %v5695_v27 = vmul.f32 0.03125, %v5603_v60  ;;  %v5700_v58 = vmul.f32 0.03125, %v5618_v39  ;;  %v5761_v5 = vmul.f32 %v12094_v61, %v12094_v61  ;;  %v5758_v50 = vmul.f32 %v12097_v0, %v12097_v0 }
0x11a8   :  { %v12105_v8 = vsub.f32 %v11942_v25, %v5695_v27  ;;  %v12108_v19 = vsub.f32 %v11947_v17, %v5700_v58  ;;  %v5799_v6 = vsel %vm90_vm0, %v5761_v5, 0.0  ;;  %v5790_v52 = vsel %vm90_vm0, %v5758_v50, 0.0 }
0x11a9   :  { %5800 = vadd.xlane.f32.xlu1 %v5799_v6  ;;  %v5621_v2 = vpop.xlane.xlu1 %5620  ;;  %5791 = vadd.xlane.f32.xlu0 %v5790_v52  ;;  %v5612_v38 = vpop.xlane.xlu0 %5611 }
0x11aa   :  { %v5701_v57 = vmul.f32 0.03125, %v5621_v2  ;;  %v5698_v60 = vmul.f32 0.03125, %v5612_v38  ;;  %v5759_v39 = vmul.f32 %v12105_v8, %v12105_v8  ;;  %v5764_v25 = vmul.f32 %v12108_v19, %v12108_v19 }
0x11ac   :  { %v12117_v27 = vsub.f32 %v11957_v10, %v5701_v57  ;;  %v12120_v17 = vsub.f32 %v11952_v20, %v5698_v60  ;;  %v5793_v58 = vsel %vm90_vm0, %v5759_v39, 0.0  ;;  %v5808_v5 = vsel %vm90_vm0, %v5764_v25, 0.0 }
0x11ad   :  { %5794 = vadd.xlane.f32.xlu1 %v5793_v58  ;;  %v5615_v50 = vpop.xlane.xlu1 %5614  ;;  %5809 = vadd.xlane.f32.xlu0 %v5808_v5  ;;  %v5630_v6 = vpop.xlane.xlu0 %5629 }
0x11ae   :  { %v5699_v52 = vmul.f32 0.03125, %v5615_v50  ;;  %v5704_v2 = vmul.f32 0.03125, %v5630_v6  ;;  %v5765_v38 = vmul.f32 %v12117_v27, %v12117_v27  ;;  %v5762_v10 = vmul.f32 %v12120_v17, %v12120_v17 }
0x11b0   :  { %v12129_v57 = vsub.f32 %v11960_v14, %v5699_v52  ;;  %v12132_v20 = vsub.f32 %v11967_v45, %v5704_v2  ;;  %v5811_v60 = vsel %vm90_vm0, %v5765_v38, 0.0  ;;  %v5802_v39 = vsel %vm90_vm0, %v5762_v10, 0.0 }
0x11b1   :  { %5812 = vadd.xlane.f32.xlu1 %v5811_v60  ;;  %v5633_v25 = vpop.xlane.xlu1 %5632  ;;  %5803 = vadd.xlane.f32.xlu0 %v5802_v39  ;;  %v5624_v58 = vpop.xlane.xlu0 %5623 }
0x11b2   :  { %v5705_v5 = vmul.f32 0.03125, %v5633_v25  ;;  %v5702_v50 = vmul.f32 0.03125, %v5624_v58  ;;  %v5763_v6 = vmul.f32 %v12129_v57, %v12129_v57  ;;  %v5768_v14 = vmul.f32 %v12132_v20, %v12132_v20 }
0x11b4   :  { %v12141_v52 = vsub.f32 %v11977_v24, %v5705_v5  ;;  %v12144_v45 = vsub.f32 %v11970_v7, %v5702_v50  ;;  %v5805_v2 = vsel %vm90_vm0, %v5763_v6, 0.0  ;;  %v5820_v38 = vsel %vm90_vm0, %v5768_v14, 0.0 }
0x11b5   :  { %5806 = vadd.xlane.f32.xlu1 %v5805_v2  ;;  %v5627_v10 = vpop.xlane.xlu1 %5626  ;;  %5821 = vadd.xlane.f32.xlu0 %v5820_v38 }
0x11b6   :  { %v5703_v60 = vmul.f32 0.03125, %v5627_v10  ;;  %v5769_v39 = vmul.f32 %v12141_v52, %v12141_v52  ;;  %v5766_v25 = vmul.f32 %v12144_v45, %v12144_v45 }
0x11b8   :  { %v12153_v24 = vsub.f32 %v11980_v46, %v5703_v60  ;;  %v5823_v7 = vsel %vm90_vm0, %v5769_v39, 0.0  ;;  %v5814_v58 = vsel %vm90_vm0, %v5766_v25, 0.0 }
0x11b9   :  { %5824 = vadd.xlane.f32.xlu1 %v5823_v7  ;;  %5815 = vadd.xlane.f32.xlu0 %v5814_v58 }
0x11ba   :  { %v5767_v5 = vmul.f32 %v12153_v24, %v12153_v24 }
0x11bc   :  { %v5817_v50 = vsel %vm90_vm0, %v5767_v5, 0.0 }
0x11bd   :  { %5818 = vadd.xlane.f32.xlu1 %v5817_v50  ;;  %v5642_v6 = vpop.xlane.xlu0 %5641 }
0x11be   :  { %v5708_v14 = vmul.f32 0.03125, %v5642_v6 }
0x11c0   :  { %v12161_v2 = vsub.f32 %v11989_v34, %v5708_v14 }
0x11c1   :  { %v5645_v38 = vpop.xlane.xlu1 %5644  ;;  %v5636_v46 = vpop.xlane.xlu0 %5635 }
0x11c2   :  { %v5709_v10 = vmul.f32 0.03125, %v5645_v38  ;;  %v5706_v60 = vmul.f32 0.03125, %v5636_v46  ;;  %v5772_v39 = vmul.f32 %v12161_v2, %v12161_v2 }
0x11c4   :  { %v12166_v25 = vsub.f32 %v11997_v13, %v5709_v10  ;;  %v12169_v7 = vsub.f32 %v11992_v26, %v5706_v60  ;;  %v5832_v58 = vsel %vm90_vm0, %v5772_v39, 0.0 }
0x11c5   :  { %v5639_v5 = vpop.xlane.xlu1 %5638  ;;  %5833 = vadd.xlane.f32.xlu0 %v5832_v58 }
0x11c6   :  { %v5707_v50 = vmul.f32 0.03125, %v5639_v5  ;;  %v5773_v34 = vmul.f32 %v12166_v25, %v12166_v25  ;;  %v5770_v6 = vmul.f32 %v12169_v7, %v12169_v7 }
0x11c8   :  { %v12177_v14 = vsub.f32 %v12000_v23, %v5707_v50  ;;  %v5835_v13 = vsel %vm90_vm0, %v5773_v34, 0.0  ;;  %v5826_v38 = vsel %vm90_vm0, %v5770_v6, 0.0 }
0x11c9   :  { %5836 = vadd.xlane.f32.xlu1 %v5835_v13  ;;  %5827 = vadd.xlane.f32.xlu0 %v5826_v38 }
0x11ca   :  { %v5771_v26 = vmul.f32 %v12177_v14, %v12177_v14 }
0x11cc   :  { %v5829_v46 = vsel %vm90_vm0, %v5771_v26, 0.0 }
0x11cd   :  { %5830 = vadd.xlane.f32.xlu1 %v5829_v46  ;;  %v5654_v10 = vpop.xlane.xlu0 %5653 }
0x11ce   :  { %v5712_v60 = vmul.f32 0.03125, %v5654_v10 }
0x11d0   :  { %v12185_v39 = vsub.f32 %v12009_v56, %v5712_v60 }
0x11d1   :  { %v5657_v58 = vpop.xlane.xlu1 %5656  ;;  %v5648_v23 = vpop.xlane.xlu0 %5647 }
0x11d2   :  { %v5713_v5 = vmul.f32 0.03125, %v5657_v58  ;;  %v5710_v50 = vmul.f32 0.03125, %v5648_v23  ;;  %v5776_v34 = vmul.f32 %v12185_v39, %v12185_v39 }
0x11d4   :  { %v12190_v6 = vsub.f32 %v12017_v47, %v5713_v5  ;;  %v12193_v13 = vsub.f32 %v12012_v18, %v5710_v50  ;;  %v5844_v38 = vsel %vm90_vm0, %v5776_v34, 0.0 }
0x11d5   :  { %v5651_v26 = vpop.xlane.xlu1 %5650  ;;  %5845 = vadd.xlane.f32.xlu0 %v5844_v38 }
0x11d6   :  { %v5711_v46 = vmul.f32 0.03125, %v5651_v26  ;;  %v5777_v56 = vmul.f32 %v12190_v6, %v12190_v6  ;;  %v5774_v10 = vmul.f32 %v12193_v13, %v12193_v13 }
0x11d8   :  { %v12201_v60 = vsub.f32 %v12020_v33, %v5711_v46  ;;  %v5847_v47 = vsel %vm90_vm0, %v5777_v56, 0.0  ;;  %v5838_v58 = vsel %vm90_vm0, %v5774_v10, 0.0 }
0x11d9   :  { %5848 = vadd.xlane.f32.xlu1 %v5847_v47  ;;  %5839 = vadd.xlane.f32.xlu0 %v5838_v58 }
0x11da   :  { %v5775_v18 = vmul.f32 %v12201_v60, %v12201_v60 }
0x11dc   :  { %v5841_v23 = vsel %vm90_vm0, %v5775_v18, 0.0 }
0x11dd   :  { %5842 = vadd.xlane.f32.xlu1 %v5841_v23  ;;  %v5666_v5 = vpop.xlane.xlu0 %5665 }
0x11de   :  { %v5716_v50 = vmul.f32 0.03125, %v5666_v5 }
0x11e0   :  { %v12209_v34 = vsub.f32 %v12029_v12, %v5716_v50 }
0x11e1   :  { %v5669_v38 = vpop.xlane.xlu1 %5668  ;;  %v5660_v33 = vpop.xlane.xlu0 %5659 }
0x11e2   :  { %v5717_v26 = vmul.f32 0.03125, %v5669_v38  ;;  %v5714_v46 = vmul.f32 0.03125, %v5660_v33  ;;  %v5780_v56 = vmul.f32 %v12209_v34, %v12209_v34 }
0x11e4   :  { %v12214_v10 = vsub.f32 %v12037_v36, %v5717_v26  ;;  %v12217_v47 = vsub.f32 %v12032_v43, %v5714_v46  ;;  %v5856_v58 = vsel %vm90_vm0, %v5780_v56, 0.0 }
0x11e5   :  { %v5663_v18 = vpop.xlane.xlu1 %5662  ;;  %5857 = vadd.xlane.f32.xlu0 %v5856_v58 }
0x11e6   :  { %v5715_v23 = vmul.f32 0.03125, %v5663_v18  ;;  %v5781_v12 = vmul.f32 %v12214_v10, %v12214_v10  ;;  %v5778_v5 = vmul.f32 %v12217_v47, %v12217_v47 }
0x11e8   :  { %v12225_v50 = vsub.f32 %v12040_v3, %v5715_v23  ;;  %v5859_v36 = vsel %vm90_vm0, %v5781_v12, 0.0  ;;  %v5850_v38 = vsel %vm90_vm0, %v5778_v5, 0.0 }
0x11e9   :  { %5860 = vadd.xlane.f32.xlu1 %v5859_v36  ;;  %5851 = vadd.xlane.f32.xlu0 %v5850_v38 }
0x11ea   :  { %v5779_v43 = vmul.f32 %v12225_v50, %v12225_v50 }
0x11ec   :  { %v5853_v33 = vsel %vm90_vm0, %v5779_v43, 0.0 }
0x11ed   :  { %5854 = vadd.xlane.f32.xlu1 %v5853_v33  ;;  %v5678_v26 = vpop.xlane.xlu0 %5677 }
0x11ee   :  { %v5720_v46 = vmul.f32 0.03125, %v5678_v26 }
0x11f0   :  { %v12233_v56 = vsub.f32 %v12049_v35, %v5720_v46 }
0x11f1   :  { %v5681_v58 = vpop.xlane.xlu1 %5680  ;;  %v5672_v3 = vpop.xlane.xlu0 %5671 }
0x11f2   :  { %v5721_v18 = vmul.f32 0.03125, %v5681_v58  ;;  %v5718_v23 = vmul.f32 0.03125, %v5672_v3  ;;  %v5784_v12 = vmul.f32 %v12233_v56, %v12233_v56 }
0x11f4   :  { %v12238_v5 = vsub.f32 %v12057_v28, %v5721_v18  ;;  %v12241_v36 = vsub.f32 %v12052_v31, %v5718_v23  ;;  %v5868_v38 = vsel %vm90_vm0, %v5784_v12, 0.0 }
0x11f5   :  { %v5675_v43 = vpop.xlane.xlu1 %5674  ;;  %5869 = vadd.xlane.f32.xlu0 %v5868_v38 }
0x11f6   :  { %13156 = vst [vmem:[#allocation23_spill] sm:$0xff] %v12241_v36  ;;  %v5719_v33 = vmul.f32 0.03125, %v5675_v43  ;;  %v5785_v35 = vmul.f32 %v12238_v5, %v12238_v5  ;;  %v5782_v26 = vmul.f32 %v12241_v36, %v12241_v36 }
0x11f8   :  { %v12249_v46 = vsub.f32 %v12060_v42, %v5719_v33  ;;  %v5871_v28 = vsel %vm90_vm0, %v5785_v35, 0.0  ;;  %v5862_v58 = vsel %vm90_vm0, %v5782_v26, 0.0 }
0x11f9   :  { %5872 = vadd.xlane.f32.xlu1 %v5871_v28  ;;  %5863 = vadd.xlane.f32.xlu0 %v5862_v58 }
0x11fa   :  { %13157 = vst [vmem:[#allocation26_spill] sm:$0xff] %v12249_v46  ;;  %v5783_v31 = vmul.f32 %v12249_v46, %v12249_v46 }
0x11fc   :  { %v5865_v3 = vsel %vm90_vm0, %v5783_v31, 0.0 }
0x11fd   :  { %5866 = vadd.xlane.f32.xlu1 %v5865_v3 }
0x11ff   :  { %v5684_v18 = vpop.xlane.xlu0 %5683 }
0x1200   :  { %v5722_v23 = vmul.f32 0.03125, %v5684_v18 }
0x1202   :  { %v12257_v12 = vsub.f32 %v12069_v15, %v5722_v23 }
0x1203   :  { %v5687_v38 = vpop.xlane.xlu1 %5686  ;;  %v5690_v42 = vpop.xlane.xlu0 %5689 }
0x1204   :  { %13158 = vst [vmem:[#allocation13_spill] sm:$0xff] %v12257_v12  ;;  %v5723_v43 = vmul.f32 0.03125, %v5687_v38  ;;  %v5724_v33 = vmul.f32 0.03125, %v5690_v42  ;;  %v5786_v35 = vmul.f32 %v12257_v12, %v12257_v12 }
0x1206   :  { %v12262_v26 = vsub.f32 %v12077_v48, %v5723_v43  ;;  %v12265_v28 = vsub.f32 %v12072_v62, %v5724_v33  ;;  %v5874_v58 = vsel %vm90_vm0, %v5786_v35, 0.0 }
0x1207   :  { %v5693_v31 = vpop.xlane.xlu1 %5692  ;;  %5875 = vadd.xlane.f32.xlu0 %v5874_v58 }
0x1208   :  { %13159 = vst [vmem:[#allocation14_spill] sm:$0xff] %v12262_v26  ;;  %13160 = vst [vmem:[#allocation24_spill] sm:$0xff] %v12265_v28  ;;  %v5725_v3 = vmul.f32 0.03125, %v5693_v31  ;;  %v5787_v15 = vmul.f32 %v12262_v26, %v12262_v26  ;;  %v5788_v18 = vmul.f32 %v12265_v28, %v12265_v28 }
0x120a   :  { %v12273_v23 = vsub.f32 %v12080_v59, %v5725_v3  ;;  %v5877_v48 = vsel %vm90_vm0, %v5787_v15, 0.0  ;;  %v5880_v38 = vsel %vm90_vm0, %v5788_v18, 0.0 }
0x120b   :  { %5878 = vadd.xlane.f32.xlu1 %v5877_v48  ;;  %5881 = vadd.xlane.f32.xlu0 %v5880_v38 }
0x120c   :  { %13161 = vst [vmem:[#allocation3_spill] sm:$0xff] %v12273_v23  ;;  %v5789_v62 = vmul.f32 %v12273_v23, %v12273_v23 }
0x120e   :  { %v5883_v42 = vsel %vm90_vm0, %v5789_v62, 0.0 }
0x120f   :  { %5884 = vadd.xlane.f32.xlu1 %v5883_v42 }
0x122e   :  { %v5798_v43 = vpop.xlane.xlu0 %5797 }
0x122f   :  { %v5888_v33 = vmul.f32 0.03125, %v5798_v43 }
0x1231   :  { %v5920_v35 = vadd.f32 1e-05, %v5888_v33 }
0x1232   :  { %v5801_v58 = vpop.xlane.xlu1 %5800  ;;  %v5792_v31 = vpop.xlane.xlu0 %5791 }
0x1233   :  { %8218 = vrsqrt.f32 %v5920_v35  ;;  %v5889_v59 = vmul.f32 0.03125, %v5801_v58  ;;  %v5886_v3 = vmul.f32 0.03125, %v5792_v31 }
0x1235   :  { %v5921_v28 = vadd.f32 1e-05, %v5889_v59  ;;  %v5918_v15 = vadd.f32 1e-05, %v5886_v3 }
0x1236   :  { %v5795_v26 = vpop.xlane.xlu1 %5794  ;;  %v5810_v18 = vpop.xlane.xlu0 %5809 }
0x1237   :  { %8220 = vrsqrt.f32 %v5921_v28  ;;  %v5887_v48 = vmul.f32 0.03125, %v5795_v26  ;;  %v5892_v38 = vmul.f32 0.03125, %v5810_v18  ;;  %v8413_v26 = vld [vmem:[%s12972_s5 + $0x20] sm:$0xff]  ;;  %v13162_v28 = vld [vmem:[#allocation25_spill] sm:$0xff] }
0x1238   :  { %8222 = vrsqrt.f32 %v5918_v15  ;;  %v12284_v15 = vrot.slane %v8413_v26, %v13162_v28 }
0x1239   :  { %v5919_v23 = vadd.f32 1e-05, %v5887_v48  ;;  %v5924_v12 = vadd.f32 1e-05, %v5892_v38  ;;  %v12288_v38 = vrot.slane %v8413_v26, %v9718_v29 }
0x123a   :  { %v5813_v62 = vpop.xlane.xlu1 %5812  ;;  %v5804_v42 = vpop.xlane.xlu0 %5803 }
0x123b   :  { %8224 = vrsqrt.f32 %v5919_v23  ;;  %v5893_v43 = vmul.f32 0.03125, %v5813_v62  ;;  %v5890_v33 = vmul.f32 0.03125, %v5804_v42 }
0x123c   :  { %8226 = vrsqrt.f32 %v5924_v12 }
0x123d   :  { %v5925_v46 = vadd.f32 1e-05, %v5893_v43  ;;  %v5922_v35 = vadd.f32 1e-05, %v5890_v33 }
0x123e   :  { %v5807_v58 = vpop.xlane.xlu1 %5806  ;;  %v5822_v31 = vpop.xlane.xlu0 %5821 }
0x123f   :  { %8228 = vrsqrt.f32 %v5925_v46  ;;  %v5891_v59 = vmul.f32 0.03125, %v5807_v58  ;;  %v5896_v3 = vmul.f32 0.03125, %v5822_v31 }
0x1240   :  { %v8219_v18 = vpop.eup %8218  ;;  %8230 = vrsqrt.f32 %v5922_v35 }
0x1241   :  { %v5923_v23 = vadd.f32 1e-05, %v5891_v59  ;;  %v5928_v48 = vadd.f32 1e-05, %v5896_v3  ;;  %v5984_v12 = vmul.f32 %v8219_v18, %v12089_v63 }
0x1242   :  { %v5825_v62 = vpop.xlane.xlu1 %5824  ;;  %v5816_v46 = vpop.xlane.xlu0 %5815 }
0x1243   :  { %8232 = vrsqrt.f32 %v5923_v23  ;;  %v5897_v42 = vmul.f32 0.03125, %v5825_v62  ;;  %v5894_v43 = vmul.f32 0.03125, %v5816_v46  ;;  %v6020_v33 = vmul.f32 %v12284_v15, %v5984_v12 }
0x1244   :  { %v8221_v58 = vpop.eup %8220  ;;  %8234 = vrsqrt.f32 %v5928_v48 }
0x1245   :  { %v8223_v31 = vpop.eup %8222  ;;  %v5929_v28 = vadd.f32 1e-05, %v5897_v42  ;;  %v5926_v36 = vadd.f32 1e-05, %v5894_v43  ;;  %v6056_v35 = vadd.f32 %v12288_v38, %v6020_v33  ;;  %v5985_v59 = vmul.f32 %v8221_v58, %v12094_v61 }
0x1246   :  { %v5819_v63 = vpop.xlane.xlu1 %5818  ;;  %v5982_v29 = vmul.f32 %v8223_v31, %v12097_v0 }
0x1247   :  { %8236 = vrsqrt.f32 %v5929_v28  ;;  %v5895_v3 = vmul.f32 0.03125, %v5819_v63  ;;  %v12295_v26 = vadd.f32 %v6056_v35, %v11655_v9  ;;  %v6021_v18 = vmul.f32 %v12284_v15, %v5985_v59 }
0x1248   :  { %v8225_v23 = vpop.eup %8224  ;;  %8238 = vrsqrt.f32 %v5926_v36  ;;  %v6018_v48 = vmul.f32 %v12284_v15, %v5982_v29 }
0x1249   :  { %v8227_v12 = vpop.eup %8226  ;;  %v5927_v62 = vadd.f32 1e-05, %v5895_v3  ;;  %v6124_v46 = vsel %vm90_vm0, %v12295_v26, 0.0  ;;  %v6057_v61 = vadd.f32 %v12288_v38, %v6021_v18  ;;  %v5983_v0 = vmul.f32 %v8225_v23, %v12105_v8 }
0x124a   :  { %6125 = vadd.xlane.f32.xlu0 %v6124_v46  ;;  %v6054_v42 = vadd.f32 %v12288_v38, %v6018_v48  ;;  %v5988_v9 = vmul.f32 %v8227_v12, %v12108_v19 }
0x124b   :  { %8240 = vrsqrt.f32 %v5927_v62  ;;  %v12306_v43 = vadd.f32 %v6057_v61, %v11658_v16  ;;  %v6019_v36 = vmul.f32 %v12284_v15, %v5983_v0 }
0x124c   :  { %v8229_v33 = vpop.eup %8228  ;;  %v12310_v58 = vadd.f32 %v6054_v42, %v11680_v49  ;;  %v6024_v31 = vmul.f32 %v12284_v15, %v5988_v9 }
0x124d   :  { %v8231_v28 = vpop.eup %8230  ;;  %v6127_v8 = vsel %vm90_vm0, %v12306_v43, 0.0  ;;  %v6055_v35 = vadd.f32 %v12288_v38, %v6019_v36  ;;  %v5989_v19 = vmul.f32 %v8229_v33, %v12117_v27 }
0x124e   :  { %6128 = vadd.xlane.f32.xlu1 %v6127_v8  ;;  %v6118_v16 = vsel %vm90_vm0, %v12310_v58, 0.0  ;;  %v5834_v59 = vpop.xlane.xlu0 %5833  ;;  %v6060_v63 = vadd.f32 %v12288_v38, %v6024_v31  ;;  %v5986_v49 = vmul.f32 %v8231_v28, %v12120_v17 }
0x124f   :  { %6119 = vadd.xlane.f32.xlu0 %v6118_v16  ;;  %v5900_v29 = vmul.f32 0.03125, %v5834_v59  ;;  %v12322_v3 = vadd.f32 %v6055_v35, %v11683_v11  ;;  %v6025_v18 = vmul.f32 %v12284_v15, %v5989_v19 }
0x1250   :  { %v8233_v23 = vpop.eup %8232  ;;  %v12326_v48 = vadd.f32 %v6060_v63, %v11625_v53  ;;  %v6022_v27 = vmul.f32 %v12284_v15, %v5986_v49 }
0x1251   :  { %v8235_v12 = vpop.eup %8234  ;;  %v5932_v62 = vadd.f32 1e-05, %v5900_v29  ;;  %v6121_v46 = vsel %vm90_vm0, %v12322_v3, 0.0  ;;  %v6061_v17 = vadd.f32 %v12288_v38, %v6025_v18  ;;  %v5987_v61 = vmul.f32 %v8233_v23, %v12129_v57 }
0x1252   :  { %6122 = vadd.xlane.f32.xlu1 %v6121_v46  ;;  %v5837_v11 = vpop.xlane.xlu1 %5836  ;;  %v6136_v0 = vsel %vm90_vm0, %v12326_v48, 0.0  ;;  %v5828_v42 = vpop.xlane.xlu0 %5827  ;;  %v6058_v53 = vadd.f32 %v12288_v38, %v6022_v27  ;;  %v5992_v9 = vmul.f32 %v8235_v12, %v12132_v20 }
0x1253   :  { %8242 = vrsqrt.f32 %v5932_v62  ;;  %v5901_v36 = vmul.f32 0.03125, %v5837_v11  ;;  %6137 = vadd.xlane.f32.xlu0 %v6136_v0  ;;  %v5898_v33 = vmul.f32 0.03125, %v5828_v42  ;;  %v12338_v31 = vadd.f32 %v6061_v17, %v11614_v4 }
0x1254   :  { %v8237_v28 = vpop.eup %8236  ;;  %v12341_v57 = vadd.f32 %v6058_v53, %v11642_v44  ;;  %v6023_v8 = vmul.f32 %v12284_v15, %v5987_v61  ;;  %v6028_v35 = vmul.f32 %v12284_v15, %v5992_v9 }
0x1255   :  { %v8239_v19 = vpop.eup %8238  ;;  %v5933_v16 = vadd.f32 1e-05, %v5901_v36  ;;  %v5930_v59 = vadd.f32 1e-05, %v5898_v33  ;;  %v6139_v20 = vsel %vm90_vm0, %v12338_v31, 0.0  ;;  %v5993_v63 = vmul.f32 %v8237_v28, %v12141_v52 }
0x1256   :  { %6140 = vadd.xlane.f32.xlu1 %v6139_v20  ;;  %v5831_v49 = vpop.xlane.xlu1 %5830  ;;  %v6130_v4 = vsel %vm90_vm0, %v12341_v57, 0.0  ;;  %v6059_v44 = vadd.f32 %v12288_v38, %v6023_v8  ;;  %v6064_v29 = vadd.f32 %v12288_v38, %v6028_v35  ;;  %v5990_v18 = vmul.f32 %v8239_v19, %v12144_v45 }
0x1257   :  { %8244 = vrsqrt.f32 %v5933_v16  ;;  %v5899_v23 = vmul.f32 0.03125, %v5831_v49  ;;  %6131 = vadd.xlane.f32.xlu0 %v6130_v4  ;;  %v6029_v27 = vmul.f32 %v12284_v15, %v5993_v63 }
0x1258   :  { %v8241_v12 = vpop.eup %8240  ;;  %8246 = vrsqrt.f32 %v5930_v59  ;;  %v12355_v52 = vadd.f32 %v6059_v44, %v11632_v32  ;;  %v12358_v62 = vadd.f32 %v6064_v29, %v11499_v54  ;;  %v6026_v46 = vmul.f32 %v12284_v15, %v5990_v18 }
0x1259   :  { %v5931_v17 = vadd.f32 1e-05, %v5899_v23  ;;  %v6065_v61 = vadd.f32 %v12288_v38, %v6029_v27  ;;  %v5991_v45 = vmul.f32 %v8241_v12, %v12153_v24 }
0x125a   :  { %v6133_v11 = vsel %vm90_vm0, %v12355_v52, 0.0  ;;  %v6148_v0 = vsel %vm90_vm0, %v12358_v62, 0.0  ;;  %v6062_v42 = vadd.f32 %v12288_v38, %v6026_v46 }
0x125b   :  { %8248 = vrsqrt.f32 %v5931_v17  ;;  %6134 = vadd.xlane.f32.xlu1 %v6133_v11  ;;  %6149 = vadd.xlane.f32.xlu0 %v6148_v0  ;;  %v12369_v54 = vadd.f32 %v6065_v61, %v11509_v22  ;;  %v6027_v32 = vmul.f32 %v12284_v15, %v5991_v45 }
0x125c   :  { %v12373_v53 = vadd.f32 %v6062_v42, %v11602_v1 }
0x125d   :  { %v6151_v24 = vsel %vm90_vm0, %v12369_v54, 0.0  ;;  %v6063_v9 = vadd.f32 %v12288_v38, %v6027_v32 }
0x125e   :  { %v6142_v36 = vsel %vm90_vm0, %v12373_v53, 0.0  ;;  %v5846_v33 = vpop.xlane.xlu0 %5845 }
0x125f   :  { %6152 = vadd.xlane.f32.xlu1 %v6151_v24  ;;  %6143 = vadd.xlane.f32.xlu0 %v6142_v36  ;;  %v5904_v28 = vmul.f32 0.03125, %v5846_v33  ;;  %v12381_v22 = vadd.f32 %v6063_v9, %v11589_v37 }
0x1260   :  { %v8243_v8 = vpop.eup %8242 }
0x1261   :  { %v5936_v35 = vadd.f32 1e-05, %v5904_v28  ;;  %v6145_v1 = vsel %vm90_vm0, %v12381_v22, 0.0  ;;  %v5996_v19 = vmul.f32 %v8243_v8, %v12161_v2 }
0x1262   :  { %v5849_v16 = vpop.xlane.xlu1 %5848  ;;  %v5840_v59 = vpop.xlane.xlu0 %5839 }
0x1263   :  { %8250 = vrsqrt.f32 %v5936_v35  ;;  %6146 = vadd.xlane.f32.xlu1 %v6145_v1  ;;  %v5905_v20 = vmul.f32 0.03125, %v5849_v16  ;;  %v5902_v63 = vmul.f32 0.03125, %v5840_v59  ;;  %v6032_v49 = vmul.f32 %v12284_v15, %v5996_v19 }
0x1264   :  { %v8245_v4 = vpop.eup %8244 }
0x1265   :  { %v8247_v44 = vpop.eup %8246  ;;  %v5937_v29 = vadd.f32 1e-05, %v5905_v20  ;;  %v5934_v37 = vadd.f32 1e-05, %v5902_v63  ;;  %v6068_v18 = vadd.f32 %v12288_v38, %v6032_v49  ;;  %v5997_v23 = vmul.f32 %v8245_v4, %v12166_v25 }
0x1266   :  { %v5843_v27 = vpop.xlane.xlu1 %5842  ;;  %v5994_v12 = vmul.f32 %v8247_v44, %v12169_v7 }
0x1267   :  { %8252 = vrsqrt.f32 %v5937_v29  ;;  %v5903_v2 = vmul.f32 0.03125, %v5843_v27  ;;  %v12391_v46 = vadd.f32 %v6068_v18, %v11518_v41  ;;  %v6033_v17 = vmul.f32 %v12284_v15, %v5997_v23 }
0x1268   :  { %v8249_v61 = vpop.eup %8248  ;;  %8254 = vrsqrt.f32 %v5934_v37  ;;  %v6030_v45 = vmul.f32 %v12284_v15, %v5994_v12 }
0x1269   :  { %v5935_v11 = vadd.f32 1e-05, %v5903_v2  ;;  %v6160_v0 = vsel %vm90_vm0, %v12391_v46, 0.0  ;;  %v6069_v25 = vadd.f32 %v12288_v38, %v6033_v17  ;;  %v5995_v42 = vmul.f32 %v8249_v61, %v12177_v14 }
0x126a   :  { %6161 = vadd.xlane.f32.xlu0 %v6160_v0  ;;  %v6066_v7 = vadd.f32 %v12288_v38, %v6030_v45 }
0x126b   :  { %8256 = vrsqrt.f32 %v5935_v11  ;;  %v12401_v41 = vadd.f32 %v6069_v25, %v11523_v40  ;;  %v6031_v32 = vmul.f32 %v12284_v15, %v5995_v42  ;;  %v13163_v25 = vld [vmem:[#allocation2_spill] sm:$0xff] }
0x126c   :  { %v12405_v24 = vadd.f32 %v6066_v7, %v11527_v51 }
0x126d   :  { %v6163_v9 = vsel %vm90_vm0, %v12401_v41, 0.0  ;;  %v6067_v36 = vadd.f32 %v12288_v38, %v6031_v32 }
0x126e   :  { %6164 = vadd.xlane.f32.xlu1 %v6163_v9  ;;  %v6154_v14 = vsel %vm90_vm0, %v12405_v24, 0.0  ;;  %v5858_v33 = vpop.xlane.xlu0 %5857 }
0x126f   :  { %6155 = vadd.xlane.f32.xlu0 %v6154_v14  ;;  %v5908_v28 = vmul.f32 0.03125, %v5858_v33  ;;  %v12413_v40 = vadd.f32 %v6067_v36, %v11530_v21  ;;  %v13164_v14 = vld [vmem:[#allocation22_spill] sm:$0xff] }
0x1270   :  { %v8251_v8 = vpop.eup %8250 }
0x1271   :  { %v5940_v35 = vadd.f32 1e-05, %v5908_v28  ;;  %v6157_v51 = vsel %vm90_vm0, %v12413_v40, 0.0  ;;  %v6000_v1 = vmul.f32 %v8251_v8, %v12185_v39 }
0x1272   :  { %6158 = vadd.xlane.f32.xlu1 %v6157_v51  ;;  %v5861_v19 = vpop.xlane.xlu1 %5860  ;;  %v5852_v16 = vpop.xlane.xlu0 %5851 }
0x1273   :  { %8258 = vrsqrt.f32 %v5940_v35  ;;  %v5909_v59 = vmul.f32 0.03125, %v5861_v19  ;;  %v5906_v20 = vmul.f32 0.03125, %v5852_v16  ;;  %v6036_v63 = vmul.f32 %v12284_v15, %v6000_v1 }
0x1274   :  { %v8253_v49 = vpop.eup %8252 }
0x1275   :  { %v8255_v4 = vpop.eup %8254  ;;  %v5941_v44 = vadd.f32 1e-05, %v5909_v59  ;;  %v5938_v21 = vadd.f32 1e-05, %v5906_v20  ;;  %v6072_v29 = vadd.f32 %v12288_v38, %v6036_v63  ;;  %v6001_v37 = vmul.f32 %v8253_v49, %v12190_v6 }
0x1276   :  { %v5855_v18 = vpop.xlane.xlu1 %5854  ;;  %v5998_v23 = vmul.f32 %v8255_v4, %v12193_v13 }
0x1277   :  { %8260 = vrsqrt.f32 %v5941_v44  ;;  %v5907_v39 = vmul.f32 0.03125, %v5855_v18  ;;  %v12423_v27 = vadd.f32 %v6072_v29, %v11652_v55  ;;  %v6037_v12 = vmul.f32 %v12284_v15, %v6001_v37  ;;  %v13165_v18 = vld [vmem:[#allocation21_spill] sm:$0xff] }
0x1278   :  { %v8257_v2 = vpop.eup %8256  ;;  %8262 = vrsqrt.f32 %v5938_v21  ;;  %v6034_v17 = vmul.f32 %v12284_v15, %v5998_v23 }
0x1279   :  { %v5939_v61 = vadd.f32 1e-05, %v5907_v39  ;;  %v6172_v45 = vsel %vm90_vm0, %v12423_v27, 0.0  ;;  %v6073_v6 = vadd.f32 %v12288_v38, %v6037_v12  ;;  %v5999_v11 = vmul.f32 %v8257_v2, %v12201_v60 }
0x127a   :  { %6173 = vadd.xlane.f32.xlu0 %v6172_v45  ;;  %v6070_v13 = vadd.f32 %v12288_v38, %v6034_v17 }
0x127b   :  { %8264 = vrsqrt.f32 %v5939_v61  ;;  %v12433_v55 = vadd.f32 %v6073_v6, %v11645_v30  ;;  %v6035_v0 = vmul.f32 %v12284_v15, %v5999_v11  ;;  %v13166_v6 = vld [vmem:[#allocation16_spill] sm:$0xff] }
0x127c   :  { %v12437_v42 = vadd.f32 %v6070_v13, %v13163_v25 }
0x127d   :  { %v6175_v7 = vsel %vm90_vm0, %v12433_v55, 0.0  ;;  %v6071_v32 = vadd.f32 %v12288_v38, %v6035_v0  ;;  %v13167_v0 = vld [vmem:[#allocation17_spill] sm:$0xff] }
0x127e   :  { %6176 = vadd.xlane.f32.xlu1 %v6175_v7  ;;  %v6166_v60 = vsel %vm90_vm0, %v12437_v42, 0.0  ;;  %v5870_v9 = vpop.xlane.xlu0 %5869 }
0x127f   :  { %6167 = vadd.xlane.f32.xlu0 %v6166_v60  ;;  %v5912_v36 = vmul.f32 0.03125, %v5870_v9  ;;  %v12445_v30 = vadd.f32 %v6071_v32, %v13164_v14  ;;  %v13168_v60 = vld [vmem:[#allocation12_spill] sm:$0xff] }
0x1280   :  { %v8259_v33 = vpop.eup %8258 }
0x1281   :  { %v5944_v28 = vadd.f32 1e-05, %v5912_v36  ;;  %v6169_v8 = vsel %vm90_vm0, %v12445_v30, 0.0  ;;  %v6004_v35 = vmul.f32 %v8259_v33, %v12209_v34 }
0x1282   :  { %6170 = vadd.xlane.f32.xlu1 %v6169_v8  ;;  %v5873_v51 = vpop.xlane.xlu1 %5872  ;;  %v5864_v1 = vpop.xlane.xlu0 %5863 }
0x1283   :  { %8266 = vrsqrt.f32 %v5944_v28  ;;  %v5913_v19 = vmul.f32 0.03125, %v5873_v51  ;;  %v5910_v16 = vmul.f32 0.03125, %v5864_v1  ;;  %v6040_v59 = vmul.f32 %v12284_v15, %v6004_v35 }
0x1284   :  { %v8261_v20 = vpop.eup %8260 }
0x1285   :  { %v8263_v63 = vpop.eup %8262  ;;  %v5945_v49 = vadd.f32 1e-05, %v5913_v19  ;;  %v5942_v4 = vadd.f32 1e-05, %v5910_v16  ;;  %v6076_v44 = vadd.f32 %v12288_v38, %v6040_v59  ;;  %v6005_v21 = vmul.f32 %v8261_v20, %v12214_v10 }
0x1286   :  { %v5867_v29 = vpop.xlane.xlu1 %5866  ;;  %v6002_v37 = vmul.f32 %v8263_v63, %v12217_v47 }
0x1287   :  { %8268 = vrsqrt.f32 %v5945_v49  ;;  %v5911_v34 = vmul.f32 0.03125, %v5867_v29  ;;  %v12455_v23 = vadd.f32 %v6076_v44, %v13165_v18  ;;  %v6041_v39 = vmul.f32 %v12284_v15, %v6005_v21  ;;  %v13169_v44 = vld [vmem:[#allocation23_spill] sm:$0xff] }
0x1288   :  { %v8265_v12 = vpop.eup %8264  ;;  %8270 = vrsqrt.f32 %v5942_v4  ;;  %v6038_v2 = vmul.f32 %v12284_v15, %v6002_v37 }
0x1289   :  { %v5943_v17 = vadd.f32 1e-05, %v5911_v34  ;;  %v6184_v61 = vsel %vm90_vm0, %v12455_v23, 0.0  ;;  %v6077_v10 = vadd.f32 %v12288_v38, %v6041_v39  ;;  %v6003_v45 = vmul.f32 %v8265_v12, %v12225_v50 }
0x128a   :  { %6185 = vadd.xlane.f32.xlu0 %v6184_v61  ;;  %v6074_v47 = vadd.f32 %v12288_v38, %v6038_v2 }
0x128b   :  { %8272 = vrsqrt.f32 %v5943_v17  ;;  %v12465_v11 = vadd.f32 %v6077_v10, %v13166_v6  ;;  %v6039_v13 = vmul.f32 %v12284_v15, %v6003_v45  ;;  %v13171_v10 = vld [vmem:[#allocation26_spill] sm:$0xff] }
0x128c   :  { %v12469_v25 = vadd.f32 %v6074_v47, %v13167_v0  ;;  %v13172_v0 = vld [vmem:[#allocation9_spill] sm:$0xff] }
0x128d   :  { %v6187_v7 = vsel %vm90_vm0, %v12465_v11, 0.0  ;;  %v6075_v32 = vadd.f32 %v12288_v38, %v6039_v13 }
0x128e   :  { %6188 = vadd.xlane.f32.xlu1 %v6187_v7  ;;  %v6178_v50 = vsel %vm90_vm0, %v12469_v25, 0.0 }
0x128f   :  { %6179 = vadd.xlane.f32.xlu0 %v6178_v50  ;;  %v12477_v9 = vadd.f32 %v6075_v32, %v13168_v60  ;;  %v13173_v32 = vld [vmem:[#allocation15_spill] sm:$0xff] }
0x1290   :  { %v8267_v36 = vpop.eup %8266  ;;  %v5876_v14 = vpop.xlane.xlu0 %5875 }
0x1291   :  { %v5914_v33 = vmul.f32 0.03125, %v5876_v14  ;;  %v6181_v28 = vsel %vm90_vm0, %v12477_v9, 0.0  ;;  %v6008_v8 = vmul.f32 %v8267_v36, %v12233_v56  ;;  %v13170_v56 = vld [vmem:[#allocation10_spill] sm:$0xff] }
0x1292   :  { %6182 = vadd.xlane.f32.xlu1 %v6181_v28 }
0x1293   :  { %v5946_v35 = vadd.f32 1e-05, %v5914_v33  ;;  %v6044_v51 = vmul.f32 %v12284_v15, %v6008_v8  ;;  %v13174_v33 = vld [vmem:[#allocation11_spill] sm:$0xff] }
0x1294   :  { %v8269_v1 = vpop.eup %8268  ;;  %v5879_v19 = vpop.xlane.xlu1 %5878 }
0x1295   :  { %v5882_v16 = vpop.xlane.xlu0 %5881  ;;  %v8271_v59 = vpop.eup %8270  ;;  %8274 = vrsqrt.f32 %v5946_v35  ;;  %v5915_v20 = vmul.f32 0.03125, %v5879_v19  ;;  %v6080_v49 = vadd.f32 %v12288_v38, %v6044_v51  ;;  %v6009_v4 = vmul.f32 %v8269_v1, %v12238_v5  ;;  %v13175_v51 = vld [vmem:[#allocation13_spill] sm:$0xff] }
0x1296   :  { %v5916_v63 = vmul.f32 0.03125, %v5882_v16  ;;  %v6006_v21 = vmul.f32 %v8271_v59, %v13169_v44 }
0x1297   :  { %v5947_v29 = vadd.f32 1e-05, %v5915_v20  ;;  %v12487_v34 = vadd.f32 %v6080_v49, %v13170_v56  ;;  %v6045_v12 = vmul.f32 %v12284_v15, %v6009_v4  ;;  %v13177_v4 = vld [vmem:[#allocation24_spill] sm:$0xff] }
0x1298   :  { %v5948_v37 = vadd.f32 1e-05, %v5916_v63  ;;  %v8273_v18 = vpop.eup %8272  ;;  %v5885_v39 = vpop.xlane.xlu1 %5884  ;;  %v6042_v2 = vmul.f32 %v12284_v15, %v6006_v21  ;;  %v13176_v63 = vld [vmem:[#allocation14_spill] sm:$0xff]  ;;  %v13178_v21 = vld [vmem:[#allocation7_spill] sm:$0xff] }
0x1299   :  { %8276 = vrsqrt.f32 %v5947_v29  ;;  %v5917_v17 = vmul.f32 0.03125, %v5885_v39  ;;  %v6196_v61 = vsel %vm90_vm0, %v12487_v34, 0.0  ;;  %v6007_v5 = vmul.f32 %v8273_v18, %v13171_v10  ;;  %v13180_v10 = vld [vmem:[#allocation20_spill] sm:$0xff] }
0x129a   :  { %8278 = vrsqrt.f32 %v5948_v37  ;;  %6197 = vadd.xlane.f32.xlu0 %v6196_v61  ;;  %v6081_v45 = vadd.f32 %v12288_v38, %v6045_v12  ;;  %v6078_v47 = vadd.f32 %v12288_v38, %v6042_v2  ;;  %v13179_v2 = vld [vmem:[#allocation3_spill] sm:$0xff] }
0x129b   :  { %v5949_v6 = vadd.f32 1e-05, %v5917_v17  ;;  %v6043_v13 = vmul.f32 %v12284_v15, %v6007_v5 }
0x129c   :  { %v12498_v7 = vadd.f32 %v6081_v45, %v13172_v0  ;;  %v12501_v50 = vadd.f32 %v6078_v47, %v13173_v32  ;;  %v13181_v47 = vld [vmem:[#allocation8_spill] sm:$0xff] }
0x129d   :  { %8280 = vrsqrt.f32 %v5949_v6  ;;  %v6079_v60 = vadd.f32 %v12288_v38, %v6043_v13 }
0x129e   :  { %v6199_v36 = vsel %vm90_vm0, %v12498_v7, 0.0  ;;  %v6190_v14 = vsel %vm90_vm0, %v12501_v50, 0.0 }
0x129f   :  { %6200 = vadd.xlane.f32.xlu1 %v6199_v36  ;;  %6191 = vadd.xlane.f32.xlu0 %v6190_v14  ;;  %v12509_v28 = vadd.f32 %v6079_v60, %v13174_v33  ;;  %v13182_v60 = vld [vmem:[#allocation6_spill] sm:$0xff] }
0x12a1   :  { %v6193_v8 = vsel %vm90_vm0, %v12509_v28, 0.0 }
0x12a2   :  { %v8275_v35 = vpop.eup %8274 }
0x12a3   :  { %6194 = vadd.xlane.f32.xlu1 %v6193_v8  ;;  %v6010_v1 = vmul.f32 %v8275_v35, %v13175_v51 }
0x12a5   :  { %v6046_v19 = vmul.f32 %v12284_v15, %v6010_v1 }
0x12a6   :  { %v8277_v16 = vpop.eup %8276 }
0x12a7   :  { %v8279_v59 = vpop.eup %8278  ;;  %v6082_v20 = vadd.f32 %v12288_v38, %v6046_v19  ;;  %v6011_v49 = vmul.f32 %v8277_v16, %v13176_v63 }
0x12a8   :  { %v6012_v44 = vmul.f32 %v8279_v59, %v13177_v4 }
0x12a9   :  { %v12519_v29 = vadd.f32 %v6082_v20, %v13178_v21  ;;  %v6047_v37 = vmul.f32 %v12284_v15, %v6011_v49 }
0x12aa   :  { %v8281_v56 = vpop.eup %8280  ;;  %v6048_v18 = vmul.f32 %v12284_v15, %v6012_v44 }
0x12ab   :  { %v6202_v39 = vsel %vm90_vm0, %v12519_v29, 0.0  ;;  %v6083_v12 = vadd.f32 %v12288_v38, %v6047_v37  ;;  %v6013_v17 = vmul.f32 %v8281_v56, %v13179_v2 }
0x12ac   :  { %6203 = vadd.xlane.f32.xlu0 %v6202_v39  ;;  %v6084_v61 = vadd.f32 %v12288_v38, %v6048_v18 }
0x12ad   :  { %v12529_v5 = vadd.f32 %v6083_v12, %v13180_v10  ;;  %v6049_v45 = vmul.f32 %v12284_v15, %v6013_v17 }
0x12ae   :  { %v12533_v6 = vadd.f32 %v6084_v61, %v13181_v47 }
0x12af   :  { %v6205_v13 = vsel %vm90_vm0, %v12529_v5, 0.0  ;;  %v6085_v0 = vadd.f32 %v12288_v38, %v6049_v45 }
0x12b0   :  { %6206 = vadd.xlane.f32.xlu1 %v6205_v13  ;;  %v6208_v32 = vsel %vm90_vm0, %v12533_v6, 0.0 }
0x12b1   :  { %6209 = vadd.xlane.f32.xlu0 %v6208_v32  ;;  %v12541_v36 = vadd.f32 %v6085_v0, %v13182_v60 }
0x12b3   :  { %v6211_v14 = vsel %vm90_vm0, %v12541_v36, 0.0 }
0x12b4   :  { %6212 = vadd.xlane.f32.xlu1 %v6211_v14 }
0x12d3   :  { %v6126_v15 = vpop.xlane.xlu0 %6125 }
0x12d4   :  { %v6216_v33 = vmul.f32 0.03125, %v6126_v15 }
0x12d6   :  { %v12546_v8 = vsub.f32 %v12295_v26, %v6216_v33 }
0x12d7   :  { %v6129_v35 = vpop.xlane.xlu1 %6128 }
0x12d8   :  { %v6217_v51 = vmul.f32 0.03125, %v6129_v35  ;;  %v6120_v38 = vpop.xlane.xlu0 %6119  ;;  %v6280_v1 = vmul.f32 %v12546_v8, %v12546_v8 }
0x12d9   :  { %v6214_v19 = vmul.f32 0.03125, %v6120_v38 }
0x12da   :  { %v12551_v16 = vsub.f32 %v12306_v43, %v6217_v51  ;;  %v6316_v59 = vsel %vm90_vm0, %v6280_v1, 0.0 }
0x12db   :  { %v12555_v20 = vsub.f32 %v12310_v58, %v6214_v19  ;;  %v6123_v63 = vpop.xlane.xlu1 %6122  ;;  %6317 = vadd.xlane.f32.xlu0 %v6316_v59 }
0x12dc   :  { %v6215_v49 = vmul.f32 0.03125, %v6123_v63  ;;  %v6138_v26 = vpop.xlane.xlu0 %6137  ;;  %v6281_v4 = vmul.f32 %v12551_v16, %v12551_v16 }
0x12dd   :  { %v6220_v44 = vmul.f32 0.03125, %v6138_v26  ;;  %v6278_v21 = vmul.f32 %v12555_v20, %v12555_v20 }
0x12de   :  { %v12562_v37 = vsub.f32 %v12322_v3, %v6215_v49  ;;  %v6319_v43 = vsel %vm90_vm0, %v6281_v4, 0.0 }
0x12df   :  { %v12566_v56 = vsub.f32 %v12326_v48, %v6220_v44  ;;  %6320 = vadd.xlane.f32.xlu1 %v6319_v43  ;;  %v6141_v58 = vpop.xlane.xlu1 %6140  ;;  %v6310_v18 = vsel %vm90_vm0, %v6278_v21, 0.0 }
0x12e0   :  { %v6221_v39 = vmul.f32 0.03125, %v6141_v58  ;;  %6311 = vadd.xlane.f32.xlu0 %v6310_v18  ;;  %v6132_v12 = vpop.xlane.xlu0 %6131  ;;  %v6279_v2 = vmul.f32 %v12562_v37, %v12562_v37 }
0x12e1   :  { %v6218_v17 = vmul.f32 0.03125, %v6132_v12  ;;  %v6284_v3 = vmul.f32 %v12566_v56, %v12566_v56 }
0x12e2   :  { %v12574_v61 = vsub.f32 %v12338_v31, %v6221_v39  ;;  %v6313_v48 = vsel %vm90_vm0, %v6279_v2, 0.0 }
0x12e3   :  { %v12578_v10 = vsub.f32 %v12341_v57, %v6218_v17  ;;  %6314 = vadd.xlane.f32.xlu1 %v6313_v48  ;;  %v6328_v45 = vsel %vm90_vm0, %v6284_v3, 0.0 }
0x12e4   :  { %v6135_v47 = vpop.xlane.xlu1 %6134  ;;  %6329 = vadd.xlane.f32.xlu0 %v6328_v45  ;;  %v6150_v13 = vpop.xlane.xlu0 %6149  ;;  %v6285_v0 = vmul.f32 %v12574_v61, %v12574_v61 }
0x12e5   :  { %v6219_v32 = vmul.f32 0.03125, %v6135_v47  ;;  %v6224_v60 = vmul.f32 0.03125, %v6150_v13  ;;  %v6282_v31 = vmul.f32 %v12578_v10, %v12578_v10 }
0x12e6   :  { %v6331_v14 = vsel %vm90_vm0, %v6285_v0, 0.0 }
0x12e7   :  { %v12587_v15 = vsub.f32 %v12355_v52, %v6219_v32  ;;  %v12590_v57 = vsub.f32 %v12358_v62, %v6224_v60  ;;  %6332 = vadd.xlane.f32.xlu1 %v6331_v14  ;;  %v6322_v33 = vsel %vm90_vm0, %v6282_v31, 0.0 }
0x12e8   :  { %v6153_v35 = vpop.xlane.xlu1 %6152  ;;  %6323 = vadd.xlane.f32.xlu0 %v6322_v33  ;;  %v6144_v51 = vpop.xlane.xlu0 %6143 }
0x12e9   :  { %v6225_v38 = vmul.f32 0.03125, %v6153_v35  ;;  %v6222_v1 = vmul.f32 0.03125, %v6144_v51  ;;  %v6283_v19 = vmul.f32 %v12587_v15, %v12587_v15  ;;  %v6288_v59 = vmul.f32 %v12590_v57, %v12590_v57 }
0x12eb   :  { %v12598_v52 = vsub.f32 %v12369_v54, %v6225_v38  ;;  %v12601_v62 = vsub.f32 %v12373_v53, %v6222_v1  ;;  %v6325_v63 = vsel %vm90_vm0, %v6283_v19, 0.0  ;;  %v6340_v49 = vsel %vm90_vm0, %v6288_v59, 0.0 }
0x12ec   :  { %6326 = vadd.xlane.f32.xlu1 %v6325_v63  ;;  %v6147_v26 = vpop.xlane.xlu1 %6146  ;;  %6341 = vadd.xlane.f32.xlu0 %v6340_v49 }
0x12ed   :  { %v6223_v4 = vmul.f32 0.03125, %v6147_v26  ;;  %v6289_v44 = vmul.f32 %v12598_v52, %v12598_v52  ;;  %v6286_v21 = vmul.f32 %v12601_v62, %v12601_v62 }
0x12ef   :  { %v12610_v54 = vsub.f32 %v12381_v22, %v6223_v4  ;;  %v6343_v53 = vsel %vm90_vm0, %v6289_v44, 0.0  ;;  %v6334_v43 = vsel %vm90_vm0, %v6286_v21, 0.0 }
0x12f0   :  { %6344 = vadd.xlane.f32.xlu1 %v6343_v53  ;;  %6335 = vadd.xlane.f32.xlu0 %v6334_v43 }
0x12f1   :  { %v6287_v58 = vmul.f32 %v12610_v54, %v12610_v54 }
0x12f3   :  { %v6337_v18 = vsel %vm90_vm0, %v6287_v58, 0.0  ;;  %v6162_v39 = vpop.xlane.xlu0 %6161 }
0x12f4   :  { %6338 = vadd.xlane.f32.xlu1 %v6337_v18  ;;  %v6228_v12 = vmul.f32 0.03125, %v6162_v39 }
0x12f6   :  { %v12618_v2 = vsub.f32 %v12391_v46, %v6228_v12 }
0x12f7   :  { %v6165_v17 = vpop.xlane.xlu1 %6164 }
0x12f8   :  { %v6229_v22 = vmul.f32 0.03125, %v6165_v17  ;;  %v6156_v3 = vpop.xlane.xlu0 %6155  ;;  %v6292_v48 = vmul.f32 %v12618_v2, %v12618_v2 }
0x12f9   :  { %v6226_v45 = vmul.f32 0.03125, %v6156_v3 }
0x12fa   :  { %v12623_v47 = vsub.f32 %v12401_v41, %v6229_v22  ;;  %v6352_v13 = vsel %vm90_vm0, %v6292_v48, 0.0 }
0x12fb   :  { %v12627_v0 = vsub.f32 %v12405_v24, %v6226_v45  ;;  %v6159_v32 = vpop.xlane.xlu1 %6158  ;;  %6353 = vadd.xlane.f32.xlu0 %v6352_v13 }
0x12fc   :  { %v6227_v60 = vmul.f32 0.03125, %v6159_v32  ;;  %v6293_v46 = vmul.f32 %v12623_v47, %v12623_v47 }
0x12fd   :  { %v6290_v31 = vmul.f32 %v12627_v0, %v12627_v0 }
0x12fe   :  { %v12634_v14 = vsub.f32 %v12413_v40, %v6227_v60  ;;  %v6355_v41 = vsel %vm90_vm0, %v6293_v46, 0.0 }
0x12ff   :  { %6356 = vadd.xlane.f32.xlu1 %v6355_v41  ;;  %v6346_v33 = vsel %vm90_vm0, %v6290_v31, 0.0 }
0x1300   :  { %6347 = vadd.xlane.f32.xlu0 %v6346_v33  ;;  %v6291_v24 = vmul.f32 %v12634_v14, %v12634_v14 }
0x1302   :  { %v6349_v35 = vsel %vm90_vm0, %v6291_v24, 0.0 }
0x1303   :  { %6350 = vadd.xlane.f32.xlu1 %v6349_v35  ;;  %v6174_v51 = vpop.xlane.xlu0 %6173 }
0x1304   :  { %v6232_v38 = vmul.f32 0.03125, %v6174_v51 }
0x1306   :  { %v12642_v1 = vsub.f32 %v12423_v27, %v6232_v38 }
0x1307   :  { %v6177_v19 = vpop.xlane.xlu1 %6176 }
0x1308   :  { %v6233_v40 = vmul.f32 0.03125, %v6177_v19  ;;  %v6168_v59 = vpop.xlane.xlu0 %6167  ;;  %v6296_v63 = vmul.f32 %v12642_v1, %v12642_v1 }
0x1309   :  { %v6230_v49 = vmul.f32 0.03125, %v6168_v59 }
0x130a   :  { %v12647_v26 = vsub.f32 %v12433_v55, %v6233_v40  ;;  %v6364_v4 = vsel %vm90_vm0, %v6296_v63, 0.0 }
0x130b   :  { %v12651_v44 = vsub.f32 %v12437_v42, %v6230_v49  ;;  %v6171_v21 = vpop.xlane.xlu1 %6170  ;;  %6365 = vadd.xlane.f32.xlu0 %v6364_v4 }
0x130c   :  { %v6231_v53 = vmul.f32 0.03125, %v6171_v21  ;;  %v6297_v27 = vmul.f32 %v12647_v26, %v12647_v26 }
0x130d   :  { %v6294_v43 = vmul.f32 %v12651_v44, %v12651_v44 }
0x130e   :  { %v12658_v58 = vsub.f32 %v12445_v30, %v6231_v53  ;;  %v6367_v55 = vsel %vm90_vm0, %v6297_v27, 0.0 }
0x130f   :  { %6368 = vadd.xlane.f32.xlu1 %v6367_v55  ;;  %v6358_v18 = vsel %vm90_vm0, %v6294_v43, 0.0 }
0x1310   :  { %6359 = vadd.xlane.f32.xlu0 %v6358_v18  ;;  %v6295_v42 = vmul.f32 %v12658_v58, %v12658_v58 }
0x1312   :  { %v6361_v39 = vsel %vm90_vm0, %v6295_v42, 0.0 }
0x1313   :  { %6362 = vadd.xlane.f32.xlu1 %v6361_v39  ;;  %v6186_v12 = vpop.xlane.xlu0 %6185 }
0x1314   :  { %v6236_v17 = vmul.f32 0.03125, %v6186_v12 }
0x1316   :  { %v12666_v22 = vsub.f32 %v12455_v23, %v6236_v17 }
0x1317   :  { %v6189_v3 = vpop.xlane.xlu1 %6188 }
0x1318   :  { %v6237_v30 = vmul.f32 0.03125, %v6189_v3  ;;  %v6180_v48 = vpop.xlane.xlu0 %6179  ;;  %v6300_v45 = vmul.f32 %v12666_v22, %v12666_v22 }
0x1319   :  { %v6234_v13 = vmul.f32 0.03125, %v6180_v48 }
0x131a   :  { %v12671_v32 = vsub.f32 %v12465_v11, %v6237_v30  ;;  %v6376_v60 = vsel %vm90_vm0, %v6300_v45, 0.0 }
0x131b   :  { %v12675_v46 = vsub.f32 %v12469_v25, %v6234_v13  ;;  %v6183_v31 = vpop.xlane.xlu1 %6182  ;;  %6377 = vadd.xlane.f32.xlu0 %v6376_v60 }
0x131c   :  { %v6235_v41 = vmul.f32 0.03125, %v6183_v31  ;;  %v6301_v23 = vmul.f32 %v12671_v32, %v12671_v32 }
0x131d   :  { %v6298_v33 = vmul.f32 %v12675_v46, %v12675_v46 }
0x131e   :  { %v12682_v24 = vsub.f32 %v12477_v9, %v6235_v41  ;;  %v6379_v11 = vsel %vm90_vm0, %v6301_v23, 0.0 }
0x131f   :  { %6380 = vadd.xlane.f32.xlu1 %v6379_v11  ;;  %v6370_v35 = vsel %vm90_vm0, %v6298_v33, 0.0 }
0x1320   :  { %6371 = vadd.xlane.f32.xlu0 %v6370_v35  ;;  %v6299_v25 = vmul.f32 %v12682_v24, %v12682_v24 }
0x1322   :  { %v6373_v51 = vsel %vm90_vm0, %v6299_v25, 0.0 }
0x1323   :  { %6374 = vadd.xlane.f32.xlu1 %v6373_v51  ;;  %v6198_v38 = vpop.xlane.xlu0 %6197 }
0x1324   :  { %v6240_v19 = vmul.f32 0.03125, %v6198_v38 }
0x1326   :  { %v12690_v40 = vsub.f32 %v12487_v34, %v6240_v19 }
0x1328   :  { %v6201_v59 = vpop.xlane.xlu1 %6200  ;;  %v6192_v9 = vpop.xlane.xlu0 %6191  ;;  %v6304_v63 = vmul.f32 %v12690_v40, %v12690_v40 }
0x1329   :  { %v6241_v49 = vmul.f32 0.03125, %v6201_v59  ;;  %v6238_v4 = vmul.f32 0.03125, %v6192_v9 }
0x132a   :  { %v6388_v21 = vsel %vm90_vm0, %v6304_v63, 0.0 }
0x132b   :  { %v12696_v53 = vsub.f32 %v12498_v7, %v6241_v49  ;;  %v12699_v27 = vsub.f32 %v12501_v50, %v6238_v4  ;;  %6389 = vadd.xlane.f32.xlu0 %v6388_v21 }
0x132c   :  { %v6195_v43 = vpop.xlane.xlu1 %6194 }
0x132d   :  { %v6239_v55 = vmul.f32 0.03125, %v6195_v43  ;;  %v6305_v34 = vmul.f32 %v12696_v53, %v12696_v53  ;;  %v6302_v18 = vmul.f32 %v12699_v27, %v12699_v27 }
0x132f   :  { %v12706_v42 = vsub.f32 %v12509_v28, %v6239_v55  ;;  %v6391_v39 = vsel %vm90_vm0, %v6305_v34, 0.0  ;;  %v6382_v7 = vsel %vm90_vm0, %v6302_v18, 0.0 }
0x1330   :  { %6392 = vadd.xlane.f32.xlu1 %v6391_v39  ;;  %6383 = vadd.xlane.f32.xlu0 %v6382_v7 }
0x1331   :  { %v6303_v50 = vmul.f32 %v12706_v42, %v12706_v42 }
0x1333   :  { %v6385_v12 = vsel %vm90_vm0, %v6303_v50, 0.0 }
0x1334   :  { %6386 = vadd.xlane.f32.xlu1 %v6385_v12 }
0x1335   :  { %v6204_v17 = vpop.xlane.xlu0 %6203 }
0x1336   :  { %v6242_v3 = vmul.f32 0.03125, %v6204_v17 }
0x1338   :  { %v12714_v30 = vsub.f32 %v12519_v29, %v6242_v3 }
0x1339   :  { %v6207_v48 = vpop.xlane.xlu1 %6206 }
0x133a   :  { %v6243_v28 = vmul.f32 0.03125, %v6207_v48  ;;  %v6210_v45 = vpop.xlane.xlu0 %6209  ;;  %v6306_v13 = vmul.f32 %v12714_v30, %v12714_v30 }
0x133b   :  { %v6244_v60 = vmul.f32 0.03125, %v6210_v45 }
0x133c   :  { %v12719_v31 = vsub.f32 %v12529_v5, %v6243_v28  ;;  %v6394_v41 = vsel %vm90_vm0, %v6306_v13, 0.0  ;;  %v8414_v13 = vld [vmem:[%s12972_s5 + $0x20] sm:$0xff] }
0x133d   :  { %v12723_v23 = vsub.f32 %v12533_v6, %v6244_v60  ;;  %v6213_v33 = vpop.xlane.xlu1 %6212  ;;  %6395 = vadd.xlane.f32.xlu0 %v6394_v41  ;;  %v13183_v60 = vld [vmem:[#allocation4_spill] sm:$0xff] }
0x133e   :  { %v6245_v11 = vmul.f32 0.03125, %v6213_v33  ;;  %v6307_v29 = vmul.f32 %v12719_v31, %v12719_v31  ;;  %v12741_v41 = vrot.slane %v8414_v13, %v13183_v60 }
0x133f   :  { %v6308_v35 = vmul.f32 %v12723_v23, %v12723_v23 }
0x1340   :  { %v12730_v25 = vsub.f32 %v12541_v36, %v6245_v11  ;;  %v6397_v5 = vsel %vm90_vm0, %v6307_v29, 0.0 }
0x1341   :  { %6398 = vadd.xlane.f32.xlu1 %v6397_v5  ;;  %v6400_v51 = vsel %vm90_vm0, %v6308_v35, 0.0 }
0x1342   :  { %6401 = vadd.xlane.f32.xlu0 %v6400_v51  ;;  %v6309_v6 = vmul.f32 %v12730_v25, %v12730_v25  ;;  %v13184_v51 = vld [vmem:[#allocation5_spill] sm:$0xff] }
0x1344   :  { %v6403_v38 = vsel %vm90_vm0, %v6309_v6, 0.0  ;;  %v12744_v6 = vrot.slane %v8414_v13, %v13184_v51 }
0x1345   :  { %6404 = vadd.xlane.f32.xlu1 %v6403_v38 }
0x1364   :  { %v6318_v19 = vpop.xlane.xlu0 %6317 }
0x1365   :  { %v6408_v59 = vmul.f32 0.03125, %v6318_v19 }
0x1367   :  { %v6440_v9 = vadd.f32 1e-05, %v6408_v59 }
0x1368   :  { %v6321_v63 = vpop.xlane.xlu1 %6320 }
0x1369   :  { %8282 = vrsqrt.f32 %v6440_v9  ;;  %v6409_v49 = vmul.f32 0.03125, %v6321_v63  ;;  %v6312_v36 = vpop.xlane.xlu0 %6311 }
0x136a   :  { %v6406_v4 = vmul.f32 0.03125, %v6312_v36 }
0x136b   :  { %v6441_v21 = vadd.f32 1e-05, %v6409_v49 }
0x136c   :  { %v6438_v43 = vadd.f32 1e-05, %v6406_v4  ;;  %v6315_v55 = vpop.xlane.xlu1 %6314 }
0x136d   :  { %8284 = vrsqrt.f32 %v6441_v21  ;;  %v6407_v34 = vmul.f32 0.03125, %v6315_v55  ;;  %v6330_v18 = vpop.xlane.xlu0 %6329 }
0x136e   :  { %8286 = vrsqrt.f32 %v6438_v43  ;;  %v6412_v39 = vmul.f32 0.03125, %v6330_v18 }
0x136f   :  { %v6439_v7 = vadd.f32 1e-05, %v6407_v34 }
0x1370   :  { %v6444_v50 = vadd.f32 1e-05, %v6412_v39  ;;  %v6333_v12 = vpop.xlane.xlu1 %6332 }
0x1371   :  { %8288 = vrsqrt.f32 %v6439_v7  ;;  %v6413_v17 = vmul.f32 0.03125, %v6333_v12  ;;  %v6324_v3 = vpop.xlane.xlu0 %6323 }
0x1372   :  { %8290 = vrsqrt.f32 %v6444_v50  ;;  %v6410_v48 = vmul.f32 0.03125, %v6324_v3 }
0x1373   :  { %v6445_v28 = vadd.f32 1e-05, %v6413_v17 }
0x1374   :  { %v6442_v45 = vadd.f32 1e-05, %v6410_v48 }
0x1375   :  { %8292 = vrsqrt.f32 %v6445_v28  ;;  %v6327_v33 = vpop.xlane.xlu1 %6326  ;;  %v6342_v11 = vpop.xlane.xlu0 %6341 }
0x1376   :  { %v8283_v29 = vpop.eup %8282  ;;  %8294 = vrsqrt.f32 %v6442_v45  ;;  %v6411_v35 = vmul.f32 0.03125, %v6327_v33  ;;  %v6416_v5 = vmul.f32 0.03125, %v6342_v11 }
0x1377   :  { %v6504_v38 = vmul.f32 %v8283_v29, %v12546_v8 }
0x1378   :  { %v6443_v19 = vadd.f32 1e-05, %v6411_v35  ;;  %v6448_v59 = vadd.f32 1e-05, %v6416_v5 }
0x1379   :  { %v6540_v9 = vmul.f32 %v12741_v41, %v6504_v38  ;;  %v6345_v63 = vpop.xlane.xlu1 %6344  ;;  %v6336_v49 = vpop.xlane.xlu0 %6335 }
0x137a   :  { %v8285_v36 = vpop.eup %8284  ;;  %8296 = vrsqrt.f32 %v6443_v19  ;;  %v6417_v4 = vmul.f32 0.03125, %v6345_v63  ;;  %v6414_v21 = vmul.f32 0.03125, %v6336_v49 }
0x137b   :  { %v8287_v43 = vpop.eup %8286  ;;  %v6576_v55 = vadd.f32 %v12744_v6, %v6540_v9  ;;  %v6505_v34 = vmul.f32 %v8285_v36, %v12551_v16  ;;  %8298 = vrsqrt.f32 %v6448_v59 }
0x137c   :  { %v6502_v18 = vmul.f32 %v8287_v43, %v12555_v20  ;;  %v6449_v39 = vadd.f32 1e-05, %v6417_v4  ;;  %v6446_v8 = vadd.f32 1e-05, %v6414_v21 }
0x137d   :  { %6608 = vst.msk [vmem:[%s12976_s6 + $0x10] sm:$0xff] %vm90_vm0, %v6576_v55  ;;  %v6541_v7 = vmul.f32 %v12741_v41, %v6505_v34  ;;  %v6339_v50 = vpop.xlane.xlu1 %6338 }
0x137e   :  { %v8289_v12 = vpop.eup %8288  ;;  %v6538_v17 = vmul.f32 %v12741_v41, %v6502_v18  ;;  %8300 = vrsqrt.f32 %v6449_v39  ;;  %v6415_v3 = vmul.f32 0.03125, %v6339_v50 }
0x137f   :  { %v8291_v48 = vpop.eup %8290  ;;  %v6577_v16 = vadd.f32 %v12744_v6, %v6541_v7  ;;  %v6503_v20 = vmul.f32 %v8289_v12, %v12562_v37  ;;  %8302 = vrsqrt.f32 %v6446_v8 }
0x1380   :  { %v6574_v28 = vadd.f32 %v12744_v6, %v6538_v17  ;;  %v6508_v45 = vmul.f32 %v8291_v48, %v12566_v56  ;;  %v6447_v13 = vadd.f32 1e-05, %v6415_v3 }
0x1381   :  { %6609 = vst.msk [vmem:[%s12976_s6 + $0x18] sm:$0xff] %vm90_vm0, %v6577_v16  ;;  %v6539_v60 = vmul.f32 %v12741_v41, %v6503_v20 }
0x1382   :  { %v8293_v33 = vpop.eup %8292  ;;  %6606 = vst.msk [vmem:[%s12976_s6] sm:$0xff] %vm90_vm0, %v6574_v28  ;;  %v6544_v37 = vmul.f32 %v12741_v41, %v6508_v45  ;;  %8304 = vrsqrt.f32 %v6447_v13 }
0x1383   :  { %v8295_v11 = vpop.eup %8294  ;;  %v6575_v56 = vadd.f32 %v12744_v6, %v6539_v60  ;;  %v6509_v29 = vmul.f32 %v8293_v33, %v12574_v61 }
0x1384   :  { %v6580_v35 = vadd.f32 %v12744_v6, %v6544_v37  ;;  %v6506_v5 = vmul.f32 %v8295_v11, %v12578_v10  ;;  %v6354_v51 = vpop.xlane.xlu0 %6353 }
0x1385   :  { %6607 = vst.msk [vmem:[%s12976_s6 + $0x8] sm:$0xff] %vm90_vm0, %v6575_v56  ;;  %v6545_v38 = vmul.f32 %v12741_v41, %v6509_v29  ;;  %v6420_v19 = vmul.f32 0.03125, %v6354_v51 }
0x1386   :  { %6612 = vst.msk [vmem:[%s12976_s6 + $0x30] sm:$0xff] %vm90_vm0, %v6580_v35  ;;  %v6542_v61 = vmul.f32 %v12741_v41, %v6506_v5 }
0x1387   :  { %v8297_v59 = vpop.eup %8296  ;;  %v6581_v9 = vadd.f32 %v12744_v6, %v6545_v38  ;;  %v6452_v10 = vadd.f32 1e-05, %v6420_v19 }
0x1388   :  { %v8299_v63 = vpop.eup %8298  ;;  %v6578_v49 = vadd.f32 %v12744_v6, %v6542_v61  ;;  %v6507_v36 = vmul.f32 %v8297_v59, %v12587_v15  ;;  %v6357_v4 = vpop.xlane.xlu1 %6356 }
0x1389   :  { %6613 = vst.msk [vmem:[%s12976_s6 + $0x38] sm:$0xff] %vm90_vm0, %v6581_v9  ;;  %v6512_v21 = vmul.f32 %v8299_v63, %v12590_v57  ;;  %8306 = vrsqrt.f32 %v6452_v10  ;;  %v6421_v43 = vmul.f32 0.03125, %v6357_v4  ;;  %v6348_v55 = vpop.xlane.xlu0 %6347 }
0x138a   :  { %6610 = vst.msk [vmem:[%s12976_s6 + $0x20] sm:$0xff] %vm90_vm0, %v6578_v49  ;;  %v6543_v34 = vmul.f32 %v12741_v41, %v6507_v36  ;;  %v6418_v18 = vmul.f32 0.03125, %v6348_v55 }
0x138b   :  { %v8301_v15 = vpop.eup %8300  ;;  %v6548_v39 = vmul.f32 %v12741_v41, %v6512_v21  ;;  %v6453_v8 = vadd.f32 1e-05, %v6421_v43 }
0x138c   :  { %v8303_v7 = vpop.eup %8302  ;;  %v6579_v50 = vadd.f32 %v12744_v6, %v6543_v34  ;;  %v6513_v57 = vmul.f32 %v8301_v15, %v12598_v52  ;;  %v6450_v12 = vadd.f32 1e-05, %v6418_v18  ;;  %v6351_v17 = vpop.xlane.xlu1 %6350 }
0x138d   :  { %v6584_v3 = vadd.f32 %v12744_v6, %v6548_v39  ;;  %v6510_v48 = vmul.f32 %v8303_v7, %v12601_v62  ;;  %8308 = vrsqrt.f32 %v6453_v8  ;;  %v6419_v16 = vmul.f32 0.03125, %v6351_v17 }
0x138e   :  { %6611 = vst.msk [vmem:[%s12976_s6 + $0x28] sm:$0xff] %vm90_vm0, %v6579_v50  ;;  %v6549_v20 = vmul.f32 %v12741_v41, %v6513_v57  ;;  %8310 = vrsqrt.f32 %v6450_v12 }
0x138f   :  { %v8305_v28 = vpop.eup %8304  ;;  %6616 = vst.msk [vmem:[%s12976_s6 + $0x50] sm:$0xff] %vm90_vm0, %v6584_v3  ;;  %v6546_v52 = vmul.f32 %v12741_v41, %v6510_v48  ;;  %v6451_v45 = vadd.f32 1e-05, %v6419_v16 }
0x1390   :  { %v6585_v62 = vadd.f32 %v12744_v6, %v6549_v20  ;;  %v6511_v13 = vmul.f32 %v8305_v28, %v12610_v54 }
0x1391   :  { %v6582_v60 = vadd.f32 %v12744_v6, %v6546_v52  ;;  %8312 = vrsqrt.f32 %v6451_v45 }
0x1392   :  { %6617 = vst.msk [vmem:[%s12976_s6 + $0x58] sm:$0xff] %vm90_vm0, %v6585_v62  ;;  %v6547_v33 = vmul.f32 %v12741_v41, %v6511_v13 }
0x1393   :  { %6614 = vst.msk [vmem:[%s12976_s6 + $0x40] sm:$0xff] %vm90_vm0, %v6582_v60 }
0x1394   :  { %v6583_v37 = vadd.f32 %v12744_v6, %v6547_v33  ;;  %v6366_v11 = vpop.xlane.xlu0 %6365 }
0x1395   :  { %v6424_v56 = vmul.f32 0.03125, %v6366_v11 }
0x1396   :  { %v8307_v54 = vpop.eup %8306  ;;  %6615 = vst.msk [vmem:[%s12976_s6 + $0x48] sm:$0xff] %vm90_vm0, %v6583_v37 }
0x1397   :  { %v6516_v29 = vmul.f32 %v8307_v54, %v12618_v2  ;;  %v6456_v35 = vadd.f32 1e-05, %v6424_v56 }
0x1398   :  { %v6369_v5 = vpop.xlane.xlu1 %6368 }
0x1399   :  { %v6552_v51 = vmul.f32 %v12741_v41, %v6516_v29  ;;  %8314 = vrsqrt.f32 %v6456_v35  ;;  %v6425_v38 = vmul.f32 0.03125, %v6369_v5  ;;  %v6360_v19 = vpop.xlane.xlu0 %6359 }
0x139a   :  { %v8309_v61 = vpop.eup %8308  ;;  %v6422_v59 = vmul.f32 0.03125, %v6360_v19 }
0x139b   :  { %v8311_v9 = vpop.eup %8310  ;;  %v6588_v10 = vadd.f32 %v12744_v6, %v6552_v51  ;;  %v6517_v63 = vmul.f32 %v8309_v61, %v12623_v47  ;;  %v6457_v49 = vadd.f32 1e-05, %v6425_v38 }
0x139c   :  { %v6514_v36 = vmul.f32 %v8311_v9, %v12627_v0  ;;  %v6454_v4 = vadd.f32 1e-05, %v6422_v59  ;;  %v6363_v21 = vpop.xlane.xlu1 %6362 }
0x139d   :  { %6620 = vst.msk [vmem:[%s12976_s6 + $0x70] sm:$0xff] %vm90_vm0, %v6588_v10  ;;  %v6553_v2 = vmul.f32 %v12741_v41, %v6517_v63  ;;  %8316 = vrsqrt.f32 %v6457_v49  ;;  %v6423_v43 = vmul.f32 0.03125, %v6363_v21 }
0x139e   :  { %v8313_v55 = vpop.eup %8312  ;;  %v6550_v34 = vmul.f32 %v12741_v41, %v6514_v36  ;;  %8318 = vrsqrt.f32 %v6454_v4 }
0x139f   :  { %v6589_v47 = vadd.f32 %v12744_v6, %v6553_v2  ;;  %v6515_v18 = vmul.f32 %v8313_v55, %v12634_v14  ;;  %v6455_v0 = vadd.f32 1e-05, %v6423_v43 }
0x13a0   :  { %v6586_v15 = vadd.f32 %v12744_v6, %v6550_v34 }
0x13a1   :  { %6621 = vst.msk [vmem:[%s12976_s6 + $0x78] sm:$0xff] %vm90_vm0, %v6589_v47  ;;  %v6551_v39 = vmul.f32 %v12741_v41, %v6515_v18  ;;  %8320 = vrsqrt.f32 %v6455_v0 }
0x13a2   :  { %6618 = vst.msk [vmem:[%s12976_s6 + $0x60] sm:$0xff] %vm90_vm0, %v6586_v15 }
0x13a3   :  { %v6587_v8 = vadd.f32 %v12744_v6, %v6551_v39 }
0x13a4   :  { %v6378_v7 = vpop.xlane.xlu0 %6377 }
0x13a5   :  { %6619 = vst.msk [vmem:[%s12976_s6 + $0x68] sm:$0xff] %vm90_vm0, %v6587_v8  ;;  %v6428_v14 = vmul.f32 0.03125, %v6378_v7 }
0x13a6   :  { %v8315_v50 = vpop.eup %8314 }
0x13a7   :  { %v6520_v57 = vmul.f32 %v8315_v50, %v12642_v1  ;;  %v6460_v12 = vadd.f32 1e-05, %v6428_v14 }
0x13a8   :  { %v6381_v17 = vpop.xlane.xlu1 %6380 }
0x13a9   :  { %v6556_v3 = vmul.f32 %v12741_v41, %v6520_v57  ;;  %8322 = vrsqrt.f32 %v6460_v12  ;;  %v6429_v48 = vmul.f32 0.03125, %v6381_v17  ;;  %v6372_v16 = vpop.xlane.xlu0 %6371 }
0x13aa   :  { %v8317_v20 = vpop.eup %8316  ;;  %v6426_v28 = vmul.f32 0.03125, %v6372_v16 }
0x13ab   :  { %v8319_v52 = vpop.eup %8318  ;;  %v6592_v45 = vadd.f32 %v12744_v6, %v6556_v3  ;;  %v6521_v62 = vmul.f32 %v8317_v20, %v12647_v26  ;;  %v6461_v13 = vadd.f32 1e-05, %v6429_v48 }
0x13ac   :  { %v6518_v60 = vmul.f32 %v8319_v52, %v12651_v44  ;;  %v6458_v33 = vadd.f32 1e-05, %v6426_v28  ;;  %v6375_v37 = vpop.xlane.xlu1 %6374 }
0x13ad   :  { %6624 = vst.msk [vmem:[%s12976_s6 + $0x90] sm:$0xff] %vm90_vm0, %v6592_v45  ;;  %v6557_v1 = vmul.f32 %v12741_v41, %v6521_v62  ;;  %8324 = vrsqrt.f32 %v6461_v13  ;;  %v6427_v11 = vmul.f32 0.03125, %v6375_v37 }
0x13ae   :  { %v8321_v56 = vpop.eup %8320  ;;  %v6554_v54 = vmul.f32 %v12741_v41, %v6518_v60  ;;  %8326 = vrsqrt.f32 %v6458_v33 }
0x13af   :  { %v6593_v26 = vadd.f32 %v12744_v6, %v6557_v1  ;;  %v6519_v29 = vmul.f32 %v8321_v56, %v12658_v58  ;;  %v6459_v44 = vadd.f32 1e-05, %v6427_v11 }
0x13b0   :  { %v6590_v35 = vadd.f32 %v12744_v6, %v6554_v54 }
0x13b1   :  { %6625 = vst.msk [vmem:[%s12976_s6 + $0x98] sm:$0xff] %vm90_vm0, %v6593_v26  ;;  %v6555_v5 = vmul.f32 %v12741_v41, %v6519_v29  ;;  %8328 = vrsqrt.f32 %v6459_v44 }
0x13b2   :  { %6622 = vst.msk [vmem:[%s12976_s6 + $0x80] sm:$0xff] %vm90_vm0, %v6590_v35 }
0x13b3   :  { %v6591_v51 = vadd.f32 %v12744_v6, %v6555_v5 }
0x13b4   :  { %v6390_v38 = vpop.xlane.xlu0 %6389 }
0x13b5   :  { %6623 = vst.msk [vmem:[%s12976_s6 + $0x88] sm:$0xff] %vm90_vm0, %v6591_v51  ;;  %v6432_v58 = vmul.f32 0.03125, %v6390_v38 }
0x13b6   :  { %v8323_v19 = vpop.eup %8322 }
0x13b7   :  { %v6524_v61 = vmul.f32 %v8323_v19, %v12666_v22  ;;  %v6464_v59 = vadd.f32 1e-05, %v6432_v58 }
0x13b9   :  { %v6560_v9 = vmul.f32 %v12741_v41, %v6524_v61  ;;  %8330 = vrsqrt.f32 %v6464_v59  ;;  %v6393_v10 = vpop.xlane.xlu1 %6392  ;;  %v6384_v63 = vpop.xlane.xlu0 %6383 }
0x13ba   :  { %v8325_v49 = vpop.eup %8324  ;;  %v6433_v36 = vmul.f32 0.03125, %v6393_v10  ;;  %v6430_v4 = vmul.f32 0.03125, %v6384_v63 }
0x13bb   :  { %v8327_v21 = vpop.eup %8326  ;;  %v6596_v2 = vadd.f32 %v12744_v6, %v6560_v9  ;;  %v6525_v43 = vmul.f32 %v8325_v49, %v12671_v32 }
0x13bc   :  { %v6522_v55 = vmul.f32 %v8327_v21, %v12675_v46  ;;  %v6465_v34 = vadd.f32 1e-05, %v6433_v36  ;;  %v6462_v47 = vadd.f32 1e-05, %v6430_v4 }
0x13bd   :  { %6628 = vst.msk [vmem:[%s12976_s6 + $0xb0] sm:$0xff] %vm90_vm0, %v6596_v2  ;;  %v6561_v22 = vmul.f32 %v12741_v41, %v6525_v43  ;;  %v6387_v18 = vpop.xlane.xlu1 %6386 }
0x13be   :  { %v8329_v0 = vpop.eup %8328  ;;  %v6558_v15 = vmul.f32 %v12741_v41, %v6522_v55  ;;  %8332 = vrsqrt.f32 %v6465_v34  ;;  %v6431_v39 = vmul.f32 0.03125, %v6387_v18 }
0x13bf   :  { %v6597_v8 = vadd.f32 %v12744_v6, %v6561_v22  ;;  %v6523_v32 = vmul.f32 %v8329_v0, %v12682_v24  ;;  %8334 = vrsqrt.f32 %v6462_v47 }
0x13c0   :  { %v6594_v46 = vadd.f32 %v12744_v6, %v6558_v15  ;;  %v6463_v7 = vadd.f32 1e-05, %v6431_v39 }
0x13c1   :  { %6629 = vst.msk [vmem:[%s12976_s6 + $0xb8] sm:$0xff] %vm90_vm0, %v6597_v8  ;;  %v6559_v14 = vmul.f32 %v12741_v41, %v6523_v32 }
0x13c2   :  { %6626 = vst.msk [vmem:[%s12976_s6 + $0xa0] sm:$0xff] %vm90_vm0, %v6594_v46  ;;  %8336 = vrsqrt.f32 %v6463_v7 }
0x13c3   :  { %v6595_v50 = vadd.f32 %v12744_v6, %v6559_v14 }
0x13c5   :  { %6627 = vst.msk [vmem:[%s12976_s6 + $0xa8] sm:$0xff] %vm90_vm0, %v6595_v50 }
0x13c6   :  { %v8331_v24 = vpop.eup %8330  ;;  %v6396_v57 = vpop.xlane.xlu0 %6395 }
0x13c7   :  { %v6528_v12 = vmul.f32 %v8331_v24, %v12690_v40  ;;  %v6434_v17 = vmul.f32 0.03125, %v6396_v57 }
0x13c9   :  { %v6564_v3 = vmul.f32 %v12741_v41, %v6528_v12  ;;  %v6466_v48 = vadd.f32 1e-05, %v6434_v17 }
0x13ca   :  { %v6399_v16 = vpop.xlane.xlu1 %6398 }
0x13cb   :  { %v8333_v20 = vpop.eup %8332  ;;  %v6600_v28 = vadd.f32 %v12744_v6, %v6564_v3  ;;  %8338 = vrsqrt.f32 %v6466_v48  ;;  %v6435_v52 = vmul.f32 0.03125, %v6399_v16  ;;  %v6402_v45 = vpop.xlane.xlu0 %6401 }
0x13cc   :  { %v8335_v62 = vpop.eup %8334  ;;  %v6529_v13 = vmul.f32 %v8333_v20, %v12696_v53  ;;  %v6436_v60 = vmul.f32 0.03125, %v6402_v45 }
0x13cd   :  { %6632 = vst.msk [vmem:[%s12976_s6 + $0xd0] sm:$0xff] %vm90_vm0, %v6600_v28  ;;  %v6526_v40 = vmul.f32 %v8335_v62, %v12699_v27  ;;  %v6467_v33 = vadd.f32 1e-05, %v6435_v52 }
0x13ce   :  { %v6565_v37 = vmul.f32 %v12741_v41, %v6529_v13  ;;  %v6468_v1 = vadd.f32 1e-05, %v6436_v60  ;;  %v6405_v11 = vpop.xlane.xlu1 %6404 }
0x13cf   :  { %v8337_v56 = vpop.eup %8336  ;;  %v6562_v54 = vmul.f32 %v12741_v41, %v6526_v40  ;;  %8340 = vrsqrt.f32 %v6467_v33  ;;  %v6437_v26 = vmul.f32 0.03125, %v6405_v11 }
0x13d0   :  { %v6601_v53 = vadd.f32 %v12744_v6, %v6565_v37  ;;  %v6527_v29 = vmul.f32 %v8337_v56, %v12706_v42  ;;  %8342 = vrsqrt.f32 %v6468_v1 }
0x13d1   :  { %v6598_v44 = vadd.f32 %v12744_v6, %v6562_v54  ;;  %v6469_v35 = vadd.f32 1e-05, %v6437_v26 }
0x13d2   :  { %6633 = vst.msk [vmem:[%s12976_s6 + $0xd8] sm:$0xff] %vm90_vm0, %v6601_v53  ;;  %v6563_v27 = vmul.f32 %v12741_v41, %v6527_v29 }
0x13d3   :  { %6630 = vst.msk [vmem:[%s12976_s6 + $0xc0] sm:$0xff] %vm90_vm0, %v6598_v44  ;;  %8344 = vrsqrt.f32 %v6469_v35 }
0x13d4   :  { %v6599_v5 = vadd.f32 %v12744_v6, %v6563_v27 }
0x13d6   :  { %6631 = vst.msk [vmem:[%s12976_s6 + $0xc8] sm:$0xff] %vm90_vm0, %v6599_v5 }
0x13d8   :  { %v8339_v42 = vpop.eup %8338 }
0x13d9   :  { %v6530_v51 = vmul.f32 %v8339_v42, %v12714_v30 }
0x13db   :  { %v6566_v38 = vmul.f32 %v12741_v41, %v6530_v51 }
0x13dc   :  { %v8341_v58 = vpop.eup %8340 }
0x13dd   :  { %v8343_v19 = vpop.eup %8342  ;;  %v6602_v61 = vadd.f32 %v12744_v6, %v6566_v38  ;;  %v6531_v59 = vmul.f32 %v8341_v58, %v12719_v31 }
0x13de   :  { %v6532_v9 = vmul.f32 %v8343_v19, %v12723_v23 }
0x13df   :  { %6634 = vst.msk [vmem:[%s12976_s6 + $0xe0] sm:$0xff] %vm90_vm0, %v6602_v61  ;;  %v6567_v10 = vmul.f32 %v12741_v41, %v6531_v59 }
0x13e0   :  { %v8345_v63 = vpop.eup %8344  ;;  %v6568_v30 = vmul.f32 %v12741_v41, %v6532_v9 }
0x13e1   :  { %v6603_v49 = vadd.f32 %v12744_v6, %v6567_v10  ;;  %v6533_v36 = vmul.f32 %v8345_v63, %v12730_v25 }
0x13e2   :  { %v6604_v4 = vadd.f32 %v12744_v6, %v6568_v30 }
0x13e3   :  { %6635 = vst.msk [vmem:[%s12976_s6 + $0xe8] sm:$0xff] %vm90_vm0, %v6603_v49  ;;  %v6569_v31 = vmul.f32 %v12741_v41, %v6533_v36 }
0x13e4   :  { %6636 = vst.msk [vmem:[%s12976_s6 + $0xf0] sm:$0xff] %vm90_vm0, %v6604_v4 }
0x13e5   :  { %v6605_v23 = vadd.f32 %v12744_v6, %v6569_v31 }
0x13e7   :  { %6637 = vst.msk [vmem:[%s12976_s6 + $0xf8] sm:$0xff] %vm90_vm0, %v6605_v23 }

</bundles_post_ra>
